<compile_context>
chip_gen: v6e
topology: v6e:2x2x1
jax: 0.10.0
libtpu: 0.0.40
codegen_flags: <defaults>
</compile_context>

<pallas_src>
import functools

import jax
import jax.numpy as jnp
from jax.experimental import pallas as pl
from jax.experimental.pallas import tpu as pltpu

EPS = 1e-5


# --------------------------------------------------------------------------
# Kernel A: fused BN1 + ReLU + 1x1 conv, with BN2-stat emission.
# --------------------------------------------------------------------------
def _bn_relu_conv1x1_kernel(x_ref, scale_ref, shift_ref, w_ref,
                            h_ref, stat_ref, *, M, tm, masked):
    # x: (tm, Cin), scale/shift: (1, Cin), w: (Cin, Cm)
    a = jnp.maximum(x_ref[...] * scale_ref[...] + shift_ref[...], 0.0)
    if masked:  # ragged tail: zero invalid rows so they don't pollute the stats
        row = jax.lax.broadcasted_iota(jnp.int32, a.shape, 0) + pl.program_id(0) * tm
        a = jnp.where(row < M, a, 0.0)
    h = jnp.dot(a.astype(w_ref.dtype), w_ref[...],
                preferred_element_type=jnp.float32)          # (tm, Cm) f32 accum
    h_ref[...] = h.astype(h_ref.dtype)
    cm = h.shape[1]
    # row 0 = sum, row 1 = sum of squares, rows 2..7 = 0  (tile-friendly 8 rows)
    stat_ref[0] = jnp.concatenate(
        [jnp.sum(h, axis=0, keepdims=True),
         jnp.sum(h * h, axis=0, keepdims=True),
         jnp.zeros((6, cm), jnp.float32)], axis=0)


def _pick_row_tile(M, cap=1024):
    # biggest tile that fits comfortably and divides M (bigger tiles amortize
    # the ~0.35 us per-grid-step overhead); ragged M handled by in-kernel mask.
    for t in (cap, 512, 256, 128, 64, 32, 16, 8):
        if t <= cap and t <= M and M % t == 0:
            return t
    return min(cap, ((M + 7) // 8) * 8)


def bn_relu_conv1x1(x_flat, scale, shift, w, h_dtype):
    # x_flat: (M, Cin) with M = N*H*W ; w: (Cin, Cm) already in matmul dtype.
    M, Cin = x_flat.shape
    Cm = w.shape[1]
    tm = _pick_row_tile(M)
    grid = pl.cdiv(M, tm)
    kernel = functools.partial(_bn_relu_conv1x1_kernel,
                               M=M, tm=tm, masked=(M % tm != 0))
    return pl.pallas_call(
        kernel,
        out_shape=(jax.ShapeDtypeStruct((M, Cm), h_dtype),
                   jax.ShapeDtypeStruct((grid, 8, Cm), jnp.float32)),
        grid=(grid,),
        in_specs=[
            pl.BlockSpec((tm, Cin), lambda i: (i, 0)),
            pl.BlockSpec((1, Cin), lambda i: (0, 0)),
            pl.BlockSpec((1, Cin), lambda i: (0, 0)),
            pl.BlockSpec((Cin, Cm), lambda i: (0, 0)),
        ],
        out_specs=(pl.BlockSpec((tm, Cm), lambda i: (i, 0)),
                   pl.BlockSpec((1, 8, Cm), lambda i: (i, 0, 0))),
        compiler_params=pltpu.CompilerParams(dimension_semantics=("parallel",)),
    )(x_flat, scale.reshape(1, Cin), shift.reshape(1, Cin), w)


# --------------------------------------------------------------------------
# Kernel B: fused BN2 + ReLU + 3x3 conv (pad=1) + DenseNet concat + stats.
# --------------------------------------------------------------------------
def _bn_relu_conv3x3_concat_kernel(x_ref, h_ref, scale_ref, shift_ref, w_ref,
                                   y_ref, stat_ref, ap_ref, *, H, W):
    Cm = h_ref.shape[-1]
    G = w_ref.shape[-1]

    # Zero-padded halo built entirely in VMEM scratch (no HBM pad copy).  The
    # scratch lives in the matmul dtype, so the 9 im2col window reads and the
    # fat patch never materialize in f32 on the bf16 path.  Zeroing every step
    # keeps correctness under megacore splitting of the parallel grid axis.
    ap_ref[...] = jnp.zeros_like(ap_ref)
    a = jnp.maximum(h_ref[0].astype(jnp.float32) * scale_ref[...] + shift_ref[...],
                    0.0)                                        # (H, W, Cm) f32
    ap_ref[pl.ds(1, H), pl.ds(1, W), :] = a.astype(ap_ref.dtype)

    # im2col: 9 shifted windows concatenated on the channel (lane) axis, one
    # reshape, then one fat matmul with K = 9*Cm (feeds the MXU far better
    # than 9 skinny K=Cm dots).  Order (ky, kx, c) matches w2.reshape(9*Cm, G).
    cols = [ap_ref[pl.ds(ky, H), pl.ds(kx, W), :]
            for ky in range(3) for kx in range(3)]
    patch = jnp.concatenate(cols, axis=-1).reshape(H * W, 9 * Cm)
    out = jnp.dot(patch, w_ref[...],
                  preferred_element_type=jnp.float32)           # (H*W, G) f32

    # Fused DenseNet concat: single lane-dense store of [old | new] features,
    # no separate per-layer concatenate pass over HBM.
    y_ref[0] = jnp.concatenate(
        [x_ref[0], out.reshape(H, W, G).astype(y_ref.dtype)], axis=-1)

    # Channel sum / sum-of-squares of the new features -> next layer's BN1
    # stats are extended without re-reading the feature map.
    stat_ref[0] = jnp.concatenate(
        [jnp.sum(out, axis=0, keepdims=True),
         jnp.sum(out * out, axis=0, keepdims=True),
         jnp.zeros((6, G), jnp.float32)], axis=0)


def bn_relu_conv3x3_concat(x, h, scale, shift, w_flat):
    # x: (N, H, W, Cin) NHWC, h: (N, H, W, Cm), w_flat: (9*Cm, G) in matmul dtype.
    N, H, W, Cin = x.shape
    Cm = h.shape[-1]
    G = w_flat.shape[-1]
    kernel = functools.partial(_bn_relu_conv3x3_concat_kernel, H=H, W=W)
    return pl.pallas_call(
        kernel,
        out_shape=(jax.ShapeDtypeStruct((N, H, W, Cin + G), jnp.float32),
                   jax.ShapeDtypeStruct((N, 8, G), jnp.float32)),
        grid=(N,),
        in_specs=[
            pl.BlockSpec((1, H, W, Cin), lambda b: (b, 0, 0, 0)),
            pl.BlockSpec((1, H, W, Cm), lambda b: (b, 0, 0, 0)),
            pl.BlockSpec((1, 1, Cm), lambda b: (0, 0, 0)),
            pl.BlockSpec((1, 1, Cm), lambda b: (0, 0, 0)),
            pl.BlockSpec((9 * Cm, G), lambda b: (0, 0)),
        ],
        out_specs=(pl.BlockSpec((1, H, W, Cin + G), lambda b: (b, 0, 0, 0)),
                   pl.BlockSpec((1, 8, G), lambda b: (b, 0, 0))),
        scratch_shapes=[pltpu.VMEM((H + 2, W + 2, Cm), w_flat.dtype)],
        compiler_params=pltpu.CompilerParams(dimension_semantics=("parallel",)),
    )(x, h, scale.reshape(1, 1, Cm), shift.reshape(1, 1, Cm), w_flat)


# --------------------------------------------------------------------------
# Glue: carry per-channel (sum, sumsq) so BN stats never need extra HBM passes.
# --------------------------------------------------------------------------
def dense_block_forward(x_nchw, params, matmul_dtype=jnp.bfloat16):
    x = jnp.transpose(x_nchw, (0, 2, 3, 1)).astype(jnp.float32)   # NCHW -> NHWC
    N, H, W, _ = x.shape
    cnt = float(N * H * W)
    # one-time prologue: stats of the block input (subsequent channels' stats
    # are emitted by the kernels themselves)
    sum_c = jnp.sum(x, axis=(0, 1, 2))
    sumsq_c = jnp.sum(x * x, axis=(0, 1, 2))

    for p in params:
        C = x.shape[-1]
        mean1 = sum_c / cnt
        var1 = jnp.maximum(sumsq_c / cnt - mean1 * mean1, 0.0)
        scale1 = p["gamma1"] * jax.lax.rsqrt(var1 + EPS)
        shift1 = p["beta1"] - mean1 * scale1

        w1 = p["w1"].astype(matmul_dtype)
        Cm = w1.shape[1]
        h_flat, hstat = bn_relu_conv1x1(x.reshape(N * H * W, C),
                                        scale1, shift1, w1, h_dtype=matmul_dtype)

        mean2 = jnp.sum(hstat[:, 0, :], axis=0) / cnt
        var2 = jnp.maximum(jnp.sum(hstat[:, 1, :], axis=0) / cnt - mean2 * mean2, 0.0)
        scale2 = p["gamma2"] * jax.lax.rsqrt(var2 + EPS)
        shift2 = p["beta2"] - mean2 * scale2

        G = p["w2"].shape[-1]
        w2 = p["w2"].reshape(9 * Cm, G).astype(matmul_dtype)   # HWIO -> (9*Cm, G)
        x, ostat = bn_relu_conv3x3_concat(x, h_flat.reshape(N, H, W, Cm),
                                          scale2, shift2, w2)

        sum_c = jnp.concatenate([sum_c, jnp.sum(ostat[:, 0, :], axis=0)])
        sumsq_c = jnp.concatenate([sumsq_c, jnp.sum(ostat[:, 1, :], axis=0)])

    return jnp.transpose(x, (0, 3, 1, 2))                        # NHWC -> NCHW


# --------------------------------------------------------------------------
# Deterministic parameter init + pure-JAX reference.
# --------------------------------------------------------------------------
def init_dense_block(key, num_layers, in_channels, growth_rate):
    params = []
    c = in_channels
    for _ in range(num_layers):
        key, k0, k1, k2, k3, k4, k5 = jax.random.split(key, 7)
        mid = 4 * growth_rate
        params.append(dict(
            gamma1=1.0 + 0.1 * jax.random.normal(k0, (c,), jnp.float32),
            beta1=0.1 * jax.random.normal(k1, (c,), jnp.float32),
            # PyTorch conv1 weight (mid, c, 1, 1)  -> stored as (c, mid)
            w1=0.2 * jax.random.normal(k2, (c, mid), jnp.float32),
            gamma2=1.0 + 0.1 * jax.random.normal(k3, (mid,), jnp.float32),
            beta2=0.1 * jax.random.normal(k4, (mid,), jnp.float32),
            # PyTorch conv2 weight (g, mid, 3, 3)  -> stored HWIO (3, 3, mid, g)
            w2=0.2 * jax.random.normal(k5, (3, 3, mid, growth_rate), jnp.float32),
        ))
        c += growth_rate
    return params


def _ref_bottleneck(x, p):
    def bn_relu(v, g, b):
        m = v.mean((0, 1, 2))
        var = ((v - m) ** 2).mean((0, 1, 2))
        return jnp.maximum((v - m) * jax.lax.rsqrt(var + EPS) * g + b, 0.0)

    a = bn_relu(x, p["gamma1"], p["beta1"])
    h = jnp.einsum("nhwc,cd->nhwd", a, p["w1"])
    a2 = bn_relu(h, p["gamma2"], p["beta2"])
    out = jax.lax.conv_general_dilated(
        a2, p["w2"], window_strides=(1, 1), padding="SAME",
        dimension_numbers=("NHWC", "HWIO", "NHWC"))
    return jnp.concatenate([x, out], axis=-1)


if __name__ == "__main__":
    num_layers, in_channels, growth_rate = 2, 4, 4
    N, H, W = 2, 16, 16

    key = jax.random.PRNGKey(0)
    kx, kp = jax.random.split(key)
    x_nchw = jax.random.normal(kx, (N, in_channels, H, W), jnp.float32)
    params = init_dense_block(kp, num_layers, in_channels, growth_rate)

    fwd = jax.jit(dense_block_forward, static_argnames=("matmul_dtype",))

    # pure-JAX reference
    xr = jnp.transpose(x_nchw, (0, 2, 3, 1))
    for p in params:
        xr = _ref_bottleneck(xr, p)
    y_ref = jnp.transpose(xr, (0, 3, 1, 2))

    # f32-matmul path: strict validation.
    y32 = jax.block_until_ready(fwd(x_nchw, params, matmul_dtype=jnp.float32))
    assert y32.shape == (N, in_channels + num_layers * growth_rate, H, W)
    err32 = float(jnp.max(jnp.abs(y32 - y_ref)))
    assert err32 < 2e-3, f"f32 path mismatch vs reference: {err32}"

    # bf16-matmul path (default; recommended for v5e/v6e/v7x MXU): loose check.
    ybf = jax.block_until_ready(fwd(x_nchw, params, matmul_dtype=jnp.bfloat16))
    errbf = float(jnp.max(jnp.abs(ybf - y_ref)))
    assert errbf < 0.25, f"bf16 path diverged from reference: {errbf}"

    print("KERNEL_OK")
</pallas_src>

<mosaic_0001>
module attributes {stable_mosaic.version = 11 : i64} {
  func.func @_bn_relu_conv1x1_kernel(%arg0: i32, %arg1: memref<512x4xf32, #tpu.memory_space<vmem>>, %arg2: memref<1x4xf32, #tpu.memory_space<vmem>>, %arg3: memref<1x4xf32, #tpu.memory_space<vmem>>, %arg4: memref<4x16xf32, #tpu.memory_space<vmem>>, %arg5: memref<512x16xf32, #tpu.memory_space<vmem>>, %arg6: memref<1x8x16xf32, #tpu.memory_space<vmem>>) attributes {dimension_semantics = [#tpu.dimension_semantics<parallel>], iteration_bounds = array<i64: 1>, scalar_prefetch = 0 : i64, scratch_operands = 0 : i64, tpu.core_type = #tpu.core_type<tc>, window_params = [{transform_indices = @transform_0, window_bounds = array<i64: 512, 4>}, {pipeline_mode = #tpu.pipeline_mode<synchronous>, transform_indices = @transform_1, window_bounds = array<i64: 1, 4>}, {pipeline_mode = #tpu.pipeline_mode<synchronous>, transform_indices = @transform_2, window_bounds = array<i64: 1, 4>}, {pipeline_mode = #tpu.pipeline_mode<synchronous>, transform_indices = @transform_3, window_bounds = array<i64: 4, 16>}, {transform_indices = @transform_4, window_bounds = array<i64: 512, 16>}, {transform_indices = @transform_5, window_bounds = array<i64: 1, 8, 16>}]} {
    %c0 = arith.constant 0 : index
    %c0_0 = arith.constant 0 : index
    %0 = vector.load %arg1[%c0, %c0_0] : memref<512x4xf32, #tpu.memory_space<vmem>>, vector<512x4xf32>
    %c0_1 = arith.constant 0 : index
    %c0_2 = arith.constant 0 : index
    %1 = vector.load %arg2[%c0_1, %c0_2] : memref<1x4xf32, #tpu.memory_space<vmem>>, vector<1x4xf32>
    %2 = vector.broadcast %1 : vector<1x4xf32> to vector<512x4xf32>
    %3 = arith.mulf %0, %2 : vector<512x4xf32>
    %c0_3 = arith.constant 0 : index
    %c0_4 = arith.constant 0 : index
    %4 = vector.load %arg3[%c0_3, %c0_4] : memref<1x4xf32, #tpu.memory_space<vmem>>, vector<1x4xf32>
    %5 = vector.broadcast %4 : vector<1x4xf32> to vector<512x4xf32>
    %6 = arith.addf %3, %5 : vector<512x4xf32>
    %cst = arith.constant 0.000000e+00 : f32
    %7 = vector.broadcast %cst : f32 to vector<512x4xf32>
    %8 = arith.maximumf %6, %7 : vector<512x4xf32>
    %c0_5 = arith.constant 0 : index
    %c0_6 = arith.constant 0 : index
    %9 = vector.load %arg4[%c0_5, %c0_6] : memref<4x16xf32, #tpu.memory_space<vmem>>, vector<4x16xf32>
    %cst_7 = arith.constant dense<0.000000e+00> : vector<512x16xf32>
    %10 = tpu.matmul %8, %9, %cst_7 {dimension_numbers = #tpu.dot_dimension_numbers<[1], [0], [0], [1], [0, 0, 1, 1], [], []>} : vector<512x4xf32>, vector<4x16xf32>, vector<512x16xf32> -> vector<512x16xf32>
    %c0_8 = arith.constant 0 : index
    %c0_9 = arith.constant 0 : index
    %11 = vector.load %arg5[%c0_8, %c0_9] : memref<512x16xf32, #tpu.memory_space<vmem>>, vector<512x16xf32>
    tpu.vector_store %arg5[%c0_8, %c0_9], %10 {strides = array<i32>} : memref<512x16xf32, #tpu.memory_space<vmem>>, vector<512x16xf32>,
    %cst_10 = arith.constant dense<0.000000e+00> : vector<16xf32>
    %12 = vector.multi_reduction <add>, %10, %cst_10 [0] : vector<512x16xf32> to vector<16xf32>
    %13 = vector.shape_cast %12 : vector<16xf32> to vector<1x16xf32>
    %14 = arith.mulf %10, %10 : vector<512x16xf32>
    %cst_11 = arith.constant dense<0.000000e+00> : vector<16xf32>
    %15 = vector.multi_reduction <add>, %14, %cst_11 [0] : vector<512x16xf32> to vector<16xf32>
    %16 = vector.shape_cast %15 : vector<16xf32> to vector<1x16xf32>
    %cst_12 = arith.constant 0.000000e+00 : f32
    %17 = vector.broadcast %cst_12 : f32 to vector<6x16xf32>
    %18 = tpu.concatenate %13, %16, %17 in 0 : vector<1x16xf32>, vector<1x16xf32>, vector<6x16xf32> -> vector<8x16xf32>
    %c0_13 = arith.constant 0 : index
    %c0_14 = arith.constant 0 : index
    %c0_15 = arith.constant 0 : index
    %19 = vector.load %arg6[%c0_13, %c0_14, %c0_15] : memref<1x8x16xf32, #tpu.memory_space<vmem>>, vector<1x8x16xf32>
    %20 = vector.shape_cast %19 : vector<1x8x16xf32> to vector<8x16xf32>
    %21 = vector.shape_cast %18 : vector<8x16xf32> to vector<1x8x16xf32>
    tpu.vector_store %arg6[%c0_13, %c0_14, %c0_15], %21 {strides = array<i32>} : memref<1x8x16xf32, #tpu.memory_space<vmem>>, vector<1x8x16xf32>,
    return
  }
  func.func @transform_0(%arg0: i32) -> (i32, i32) {
    %c0_i32 = arith.constant 0 : i32
    %c0_i32_0 = arith.constant 0 : i32
    return %arg0, %c0_i32 : i32, i32
  }
  func.func @transform_1(%arg0: i32) -> (i32, i32) {
    %c0_i32 = arith.constant 0 : i32
    %c0_i32_0 = arith.constant 0 : i32
    %c0_i32_1 = arith.constant 0 : i32
    return %c0_i32, %c0_i32_0 : i32, i32
  }
  func.func @transform_2(%arg0: i32) -> (i32, i32) {
    %c0_i32 = arith.constant 0 : i32
    %c0_i32_0 = arith.constant 0 : i32
    %c0_i32_1 = arith.constant 0 : i32
    return %c0_i32, %c0_i32_0 : i32, i32
  }
  func.func @transform_3(%arg0: i32) -> (i32, i32) {
    %c0_i32 = arith.constant 0 : i32
    %c0_i32_0 = arith.constant 0 : i32
    %c0_i32_1 = arith.constant 0 : i32
    return %c0_i32, %c0_i32_0 : i32, i32
  }
  func.func @transform_4(%arg0: i32) -> (i32, i32) {
    %c0_i32 = arith.constant 0 : i32
    %c0_i32_0 = arith.constant 0 : i32
    return %arg0, %c0_i32 : i32, i32
  }
  func.func @transform_5(%arg0: i32) -> (i32, i32, i32) {
    %c0_i32 = arith.constant 0 : i32
    %c0_i32_0 = arith.constant 0 : i32
    %c0_i32_1 = arith.constant 0 : i32
    return %arg0, %c0_i32, %c0_i32_0 : i32, i32, i32
  }
}

module attributes {stable_mosaic.version = 11 : i64} {
  func.func @_bn_relu_conv3x3_concat_kernel(%arg0: i32, %arg1: memref<1x16x16x4xf32, #tpu.memory_space<vmem>>, %arg2: memref<1x16x16x16xf32, #tpu.memory_space<vmem>>, %arg3: memref<1x1x16xf32, #tpu.memory_space<vmem>>, %arg4: memref<1x1x16xf32, #tpu.memory_space<vmem>>, %arg5: memref<144x4xf32, #tpu.memory_space<vmem>>, %arg6: memref<1x16x16x8xf32, #tpu.memory_space<vmem>>, %arg7: memref<1x8x4xf32, #tpu.memory_space<vmem>>, %arg8: memref<18x18x16xf32, #tpu.memory_space<vmem>>) attributes {dimension_semantics = [#tpu.dimension_semantics<parallel>], iteration_bounds = array<i64: 2>, scalar_prefetch = 0 : i64, scratch_operands = 1 : i64, tpu.core_type = #tpu.core_type<tc>, window_params = [{transform_indices = @transform_0, window_bounds = array<i64: 1, 16, 16, 4>}, {transform_indices = @transform_1, window_bounds = array<i64: 1, 16, 16, 16>}, {pipeline_mode = #tpu.pipeline_mode<synchronous>, transform_indices = @transform_2, window_bounds = array<i64: 1, 1, 16>}, {pipeline_mode = #tpu.pipeline_mode<synchronous>, transform_indices = @transform_3, window_bounds = array<i64: 1, 1, 16>}, {pipeline_mode = #tpu.pipeline_mode<synchronous>, transform_indices = @transform_4, window_bounds = array<i64: 144, 4>}, {transform_indices = @transform_5, window_bounds = array<i64: 1, 16, 16, 8>}, {transform_indices = @transform_6, window_bounds = array<i64: 1, 8, 4>}]} {
    %cst = arith.constant 0.000000e+00 : f32
    %0 = vector.broadcast %cst : f32 to vector<18x18x16xf32>
    %c0 = arith.constant 0 : index
    %c0_0 = arith.constant 0 : index
    %c0_1 = arith.constant 0 : index
    %1 = vector.load %arg8[%c0, %c0_0, %c0_1] : memref<18x18x16xf32, #tpu.memory_space<vmem>>, vector<18x18x16xf32>
    tpu.vector_store %arg8[%c0, %c0_0, %c0_1], %0 {strides = array<i32>} : memref<18x18x16xf32, #tpu.memory_space<vmem>>, vector<18x18x16xf32>,
    %c0_2 = arith.constant 0 : index
    %c0_3 = arith.constant 0 : index
    %c0_4 = arith.constant 0 : index
    %c0_5 = arith.constant 0 : index
    %2 = vector.load %arg2[%c0_2, %c0_3, %c0_4, %c0_5] : memref<1x16x16x16xf32, #tpu.memory_space<vmem>>, vector<1x16x16x16xf32>
    %3 = vector.shape_cast %2 : vector<1x16x16x16xf32> to vector<16x16x16xf32>
    %c0_6 = arith.constant 0 : index
    %c0_7 = arith.constant 0 : index
    %c0_8 = arith.constant 0 : index
    %4 = vector.load %arg3[%c0_6, %c0_7, %c0_8] : memref<1x1x16xf32, #tpu.memory_space<vmem>>, vector<1x1x16xf32>
    %5 = vector.broadcast %4 : vector<1x1x16xf32> to vector<16x16x16xf32>
    %6 = arith.mulf %3, %5 : vector<16x16x16xf32>
    %c0_9 = arith.constant 0 : index
    %c0_10 = arith.constant 0 : index
    %c0_11 = arith.constant 0 : index
    %7 = vector.load %arg4[%c0_9, %c0_10, %c0_11] : memref<1x1x16xf32, #tpu.memory_space<vmem>>, vector<1x1x16xf32>
    %8 = vector.broadcast %7 : vector<1x1x16xf32> to vector<16x16x16xf32>
    %9 = arith.addf %6, %8 : vector<16x16x16xf32>
    %cst_12 = arith.constant 0.000000e+00 : f32
    %10 = vector.broadcast %cst_12 : f32 to vector<16x16x16xf32>
    %11 = arith.maximumf %9, %10 : vector<16x16x16xf32>
    %c1 = arith.constant 1 : index
    %c1_13 = arith.constant 1 : index
    %c0_14 = arith.constant 0 : index
    %12 = vector.load %arg8[%c1, %c1_13, %c0_14] : memref<18x18x16xf32, #tpu.memory_space<vmem>>, vector<16x16x16xf32>
    tpu.vector_store %arg8[%c1, %c1_13, %c0_14], %11 {strides = array<i32>} : memref<18x18x16xf32, #tpu.memory_space<vmem>>, vector<16x16x16xf32>,
    %c0_15 = arith.constant 0 : index
    %c0_16 = arith.constant 0 : index
    %c0_17 = arith.constant 0 : index
    %13 = vector.load %arg8[%c0_15, %c0_16, %c0_17] : memref<18x18x16xf32, #tpu.memory_space<vmem>>, vector<16x16x16xf32>
    %c0_18 = arith.constant 0 : index
    %c1_19 = arith.constant 1 : index
    %c0_20 = arith.constant 0 : index
    %14 = vector.load %arg8[%c0_18, %c1_19, %c0_20] : memref<18x18x16xf32, #tpu.memory_space<vmem>>, vector<16x16x16xf32>
    %c0_21 = arith.constant 0 : index
    %c2 = arith.constant 2 : index
    %c0_22 = arith.constant 0 : index
    %15 = vector.load %arg8[%c0_21, %c2, %c0_22] : memref<18x18x16xf32, #tpu.memory_space<vmem>>, vector<16x16x16xf32>
    %c1_23 = arith.constant 1 : index
    %c0_24 = arith.constant 0 : index
    %c0_25 = arith.constant 0 : index
    %16 = vector.load %arg8[%c1_23, %c0_24, %c0_25] : memref<18x18x16xf32, #tpu.memory_space<vmem>>, vector<16x16x16xf32>
    %c1_26 = arith.constant 1 : index
    %c1_27 = arith.constant 1 : index
    %c0_28 = arith.constant 0 : index
    %17 = vector.load %arg8[%c1_26, %c1_27, %c0_28] : memref<18x18x16xf32, #tpu.memory_space<vmem>>, vector<16x16x16xf32>
    %c1_29 = arith.constant 1 : index
    %c2_30 = arith.constant 2 : index
    %c0_31 = arith.constant 0 : index
    %18 = vector.load %arg8[%c1_29, %c2_30, %c0_31] : memref<18x18x16xf32, #tpu.memory_space<vmem>>, vector<16x16x16xf32>
    %c2_32 = arith.constant 2 : index
    %c0_33 = arith.constant 0 : index
    %c0_34 = arith.constant 0 : index
    %19 = vector.load %arg8[%c2_32, %c0_33, %c0_34] : memref<18x18x16xf32, #tpu.memory_space<vmem>>, vector<16x16x16xf32>
    %c2_35 = arith.constant 2 : index
    %c1_36 = arith.constant 1 : index
    %c0_37 = arith.constant 0 : index
    %20 = vector.load %arg8[%c2_35, %c1_36, %c0_37] : memref<18x18x16xf32, #tpu.memory_space<vmem>>, vector<16x16x16xf32>
    %c2_38 = arith.constant 2 : index
    %c2_39 = arith.constant 2 : index
    %c0_40 = arith.constant 0 : index
    %21 = vector.load %arg8[%c2_38, %c2_39, %c0_40] : memref<18x18x16xf32, #tpu.memory_space<vmem>>, vector<16x16x16xf32>
    %22 = tpu.concatenate %13, %14, %15, %16, %17, %18, %19, %20, %21 in 2 : vector<16x16x16xf32>, vector<16x16x16xf32>, vector<16x16x16xf32>, vector<16x16x16xf32>, vector<16x16x16xf32>, vector<16x16x16xf32>, vector<16x16x16xf32>, vector<16x16x16xf32>, vector<16x16x16xf32> -> vector<16x16x144xf32>
    %23 = vector.shape_cast %22 : vector<16x16x144xf32> to vector<256x144xf32>
    %c0_41 = arith.constant 0 : index
    %c0_42 = arith.constant 0 : index
    %24 = vector.load %arg5[%c0_41, %c0_42] : memref<144x4xf32, #tpu.memory_space<vmem>>, vector<144x4xf32>
    %cst_43 = arith.constant dense<0.000000e+00> : vector<256x4xf32>
    %25 = tpu.matmul %23, %24, %cst_43 {dimension_numbers = #tpu.dot_dimension_numbers<[1], [0], [0], [1], [0, 0, 1, 1], [], []>} : vector<256x144xf32>, vector<144x4xf32>, vector<256x4xf32> -> vector<256x4xf32>
    %c0_44 = arith.constant 0 : index
    %c0_45 = arith.constant 0 : index
    %c0_46 = arith.constant 0 : index
    %c0_47 = arith.constant 0 : index
    %26 = vector.load %arg1[%c0_44, %c0_45, %c0_46, %c0_47] : memref<1x16x16x4xf32, #tpu.memory_space<vmem>>, vector<1x16x16x4xf32>
    %27 = vector.shape_cast %26 : vector<1x16x16x4xf32> to vector<16x16x4xf32>
    %28 = vector.shape_cast %25 : vector<256x4xf32> to vector<16x16x4xf32>
    %29 = tpu.concatenate %27, %28 in 2 : vector<16x16x4xf32>, vector<16x16x4xf32> -> vector<16x16x8xf32>
    %c0_48 = arith.constant 0 : index
    %c0_49 = arith.constant 0 : index
    %c0_50 = arith.constant 0 : index
    %c0_51 = arith.constant 0 : index
    %30 = vector.load %arg6[%c0_48, %c0_49, %c0_50, %c0_51] : memref<1x16x16x8xf32, #tpu.memory_space<vmem>>, vector<1x16x16x8xf32>
    %31 = vector.shape_cast %30 : vector<1x16x16x8xf32> to vector<16x16x8xf32>
    %32 = vector.shape_cast %29 : vector<16x16x8xf32> to vector<1x16x16x8xf32>
    tpu.vector_store %arg6[%c0_48, %c0_49, %c0_50, %c0_51], %32 {strides = array<i32>} : memref<1x16x16x8xf32, #tpu.memory_space<vmem>>, vector<1x16x16x8xf32>,
    %cst_52 = arith.constant dense<0.000000e+00> : vector<4xf32>
    %33 = vector.multi_reduction <add>, %25, %cst_52 [0] : vector<256x4xf32> to vector<4xf32>
    %34 = vector.shape_cast %33 : vector<4xf32> to vector<1x4xf32>
    %35 = arith.mulf %25, %25 : vector<256x4xf32>
    %cst_53 = arith.constant dense<0.000000e+00> : vector<4xf32>
    %36 = vector.multi_reduction <add>, %35, %cst_53 [0] : vector<256x4xf32> to vector<4xf32>
    %37 = vector.shape_cast %36 : vector<4xf32> to vector<1x4xf32>
    %cst_54 = arith.constant 0.000000e+00 : f32
    %38 = vector.broadcast %cst_54 : f32 to vector<6x4xf32>
    %39 = tpu.concatenate %34, %37, %38 in 0 : vector<1x4xf32>, vector<1x4xf32>, vector<6x4xf32> -> vector<8x4xf32>
    %c0_55 = arith.constant 0 : index
    %c0_56 = arith.constant 0 : index
    %c0_57 = arith.constant 0 : index
    %40 = vector.load %arg7[%c0_55, %c0_56, %c0_57] : memref<1x8x4xf32, #tpu.memory_space<vmem>>, vector<1x8x4xf32>
    %41 = vector.shape_cast %40 : vector<1x8x4xf32> to vector<8x4xf32>
    %42 = vector.shape_cast %39 : vector<8x4xf32> to vector<1x8x4xf32>
    tpu.vector_store %arg7[%c0_55, %c0_56, %c0_57], %42 {strides = array<i32>} : memref<1x8x4xf32, #tpu.memory_space<vmem>>, vector<1x8x4xf32>,
    return
  }
  func.func @transform_0(%arg0: i32) -> (i32, i32, i32, i32) {
    %c0_i32 = arith.constant 0 : i32
    %c0_i32_0 = arith.constant 0 : i32
    %c0_i32_1 = arith.constant 0 : i32
    %c0_i32_2 = arith.constant 0 : i32
    return %arg0, %c0_i32, %c0_i32_0, %c0_i32_1 : i32, i32, i32, i32
  }
  func.func @transform_1(%arg0: i32) -> (i32, i32, i32, i32) {
    %c0_i32 = arith.constant 0 : i32
    %c0_i32_0 = arith.constant 0 : i32
    %c0_i32_1 = arith.constant 0 : i32
    %c0_i32_2 = arith.constant 0 : i32
    return %arg0, %c0_i32, %c0_i32_0, %c0_i32_1 : i32, i32, i32, i32
  }
  func.func @transform_2(%arg0: i32) -> (i32, i32, i32) {
    %c0_i32 = arith.constant 0 : i32
    %c0_i32_0 = arith.constant 0 : i32
    %c0_i32_1 = arith.constant 0 : i32
    %c0_i32_2 = arith.constant 0 : i32
    return %c0_i32, %c0_i32_0, %c0_i32_1 : i32, i32, i32
  }
  func.func @transform_3(%arg0: i32) -> (i32, i32, i32) {
    %c0_i32 = arith.constant 0 : i32
    %c0_i32_0 = arith.constant 0 : i32
    %c0_i32_1 = arith.constant 0 : i32
    %c0_i32_2 = arith.constant 0 : i32
    return %c0_i32, %c0_i32_0, %c0_i32_1 : i32, i32, i32
  }
  func.func @transform_4(%arg0: i32) -> (i32, i32) {
    %c0_i32 = arith.constant 0 : i32
    %c0_i32_0 = arith.constant 0 : i32
    %c0_i32_1 = arith.constant 0 : i32
    return %c0_i32, %c0_i32_0 : i32, i32
  }
  func.func @transform_5(%arg0: i32) -> (i32, i32, i32, i32) {
    %c0_i32 = arith.constant 0 : i32
    %c0_i32_0 = arith.constant 0 : i32
    %c0_i32_1 = arith.constant 0 : i32
    %c0_i32_2 = arith.constant 0 : i32
    return %arg0, %c0_i32, %c0_i32_0, %c0_i32_1 : i32, i32, i32, i32
  }
  func.func @transform_6(%arg0: i32) -> (i32, i32, i32) {
    %c0_i32 = arith.constant 0 : i32
    %c0_i32_0 = arith.constant 0 : i32
    %c0_i32_1 = arith.constant 0 : i32
    return %arg0, %c0_i32, %c0_i32_0 : i32, i32, i32
  }
}

module attributes {stable_mosaic.version = 11 : i64} {
  func.func @_bn_relu_conv1x1_kernel(%arg0: i32, %arg1: memref<512x8xf32, #tpu.memory_space<vmem>>, %arg2: memref<1x8xf32, #tpu.memory_space<vmem>>, %arg3: memref<1x8xf32, #tpu.memory_space<vmem>>, %arg4: memref<8x16xf32, #tpu.memory_space<vmem>>, %arg5: memref<512x16xf32, #tpu.memory_space<vmem>>, %arg6: memref<1x8x16xf32, #tpu.memory_space<vmem>>) attributes {dimension_semantics = [#tpu.dimension_semantics<parallel>], iteration_bounds = array<i64: 1>, scalar_prefetch = 0 : i64, scratch_operands = 0 : i64, tpu.core_type = #tpu.core_type<tc>, window_params = [{transform_indices = @transform_0, window_bounds = array<i64: 512, 8>}, {pipeline_mode = #tpu.pipeline_mode<synchronous>, transform_indices = @transform_1, window_bounds = array<i64: 1, 8>}, {pipeline_mode = #tpu.pipeline_mode<synchronous>, transform_indices = @transform_2, window_bounds = array<i64: 1, 8>}, {pipeline_mode = #tpu.pipeline_mode<synchronous>, transform_indices = @transform_3, window_bounds = array<i64: 8, 16>}, {transform_indices = @transform_4, window_bounds = array<i64: 512, 16>}, {transform_indices = @transform_5, window_bounds = array<i64: 1, 8, 16>}]} {
    %c0 = arith.constant 0 : index
    %c0_0 = arith.constant 0 : index
    %0 = vector.load %arg1[%c0, %c0_0] : memref<512x8xf32, #tpu.memory_space<vmem>>, vector<512x8xf32>
    %c0_1 = arith.constant 0 : index
    %c0_2 = arith.constant 0 : index
    %1 = vector.load %arg2[%c0_1, %c0_2] : memref<1x8xf32, #tpu.memory_space<vmem>>, vector<1x8xf32>
    %2 = vector.broadcast %1 : vector<1x8xf32> to vector<512x8xf32>
    %3 = arith.mulf %0, %2 : vector<512x8xf32>
    %c0_3 = arith.constant 0 : index
    %c0_4 = arith.constant 0 : index
    %4 = vector.load %arg3[%c0_3, %c0_4] : memref<1x8xf32, #tpu.memory_space<vmem>>, vector<1x8xf32>
    %5 = vector.broadcast %4 : vector<1x8xf32> to vector<512x8xf32>
    %6 = arith.addf %3, %5 : vector<512x8xf32>
    %cst = arith.constant 0.000000e+00 : f32
    %7 = vector.broadcast %cst : f32 to vector<512x8xf32>
    %8 = arith.maximumf %6, %7 : vector<512x8xf32>
    %c0_5 = arith.constant 0 : index
    %c0_6 = arith.constant 0 : index
    %9 = vector.load %arg4[%c0_5, %c0_6] : memref<8x16xf32, #tpu.memory_space<vmem>>, vector<8x16xf32>
    %cst_7 = arith.constant dense<0.000000e+00> : vector<512x16xf32>
    %10 = tpu.matmul %8, %9, %cst_7 {dimension_numbers = #tpu.dot_dimension_numbers<[1], [0], [0], [1], [0, 0, 1, 1], [], []>} : vector<512x8xf32>, vector<8x16xf32>, vector<512x16xf32> -> vector<512x16xf32>
    %c0_8 = arith.constant 0 : index
    %c0_9 = arith.constant 0 : index
    %11 = vector.load %arg5[%c0_8, %c0_9] : memref<512x16xf32, #tpu.memory_space<vmem>>, vector<512x16xf32>
    tpu.vector_store %arg5[%c0_8, %c0_9], %10 {strides = array<i32>} : memref<512x16xf32, #tpu.memory_space<vmem>>, vector<512x16xf32>,
    %cst_10 = arith.constant dense<0.000000e+00> : vector<16xf32>
    %12 = vector.multi_reduction <add>, %10, %cst_10 [0] : vector<512x16xf32> to vector<16xf32>
    %13 = vector.shape_cast %12 : vector<16xf32> to vector<1x16xf32>
    %14 = arith.mulf %10, %10 : vector<512x16xf32>
    %cst_11 = arith.constant dense<0.000000e+00> : vector<16xf32>
    %15 = vector.multi_reduction <add>, %14, %cst_11 [0] : vector<512x16xf32> to vector<16xf32>
    %16 = vector.shape_cast %15 : vector<16xf32> to vector<1x16xf32>
    %cst_12 = arith.constant 0.000000e+00 : f32
    %17 = vector.broadcast %cst_12 : f32 to vector<6x16xf32>
    %18 = tpu.concatenate %13, %16, %17 in 0 : vector<1x16xf32>, vector<1x16xf32>, vector<6x16xf32> -> vector<8x16xf32>
    %c0_13 = arith.constant 0 : index
    %c0_14 = arith.constant 0 : index
    %c0_15 = arith.constant 0 : index
    %19 = vector.load %arg6[%c0_13, %c0_14, %c0_15] : memref<1x8x16xf32, #tpu.memory_space<vmem>>, vector<1x8x16xf32>
    %20 = vector.shape_cast %19 : vector<1x8x16xf32> to vector<8x16xf32>
    %21 = vector.shape_cast %18 : vector<8x16xf32> to vector<1x8x16xf32>
    tpu.vector_store %arg6[%c0_13, %c0_14, %c0_15], %21 {strides = array<i32>} : memref<1x8x16xf32, #tpu.memory_space<vmem>>, vector<1x8x16xf32>,
    return
  }
  func.func @transform_0(%arg0: i32) -> (i32, i32) {
    %c0_i32 = arith.constant 0 : i32
    %c0_i32_0 = arith.constant 0 : i32
    return %arg0, %c0_i32 : i32, i32
  }
  func.func @transform_1(%arg0: i32) -> (i32, i32) {
    %c0_i32 = arith.constant 0 : i32
    %c0_i32_0 = arith.constant 0 : i32
    %c0_i32_1 = arith.constant 0 : i32
    return %c0_i32, %c0_i32_0 : i32, i32
  }
  func.func @transform_2(%arg0: i32) -> (i32, i32) {
    %c0_i32 = arith.constant 0 : i32
    %c0_i32_0 = arith.constant 0 : i32
    %c0_i32_1 = arith.constant 0 : i32
    return %c0_i32, %c0_i32_0 : i32, i32
  }
  func.func @transform_3(%arg0: i32) -> (i32, i32) {
    %c0_i32 = arith.constant 0 : i32
    %c0_i32_0 = arith.constant 0 : i32
    %c0_i32_1 = arith.constant 0 : i32
    return %c0_i32, %c0_i32_0 : i32, i32
  }
  func.func @transform_4(%arg0: i32) -> (i32, i32) {
    %c0_i32 = arith.constant 0 : i32
    %c0_i32_0 = arith.constant 0 : i32
    return %arg0, %c0_i32 : i32, i32
  }
  func.func @transform_5(%arg0: i32) -> (i32, i32, i32) {
    %c0_i32 = arith.constant 0 : i32
    %c0_i32_0 = arith.constant 0 : i32
    %c0_i32_1 = arith.constant 0 : i32
    return %arg0, %c0_i32, %c0_i32_0 : i32, i32, i32
  }
}

module attributes {stable_mosaic.version = 11 : i64} {
  func.func @_bn_relu_conv3x3_concat_kernel(%arg0: i32, %arg1: memref<1x16x16x8xf32, #tpu.memory_space<vmem>>, %arg2: memref<1x16x16x16xf32, #tpu.memory_space<vmem>>, %arg3: memref<1x1x16xf32, #tpu.memory_space<vmem>>, %arg4: memref<1x1x16xf32, #tpu.memory_space<vmem>>, %arg5: memref<144x4xf32, #tpu.memory_space<vmem>>, %arg6: memref<1x16x16x12xf32, #tpu.memory_space<vmem>>, %arg7: memref<1x8x4xf32, #tpu.memory_space<vmem>>, %arg8: memref<18x18x16xf32, #tpu.memory_space<vmem>>) attributes {dimension_semantics = [#tpu.dimension_semantics<parallel>], iteration_bounds = array<i64: 2>, scalar_prefetch = 0 : i64, scratch_operands = 1 : i64, tpu.core_type = #tpu.core_type<tc>, window_params = [{transform_indices = @transform_0, window_bounds = array<i64: 1, 16, 16, 8>}, {transform_indices = @transform_1, window_bounds = array<i64: 1, 16, 16, 16>}, {pipeline_mode = #tpu.pipeline_mode<synchronous>, transform_indices = @transform_2, window_bounds = array<i64: 1, 1, 16>}, {pipeline_mode = #tpu.pipeline_mode<synchronous>, transform_indices = @transform_3, window_bounds = array<i64: 1, 1, 16>}, {pipeline_mode = #tpu.pipeline_mode<synchronous>, transform_indices = @transform_4, window_bounds = array<i64: 144, 4>}, {transform_indices = @transform_5, window_bounds = array<i64: 1, 16, 16, 12>}, {transform_indices = @transform_6, window_bounds = array<i64: 1, 8, 4>}]} {
    %cst = arith.constant 0.000000e+00 : f32
    %0 = vector.broadcast %cst : f32 to vector<18x18x16xf32>
    %c0 = arith.constant 0 : index
    %c0_0 = arith.constant 0 : index
    %c0_1 = arith.constant 0 : index
    %1 = vector.load %arg8[%c0, %c0_0, %c0_1] : memref<18x18x16xf32, #tpu.memory_space<vmem>>, vector<18x18x16xf32>
    tpu.vector_store %arg8[%c0, %c0_0, %c0_1], %0 {strides = array<i32>} : memref<18x18x16xf32, #tpu.memory_space<vmem>>, vector<18x18x16xf32>,
    %c0_2 = arith.constant 0 : index
    %c0_3 = arith.constant 0 : index
    %c0_4 = arith.constant 0 : index
    %c0_5 = arith.constant 0 : index
    %2 = vector.load %arg2[%c0_2, %c0_3, %c0_4, %c0_5] : memref<1x16x16x16xf32, #tpu.memory_space<vmem>>, vector<1x16x16x16xf32>
    %3 = vector.shape_cast %2 : vector<1x16x16x16xf32> to vector<16x16x16xf32>
    %c0_6 = arith.constant 0 : index
    %c0_7 = arith.constant 0 : index
    %c0_8 = arith.constant 0 : index
    %4 = vector.load %arg3[%c0_6, %c0_7, %c0_8] : memref<1x1x16xf32, #tpu.memory_space<vmem>>, vector<1x1x16xf32>
    %5 = vector.broadcast %4 : vector<1x1x16xf32> to vector<16x16x16xf32>
    %6 = arith.mulf %3, %5 : vector<16x16x16xf32>
    %c0_9 = arith.constant 0 : index
    %c0_10 = arith.constant 0 : index
    %c0_11 = arith.constant 0 : index
    %7 = vector.load %arg4[%c0_9, %c0_10, %c0_11] : memref<1x1x16xf32, #tpu.memory_space<vmem>>, vector<1x1x16xf32>
    %8 = vector.broadcast %7 : vector<1x1x16xf32> to vector<16x16x16xf32>
    %9 = arith.addf %6, %8 : vector<16x16x16xf32>
    %cst_12 = arith.constant 0.000000e+00 : f32
    %10 = vector.broadcast %cst_12 : f32 to vector<16x16x16xf32>
    %11 = arith.maximumf %9, %10 : vector<16x16x16xf32>
    %c1 = arith.constant 1 : index
    %c1_13 = arith.constant 1 : index
    %c0_14 = arith.constant 0 : index
    %12 = vector.load %arg8[%c1, %c1_13, %c0_14] : memref<18x18x16xf32, #tpu.memory_space<vmem>>, vector<16x16x16xf32>
    tpu.vector_store %arg8[%c1, %c1_13, %c0_14], %11 {strides = array<i32>} : memref<18x18x16xf32, #tpu.memory_space<vmem>>, vector<16x16x16xf32>,
    %c0_15 = arith.constant 0 : index
    %c0_16 = arith.constant 0 : index
    %c0_17 = arith.constant 0 : index
    %13 = vector.load %arg8[%c0_15, %c0_16, %c0_17] : memref<18x18x16xf32, #tpu.memory_space<vmem>>, vector<16x16x16xf32>
    %c0_18 = arith.constant 0 : index
    %c1_19 = arith.constant 1 : index
    %c0_20 = arith.constant 0 : index
    %14 = vector.load %arg8[%c0_18, %c1_19, %c0_20] : memref<18x18x16xf32, #tpu.memory_space<vmem>>, vector<16x16x16xf32>
    %c0_21 = arith.constant 0 : index
    %c2 = arith.constant 2 : index
    %c0_22 = arith.constant 0 : index
    %15 = vector.load %arg8[%c0_21, %c2, %c0_22] : memref<18x18x16xf32, #tpu.memory_space<vmem>>, vector<16x16x16xf32>
    %c1_23 = arith.constant 1 : index
    %c0_24 = arith.constant 0 : index
    %c0_25 = arith.constant 0 : index
    %16 = vector.load %arg8[%c1_23, %c0_24, %c0_25] : memref<18x18x16xf32, #tpu.memory_space<vmem>>, vector<16x16x16xf32>
    %c1_26 = arith.constant 1 : index
    %c1_27 = arith.constant 1 : index
    %c0_28 = arith.constant 0 : index
    %17 = vector.load %arg8[%c1_26, %c1_27, %c0_28] : memref<18x18x16xf32, #tpu.memory_space<vmem>>, vector<16x16x16xf32>
    %c1_29 = arith.constant 1 : index
    %c2_30 = arith.constant 2 : index
    %c0_31 = arith.constant 0 : index
    %18 = vector.load %arg8[%c1_29, %c2_30, %c0_31] : memref<18x18x16xf32, #tpu.memory_space<vmem>>, vector<16x16x16xf32>
    %c2_32 = arith.constant 2 : index
    %c0_33 = arith.constant 0 : index
    %c0_34 = arith.constant 0 : index
    %19 = vector.load %arg8[%c2_32, %c0_33, %c0_34] : memref<18x18x16xf32, #tpu.memory_space<vmem>>, vector<16x16x16xf32>
    %c2_35 = arith.constant 2 : index
    %c1_36 = arith.constant 1 : index
    %c0_37 = arith.constant 0 : index
    %20 = vector.load %arg8[%c2_35, %c1_36, %c0_37] : memref<18x18x16xf32, #tpu.memory_space<vmem>>, vector<16x16x16xf32>
    %c2_38 = arith.constant 2 : index
    %c2_39 = arith.constant 2 : index
    %c0_40 = arith.constant 0 : index
    %21 = vector.load %arg8[%c2_38, %c2_39, %c0_40] : memref<18x18x16xf32, #tpu.memory_space<vmem>>, vector<16x16x16xf32>
    %22 = tpu.concatenate %13, %14, %15, %16, %17, %18, %19, %20, %21 in 2 : vector<16x16x16xf32>, vector<16x16x16xf32>, vector<16x16x16xf32>, vector<16x16x16xf32>, vector<16x16x16xf32>, vector<16x16x16xf32>, vector<16x16x16xf32>, vector<16x16x16xf32>, vector<16x16x16xf32> -> vector<16x16x144xf32>
    %23 = vector.shape_cast %22 : vector<16x16x144xf32> to vector<256x144xf32>
    %c0_41 = arith.constant 0 : index
    %c0_42 = arith.constant 0 : index
    %24 = vector.load %arg5[%c0_41, %c0_42] : memref<144x4xf32, #tpu.memory_space<vmem>>, vector<144x4xf32>
    %cst_43 = arith.constant dense<0.000000e+00> : vector<256x4xf32>
    %25 = tpu.matmul %23, %24, %cst_43 {dimension_numbers = #tpu.dot_dimension_numbers<[1], [0], [0], [1], [0, 0, 1, 1], [], []>} : vector<256x144xf32>, vector<144x4xf32>, vector<256x4xf32> -> vector<256x4xf32>
    %c0_44 = arith.constant 0 : index
    %c0_45 = arith.constant 0 : index
    %c0_46 = arith.constant 0 : index
    %c0_47 = arith.constant 0 : index
    %26 = vector.load %arg1[%c0_44, %c0_45, %c0_46, %c0_47] : memref<1x16x16x8xf32, #tpu.memory_space<vmem>>, vector<1x16x16x8xf32>
    %27 = vector.shape_cast %26 : vector<1x16x16x8xf32> to vector<16x16x8xf32>
    %28 = vector.shape_cast %25 : vector<256x4xf32> to vector<16x16x4xf32>
    %29 = tpu.concatenate %27, %28 in 2 : vector<16x16x8xf32>, vector<16x16x4xf32> -> vector<16x16x12xf32>
    %c0_48 = arith.constant 0 : index
    %c0_49 = arith.constant 0 : index
    %c0_50 = arith.constant 0 : index
    %c0_51 = arith.constant 0 : index
    %30 = vector.load %arg6[%c0_48, %c0_49, %c0_50, %c0_51] : memref<1x16x16x12xf32, #tpu.memory_space<vmem>>, vector<1x16x16x12xf32>
    %31 = vector.shape_cast %30 : vector<1x16x16x12xf32> to vector<16x16x12xf32>
    %32 = vector.shape_cast %29 : vector<16x16x12xf32> to vector<1x16x16x12xf32>
    tpu.vector_store %arg6[%c0_48, %c0_49, %c0_50, %c0_51], %32 {strides = array<i32>} : memref<1x16x16x12xf32, #tpu.memory_space<vmem>>, vector<1x16x16x12xf32>,
    %cst_52 = arith.constant dense<0.000000e+00> : vector<4xf32>
    %33 = vector.multi_reduction <add>, %25, %cst_52 [0] : vector<256x4xf32> to vector<4xf32>
    %34 = vector.shape_cast %33 : vector<4xf32> to vector<1x4xf32>
    %35 = arith.mulf %25, %25 : vector<256x4xf32>
    %cst_53 = arith.constant dense<0.000000e+00> : vector<4xf32>
    %36 = vector.multi_reduction <add>, %35, %cst_53 [0] : vector<256x4xf32> to vector<4xf32>
    %37 = vector.shape_cast %36 : vector<4xf32> to vector<1x4xf32>
    %cst_54 = arith.constant 0.000000e+00 : f32
    %38 = vector.broadcast %cst_54 : f32 to vector<6x4xf32>
    %39 = tpu.concatenate %34, %37, %38 in 0 : vector<1x4xf32>, vector<1x4xf32>, vector<6x4xf32> -> vector<8x4xf32>
    %c0_55 = arith.constant 0 : index
    %c0_56 = arith.constant 0 : index
    %c0_57 = arith.constant 0 : index
    %40 = vector.load %arg7[%c0_55, %c0_56, %c0_57] : memref<1x8x4xf32, #tpu.memory_space<vmem>>, vector<1x8x4xf32>
    %41 = vector.shape_cast %40 : vector<1x8x4xf32> to vector<8x4xf32>
    %42 = vector.shape_cast %39 : vector<8x4xf32> to vector<1x8x4xf32>
    tpu.vector_store %arg7[%c0_55, %c0_56, %c0_57], %42 {strides = array<i32>} : memref<1x8x4xf32, #tpu.memory_space<vmem>>, vector<1x8x4xf32>,
    return
  }
  func.func @transform_0(%arg0: i32) -> (i32, i32, i32, i32) {
    %c0_i32 = arith.constant 0 : i32
    %c0_i32_0 = arith.constant 0 : i32
    %c0_i32_1 = arith.constant 0 : i32
    %c0_i32_2 = arith.constant 0 : i32
    return %arg0, %c0_i32, %c0_i32_0, %c0_i32_1 : i32, i32, i32, i32
  }
  func.func @transform_1(%arg0: i32) -> (i32, i32, i32, i32) {
    %c0_i32 = arith.constant 0 : i32
    %c0_i32_0 = arith.constant 0 : i32
    %c0_i32_1 = arith.constant 0 : i32
    %c0_i32_2 = arith.constant 0 : i32
    return %arg0, %c0_i32, %c0_i32_0, %c0_i32_1 : i32, i32, i32, i32
  }
  func.func @transform_2(%arg0: i32) -> (i32, i32, i32) {
    %c0_i32 = arith.constant 0 : i32
    %c0_i32_0 = arith.constant 0 : i32
    %c0_i32_1 = arith.constant 0 : i32
    %c0_i32_2 = arith.constant 0 : i32
    return %c0_i32, %c0_i32_0, %c0_i32_1 : i32, i32, i32
  }
  func.func @transform_3(%arg0: i32) -> (i32, i32, i32) {
    %c0_i32 = arith.constant 0 : i32
    %c0_i32_0 = arith.constant 0 : i32
    %c0_i32_1 = arith.constant 0 : i32
    %c0_i32_2 = arith.constant 0 : i32
    return %c0_i32, %c0_i32_0, %c0_i32_1 : i32, i32, i32
  }
  func.func @transform_4(%arg0: i32) -> (i32, i32) {
    %c0_i32 = arith.constant 0 : i32
    %c0_i32_0 = arith.constant 0 : i32
    %c0_i32_1 = arith.constant 0 : i32
    return %c0_i32, %c0_i32_0 : i32, i32
  }
  func.func @transform_5(%arg0: i32) -> (i32, i32, i32, i32) {
    %c0_i32 = arith.constant 0 : i32
    %c0_i32_0 = arith.constant 0 : i32
    %c0_i32_1 = arith.constant 0 : i32
    %c0_i32_2 = arith.constant 0 : i32
    return %arg0, %c0_i32, %c0_i32_0, %c0_i32_1 : i32, i32, i32, i32
  }
  func.func @transform_6(%arg0: i32) -> (i32, i32, i32) {
    %c0_i32 = arith.constant 0 : i32
    %c0_i32_0 = arith.constant 0 : i32
    %c0_i32_1 = arith.constant 0 : i32
    return %arg0, %c0_i32, %c0_i32_0 : i32, i32, i32
  }
}

</mosaic_0001>

<bundles_post_ra>
// kernel: dense_block_forward.4
= control target key start
LH: loop header
LB: loop body
LE: loop exit
PB: predicated region body
PF: predicated region fallthrough
CT: control target
= control target key end

     0   :  { %vm483_vm0 = vcmask 1043456   ;;  %vm290_vm1 = vcmask 31744   ;;  %vm872_vm2 = vcmask 130048   ;;  %vm1267_vm3 = vcmask 1040384   ;;  %s2604_s3 = inlined_call_operand.vmem [shape: f32[4,16], index: 3, kind: input, shape index: {}]   ;;  %s2605_s0 = inlined_call_operand.vmem [shape: f32[512,4], index: 0, kind: input, shape index: {}]   ;;  %s2606_s1 = inlined_call_operand.vmem [shape: f32[1,4], index: 1, kind: input, shape index: {}]   ;;  %s2607_s2 = inlined_call_operand.vmem [shape: f32[1,4], index: 2, kind: input, shape index: {}]   ;;  %s2608_s4 = inlined_call_operand.vmem [shape: f32[512,16], index: 4, kind: output, shape index: {0}]   ;;  %s2609_s5 = inlined_call_operand.vmem [shape: f32[1,8,16], index: 5, kind: output, shape index: {1}]  }
   0x1   :  { %v289_v0 = vld [vmem:[%s2604_s3] sm:$0xf]  ;;  %v20_v5 = vld [vmem:[%s2605_s0 + $0x8] sm:$0xff]  ;;  %v21_v6 = vld [vmem:[%s2605_s0 + $0x10] sm:$0xff]  ;;  %vm1269_vm4 = vcmask 1041408  }
   0x2   :  { %v19_v1 = vld [vmem:[%s2605_s0] sm:$0xff]  ;;  %1412 = vmatprep.subr.msk.mxu0 %vm483_vm0, %v289_v0  ;;  %1510 = vmatprep.subr.msk.mxu1 %vm483_vm0, %v289_v0  ;;  %v22_v9 = vld [vmem:[%s2605_s0 + $0x18] sm:$0xff]  ;;  %v24_v11 = vld [vmem:[%s2605_s0 + $0x28] sm:$0xff] }
   0x3   :  { %v1551_v2 = vld [vmem:[%s2606_s1] ss:$0 sm:$0xff]  ;;  %1413 = vmatpush3.msk.msra.mxu0 %vm483_vm0, %v289_v0  ;;  %1511 = vmatpush3.msk.msra.mxu1 %vm483_vm0, %v289_v0  ;;  %v25_v15 = vld [vmem:[%s2605_s0 + $0x30] sm:$0xff]  ;;  %v26_v19 = vld [vmem:[%s2605_s0 + $0x38] sm:$0xff] }
   0x4   :  { %v90_v3 = vmul.f32 %v1551_v2, %v19_v1  ;;  %v1558_v4 = vld [vmem:[%s2607_s2] ss:$0 sm:$0xff]  ;;  %v91_v7 = vmul.f32 %v1551_v2, %v20_v5  ;;  %v92_v8 = vmul.f32 %v1551_v2, %v21_v6  ;;  %v93_v13 = vmul.f32 %v1551_v2, %v22_v9  ;;  %v28_v33 = vld [vmem:[%s2605_s0 + $0x48] sm:$0xff]  ;;  %v29_v34 = vld [vmem:[%s2605_s0 + $0x50] sm:$0xff] }
   0x5   :  { %v23_v10 = vld [vmem:[%s2605_s0 + $0x20] sm:$0xff]  ;;  %v95_v18 = vmul.f32 %v1551_v2, %v24_v11  ;;  %v96_v23 = vmul.f32 %v1551_v2, %v25_v15  ;;  %v97_v27 = vmul.f32 %v1551_v2, %v26_v19  ;;  %v99_v37 = vmul.f32 %v1551_v2, %v28_v33  ;;  %v30_v41 = vld [vmem:[%s2605_s0 + $0x58] sm:$0xff]  ;;  %v32_v43 = vld [vmem:[%s2605_s0 + $0x68] sm:$0xff] }
   0x6   :  { %v161_v12 = vadd.f32 %v1558_v4, %v90_v3  ;;  %v94_v14 = vmul.f32 %v1551_v2, %v23_v10  ;;  %v162_v16 = vadd.f32 %v1558_v4, %v91_v7  ;;  %v163_v17 = vadd.f32 %v1558_v4, %v92_v8  ;;  %v27_v26 = vld [vmem:[%s2605_s0 + $0x40] sm:$0xff]  ;;  %v33_v44 = vld [vmem:[%s2605_s0 + $0x70] sm:$0xff]  ;;  %v34_v50 = vld [vmem:[%s2605_s0 + $0x78] sm:$0xff] }
   0x7   :  { %v164_v21 = vadd.f32 %v1558_v4, %v93_v13  ;;  %v166_v29 = vadd.f32 %v1558_v4, %v95_v18  ;;  %v167_v31 = vadd.f32 %v1558_v4, %v96_v23  ;;  %v98_v32 = vmul.f32 %v1551_v2, %v27_v26  ;;  %v31_v42 = vld [vmem:[%s2605_s0 + $0x60] sm:$0xff]  ;;  %v36_v63 = vld [vmem:[%s2605_s0 + $0x88] sm:$0xff]  ;;  %v37_v0 = vld [vmem:[%s2605_s0 + $0x90] sm:$0xff] }
   0x8   :  { %v225_v20 = vmax.f32 %v161_v12, 0.0  ;;  %v165_v22 = vadd.f32 %v1558_v4, %v94_v14  ;;  %v226_v24 = vmax.f32 %v162_v16, 0.0  ;;  %v227_v25 = vmax.f32 %v163_v17, 0.0  ;;  %v35_v55 = vld [vmem:[%s2605_s0 + $0x80] sm:$0xff]  ;;  %v38_v3 = vld [vmem:[%s2605_s0 + $0x98] sm:$0xff]  ;;  %v52_v5 = vld [vmem:[%s2605_s0 + $0x108] sm:$0xff] }
   0x9   :  { %v228_v28 = vmax.f32 %v164_v21, 0.0  ;;  %v168_v35 = vadd.f32 %v1558_v4, %v97_v27  ;;  %v230_v36 = vmax.f32 %v166_v29, 0.0  ;;  %v231_v38 = vmax.f32 %v167_v31, 0.0  ;;  %v51_v1 = vld [vmem:[%s2605_s0 + $0x100] sm:$0xff]  ;;  %v53_v6 = vld [vmem:[%s2605_s0 + $0x110] sm:$0xff]  ;;  %v54_v12 = vld [vmem:[%s2605_s0 + $0x118] sm:$0xff] }
   0xa   :  { %1414 = vmatprep.mubr.msk.f32.mxu0 %vm290_vm1, %v225_v20  ;;  %v229_v30 = vmax.f32 %v165_v22, 0.0  ;;  %v169_v39 = vadd.f32 %v1558_v4, %v98_v32  ;;  %v100_v40 = vmul.f32 %v1551_v2, %v29_v34  ;;  %v170_v46 = vadd.f32 %v1558_v4, %v99_v37  ;;  %v39_v11 = vld [vmem:[%s2605_s0 + $0xa0] sm:$0xff]  ;;  %v40_v17 = vld [vmem:[%s2605_s0 + $0xa8] sm:$0xff]  ;;  %v41_v26 = vld [vmem:[%s2605_s0 + $0xb0] sm:$0xff] }
   0xb   :  { %1415 = vmatmul.mubr.msk.f32.vlgmr.msra.gmra.mxu0 %vm290_vm1, %v226_v24  ;;  %v232_v45 = vmax.f32 %v168_v35, 0.0  ;;  %v101_v47 = vmul.f32 %v1551_v2, %v30_v41  ;;  %v102_v48 = vmul.f32 %v1551_v2, %v31_v42  ;;  %v103_v49 = vmul.f32 %v1551_v2, %v32_v43  ;;  %v55_v13 = vld [vmem:[%s2605_s0 + $0x120] sm:$0xff]  ;;  %v56_v19 = vld [vmem:[%s2605_s0 + $0x128] sm:$0xff]  ;;  %v57_v24 = vld [vmem:[%s2605_s0 + $0x130] sm:$0xff] }
   0xc   :  { %1417 = vmatprep.mubr.msk.f32.mxu0 %vm290_vm1, %v227_v25  ;;  %v233_v51 = vmax.f32 %v169_v39, 0.0  ;;  %v171_v52 = vadd.f32 %v1558_v4, %v100_v40  ;;  %v104_v53 = vmul.f32 %v1551_v2, %v33_v44  ;;  %v105_v54 = vmul.f32 %v1551_v2, %v34_v50  ;;  %v42_v27 = vld [vmem:[%s2605_s0 + $0xb8] sm:$0xff]  ;;  %v59_v44 = vld [vmem:[%s2605_s0 + $0x140] sm:$0xff] }
   0xd   :  { %v234_v56 = vmax.f32 %v170_v46, 0.0  ;;  %v172_v57 = vadd.f32 %v1558_v4, %v101_v47  ;;  %v173_v58 = vadd.f32 %v1558_v4, %v102_v48  ;;  %v174_v59 = vadd.f32 %v1558_v4, %v103_v49  ;;  %v58_v39 = vld [vmem:[%s2605_s0 + $0x138] sm:$0xff]  ;;  %v43_v49 = vld [vmem:[%s2605_s0 + $0xc0] sm:$0xff] }
   0xe   :  { %v235_v60 = vmax.f32 %v171_v52, 0.0  ;;  %v1650_v61 = vadd.f32 %v1558_v4, %v104_v53  ;;  %v106_v62 = vmul.f32 %v1551_v2, %v35_v55  ;;  %v1673_v10 = vadd.f32 %v1558_v4, %v105_v54  ;;  %v44_v55 = vld [vmem:[%s2605_s0 + $0xc8] sm:$0xff] }
   0xf   :  { %1418 = vmatmul.mubr.msk.f32.gmra.mxu0 %vm290_vm1, %v228_v28  ;;  %v236_v7 = vmax.f32 %v172_v57, 0.0  ;;  %v237_v8 = vmax.f32 %v173_v58, 0.0  ;;  %v238_v9 = vmax.f32 %v174_v59, 0.0  ;;  %v107_v15 = vmul.f32 %v1551_v2, %v36_v63  ;;  %v60_v59 = vld [vmem:[%s2605_s0 + $0x148] sm:$0xff] }
  0x10   :  { %1420 = vmatprep.mubr.msk.f32.mxu0 %vm290_vm1, %v229_v30  ;;  %v239_v14 = vmax.f32 %v1650_v61, 0.0  ;;  %v108_v16 = vmul.f32 %v1551_v2, %v37_v0  ;;  %v122_v18 = vmul.f32 %v1551_v2, %v51_v1  ;;  %v1696_v20 = vadd.f32 %v1558_v4, %v106_v62  ;;  %v45_v0 = vld [vmem:[%s2605_s0 + $0xd0] sm:$0xff] }
  0x11   :  { %v109_v21 = vmul.f32 %v1551_v2, %v38_v3  ;;  %v123_v22 = vmul.f32 %v1551_v2, %v52_v5  ;;  %v124_v23 = vmul.f32 %v1551_v2, %v53_v6  ;;  %v110_v25 = vmul.f32 %v1551_v2, %v39_v11  ;;  %v61_v1 = vld [vmem:[%s2605_s0 + $0x150] sm:$0xff] }
  0x12   :  { %v193_v28 = vadd.f32 %v1558_v4, %v122_v18  ;;  %v125_v29 = vmul.f32 %v1551_v2, %v54_v12  ;;  %v126_v30 = vmul.f32 %v1551_v2, %v55_v13  ;;  %v111_v31 = vmul.f32 %v1551_v2, %v40_v17 }
  0x13   :  { %1421 = vmatmul.mubr.msk.f32.gmra.mxu0 %vm290_vm1, %v230_v36  ;;  %v194_v32 = vadd.f32 %v1558_v4, %v123_v22  ;;  %v195_v33 = vadd.f32 %v1558_v4, %v124_v23  ;;  %v127_v34 = vmul.f32 %v1551_v2, %v56_v19  ;;  %v112_v40 = vmul.f32 %v1551_v2, %v41_v26 }
  0x14   :  { %1423 = vmatprep.mubr.msk.f32.mxu0 %vm290_vm1, %v231_v38  ;;  %v257_v35 = vmax.f32 %v193_v28, 0.0  ;;  %v196_v36 = vadd.f32 %v1558_v4, %v125_v29  ;;  %v197_v37 = vadd.f32 %v1558_v4, %v126_v30  ;;  %v128_v38 = vmul.f32 %v1551_v2, %v57_v24  ;;  %v64_v30 = vld [vmem:[%s2605_s0 + $0x168] sm:$0xff] }
  0x15   :  { %v113_v41 = vmul.f32 %v1551_v2, %v42_v27  ;;  %v258_v42 = vmax.f32 %v194_v32, 0.0  ;;  %v259_v43 = vmax.f32 %v195_v33, 0.0  ;;  %v1733_v46 = vadd.f32 %v1558_v4, %v108_v16  ;;  %v74_v32 = vld [vmem:[%s2605_s0 + $0x1b8] sm:$0xff] }
  0x16   :  { %v1736_v47 = vadd.f32 %v1558_v4, %v109_v21  ;;  %v1739_v48 = vadd.f32 %v1558_v4, %v110_v25  ;;  %1462 = vmatprep.mubr.msk.f32.mxu1 %vm290_vm1, %v257_v35  ;;  %v240_v50 = vmax.f32 %v1673_v10, 0.0  ;;  %v198_v52 = vadd.f32 %v1558_v4, %v127_v34  ;;  %v47_v10 = vld [vmem:[%s2605_s0 + $0xe0] sm:$0xff]  ;;  %v73_v25 = vld [vmem:[%s2605_s0 + $0x1b0] sm:$0xff] }
  0x17   :  { %1424 = vmatmul.mubr.msk.f32.gmra.mxu0 %vm290_vm1, %v232_v45  ;;  %v178_v45 = vadd.f32 %v1558_v4, %v107_v15  ;;  %1463 = vmatmul.mubr.msk.f32.vlgmr.msra.gmra.mxu1 %vm290_vm1, %v258_v42  ;;  %v129_v53 = vmul.f32 %v1551_v2, %v58_v39  ;;  %v241_v54 = vmax.f32 %v1696_v20, 0.0  ;;  %v199_v57 = vadd.f32 %v1558_v4, %v128_v38  ;;  %v63_v15 = vld [vmem:[%s2605_s0 + $0x160] sm:$0xff]  ;;  %v72_v20 = vld [vmem:[%s2605_s0 + $0x1a8] sm:$0xff] }
  0x18   :  { %1426 = vmatprep.mubr.msk.f32.mxu0 %vm290_vm1, %v233_v51  ;;  %v260_v51 = vmax.f32 %v196_v36, 0.0  ;;  %1465 = vmatprep.mubr.msk.f32.mxu1 %vm290_vm1, %v259_v43  ;;  %v130_v58 = vmul.f32 %v1551_v2, %v59_v44  ;;  %v1765_v61 = vadd.f32 %v1558_v4, %v112_v40  ;;  %v1768_v62 = vadd.f32 %v1558_v4, %v113_v41  ;;  %v76_v42 = vld [vmem:[%s2605_s0 + $0x1c8] sm:$0xff]  ;;  %v77_v43 = vld [vmem:[%s2605_s0 + $0x1d0] sm:$0xff] }
  0x19   :  { %v114_v63 = vmul.f32 %v1551_v2, %v43_v49  ;;  %v242_v3 = vmax.f32 %v178_v45, 0.0  ;;  %v243_v5 = vmax.f32 %v1733_v46, 0.0  ;;  %v244_v6 = vmax.f32 %v1736_v47, 0.0  ;;  %v78_v49 = vld [vmem:[%s2605_s0 + $0x1d8] sm:$0xff] }
  0x1a   :  { %v262_v11 = vmax.f32 %v198_v52, 0.0  ;;  %v200_v12 = vadd.f32 %v1558_v4, %v129_v53  ;;  %v131_v13 = vmul.f32 %v1551_v2, %v60_v59  ;;  %v116_v16 = vmul.f32 %v1551_v2, %v45_v0 }
  0x1b   :  { %1427 = vmatmul.mubr.msk.f32.gmra.mxu0 %vm290_vm1, %v234_v56  ;;  %v261_v56 = vmax.f32 %v197_v37, 0.0  ;;  %1466 = vmatmul.mubr.msk.f32.gmra.mxu1 %vm290_vm1, %v260_v51  ;;  %v263_v17 = vmax.f32 %v199_v57, 0.0  ;;  %v201_v18 = vadd.f32 %v1558_v4, %v130_v58  ;;  %v132_v19 = vmul.f32 %v1551_v2, %v61_v1  ;;  %v75_v37 = vld [vmem:[%s2605_s0 + $0x1c0] sm:$0xff]  ;;  %v66_v57 = vld [vmem:[%s2605_s0 + $0x178] sm:$0xff] }
  0x1c   :  { %1429 = vmatprep.mubr.msk.f32.mxu0 %vm290_vm1, %v235_v60  ;;  %v1762_v60 = vadd.f32 %v1558_v4, %v111_v31  ;;  %v247_v22 = vmax.f32 %v1765_v61, 0.0  ;;  %v248_v23 = vmax.f32 %v1768_v62, 0.0  ;;  %v1809_v24 = vadd.f32 %v1558_v4, %v114_v63  ;;  %v65_v31 = vld [vmem:[%s2605_s0 + $0x170] sm:$0xff] }
  0x1d   :  { %1468 = vmatprep.mubr.msk.f32.mxu1 %vm290_vm1, %v261_v56  ;;  %v1818_v27 = vmul.f32 %v1551_v2, %v47_v10  ;;  %v134_v29 = vmul.f32 %v1551_v2, %v63_v15  ;;  %v264_v34 = vmax.f32 %v200_v12, 0.0  ;;  %v202_v35 = vadd.f32 %v1558_v4, %v131_v13  ;;  %v81_v63 = vld [vmem:[%s2605_s0 + $0x1f0] sm:$0xff]  ;;  %v48_v15 = vld [vmem:[%s2605_s0 + $0xe8] sm:$0xff] }
  0x1e   :  { %v246_v21 = vmax.f32 %v1762_v60, 0.0  ;;  %v143_v36 = vmul.f32 %v1551_v2, %v72_v20  ;;  %v1843_v38 = vadd.f32 %v1558_v4, %v116_v16  ;;  %v265_v39 = vmax.f32 %v201_v18, 0.0  ;;  %v49_v16 = vld [vmem:[%s2605_s0 + $0xf0] sm:$0xff] }
  0x1f   :  { %1430 = vmatmul.mubr.msk.f32.gmra.mxu0 %vm290_vm1, %v236_v7  ;;  %v245_v7 = vmax.f32 %v1739_v48, 0.0  ;;  %1469 = vmatmul.mubr.msk.f32.gmra.mxu1 %vm290_vm1, %v262_v11  ;;  %v203_v40 = vadd.f32 %v1558_v4, %v132_v19  ;;  %v144_v41 = vmul.f32 %v1551_v2, %v73_v25  ;;  %v135_v44 = vmul.f32 %v1551_v2, %v64_v30  ;;  %v67_v48 = vld [vmem:[%s2605_s0 + $0x180] sm:$0xff]  ;;  %v69_v61 = vld [vmem:[%s2605_s0 + $0x190] sm:$0xff] }
  0x20   :  { %1432 = vmatprep.mubr.msk.f32.mxu0 %vm290_vm1, %v237_v8  ;;  %v46_v8 = vld [vmem:[%s2605_s0 + $0xd8] sm:$0xff]  ;;  %1471 = vmatprep.mubr.msk.f32.mxu1 %vm290_vm1, %v263_v17  ;;  %v136_v45 = vmul.f32 %v1551_v2, %v65_v31  ;;  %v1857_v46 = vadd.f32 %v1558_v4, %v143_v36  ;;  %v145_v47 = vmul.f32 %v1551_v2, %v74_v32  ;;  %v266_v56 = vmax.f32 %v202_v35, 0.0 }
  0x21   :  { %v1815_v26 = vmul.f32 %v1551_v2, %v46_v8  ;;  %v205_v52 = vadd.f32 %v1558_v4, %v134_v29  ;;  %v1869_v53 = vadd.f32 %v1558_v4, %v144_v41  ;;  %v147_v59 = vmul.f32 %v1551_v2, %v76_v42  ;;  %v50_v36 = vld [vmem:[%s2605_s0 + $0xf8] sm:$0xff]  ;;  %v71_v41 = vld [vmem:[%s2605_s0 + $0x1a0] sm:$0xff] }
  0x22   :  { %v1881_v58 = vadd.f32 %v1558_v4, %v145_v47  ;;  %v148_v60 = vmul.f32 %v1551_v2, %v77_v43  ;;  %v267_v0 = vmax.f32 %v203_v40, 0.0  ;;  %v249_v8 = vmax.f32 %v1809_v24, 0.0  ;;  %v70_v40 = vld [vmem:[%s2605_s0 + $0x198] sm:$0xff] }
  0x23   :  { %1433 = vmatmul.mubr.msk.f32.gmra.mxu0 %vm290_vm1, %v238_v9  ;;  %v115_v9 = vmul.f32 %v1551_v2, %v44_v55  ;;  %v80_v55 = vld [vmem:[%s2605_s0 + $0x1e8] sm:$0xff]  ;;  %1472 = vmatmul.mubr.msk.f32.gmra.mxu1 %vm290_vm1, %v264_v34  ;;  %v137_v11 = vmul.f32 %v1551_v2, %v66_v57  ;;  %v206_v18 = vadd.f32 %v1558_v4, %v135_v44 }
  0x24   :  { %1435 = vmatprep.mubr.msk.f32.mxu0 %vm290_vm1, %v239_v14  ;;  %v62_v14 = vld [vmem:[%s2605_s0 + $0x158] sm:$0xff]  ;;  %1474 = vmatprep.mubr.msk.f32.mxu1 %vm290_vm1, %v265_v39  ;;  %v151_v10 = vmul.f32 %v1551_v2, %v80_v55  ;;  %v207_v24 = vadd.f32 %v1558_v4, %v136_v45  ;;  %v138_v25 = vmul.f32 %v1551_v2, %v67_v48  ;;  %v251_v39 = vmax.f32 %v1843_v38, 0.0 }
  0x25   :  { %v133_v28 = vmul.f32 %v1551_v2, %v62_v14  ;;  %v1833_v33 = vadd.f32 %v1558_v4, %v115_v9  ;;  %v1908_v9 = vadd.f32 %v1558_v4, %v148_v60  ;;  %v152_v14 = vmul.f32 %v1551_v2, %v81_v63 }
  0x26   :  { %v1929_v19 = vadd.f32 %v1558_v4, %v151_v10  ;;  %v188_v30 = vadd.f32 %v1558_v4, %v1815_v26  ;;  %v189_v31 = vadd.f32 %v1558_v4, %v1818_v27  ;;  %v119_v32 = vmul.f32 %v1551_v2, %v48_v15 }
  0x27   :  { %1436 = vmatmul.mubr.msk.f32.gmra.mxu0 %vm290_vm1, %v240_v50  ;;  %v79_v50 = vld [vmem:[%s2605_s0 + $0x1e0] sm:$0xff]  ;;  %v204_v51 = vadd.f32 %v1558_v4, %v133_v28  ;;  %1475 = vmatmul.mubr.msk.f32.gmra.mxu1 %vm290_vm1, %v266_v56  ;;  %v68_v28 = vld [vmem:[%s2605_s0 + $0x188] sm:$0xff]  ;;  %v1942_v29 = vadd.f32 %v1558_v4, %v152_v14  ;;  %v120_v34 = vmul.f32 %v1551_v2, %v49_v16  ;;  %v250_v35 = vmax.f32 %v1833_v33, 0.0 }
  0x28   :  { %1438 = vmatprep.mubr.msk.f32.mxu0 %vm290_vm1, %v241_v54  ;;  %v146_v54 = vmul.f32 %v1551_v2, %v75_v37  ;;  %1477 = vmatprep.mubr.msk.f32.mxu1 %vm290_vm1, %v267_v0  ;;  %v270_v26 = vmax.f32 %v206_v18, 0.0  ;;  %v208_v37 = vadd.f32 %v1558_v4, %v137_v11  ;;  %v139_v27 = vmul.f32 %v1551_v2, %v68_v28 }
  0x29   :  { %v268_v17 = vmax.f32 %v204_v51, 0.0  ;;  %v271_v62 = vmax.f32 %v207_v24, 0.0  ;;  %v140_v33 = vmul.f32 %v1551_v2, %v69_v61  ;;  %v190_v42 = vadd.f32 %v1558_v4, %v119_v32 }
  0x2a   :  { %v1893_v1 = vadd.f32 %v1558_v4, %v146_v54  ;;  %v191_v43 = vadd.f32 %v1558_v4, %v120_v34  ;;  %v121_v38 = vmul.f32 %v1551_v2, %v50_v36  ;;  %v252_v44 = vmax.f32 %v188_v30, 0.0 }
  0x2b   :  { %1439 = vmatmul.mubr.msk.f32.gmra.mxu0 %vm290_vm1, %v242_v3  ;;  %v149_v3 = vmul.f32 %v1551_v2, %v78_v49  ;;  %1478 = vmatmul.mubr.msk.f32.gmra.mxu1 %vm290_vm1, %v268_v17  ;;  %v272_v45 = vmax.f32 %v208_v37, 0.0  ;;  %v210_v47 = vadd.f32 %v1558_v4, %v139_v27  ;;  %v141_v49 = vmul.f32 %v1551_v2, %v70_v40 }
  0x2c   :  { %1441 = vmatprep.mubr.msk.f32.mxu0 %vm290_vm1, %v243_v5  ;;  %v150_v5 = vmul.f32 %v1551_v2, %v79_v50  ;;  %v253_v50 = vmax.f32 %v189_v31, 0.0  ;;  %v142_v54 = vmul.f32 %v1551_v2, %v71_v41  ;;  %v254_v55 = vmax.f32 %v190_v42, 0.0 }
  0x2d   :  { %v1913_v12 = vadd.f32 %v1558_v4, %v149_v3  ;;  %v192_v56 = vadd.f32 %v1558_v4, %v121_v38  ;;  %v274_v57 = vmax.f32 %v210_v47, 0.0  ;;  %v255_v60 = vmax.f32 %v191_v43, 0.0 }
  0x2e   :  { %v1916_v13 = vadd.f32 %v1558_v4, %v150_v5  ;;  %v213_v0 = vadd.f32 %v1558_v4, %v142_v54  ;;  %v281_v48 = vmax.f32 %v1893_v1, 0.0  ;;  %v286_v1 = vmax.f32 %v1929_v19, 0.0 }
  0x2f   :  { %1442 = vmatmul.mubr.msk.f32.gmra.mxu0 %vm290_vm1, %v244_v6  ;;  %v82_v6 = vld [vmem:[%s2605_s0 + $0x1f8] sm:$0xff] }
  0x30   :  { %1444 = vmatprep.mubr.msk.f32.mxu0 %vm290_vm1, %v245_v7  ;;  %v1905_v7 = vadd.f32 %v1558_v4, %v147_v59  ;;  %v153_v20 = vmul.f32 %v1551_v2, %v82_v6  ;;  %v212_v59 = vadd.f32 %v1558_v4, %v141_v49  ;;  %v256_v2 = vmax.f32 %v192_v56, 0.0 }
  0x31   :  { %v277_v5 = vmax.f32 %v213_v0, 0.0  ;;  %v278_v6 = vmax.f32 %v1857_v46, 0.0  ;;  %v283_v46 = vmax.f32 %v1908_v9, 0.0 }
  0x32   :  { %v276_v3 = vmax.f32 %v212_v59, 0.0  ;;  %v282_v10 = vmax.f32 %v1905_v7, 0.0  ;;  %v287_v7 = vmax.f32 %v1942_v29, 0.0 }
  0x33   :  { %1445 = vmatmul.mubr.msk.f32.gmra.mxu0 %vm290_vm1, %v246_v21  ;;  %v269_v21 = vmax.f32 %v205_v52, 0.0  ;;  %v211_v52 = vadd.f32 %v1558_v4, %v140_v33 }
  0x34   :  { %1447 = vmatprep.mubr.msk.f32.mxu0 %vm290_vm1, %v247_v22  ;;  %v1948_v22 = vadd.f32 %v1558_v4, %v153_v20 }
  0x35   :  { %1480 = vmatprep.mubr.msk.f32.mxu1 %vm290_vm1, %v269_v21  ;;  %v275_v63 = vmax.f32 %v211_v52, 0.0 }
  0x36   :  { %1481 = vmatmul.mubr.msk.f32.gmra.mxu1 %vm290_vm1, %v270_v26  ;;  %v288_v9 = vmax.f32 %v1948_v22, 0.0 }
  0x37   :  { %1448 = vmatmul.mubr.msk.f32.gmra.mxu0 %vm290_vm1, %v248_v23  ;;  %v209_v23 = vadd.f32 %v1558_v4, %v138_v25  ;;  %1483 = vmatprep.mubr.msk.f32.mxu1 %vm290_vm1, %v271_v62  ;;  %v279_v4 = vmax.f32 %v1869_v53, 0.0  ;;  %v284_v53 = vmax.f32 %v1913_v12, 0.0 }
  0x38   :  { %1450 = vmatprep.mubr.msk.f32.mxu0 %vm290_vm1, %v249_v8  ;;  %v280_v8 = vmax.f32 %v1881_v58, 0.0  ;;  %v285_v58 = vmax.f32 %v1916_v13, 0.0 }
  0x39   :  { %v273_v51 = vmax.f32 %v209_v23, 0.0 }
  0x3a   :  { %1484 = vmatmul.mubr.msk.f32.gmra.mxu1 %vm290_vm1, %v272_v45 }
  0x3b   :  { %1451 = vmatmul.mubr.msk.f32.gmra.mxu0 %vm290_vm1, %v250_v35  ;;  %1486 = vmatprep.mubr.msk.f32.mxu1 %vm290_vm1, %v273_v51 }
  0x3c   :  { %1453 = vmatprep.mubr.msk.f32.mxu0 %vm290_vm1, %v251_v39 }
  0x3e   :  { %1487 = vmatmul.mubr.msk.f32.gmra.mxu1 %vm290_vm1, %v274_v57 }
  0x3f   :  { %1454 = vmatmul.mubr.msk.f32.gmra.mxu0 %vm290_vm1, %v252_v44  ;;  %1489 = vmatprep.mubr.msk.f32.mxu1 %vm290_vm1, %v275_v63 }
  0x40   :  { %1456 = vmatprep.mubr.msk.f32.mxu0 %vm290_vm1, %v253_v50 }
  0x42   :  { %1490 = vmatmul.mubr.msk.f32.gmra.mxu1 %vm290_vm1, %v276_v3 }
  0x43   :  { %1457 = vmatmul.mubr.msk.f32.gmra.mxu0 %vm290_vm1, %v254_v55  ;;  %1492 = vmatprep.mubr.msk.f32.mxu1 %vm290_vm1, %v277_v5 }
  0x44   :  { %1459 = vmatprep.mubr.msk.f32.mxu0 %vm290_vm1, %v255_v60 }
  0x46   :  { %1493 = vmatmul.mubr.msk.f32.gmra.mxu1 %vm290_vm1, %v278_v6 }
  0x47   :  { %1460 = vmatmul.mubr.msk.f32.gmra.mxu0 %vm290_vm1, %v256_v2  ;;  %1495 = vmatprep.mubr.msk.f32.mxu1 %vm290_vm1, %v279_v4 }
  0x4a   :  { %1496 = vmatmul.mubr.msk.f32.gmra.mxu1 %vm290_vm1, %v280_v8 }
  0x4b   :  { %1498 = vmatprep.mubr.msk.f32.mxu1 %vm290_vm1, %v281_v48 }
  0x4e   :  { %1499 = vmatmul.mubr.msk.f32.gmra.mxu1 %vm290_vm1, %v282_v10 }
  0x4f   :  { %1501 = vmatprep.mubr.msk.f32.mxu1 %vm290_vm1, %v283_v46 }
  0x52   :  { %1502 = vmatmul.mubr.msk.f32.gmra.mxu1 %vm290_vm1, %v284_v53 }
  0x53   :  { %1504 = vmatprep.mubr.msk.f32.mxu1 %vm290_vm1, %v285_v58 }
  0x56   :  { %1505 = vmatmul.mubr.msk.f32.gmra.mxu1 %vm290_vm1, %v286_v1 }
  0x57   :  { %1507 = vmatprep.mubr.msk.f32.mxu1 %vm290_vm1, %v287_v7 }
  0x5a   :  { %1508 = vmatmul.mubr.msk.f32.gmra.mxu1 %vm290_vm1, %v288_v9 }
  0xcb   :  { %v1416_v11 = vpop.f32.mrf.mxu0 }
  0xcc   :  { %874 = vst.msk [vmem:[%s2608_s4 + $0x8] sm:$0xff] %vm872_vm2, %v1416_v11  ;;  %v1071_v13 = vmul.f32 %v1416_v11, %v1416_v11  ;;  %v938_v17 = vsel %vm872_vm2, %v1416_v11, 0.0 }
  0xcd   :  { %v553_v12 = vpop.f32.mrf.mxu0 }
  0xce   :  { %873 = vst.msk [vmem:[%s2608_s4] sm:$0xff] %vm872_vm2, %v553_v12  ;;  %v937_v14 = vsel %vm872_vm2, %v553_v12, 0.0  ;;  %v1070_v15 = vmul.f32 %v553_v12, %v553_v12  ;;  %v1135_v21 = vsel %vm872_vm2, %v1071_v13, 0.0 }
  0xcf   :  { %v1419_v16 = vpop.f32.mrf.mxu0  ;;  %v939_v19 = vadd.f32 %v938_v17, %v937_v14 }
  0xd0   :  { %v1134_v18 = vsel %vm872_vm2, %v1070_v15, 0.0  ;;  %876 = vst.msk [vmem:[%s2608_s4 + $0x18] sm:$0xff] %vm872_vm2, %v1419_v16  ;;  %v1073_v24 = vmul.f32 %v1419_v16, %v1419_v16  ;;  %v942_v30 = vsel %vm872_vm2, %v1419_v16, 0.0 }
  0xd1   :  { %v563_v20 = vpop.f32.mrf.mxu0  ;;  %v1136_v29 = vadd.f32 %v1135_v21, %v1134_v18 }
  0xd2   :  { %875 = vst.msk [vmem:[%s2608_s4 + $0x10] sm:$0xff] %vm872_vm2, %v563_v20  ;;  %v940_v25 = vsel %vm872_vm2, %v563_v20, 0.0  ;;  %v1072_v28 = vmul.f32 %v563_v20, %v563_v20  ;;  %v1139_v36 = vsel %vm872_vm2, %v1073_v24, 0.0 }
  0xd3   :  { %v941_v61 = vadd.f32 %v940_v25, %v939_v19  ;;  %v1422_v22 = vpop.f32.mrf.mxu0 }
  0xd4   :  { %v1137_v31 = vsel %vm872_vm2, %v1072_v28, 0.0  ;;  %878 = vst.msk [vmem:[%s2608_s4 + $0x28] sm:$0xff] %vm872_vm2, %v1422_v22  ;;  %v1075_v26 = vmul.f32 %v1422_v22, %v1422_v22  ;;  %v946_v33 = vsel %vm872_vm2, %v1422_v22, 0.0 }
  0xd5   :  { %v1138_v32 = vadd.f32 %v1137_v31, %v1136_v29  ;;  %v573_v34 = vpop.f32.mrf.mxu0  ;;  %v943_v35 = vadd.f32 %v942_v30, %v941_v61 }
  0xd6   :  { %877 = vst.msk [vmem:[%s2608_s4 + $0x20] sm:$0xff] %vm872_vm2, %v573_v34  ;;  %v944_v37 = vsel %vm872_vm2, %v573_v34, 0.0  ;;  %v1074_v27 = vmul.f32 %v573_v34, %v573_v34  ;;  %v1143_v38 = vsel %vm872_vm2, %v1075_v26, 0.0 }
  0xd7   :  { %v945_v39 = vadd.f32 %v944_v37, %v943_v35  ;;  %v1140_v62 = vadd.f32 %v1139_v36, %v1138_v32  ;;  %v1425_v23 = vpop.f32.mrf.mxu0  ;;  %v2093_v12 = vpop.f32.mrf.mxu1 }
  0xd8   :  { %v1141_v40 = vsel %vm872_vm2, %v1074_v27, 0.0  ;;  %880 = vst.msk [vmem:[%s2608_s4 + $0x38] sm:$0xff] %vm872_vm2, %v1425_v23  ;;  %v1077_v44 = vmul.f32 %v1425_v23, %v1425_v23  ;;  %v950_v52 = vsel %vm872_vm2, %v1425_v23, 0.0  ;;  %906 = vst.msk [vmem:[%s2608_s4 + $0x108] sm:$0xff] %vm872_vm2, %v2093_v12 }
  0xd9   :  { %v1142_v41 = vadd.f32 %v1141_v40, %v1140_v62  ;;  %v583_v42 = vpop.f32.mrf.mxu0  ;;  %v947_v43 = vadd.f32 %v946_v33, %v945_v39  ;;  %v2106_v18 = vpop.f32.mrf.mxu1 }
  0xda   :  { %879 = vst.msk [vmem:[%s2608_s4 + $0x30] sm:$0xff] %vm872_vm2, %v583_v42  ;;  %v948_v45 = vsel %vm872_vm2, %v583_v42, 0.0  ;;  %v1076_v47 = vmul.f32 %v583_v42, %v583_v42  ;;  %v1147_v59 = vsel %vm872_vm2, %v1077_v44, 0.0  ;;  %905 = vst.msk [vmem:[%s2608_s4 + $0x100] sm:$0xff] %vm872_vm2, %v2106_v18 }
  0xdb   :  { %v949_v49 = vadd.f32 %v948_v45, %v947_v43  ;;  %v1144_v50 = vadd.f32 %v1143_v38, %v1142_v41  ;;  %v1428_v51 = vpop.f32.mrf.mxu0  ;;  %v2119_v61 = vpop.f32.mrf.mxu1 }
  0xdc   :  { %v1145_v54 = vsel %vm872_vm2, %v1076_v47, 0.0  ;;  %882 = vst.msk [vmem:[%s2608_s4 + $0x48] sm:$0xff] %vm872_vm2, %v1428_v51  ;;  %v1079_v60 = vmul.f32 %v1428_v51, %v1428_v51  ;;  %v954_v6 = vsel %vm872_vm2, %v1428_v51, 0.0  ;;  %908 = vst.msk [vmem:[%s2608_s4 + $0x118] sm:$0xff] %vm872_vm2, %v2119_v61 }
  0xdd   :  { %v1146_v55 = vadd.f32 %v1145_v54, %v1144_v50  ;;  %v593_v56 = vpop.f32.mrf.mxu0  ;;  %v951_v57 = vadd.f32 %v950_v52, %v949_v49  ;;  %v2132_v35 = vpop.f32.mrf.mxu1 }
  0xde   :  { %881 = vst.msk [vmem:[%s2608_s4 + $0x40] sm:$0xff] %vm872_vm2, %v593_v56  ;;  %v952_v63 = vsel %vm872_vm2, %v593_v56, 0.0  ;;  %v1078_v0 = vmul.f32 %v593_v56, %v593_v56  ;;  %v1151_v46 = vsel %vm872_vm2, %v1079_v60, 0.0  ;;  %907 = vst.msk [vmem:[%s2608_s4 + $0x110] sm:$0xff] %vm872_vm2, %v2132_v35 }
  0xdf   :  { %v953_v2 = vadd.f32 %v952_v63, %v951_v57  ;;  %v1148_v3 = vadd.f32 %v1147_v59, %v1146_v55  ;;  %v1431_v5 = vpop.f32.mrf.mxu0  ;;  %v2145_v33 = vpop.f32.mrf.mxu1 }
  0xe0   :  { %v1149_v4 = vsel %vm872_vm2, %v1078_v0, 0.0  ;;  %884 = vst.msk [vmem:[%s2608_s4 + $0x58] sm:$0xff] %vm872_vm2, %v1431_v5  ;;  %v1081_v53 = vmul.f32 %v1431_v5, %v1431_v5  ;;  %v958_v13 = vsel %vm872_vm2, %v1431_v5, 0.0  ;;  %910 = vst.msk [vmem:[%s2608_s4 + $0x128] sm:$0xff] %vm872_vm2, %v2145_v33 }
  0xe1   :  { %v1150_v8 = vadd.f32 %v1149_v4, %v1148_v3  ;;  %v603_v48 = vpop.f32.mrf.mxu0  ;;  %v955_v10 = vadd.f32 %v954_v6, %v953_v2  ;;  %v2158_v44 = vpop.f32.mrf.mxu1 }
  0xe2   :  { %883 = vst.msk [vmem:[%s2608_s4 + $0x50] sm:$0xff] %vm872_vm2, %v603_v48  ;;  %v956_v58 = vsel %vm872_vm2, %v603_v48, 0.0  ;;  %v1080_v1 = vmul.f32 %v603_v48, %v603_v48  ;;  %v1155_v19 = vsel %vm872_vm2, %v1081_v53, 0.0  ;;  %909 = vst.msk [vmem:[%s2608_s4 + $0x120] sm:$0xff] %vm872_vm2, %v2158_v44 }
  0xe3   :  { %v957_v7 = vadd.f32 %v956_v58, %v955_v10  ;;  %v1152_v9 = vadd.f32 %v1151_v46, %v1150_v8  ;;  %v1434_v11 = vpop.f32.mrf.mxu0  ;;  %v2171_v55 = vpop.f32.mrf.mxu1 }
  0xe4   :  { %v1153_v14 = vsel %vm872_vm2, %v1080_v1, 0.0  ;;  %886 = vst.msk [vmem:[%s2608_s4 + $0x68] sm:$0xff] %vm872_vm2, %v1434_v11  ;;  %v1083_v20 = vmul.f32 %v1434_v11, %v1434_v11  ;;  %v962_v22 = vsel %vm872_vm2, %v1434_v11, 0.0  ;;  %912 = vst.msk [vmem:[%s2608_s4 + $0x138] sm:$0xff] %vm872_vm2, %v2171_v55 }
  0xe5   :  { %v1154_v15 = vadd.f32 %v1153_v14, %v1152_v9  ;;  %v613_v16 = vpop.f32.mrf.mxu0  ;;  %v959_v17 = vadd.f32 %v958_v13, %v957_v7  ;;  %v2184_v0 = vpop.f32.mrf.mxu1 }
  0xe6   :  { %885 = vst.msk [vmem:[%s2608_s4 + $0x60] sm:$0xff] %vm872_vm2, %v613_v16  ;;  %v960_v21 = vsel %vm872_vm2, %v613_v16, 0.0  ;;  %v1082_v24 = vmul.f32 %v613_v16, %v613_v16  ;;  %v1159_v36 = vsel %vm872_vm2, %v1083_v20, 0.0  ;;  %911 = vst.msk [vmem:[%s2608_s4 + $0x130] sm:$0xff] %vm872_vm2, %v2184_v0 }
  0xe7   :  { %v961_v25 = vadd.f32 %v960_v21, %v959_v17  ;;  %v1156_v28 = vadd.f32 %v1155_v19, %v1154_v15  ;;  %v1437_v29 = vpop.f32.mrf.mxu0  ;;  %v2197_v10 = vpop.f32.mrf.mxu1 }
  0xe8   :  { %v1157_v30 = vsel %vm872_vm2, %v1082_v24, 0.0  ;;  %888 = vst.msk [vmem:[%s2608_s4 + $0x78] sm:$0xff] %vm872_vm2, %v1437_v29  ;;  %v1085_v26 = vmul.f32 %v1437_v29, %v1437_v29  ;;  %v966_v40 = vsel %vm872_vm2, %v1437_v29, 0.0  ;;  %914 = vst.msk [vmem:[%s2608_s4 + $0x148] sm:$0xff] %vm872_vm2, %v2197_v10 }
  0xe9   :  { %v1158_v31 = vadd.f32 %v1157_v30, %v1156_v28  ;;  %v623_v32 = vpop.f32.mrf.mxu0  ;;  %v963_v34 = vadd.f32 %v962_v22, %v961_v25  ;;  %v2210_v9 = vpop.f32.mrf.mxu1 }
  0xea   :  { %887 = vst.msk [vmem:[%s2608_s4 + $0x70] sm:$0xff] %vm872_vm2, %v623_v32  ;;  %v964_v37 = vsel %vm872_vm2, %v623_v32, 0.0  ;;  %v1084_v27 = vmul.f32 %v623_v32, %v623_v32  ;;  %v1163_v45 = vsel %vm872_vm2, %v1085_v26, 0.0  ;;  %913 = vst.msk [vmem:[%s2608_s4 + $0x140] sm:$0xff] %vm872_vm2, %v2210_v9 }
  0xeb   :  { %v965_v39 = vadd.f32 %v964_v37, %v963_v34  ;;  %v1160_v62 = vadd.f32 %v1159_v36, %v1158_v31  ;;  %v1440_v23 = vpop.f32.mrf.mxu0  ;;  %v2223_v20 = vpop.f32.mrf.mxu1 }
  0xec   :  { %v1161_v41 = vsel %vm872_vm2, %v1084_v27, 0.0  ;;  %890 = vst.msk [vmem:[%s2608_s4 + $0x88] sm:$0xff] %vm872_vm2, %v1440_v23  ;;  %v1087_v47 = vmul.f32 %v1440_v23, %v1440_v23  ;;  %v970_v56 = vsel %vm872_vm2, %v1440_v23, 0.0  ;;  %916 = vst.msk [vmem:[%s2608_s4 + $0x158] sm:$0xff] %vm872_vm2, %v2223_v20 }
  0xed   :  { %v1162_v42 = vadd.f32 %v1161_v41, %v1160_v62  ;;  %v633_v43 = vpop.f32.mrf.mxu0  ;;  %v967_v38 = vadd.f32 %v966_v40, %v965_v39  ;;  %v2236_v22 = vpop.f32.mrf.mxu1 }
  0xee   :  { %889 = vst.msk [vmem:[%s2608_s4 + $0x80] sm:$0xff] %vm872_vm2, %v633_v43  ;;  %v968_v49 = vsel %vm872_vm2, %v633_v43, 0.0  ;;  %v1086_v50 = vmul.f32 %v633_v43, %v633_v43  ;;  %v1167_v2 = vsel %vm872_vm2, %v1087_v47, 0.0  ;;  %915 = vst.msk [vmem:[%s2608_s4 + $0x150] sm:$0xff] %vm872_vm2, %v2236_v22 }
  0xef   :  { %v969_v51 = vadd.f32 %v968_v49, %v967_v38  ;;  %v1164_v52 = vadd.f32 %v1163_v45, %v1162_v42  ;;  %v1443_v54 = vpop.f32.mrf.mxu0 }
  0xf0   :  { %v1165_v57 = vsel %vm872_vm2, %v1086_v50, 0.0  ;;  %892 = vst.msk [vmem:[%s2608_s4 + $0x98] sm:$0xff] %vm872_vm2, %v1443_v54  ;;  %v1089_v3 = vmul.f32 %v1443_v54, %v1443_v54  ;;  %v974_v46 = vsel %vm872_vm2, %v1443_v54, 0.0 }
  0xf1   :  { %v1166_v59 = vadd.f32 %v1165_v57, %v1164_v52  ;;  %v643_v60 = vpop.f32.mrf.mxu0  ;;  %v971_v63 = vadd.f32 %v970_v56, %v969_v51 }
  0xf2   :  { %891 = vst.msk [vmem:[%s2608_s4 + $0x90] sm:$0xff] %vm872_vm2, %v643_v60  ;;  %v972_v5 = vsel %vm872_vm2, %v643_v60, 0.0  ;;  %v1088_v6 = vmul.f32 %v643_v60, %v643_v60  ;;  %v1171_v11 = vsel %vm872_vm2, %v1089_v3, 0.0 }
  0xf3   :  { %v973_v4 = vadd.f32 %v972_v5, %v971_v63  ;;  %v1168_v8 = vadd.f32 %v1167_v2, %v1166_v59  ;;  %v1446_v48 = vpop.f32.mrf.mxu0 }
  0xf4   :  { %v1169_v53 = vsel %vm872_vm2, %v1088_v6, 0.0  ;;  %894 = vst.msk [vmem:[%s2608_s4 + $0xa8] sm:$0xff] %vm872_vm2, %v1446_v48  ;;  %v1091_v13 = vmul.f32 %v1446_v48, %v1446_v48  ;;  %v978_v21 = vsel %vm872_vm2, %v1446_v48, 0.0 }
  0xf5   :  { %v1170_v58 = vadd.f32 %v1169_v53, %v1168_v8  ;;  %v653_v1 = vpop.f32.mrf.mxu0  ;;  %v975_v7 = vadd.f32 %v974_v46, %v973_v4 }
  0xf6   :  { %893 = vst.msk [vmem:[%s2608_s4 + $0xa0] sm:$0xff] %vm872_vm2, %v653_v1  ;;  %v976_v14 = vsel %vm872_vm2, %v653_v1, 0.0  ;;  %v1090_v15 = vmul.f32 %v653_v1, %v653_v1  ;;  %v1175_v30 = vsel %vm872_vm2, %v1091_v13, 0.0  ;;  %v2249_v27 = vpop.f32.mrf.mxu1 }
  0xf7   :  { %v977_v16 = vadd.f32 %v976_v14, %v975_v7  ;;  %v1172_v17 = vadd.f32 %v1171_v11, %v1170_v58  ;;  %v1449_v19 = vpop.f32.mrf.mxu0  ;;  %918 = vst.msk [vmem:[%s2608_s4 + $0x168] sm:$0xff] %vm872_vm2, %v2249_v27 }
  0xf8   :  { %v1173_v24 = vsel %vm872_vm2, %v1090_v15, 0.0  ;;  %896 = vst.msk [vmem:[%s2608_s4 + $0xb8] sm:$0xff] %vm872_vm2, %v1449_v19  ;;  %v1093_v31 = vmul.f32 %v1449_v19, %v1449_v19  ;;  %v982_v39 = vsel %vm872_vm2, %v1449_v19, 0.0  ;;  %v2262_v42 = vpop.f32.mrf.mxu1 }
  0xf9   :  { %v1174_v25 = vadd.f32 %v1173_v24, %v1172_v17  ;;  %v663_v28 = vpop.f32.mrf.mxu0  ;;  %v979_v29 = vadd.f32 %v978_v21, %v977_v16  ;;  %917 = vst.msk [vmem:[%s2608_s4 + $0x160] sm:$0xff] %vm872_vm2, %v2262_v42 }
  0xfa   :  { %895 = vst.msk [vmem:[%s2608_s4 + $0xb0] sm:$0xff] %vm872_vm2, %v663_v28  ;;  %v980_v32 = vsel %vm872_vm2, %v663_v28, 0.0  ;;  %v1092_v34 = vmul.f32 %v663_v28, %v663_v28  ;;  %v1179_v43 = vsel %vm872_vm2, %v1093_v31, 0.0  ;;  %v2275_v52 = vpop.f32.mrf.mxu1 }
  0xfb   :  { %v981_v36 = vadd.f32 %v980_v32, %v979_v29  ;;  %v1176_v26 = vadd.f32 %v1175_v30, %v1174_v25  ;;  %v1452_v37 = vpop.f32.mrf.mxu0  ;;  %920 = vst.msk [vmem:[%s2608_s4 + $0x178] sm:$0xff] %vm872_vm2, %v2275_v52 }
  0xfc   :  { %v1177_v62 = vsel %vm872_vm2, %v1092_v34, 0.0  ;;  %898 = vst.msk [vmem:[%s2608_s4 + $0xc8] sm:$0xff] %vm872_vm2, %v1452_v37  ;;  %v1095_v38 = vmul.f32 %v1452_v37, %v1452_v37  ;;  %v986_v54 = vsel %vm872_vm2, %v1452_v37, 0.0  ;;  %v2288_v63 = vpop.f32.mrf.mxu1 }
  0xfd   :  { %v1178_v23 = vadd.f32 %v1177_v62, %v1176_v26  ;;  %v673_v40 = vpop.f32.mrf.mxu0  ;;  %v983_v41 = vadd.f32 %v982_v39, %v981_v36  ;;  %919 = vst.msk [vmem:[%s2608_s4 + $0x170] sm:$0xff] %vm872_vm2, %v2288_v63 }
  0xfe   :  { %897 = vst.msk [vmem:[%s2608_s4 + $0xc0] sm:$0xff] %vm872_vm2, %v673_v40  ;;  %v984_v45 = vsel %vm872_vm2, %v673_v40, 0.0  ;;  %v1094_v47 = vmul.f32 %v673_v40, %v673_v40  ;;  %v1183_v2 = vsel %vm872_vm2, %v1095_v38, 0.0  ;;  %v2301_v46 = vpop.f32.mrf.mxu1  ;;  %v1102_v38 = vmul.f32 %v2106_v18, %v2106_v18 }
  0xff   :  { %v985_v49 = vadd.f32 %v984_v45, %v983_v41  ;;  %v1180_v50 = vadd.f32 %v1179_v43, %v1178_v23  ;;  %v1455_v51 = vpop.f32.mrf.mxu0  ;;  %922 = vst.msk [vmem:[%s2608_s4 + $0x188] sm:$0xff] %vm872_vm2, %v2301_v46 }
 0x100   :  { %v1181_v56 = vsel %vm872_vm2, %v1094_v47, 0.0  ;;  %900 = vst.msk [vmem:[%s2608_s4 + $0xd8] sm:$0xff] %vm872_vm2, %v1455_v51  ;;  %v1097_v3 = vmul.f32 %v1455_v51, %v1455_v51  ;;  %v990_v53 = vsel %vm872_vm2, %v1455_v51, 0.0  ;;  %v2314_v13 = vpop.f32.mrf.mxu1  ;;  %v1103_v51 = vmul.f32 %v2093_v12, %v2093_v12 }
 0x101   :  { %v1182_v57 = vadd.f32 %v1181_v56, %v1180_v50  ;;  %v683_v59 = vpop.f32.mrf.mxu0  ;;  %v987_v60 = vadd.f32 %v986_v54, %v985_v49  ;;  %921 = vst.msk [vmem:[%s2608_s4 + $0x180] sm:$0xff] %vm872_vm2, %v2314_v13  ;;  %v1000_v54 = vsel %vm872_vm2, %v2106_v18, 0.0 }
 0x102   :  { %899 = vst.msk [vmem:[%s2608_s4 + $0xd0] sm:$0xff] %vm872_vm2, %v683_v59  ;;  %v988_v5 = vsel %vm872_vm2, %v683_v59, 0.0  ;;  %v1096_v6 = vmul.f32 %v683_v59, %v683_v59  ;;  %v1187_v14 = vsel %vm872_vm2, %v1097_v3, 0.0  ;;  %v2327_v25 = vpop.f32.mrf.mxu1  ;;  %v1104_v3 = vmul.f32 %v2132_v35, %v2132_v35 }
 0x103   :  { %v989_v4 = vadd.f32 %v988_v5, %v987_v60  ;;  %v1184_v8 = vadd.f32 %v1183_v2, %v1182_v57  ;;  %v1458_v48 = vpop.f32.mrf.mxu0  ;;  %924 = vst.msk [vmem:[%s2608_s4 + $0x198] sm:$0xff] %vm872_vm2, %v2327_v25  ;;  %v1002_v60 = vsel %vm872_vm2, %v2093_v12, 0.0  ;;  %v1197_v2 = vsel %vm872_vm2, %v1102_v38, 0.0 }
 0x104   :  { %v1185_v58 = vsel %vm872_vm2, %v1096_v6, 0.0  ;;  %902 = vst.msk [vmem:[%s2608_s4 + $0xe8] sm:$0xff] %vm872_vm2, %v1458_v48  ;;  %v1099_v15 = vmul.f32 %v1458_v48, %v1458_v48  ;;  %v994_v28 = vsel %vm872_vm2, %v1458_v48, 0.0  ;;  %v2340_v34 = vpop.f32.mrf.mxu1  ;;  %v1105_v12 = vmul.f32 %v2119_v61, %v2119_v61 }
 0x105   :  { %v1186_v1 = vadd.f32 %v1185_v58, %v1184_v8  ;;  %v693_v7 = vpop.f32.mrf.mxu0  ;;  %v991_v11 = vadd.f32 %v990_v53, %v989_v4  ;;  %923 = vst.msk [vmem:[%s2608_s4 + $0x190] sm:$0xff] %vm872_vm2, %v2340_v34  ;;  %v1199_v4 = vsel %vm872_vm2, %v1103_v51, 0.0  ;;  %v1004_v8 = vsel %vm872_vm2, %v2132_v35, 0.0 }
 0x106   :  { %901 = vst.msk [vmem:[%s2608_s4 + $0xe0] sm:$0xff] %vm872_vm2, %v693_v7  ;;  %v992_v16 = vsel %vm872_vm2, %v693_v7, 0.0  ;;  %v1098_v17 = vmul.f32 %v693_v7, %v693_v7  ;;  %v1191_v36 = vsel %vm872_vm2, %v1099_v15, 0.0  ;;  %v2353_v40 = vpop.f32.mrf.mxu1  ;;  %v1201_v7 = vsel %vm872_vm2, %v1104_v3, 0.0 }
 0x107   :  { %v993_v19 = vadd.f32 %v992_v16, %v991_v11  ;;  %v1188_v21 = vadd.f32 %v1187_v14, %v1186_v1  ;;  %v1461_v24 = vpop.f32.mrf.mxu0  ;;  %926 = vst.msk [vmem:[%s2608_s4 + $0x1a8] sm:$0xff] %vm872_vm2, %v2353_v40  ;;  %v1006_v1 = vsel %vm872_vm2, %v2119_v61, 0.0  ;;  %v1106_v11 = vmul.f32 %v2158_v44, %v2158_v44 }
 0x108   :  { %v1189_v29 = vsel %vm872_vm2, %v1098_v17, 0.0  ;;  %904 = vst.msk [vmem:[%s2608_s4 + $0xf8] sm:$0xff] %vm872_vm2, %v1461_v24  ;;  %v1101_v26 = vmul.f32 %v1461_v24, %v1461_v24  ;;  %v998_v41 = vsel %vm872_vm2, %v1461_v24, 0.0  ;;  %v2364_v49 = vpop.f32.mrf.mxu1  ;;  %v1203_v16 = vsel %vm872_vm2, %v1105_v12, 0.0 }
 0x109   :  { %v1190_v30 = vadd.f32 %v1189_v29, %v1188_v21  ;;  %v703_v31 = vpop.f32.mrf.mxu0  ;;  %v995_v32 = vadd.f32 %v994_v28, %v993_v19  ;;  %925 = vst.msk [vmem:[%s2608_s4 + $0x1a0] sm:$0xff] %vm872_vm2, %v2364_v49  ;;  %v1107_v61 = vmul.f32 %v2145_v33, %v2145_v33  ;;  %v1008_v17 = vsel %vm872_vm2, %v2158_v44, 0.0 }
 0x10a   :  { %903 = vst.msk [vmem:[%s2608_s4 + $0xf0] sm:$0xff] %vm872_vm2, %v703_v31  ;;  %v996_v37 = vsel %vm872_vm2, %v703_v31, 0.0  ;;  %v1100_v39 = vmul.f32 %v703_v31, %v703_v31  ;;  %v1195_v50 = vsel %vm872_vm2, %v1101_v26, 0.0  ;;  %v2376_v59 = vpop.f32.mrf.mxu1  ;;  %v1010_v28 = vsel %vm872_vm2, %v2145_v33, 0.0 }
 0x10b   :  { %v997_v62 = vadd.f32 %v996_v37, %v995_v32  ;;  %v1192_v23 = vadd.f32 %v1191_v36, %v1190_v30  ;;  %928 = vst.msk [vmem:[%s2608_s4 + $0x1b8] sm:$0xff] %vm872_vm2, %v2376_v59  ;;  %v1205_v29 = vsel %vm872_vm2, %v1106_v11, 0.0  ;;  %v1108_v30 = vmul.f32 %v2184_v0, %v2184_v0 }
 0x10c   :  { %v1193_v43 = vsel %vm872_vm2, %v1100_v39, 0.0  ;;  %v2388_v6 = vpop.f32.mrf.mxu1  ;;  %v1207_v36 = vsel %vm872_vm2, %v1107_v61, 0.0  ;;  %v1109_v33 = vmul.f32 %v2171_v55, %v2171_v55  ;;  %v1012_v26 = vsel %vm872_vm2, %v2184_v0, 0.0 }
 0x10d   :  { %v999_v45 = vadd.f32 %v998_v41, %v997_v62  ;;  %v1194_v47 = vadd.f32 %v1193_v43, %v1192_v23  ;;  %927 = vst.msk [vmem:[%s2608_s4 + $0x1b0] sm:$0xff] %vm872_vm2, %v2388_v6  ;;  %v1014_v23 = vsel %vm872_vm2, %v2171_v55, 0.0  ;;  %v1209_v41 = vsel %vm872_vm2, %v1108_v30, 0.0 }
 0x10e   :  { %v2400_v58 = vpop.f32.mrf.mxu1  ;;  %v1110_v43 = vmul.f32 %v2210_v9, %v2210_v9  ;;  %v1111_v55 = vmul.f32 %v2197_v10, %v2197_v10  ;;  %v1117_v30 = vmul.f32 %v2275_v52, %v2275_v52 }
 0x10f   :  { %v1196_v56 = vadd.f32 %v1195_v50, %v1194_v47  ;;  %v1001_v57 = vadd.f32 %v1000_v54, %v999_v45  ;;  %930 = vst.msk [vmem:[%s2608_s4 + $0x1c8] sm:$0xff] %vm872_vm2, %v2400_v58  ;;  %v1211_v47 = vsel %vm872_vm2, %v1109_v33, 0.0  ;;  %v1016_v50 = vsel %vm872_vm2, %v2210_v9, 0.0 }
 0x110   :  { %v2412_v15 = vpop.f32.mrf.mxu1  ;;  %v1118_v33 = vmul.f32 %v2314_v13, %v2314_v13 }
 0x111   :  { %v1198_v18 = vadd.f32 %v1197_v2, %v1196_v56  ;;  %v1003_v5 = vadd.f32 %v1002_v60, %v1001_v57  ;;  %929 = vst.msk [vmem:[%s2608_s4 + $0x1c0] sm:$0xff] %vm872_vm2, %v2412_v15  ;;  %v1018_v57 = vsel %vm872_vm2, %v2197_v10, 0.0  ;;  %v1213_v60 = vsel %vm872_vm2, %v1110_v43, 0.0 }
 0x112   :  { %v2424_v24 = vpop.f32.mrf.mxu1  ;;  %v1112_v2 = vmul.f32 %v2236_v22, %v2236_v22  ;;  %v1113_v10 = vmul.f32 %v2223_v20, %v2223_v20 }
 0x113   :  { %v1005_v48 = vadd.f32 %v1004_v8, %v1003_v5  ;;  %v1200_v53 = vadd.f32 %v1199_v4, %v1198_v18  ;;  %932 = vst.msk [vmem:[%s2608_s4 + $0x1d8] sm:$0xff] %vm872_vm2, %v2424_v24  ;;  %v1215_v5 = vsel %vm872_vm2, %v1111_v55, 0.0  ;;  %v1020_v4 = vsel %vm872_vm2, %v2236_v22, 0.0 }
 0x114   :  { %v2436_v32 = vpop.f32.mrf.mxu1  ;;  %v1219_v22 = vsel %vm872_vm2, %v1113_v10, 0.0  ;;  %v1123_v10 = vmul.f32 %v2353_v40, %v2353_v40 }
 0x115   :  { %v1202_v35 = vadd.f32 %v1201_v7, %v1200_v53  ;;  %v1007_v14 = vadd.f32 %v1006_v1, %v1005_v48  ;;  %931 = vst.msk [vmem:[%s2608_s4 + $0x1d0] sm:$0xff] %vm872_vm2, %v2436_v32  ;;  %v1022_v48 = vsel %vm872_vm2, %v2223_v20, 0.0  ;;  %v1217_v53 = vsel %vm872_vm2, %v1112_v2, 0.0 }
 0x116   :  { %v2448_v62 = vpop.f32.mrf.mxu1  ;;  %v1114_v1 = vmul.f32 %v2262_v42, %v2262_v42  ;;  %v1026_v20 = vsel %vm872_vm2, %v2249_v27, 0.0  ;;  %v1122_v2 = vmul.f32 %v2364_v49, %v2364_v49 }
 0x117   :  { %v1009_v19 = vadd.f32 %v1008_v17, %v1007_v14  ;;  %v1204_v21 = vadd.f32 %v1203_v16, %v1202_v35  ;;  %934 = vst.msk [vmem:[%s2608_s4 + $0x1e8] sm:$0xff] %vm872_vm2, %v2448_v62  ;;  %v1115_v35 = vmul.f32 %v2249_v27, %v2249_v27  ;;  %v1024_v14 = vsel %vm872_vm2, %v2262_v42, 0.0 }
 0x118   :  { %v2460_v45 = vpop.f32.mrf.mxu1  ;;  %v1221_v17 = vsel %vm872_vm2, %v1114_v1, 0.0  ;;  %v1028_v42 = vsel %vm872_vm2, %v2288_v63, 0.0  ;;  %v1030_v27 = vsel %vm872_vm2, %v2275_v52, 0.0  ;;  %v1034_v52 = vsel %vm872_vm2, %v2301_v46, 0.0 }
 0x119   :  { %v1206_v44 = vadd.f32 %v1205_v29, %v1204_v21  ;;  %v1011_v31 = vadd.f32 %v1010_v28, %v1009_v19  ;;  %933 = vst.msk [vmem:[%s2608_s4 + $0x1e0] sm:$0xff] %vm872_vm2, %v2460_v45  ;;  %v1116_v19 = vmul.f32 %v2288_v63, %v2288_v63  ;;  %v1223_v29 = vsel %vm872_vm2, %v1115_v35, 0.0 }
 0x11a   :  { %v2472_v56 = vpop.f32.mrf.mxu1  ;;  %v1032_v63 = vsel %vm872_vm2, %v2314_v13, 0.0  ;;  %v1036_v13 = vsel %vm872_vm2, %v2340_v34, 0.0 }
 0x11b   :  { %v1013_v37 = vadd.f32 %v1012_v26, %v1011_v31  ;;  %v1208_v39 = vadd.f32 %v1207_v36, %v1206_v44  ;;  %936 = vst.msk [vmem:[%s2608_s4 + $0x1f8] sm:$0xff] %vm872_vm2, %v2472_v56  ;;  %v1225_v36 = vsel %vm872_vm2, %v1116_v19, 0.0  ;;  %v1127_v19 = vmul.f32 %v2400_v58, %v2400_v58 }
 0x11c   :  { %v2484_v18 = vpop.f32.mrf.mxu1 }
 0x11d   :  { %v1210_v0 = vadd.f32 %v1209_v41, %v1208_v39  ;;  %v1015_v38 = vadd.f32 %v1014_v23, %v1013_v37  ;;  %935 = vst.msk [vmem:[%s2608_s4 + $0x1f0] sm:$0xff] %vm872_vm2, %v2484_v18  ;;  %v1227_v39 = vsel %vm872_vm2, %v1117_v30, 0.0  ;;  %v1119_v23 = vmul.f32 %v2301_v46, %v2301_v46 }
 0x11e   :  { %v1038_v46 = vsel %vm872_vm2, %v2327_v25, 0.0  ;;  %v1128_v30 = vmul.f32 %v2436_v32, %v2436_v32 }
 0x11f   :  { %v1017_v51 = vadd.f32 %v1016_v50, %v1015_v38  ;;  %v1212_v54 = vadd.f32 %v1211_v47, %v1210_v0  ;;  %v1229_v0 = vsel %vm872_vm2, %v1118_v33, 0.0  ;;  %v1120_v38 = vmul.f32 %v2340_v34, %v2340_v34 }
 0x120   :  { %v1231_v50 = vsel %vm872_vm2, %v1119_v23, 0.0  ;;  %v1040_v34 = vsel %vm872_vm2, %v2364_v49, 0.0  ;;  %v1044_v49 = vsel %vm872_vm2, %v2388_v6, 0.0 }
 0x121   :  { %v1214_v9 = vadd.f32 %v1213_v60, %v1212_v54  ;;  %v1019_v3 = vadd.f32 %v1018_v57, %v1017_v51  ;;  %v1121_v51 = vmul.f32 %v2327_v25, %v2327_v25  ;;  %v1233_v60 = vsel %vm872_vm2, %v1120_v38, 0.0 }
 0x122   :  { %v1042_v25 = vsel %vm872_vm2, %v2353_v40, 0.0  ;;  %v1046_v40 = vsel %vm872_vm2, %v2376_v59, 0.0  ;;  %v1132_v38 = vmul.f32 %v2484_v18, %v2484_v18 }
 0x123   :  { %v1021_v12 = vadd.f32 %v1020_v4, %v1019_v3  ;;  %v1216_v8 = vadd.f32 %v1215_v5, %v1214_v9  ;;  %v1235_v5 = vsel %vm872_vm2, %v1121_v51, 0.0  ;;  %v1133_v51 = vmul.f32 %v2472_v56, %v2472_v56 }
 0x125   :  { %v1218_v7 = vadd.f32 %v1217_v53, %v1216_v8  ;;  %v1023_v11 = vadd.f32 %v1022_v48, %v1021_v12  ;;  %v1237_v8 = vsel %vm872_vm2, %v1122_v2, 0.0  ;;  %v1124_v48 = vmul.f32 %v2388_v6, %v2388_v6 }
 0x126   :  { %v1048_v6 = vsel %vm872_vm2, %v2412_v15, 0.0  ;;  %v1259_v2 = vsel %vm872_vm2, %v1133_v51, 0.0 }
 0x127   :  { %v1025_v16 = vadd.f32 %v1024_v14, %v1023_v11  ;;  %v1220_v61 = vadd.f32 %v1219_v22, %v1218_v7  ;;  %v1239_v7 = vsel %vm872_vm2, %v1123_v10, 0.0  ;;  %v1125_v11 = vmul.f32 %v2376_v59, %v2376_v59 }
 0x128   :  { %v1241_v14 = vsel %vm872_vm2, %v1124_v48, 0.0  ;;  %v1050_v59 = vsel %vm872_vm2, %v2400_v58, 0.0  ;;  %v1054_v58 = vsel %vm872_vm2, %v2424_v24, 0.0 }
 0x129   :  { %v1222_v21 = vadd.f32 %v1221_v17, %v1220_v61  ;;  %v1027_v28 = vadd.f32 %v1026_v20, %v1025_v16  ;;  %v1126_v16 = vmul.f32 %v2412_v15, %v2412_v15  ;;  %v1243_v17 = vsel %vm872_vm2, %v1125_v11, 0.0 }
 0x12a   :  { %v1052_v15 = vsel %vm872_vm2, %v2436_v32, 0.0  ;;  %v1056_v32 = vsel %vm872_vm2, %v2460_v45, 0.0 }
 0x12b   :  { %v1029_v44 = vadd.f32 %v1028_v42, %v1027_v28  ;;  %v1224_v31 = vadd.f32 %v1223_v29, %v1222_v21  ;;  %v1245_v29 = vsel %vm872_vm2, %v1126_v16, 0.0 }
 0x12d   :  { %v1226_v26 = vadd.f32 %v1225_v36, %v1224_v31  ;;  %v1031_v37 = vadd.f32 %v1030_v27, %v1029_v44  ;;  %v1247_v31 = vsel %vm872_vm2, %v1127_v19, 0.0  ;;  %v1129_v27 = vmul.f32 %v2424_v24, %v2424_v24 }
 0x12e   :  { %v1058_v24 = vsel %vm872_vm2, %v2448_v62, 0.0 }
 0x12f   :  { %v1033_v41 = vadd.f32 %v1032_v63, %v1031_v37  ;;  %v1228_v43 = vadd.f32 %v1227_v39, %v1226_v26  ;;  %v1249_v26 = vsel %vm872_vm2, %v1128_v30, 0.0  ;;  %v1130_v37 = vmul.f32 %v2460_v45, %v2460_v45 }
 0x130   :  { %v1251_v63 = vsel %vm872_vm2, %v1129_v27, 0.0  ;;  %v1060_v45 = vsel %vm872_vm2, %v2484_v18, 0.0 }
 0x131   :  { %v1230_v47 = vadd.f32 %v1229_v0, %v1228_v43  ;;  %v1035_v55 = vadd.f32 %v1034_v52, %v1033_v41  ;;  %v1131_v41 = vmul.f32 %v2448_v62, %v2448_v62  ;;  %v1253_v0 = vsel %vm872_vm2, %v1130_v37, 0.0 }
 0x132   :  { %v1062_v62 = vsel %vm872_vm2, %v2472_v56, 0.0 }
 0x133   :  { %v1037_v54 = vadd.f32 %v1036_v13, %v1035_v55  ;;  %v1232_v57 = vadd.f32 %v1231_v50, %v1230_v47  ;;  %v1255_v50 = vsel %vm872_vm2, %v1131_v41, 0.0 }
 0x135   :  { %v1234_v9 = vadd.f32 %v1233_v60, %v1232_v57  ;;  %v1039_v3 = vadd.f32 %v1038_v46, %v1037_v54  ;;  %v1257_v57 = vsel %vm872_vm2, %v1132_v38, 0.0 }
 0x137   :  { %v1041_v4 = vadd.f32 %v1040_v34, %v1039_v3  ;;  %v1236_v12 = vadd.f32 %v1235_v5, %v1234_v9 }
 0x139   :  { %v1238_v53 = vadd.f32 %v1237_v8, %v1236_v12  ;;  %v1043_v1 = vadd.f32 %v1042_v25, %v1041_v4 }
 0x13b   :  { %v1045_v22 = vadd.f32 %v1044_v49, %v1043_v1  ;;  %v1240_v35 = vadd.f32 %v1239_v7, %v1238_v53 }
 0x13d   :  { %v1242_v61 = vadd.f32 %v1241_v14, %v1240_v35  ;;  %v1047_v20 = vadd.f32 %v1046_v40, %v1045_v22 }
 0x13f   :  { %v1049_v21 = vadd.f32 %v1048_v6, %v1047_v20  ;;  %v1244_v28 = vadd.f32 %v1243_v17, %v1242_v61 }
 0x141   :  { %v1246_v42 = vadd.f32 %v1245_v29, %v1244_v28  ;;  %v1051_v44 = vadd.f32 %v1050_v59, %v1049_v21 }
 0x143   :  { %v1053_v36 = vadd.f32 %v1052_v15, %v1051_v44  ;;  %v1248_v33 = vadd.f32 %v1247_v31, %v1246_v42 }
 0x145   :  { %v1250_v39 = vadd.f32 %v1249_v26, %v1248_v33  ;;  %v1055_v23 = vadd.f32 %v1054_v58, %v1053_v36 }
 0x147   :  { %v1057_v43 = vadd.f32 %v1056_v32, %v1055_v23  ;;  %v1252_v52 = vadd.f32 %v1251_v63, %v1250_v39 }
 0x149   :  { %v1254_v47 = vadd.f32 %v1253_v0, %v1252_v52  ;;  %v1059_v55 = vadd.f32 %v1058_v24, %v1057_v43 }
 0x14b   :  { %v1061_v13 = vadd.f32 %v1060_v45, %v1059_v55  ;;  %v1256_v54 = vadd.f32 %v1255_v50, %v1254_v47 }
 0x14d   :  { %v1063_v46 = vadd.f32 %v1062_v62, %v1061_v13  ;;  %v1258_v60 = vadd.f32 %v1257_v57, %v1256_v54 }
 0x14f   :  { %v1064_v9 = vrot.slane %v1063_v46, 4  ;;  %v1260_v3 = vadd.f32 %v1259_v2, %v1258_v60 }
 0x151   :  { %v1065_v5 = vadd.f32 %v1064_v9, %v1063_v46  ;;  %v1261_v10 = vrot.slane %v1260_v3, 4 }
 0x153   :  { %v1066_v34 = vrot.slane %v1065_v5, 2  ;;  %v1262_v4 = vadd.f32 %v1261_v10, %v1260_v3 }
 0x155   :  { %v1067_v12 = vadd.f32 %v1066_v34, %v1065_v5  ;;  %v1263_v25 = vrot.slane %v1262_v4, 2 }
 0x157   :  { %v1068_v18 = vrot.slane %v1067_v12, 1  ;;  %v1264_v8 = vadd.f32 %v1263_v25, %v1262_v4 }
 0x159   :  { %v1265_v48 = vrot.slane %v1264_v8, 1  ;;  %v1069_v53 = vadd.f32 %v1068_v18, %v1067_v12 }
 0x15b   :  { %v1266_v56 = vadd.f32 %v1265_v48, %v1264_v8 }
 0x15d   :  { %v1268_v1 = vsel %vm1267_vm3, %v1069_v53, %v1266_v56 }
 0x15e   :  { %v1270_v7 = vsel %vm1269_vm4, %v1268_v1, 0.0 }
 0x15f   :  { %1271 = vst.msk [vmem:[%s2609_s5] sm:$0xff] %vm872_vm2, %v1270_v7 }

// kernel: dense_block_forward.6
= control target key start
LH: loop header
LB: loop body
LE: loop exit
PB: predicated region body
PF: predicated region fallthrough
CT: control target
= control target key end

     0   :  { %vm290_vm0 = vcmask 64512   ;;  %vm868_vm1 = vcmask 130048   ;;  %vm1263_vm2 = vcmask 1040384   ;;  %vm1265_vm3 = vcmask 1041408   ;;  %s2595_s3 = inlined_call_operand.vmem [shape: f32[8,16], index: 3, kind: input, shape index: {}]   ;;  %s2596_s0 = inlined_call_operand.vmem [shape: f32[512,8], index: 0, kind: input, shape index: {}]   ;;  %s2597_s1 = inlined_call_operand.vmem [shape: f32[1,8], index: 1, kind: input, shape index: {}]   ;;  %s2598_s2 = inlined_call_operand.vmem [shape: f32[1,8], index: 2, kind: input, shape index: {}]   ;;  %s2599_s4 = inlined_call_operand.vmem [shape: f32[512,16], index: 4, kind: output, shape index: {0}]   ;;  %s2600_s5 = inlined_call_operand.vmem [shape: f32[1,8,16], index: 5, kind: output, shape index: {1}]  }
   0x1   :  { %v289_v0 = vld [vmem:[%s2595_s3] sm:$0xff]  ;;  %v20_v5 = vld [vmem:[%s2596_s0 + $0x8] sm:$0xff]  ;;  %v21_v6 = vld [vmem:[%s2596_s0 + $0x10] sm:$0xff] }
   0x2   :  { %v19_v1 = vld [vmem:[%s2596_s0] sm:$0xff]  ;;  %1407 = vmatprep.subr.mxu0 %v289_v0  ;;  %1505 = vmatprep.subr.mxu1 %v289_v0  ;;  %v22_v9 = vld [vmem:[%s2596_s0 + $0x18] sm:$0xff]  ;;  %v24_v11 = vld [vmem:[%s2596_s0 + $0x28] sm:$0xff] }
   0x3   :  { %v1546_v2 = vld [vmem:[%s2597_s1] ss:$0 sm:$0xff]  ;;  %1408 = vmatpush3.msra.mxu0 %v289_v0  ;;  %1506 = vmatpush3.msra.mxu1 %v289_v0  ;;  %v25_v15 = vld [vmem:[%s2596_s0 + $0x30] sm:$0xff]  ;;  %v26_v19 = vld [vmem:[%s2596_s0 + $0x38] sm:$0xff] }
   0x4   :  { %v90_v3 = vmul.f32 %v1546_v2, %v19_v1  ;;  %v1552_v4 = vld [vmem:[%s2598_s2] ss:$0 sm:$0xff]  ;;  %v91_v7 = vmul.f32 %v1546_v2, %v20_v5  ;;  %v92_v8 = vmul.f32 %v1546_v2, %v21_v6  ;;  %v93_v13 = vmul.f32 %v1546_v2, %v22_v9  ;;  %v28_v33 = vld [vmem:[%s2596_s0 + $0x48] sm:$0xff]  ;;  %v29_v34 = vld [vmem:[%s2596_s0 + $0x50] sm:$0xff] }
   0x5   :  { %v23_v10 = vld [vmem:[%s2596_s0 + $0x20] sm:$0xff]  ;;  %v95_v18 = vmul.f32 %v1546_v2, %v24_v11  ;;  %v96_v23 = vmul.f32 %v1546_v2, %v25_v15  ;;  %v97_v27 = vmul.f32 %v1546_v2, %v26_v19  ;;  %v99_v37 = vmul.f32 %v1546_v2, %v28_v33  ;;  %v30_v41 = vld [vmem:[%s2596_s0 + $0x58] sm:$0xff]  ;;  %v32_v43 = vld [vmem:[%s2596_s0 + $0x68] sm:$0xff] }
   0x6   :  { %v161_v12 = vadd.f32 %v1552_v4, %v90_v3  ;;  %v94_v14 = vmul.f32 %v1546_v2, %v23_v10  ;;  %v162_v16 = vadd.f32 %v1552_v4, %v91_v7  ;;  %v163_v17 = vadd.f32 %v1552_v4, %v92_v8  ;;  %v27_v26 = vld [vmem:[%s2596_s0 + $0x40] sm:$0xff]  ;;  %v33_v44 = vld [vmem:[%s2596_s0 + $0x70] sm:$0xff]  ;;  %v34_v50 = vld [vmem:[%s2596_s0 + $0x78] sm:$0xff] }
   0x7   :  { %v164_v21 = vadd.f32 %v1552_v4, %v93_v13  ;;  %v166_v29 = vadd.f32 %v1552_v4, %v95_v18  ;;  %v167_v31 = vadd.f32 %v1552_v4, %v96_v23  ;;  %v98_v32 = vmul.f32 %v1546_v2, %v27_v26  ;;  %v31_v42 = vld [vmem:[%s2596_s0 + $0x60] sm:$0xff]  ;;  %v36_v63 = vld [vmem:[%s2596_s0 + $0x88] sm:$0xff]  ;;  %v37_v0 = vld [vmem:[%s2596_s0 + $0x90] sm:$0xff] }
   0x8   :  { %v225_v20 = vmax.f32 %v161_v12, 0.0  ;;  %v165_v22 = vadd.f32 %v1552_v4, %v94_v14  ;;  %v226_v24 = vmax.f32 %v162_v16, 0.0  ;;  %v227_v25 = vmax.f32 %v163_v17, 0.0  ;;  %v35_v55 = vld [vmem:[%s2596_s0 + $0x80] sm:$0xff]  ;;  %v38_v3 = vld [vmem:[%s2596_s0 + $0x98] sm:$0xff]  ;;  %v52_v5 = vld [vmem:[%s2596_s0 + $0x108] sm:$0xff] }
   0x9   :  { %v228_v28 = vmax.f32 %v164_v21, 0.0  ;;  %v168_v35 = vadd.f32 %v1552_v4, %v97_v27  ;;  %v230_v36 = vmax.f32 %v166_v29, 0.0  ;;  %v231_v38 = vmax.f32 %v167_v31, 0.0  ;;  %v51_v1 = vld [vmem:[%s2596_s0 + $0x100] sm:$0xff]  ;;  %v53_v6 = vld [vmem:[%s2596_s0 + $0x110] sm:$0xff]  ;;  %v54_v12 = vld [vmem:[%s2596_s0 + $0x118] sm:$0xff] }
   0xa   :  { %1409 = vmatprep.mubr.msk.f32.mxu0 %vm290_vm0, %v225_v20  ;;  %v229_v30 = vmax.f32 %v165_v22, 0.0  ;;  %v169_v39 = vadd.f32 %v1552_v4, %v98_v32  ;;  %v100_v40 = vmul.f32 %v1546_v2, %v29_v34  ;;  %v170_v46 = vadd.f32 %v1552_v4, %v99_v37  ;;  %v39_v11 = vld [vmem:[%s2596_s0 + $0xa0] sm:$0xff]  ;;  %v40_v17 = vld [vmem:[%s2596_s0 + $0xa8] sm:$0xff]  ;;  %v41_v26 = vld [vmem:[%s2596_s0 + $0xb0] sm:$0xff] }
   0xb   :  { %1410 = vmatmul.mubr.msk.f32.vlgmr.msra.gmra.mxu0 %vm290_vm0, %v226_v24  ;;  %v232_v45 = vmax.f32 %v168_v35, 0.0  ;;  %v101_v47 = vmul.f32 %v1546_v2, %v30_v41  ;;  %v102_v48 = vmul.f32 %v1546_v2, %v31_v42  ;;  %v103_v49 = vmul.f32 %v1546_v2, %v32_v43  ;;  %v55_v13 = vld [vmem:[%s2596_s0 + $0x120] sm:$0xff]  ;;  %v56_v19 = vld [vmem:[%s2596_s0 + $0x128] sm:$0xff]  ;;  %v57_v24 = vld [vmem:[%s2596_s0 + $0x130] sm:$0xff] }
   0xc   :  { %1412 = vmatprep.mubr.msk.f32.mxu0 %vm290_vm0, %v227_v25  ;;  %v233_v51 = vmax.f32 %v169_v39, 0.0  ;;  %v171_v52 = vadd.f32 %v1552_v4, %v100_v40  ;;  %v104_v53 = vmul.f32 %v1546_v2, %v33_v44  ;;  %v105_v54 = vmul.f32 %v1546_v2, %v34_v50  ;;  %v42_v27 = vld [vmem:[%s2596_s0 + $0xb8] sm:$0xff]  ;;  %v59_v44 = vld [vmem:[%s2596_s0 + $0x140] sm:$0xff] }
   0xd   :  { %v234_v56 = vmax.f32 %v170_v46, 0.0  ;;  %v172_v57 = vadd.f32 %v1552_v4, %v101_v47  ;;  %v173_v58 = vadd.f32 %v1552_v4, %v102_v48  ;;  %v174_v59 = vadd.f32 %v1552_v4, %v103_v49  ;;  %v58_v39 = vld [vmem:[%s2596_s0 + $0x138] sm:$0xff]  ;;  %v43_v49 = vld [vmem:[%s2596_s0 + $0xc0] sm:$0xff] }
   0xe   :  { %v235_v60 = vmax.f32 %v171_v52, 0.0  ;;  %v1641_v61 = vadd.f32 %v1552_v4, %v104_v53  ;;  %v106_v62 = vmul.f32 %v1546_v2, %v35_v55  ;;  %v1664_v10 = vadd.f32 %v1552_v4, %v105_v54  ;;  %v44_v55 = vld [vmem:[%s2596_s0 + $0xc8] sm:$0xff] }
   0xf   :  { %1413 = vmatmul.mubr.msk.f32.gmra.mxu0 %vm290_vm0, %v228_v28  ;;  %v236_v7 = vmax.f32 %v172_v57, 0.0  ;;  %v237_v8 = vmax.f32 %v173_v58, 0.0  ;;  %v238_v9 = vmax.f32 %v174_v59, 0.0  ;;  %v107_v15 = vmul.f32 %v1546_v2, %v36_v63  ;;  %v60_v59 = vld [vmem:[%s2596_s0 + $0x148] sm:$0xff] }
  0x10   :  { %1415 = vmatprep.mubr.msk.f32.mxu0 %vm290_vm0, %v229_v30  ;;  %v239_v14 = vmax.f32 %v1641_v61, 0.0  ;;  %v108_v16 = vmul.f32 %v1546_v2, %v37_v0  ;;  %v122_v18 = vmul.f32 %v1546_v2, %v51_v1  ;;  %v1687_v20 = vadd.f32 %v1552_v4, %v106_v62  ;;  %v45_v0 = vld [vmem:[%s2596_s0 + $0xd0] sm:$0xff] }
  0x11   :  { %v109_v21 = vmul.f32 %v1546_v2, %v38_v3  ;;  %v123_v22 = vmul.f32 %v1546_v2, %v52_v5  ;;  %v124_v23 = vmul.f32 %v1546_v2, %v53_v6  ;;  %v110_v25 = vmul.f32 %v1546_v2, %v39_v11  ;;  %v61_v1 = vld [vmem:[%s2596_s0 + $0x150] sm:$0xff] }
  0x12   :  { %v193_v28 = vadd.f32 %v1552_v4, %v122_v18  ;;  %v125_v29 = vmul.f32 %v1546_v2, %v54_v12  ;;  %v126_v30 = vmul.f32 %v1546_v2, %v55_v13  ;;  %v111_v31 = vmul.f32 %v1546_v2, %v40_v17 }
  0x13   :  { %1416 = vmatmul.mubr.msk.f32.gmra.mxu0 %vm290_vm0, %v230_v36  ;;  %v194_v32 = vadd.f32 %v1552_v4, %v123_v22  ;;  %v195_v33 = vadd.f32 %v1552_v4, %v124_v23  ;;  %v127_v34 = vmul.f32 %v1546_v2, %v56_v19  ;;  %v112_v40 = vmul.f32 %v1546_v2, %v41_v26 }
  0x14   :  { %1418 = vmatprep.mubr.msk.f32.mxu0 %vm290_vm0, %v231_v38  ;;  %v257_v35 = vmax.f32 %v193_v28, 0.0  ;;  %v196_v36 = vadd.f32 %v1552_v4, %v125_v29  ;;  %v197_v37 = vadd.f32 %v1552_v4, %v126_v30  ;;  %v128_v38 = vmul.f32 %v1546_v2, %v57_v24  ;;  %v64_v30 = vld [vmem:[%s2596_s0 + $0x168] sm:$0xff] }
  0x15   :  { %v113_v41 = vmul.f32 %v1546_v2, %v42_v27  ;;  %v258_v42 = vmax.f32 %v194_v32, 0.0  ;;  %v259_v43 = vmax.f32 %v195_v33, 0.0  ;;  %v1724_v46 = vadd.f32 %v1552_v4, %v108_v16  ;;  %v74_v32 = vld [vmem:[%s2596_s0 + $0x1b8] sm:$0xff] }
  0x16   :  { %v1727_v47 = vadd.f32 %v1552_v4, %v109_v21  ;;  %v1730_v48 = vadd.f32 %v1552_v4, %v110_v25  ;;  %1457 = vmatprep.mubr.msk.f32.mxu1 %vm290_vm0, %v257_v35  ;;  %v240_v50 = vmax.f32 %v1664_v10, 0.0  ;;  %v198_v52 = vadd.f32 %v1552_v4, %v127_v34  ;;  %v47_v10 = vld [vmem:[%s2596_s0 + $0xe0] sm:$0xff]  ;;  %v73_v25 = vld [vmem:[%s2596_s0 + $0x1b0] sm:$0xff] }
  0x17   :  { %1419 = vmatmul.mubr.msk.f32.gmra.mxu0 %vm290_vm0, %v232_v45  ;;  %v178_v45 = vadd.f32 %v1552_v4, %v107_v15  ;;  %1458 = vmatmul.mubr.msk.f32.vlgmr.msra.gmra.mxu1 %vm290_vm0, %v258_v42  ;;  %v129_v53 = vmul.f32 %v1546_v2, %v58_v39  ;;  %v241_v54 = vmax.f32 %v1687_v20, 0.0  ;;  %v199_v57 = vadd.f32 %v1552_v4, %v128_v38  ;;  %v63_v15 = vld [vmem:[%s2596_s0 + $0x160] sm:$0xff]  ;;  %v72_v20 = vld [vmem:[%s2596_s0 + $0x1a8] sm:$0xff] }
  0x18   :  { %1421 = vmatprep.mubr.msk.f32.mxu0 %vm290_vm0, %v233_v51  ;;  %v260_v51 = vmax.f32 %v196_v36, 0.0  ;;  %1460 = vmatprep.mubr.msk.f32.mxu1 %vm290_vm0, %v259_v43  ;;  %v130_v58 = vmul.f32 %v1546_v2, %v59_v44  ;;  %v1756_v61 = vadd.f32 %v1552_v4, %v112_v40  ;;  %v1759_v62 = vadd.f32 %v1552_v4, %v113_v41  ;;  %v76_v42 = vld [vmem:[%s2596_s0 + $0x1c8] sm:$0xff]  ;;  %v77_v43 = vld [vmem:[%s2596_s0 + $0x1d0] sm:$0xff] }
  0x19   :  { %v114_v63 = vmul.f32 %v1546_v2, %v43_v49  ;;  %v242_v3 = vmax.f32 %v178_v45, 0.0  ;;  %v243_v5 = vmax.f32 %v1724_v46, 0.0  ;;  %v244_v6 = vmax.f32 %v1727_v47, 0.0  ;;  %v78_v49 = vld [vmem:[%s2596_s0 + $0x1d8] sm:$0xff] }
  0x1a   :  { %v262_v11 = vmax.f32 %v198_v52, 0.0  ;;  %v200_v12 = vadd.f32 %v1552_v4, %v129_v53  ;;  %v131_v13 = vmul.f32 %v1546_v2, %v60_v59  ;;  %v116_v16 = vmul.f32 %v1546_v2, %v45_v0 }
  0x1b   :  { %1422 = vmatmul.mubr.msk.f32.gmra.mxu0 %vm290_vm0, %v234_v56  ;;  %v261_v56 = vmax.f32 %v197_v37, 0.0  ;;  %1461 = vmatmul.mubr.msk.f32.gmra.mxu1 %vm290_vm0, %v260_v51  ;;  %v263_v17 = vmax.f32 %v199_v57, 0.0  ;;  %v201_v18 = vadd.f32 %v1552_v4, %v130_v58  ;;  %v132_v19 = vmul.f32 %v1546_v2, %v61_v1  ;;  %v75_v37 = vld [vmem:[%s2596_s0 + $0x1c0] sm:$0xff]  ;;  %v66_v57 = vld [vmem:[%s2596_s0 + $0x178] sm:$0xff] }
  0x1c   :  { %1424 = vmatprep.mubr.msk.f32.mxu0 %vm290_vm0, %v235_v60  ;;  %v1753_v60 = vadd.f32 %v1552_v4, %v111_v31  ;;  %v247_v22 = vmax.f32 %v1756_v61, 0.0  ;;  %v248_v23 = vmax.f32 %v1759_v62, 0.0  ;;  %v1800_v24 = vadd.f32 %v1552_v4, %v114_v63  ;;  %v65_v31 = vld [vmem:[%s2596_s0 + $0x170] sm:$0xff] }
  0x1d   :  { %1463 = vmatprep.mubr.msk.f32.mxu1 %vm290_vm0, %v261_v56  ;;  %v1809_v27 = vmul.f32 %v1546_v2, %v47_v10  ;;  %v134_v29 = vmul.f32 %v1546_v2, %v63_v15  ;;  %v264_v34 = vmax.f32 %v200_v12, 0.0  ;;  %v202_v35 = vadd.f32 %v1552_v4, %v131_v13  ;;  %v81_v63 = vld [vmem:[%s2596_s0 + $0x1f0] sm:$0xff]  ;;  %v48_v15 = vld [vmem:[%s2596_s0 + $0xe8] sm:$0xff] }
  0x1e   :  { %v246_v21 = vmax.f32 %v1753_v60, 0.0  ;;  %v143_v36 = vmul.f32 %v1546_v2, %v72_v20  ;;  %v1834_v38 = vadd.f32 %v1552_v4, %v116_v16  ;;  %v265_v39 = vmax.f32 %v201_v18, 0.0  ;;  %v49_v16 = vld [vmem:[%s2596_s0 + $0xf0] sm:$0xff] }
  0x1f   :  { %1425 = vmatmul.mubr.msk.f32.gmra.mxu0 %vm290_vm0, %v236_v7  ;;  %v245_v7 = vmax.f32 %v1730_v48, 0.0  ;;  %1464 = vmatmul.mubr.msk.f32.gmra.mxu1 %vm290_vm0, %v262_v11  ;;  %v203_v40 = vadd.f32 %v1552_v4, %v132_v19  ;;  %v144_v41 = vmul.f32 %v1546_v2, %v73_v25  ;;  %v135_v44 = vmul.f32 %v1546_v2, %v64_v30  ;;  %v67_v48 = vld [vmem:[%s2596_s0 + $0x180] sm:$0xff]  ;;  %v69_v61 = vld [vmem:[%s2596_s0 + $0x190] sm:$0xff] }
  0x20   :  { %1427 = vmatprep.mubr.msk.f32.mxu0 %vm290_vm0, %v237_v8  ;;  %v46_v8 = vld [vmem:[%s2596_s0 + $0xd8] sm:$0xff]  ;;  %1466 = vmatprep.mubr.msk.f32.mxu1 %vm290_vm0, %v263_v17  ;;  %v136_v45 = vmul.f32 %v1546_v2, %v65_v31  ;;  %v1848_v46 = vadd.f32 %v1552_v4, %v143_v36  ;;  %v145_v47 = vmul.f32 %v1546_v2, %v74_v32  ;;  %v266_v56 = vmax.f32 %v202_v35, 0.0 }
  0x21   :  { %v1806_v26 = vmul.f32 %v1546_v2, %v46_v8  ;;  %v205_v52 = vadd.f32 %v1552_v4, %v134_v29  ;;  %v1860_v53 = vadd.f32 %v1552_v4, %v144_v41  ;;  %v147_v59 = vmul.f32 %v1546_v2, %v76_v42  ;;  %v50_v36 = vld [vmem:[%s2596_s0 + $0xf8] sm:$0xff]  ;;  %v71_v41 = vld [vmem:[%s2596_s0 + $0x1a0] sm:$0xff] }
  0x22   :  { %v1872_v58 = vadd.f32 %v1552_v4, %v145_v47  ;;  %v148_v60 = vmul.f32 %v1546_v2, %v77_v43  ;;  %v267_v0 = vmax.f32 %v203_v40, 0.0  ;;  %v249_v8 = vmax.f32 %v1800_v24, 0.0  ;;  %v70_v40 = vld [vmem:[%s2596_s0 + $0x198] sm:$0xff] }
  0x23   :  { %1428 = vmatmul.mubr.msk.f32.gmra.mxu0 %vm290_vm0, %v238_v9  ;;  %v115_v9 = vmul.f32 %v1546_v2, %v44_v55  ;;  %v80_v55 = vld [vmem:[%s2596_s0 + $0x1e8] sm:$0xff]  ;;  %1467 = vmatmul.mubr.msk.f32.gmra.mxu1 %vm290_vm0, %v264_v34  ;;  %v137_v11 = vmul.f32 %v1546_v2, %v66_v57  ;;  %v206_v18 = vadd.f32 %v1552_v4, %v135_v44 }
  0x24   :  { %1430 = vmatprep.mubr.msk.f32.mxu0 %vm290_vm0, %v239_v14  ;;  %v62_v14 = vld [vmem:[%s2596_s0 + $0x158] sm:$0xff]  ;;  %1469 = vmatprep.mubr.msk.f32.mxu1 %vm290_vm0, %v265_v39  ;;  %v151_v10 = vmul.f32 %v1546_v2, %v80_v55  ;;  %v207_v24 = vadd.f32 %v1552_v4, %v136_v45  ;;  %v138_v25 = vmul.f32 %v1546_v2, %v67_v48  ;;  %v251_v39 = vmax.f32 %v1834_v38, 0.0 }
  0x25   :  { %v133_v28 = vmul.f32 %v1546_v2, %v62_v14  ;;  %v1824_v33 = vadd.f32 %v1552_v4, %v115_v9  ;;  %v1899_v9 = vadd.f32 %v1552_v4, %v148_v60  ;;  %v152_v14 = vmul.f32 %v1546_v2, %v81_v63 }
  0x26   :  { %v1920_v19 = vadd.f32 %v1552_v4, %v151_v10  ;;  %v188_v30 = vadd.f32 %v1552_v4, %v1806_v26  ;;  %v189_v31 = vadd.f32 %v1552_v4, %v1809_v27  ;;  %v119_v32 = vmul.f32 %v1546_v2, %v48_v15 }
  0x27   :  { %1431 = vmatmul.mubr.msk.f32.gmra.mxu0 %vm290_vm0, %v240_v50  ;;  %v79_v50 = vld [vmem:[%s2596_s0 + $0x1e0] sm:$0xff]  ;;  %v204_v51 = vadd.f32 %v1552_v4, %v133_v28  ;;  %1470 = vmatmul.mubr.msk.f32.gmra.mxu1 %vm290_vm0, %v266_v56  ;;  %v68_v28 = vld [vmem:[%s2596_s0 + $0x188] sm:$0xff]  ;;  %v1933_v29 = vadd.f32 %v1552_v4, %v152_v14  ;;  %v120_v34 = vmul.f32 %v1546_v2, %v49_v16  ;;  %v250_v35 = vmax.f32 %v1824_v33, 0.0 }
  0x28   :  { %1433 = vmatprep.mubr.msk.f32.mxu0 %vm290_vm0, %v241_v54  ;;  %v146_v54 = vmul.f32 %v1546_v2, %v75_v37  ;;  %1472 = vmatprep.mubr.msk.f32.mxu1 %vm290_vm0, %v267_v0  ;;  %v270_v26 = vmax.f32 %v206_v18, 0.0  ;;  %v208_v37 = vadd.f32 %v1552_v4, %v137_v11  ;;  %v139_v27 = vmul.f32 %v1546_v2, %v68_v28 }
  0x29   :  { %v268_v17 = vmax.f32 %v204_v51, 0.0  ;;  %v271_v62 = vmax.f32 %v207_v24, 0.0  ;;  %v140_v33 = vmul.f32 %v1546_v2, %v69_v61  ;;  %v190_v42 = vadd.f32 %v1552_v4, %v119_v32 }
  0x2a   :  { %v1884_v1 = vadd.f32 %v1552_v4, %v146_v54  ;;  %v191_v43 = vadd.f32 %v1552_v4, %v120_v34  ;;  %v121_v38 = vmul.f32 %v1546_v2, %v50_v36  ;;  %v252_v44 = vmax.f32 %v188_v30, 0.0 }
  0x2b   :  { %1434 = vmatmul.mubr.msk.f32.gmra.mxu0 %vm290_vm0, %v242_v3  ;;  %v149_v3 = vmul.f32 %v1546_v2, %v78_v49  ;;  %1473 = vmatmul.mubr.msk.f32.gmra.mxu1 %vm290_vm0, %v268_v17  ;;  %v272_v45 = vmax.f32 %v208_v37, 0.0  ;;  %v210_v47 = vadd.f32 %v1552_v4, %v139_v27  ;;  %v141_v49 = vmul.f32 %v1546_v2, %v70_v40 }
  0x2c   :  { %1436 = vmatprep.mubr.msk.f32.mxu0 %vm290_vm0, %v243_v5  ;;  %v150_v5 = vmul.f32 %v1546_v2, %v79_v50  ;;  %v253_v50 = vmax.f32 %v189_v31, 0.0  ;;  %v142_v54 = vmul.f32 %v1546_v2, %v71_v41  ;;  %v254_v55 = vmax.f32 %v190_v42, 0.0 }
  0x2d   :  { %v1904_v12 = vadd.f32 %v1552_v4, %v149_v3  ;;  %v192_v56 = vadd.f32 %v1552_v4, %v121_v38  ;;  %v274_v57 = vmax.f32 %v210_v47, 0.0  ;;  %v255_v60 = vmax.f32 %v191_v43, 0.0 }
  0x2e   :  { %v1907_v13 = vadd.f32 %v1552_v4, %v150_v5  ;;  %v213_v0 = vadd.f32 %v1552_v4, %v142_v54  ;;  %v281_v48 = vmax.f32 %v1884_v1, 0.0  ;;  %v286_v1 = vmax.f32 %v1920_v19, 0.0 }
  0x2f   :  { %1437 = vmatmul.mubr.msk.f32.gmra.mxu0 %vm290_vm0, %v244_v6  ;;  %v82_v6 = vld [vmem:[%s2596_s0 + $0x1f8] sm:$0xff] }
  0x30   :  { %1439 = vmatprep.mubr.msk.f32.mxu0 %vm290_vm0, %v245_v7  ;;  %v1896_v7 = vadd.f32 %v1552_v4, %v147_v59  ;;  %v153_v20 = vmul.f32 %v1546_v2, %v82_v6  ;;  %v212_v59 = vadd.f32 %v1552_v4, %v141_v49  ;;  %v256_v2 = vmax.f32 %v192_v56, 0.0 }
  0x31   :  { %v277_v5 = vmax.f32 %v213_v0, 0.0  ;;  %v278_v6 = vmax.f32 %v1848_v46, 0.0  ;;  %v283_v46 = vmax.f32 %v1899_v9, 0.0 }
  0x32   :  { %v276_v3 = vmax.f32 %v212_v59, 0.0  ;;  %v282_v10 = vmax.f32 %v1896_v7, 0.0  ;;  %v287_v7 = vmax.f32 %v1933_v29, 0.0 }
  0x33   :  { %1440 = vmatmul.mubr.msk.f32.gmra.mxu0 %vm290_vm0, %v246_v21  ;;  %v269_v21 = vmax.f32 %v205_v52, 0.0  ;;  %v211_v52 = vadd.f32 %v1552_v4, %v140_v33 }
  0x34   :  { %1442 = vmatprep.mubr.msk.f32.mxu0 %vm290_vm0, %v247_v22  ;;  %v1939_v22 = vadd.f32 %v1552_v4, %v153_v20 }
  0x35   :  { %1475 = vmatprep.mubr.msk.f32.mxu1 %vm290_vm0, %v269_v21  ;;  %v275_v63 = vmax.f32 %v211_v52, 0.0 }
  0x36   :  { %1476 = vmatmul.mubr.msk.f32.gmra.mxu1 %vm290_vm0, %v270_v26  ;;  %v288_v9 = vmax.f32 %v1939_v22, 0.0 }
  0x37   :  { %1443 = vmatmul.mubr.msk.f32.gmra.mxu0 %vm290_vm0, %v248_v23  ;;  %v209_v23 = vadd.f32 %v1552_v4, %v138_v25  ;;  %1478 = vmatprep.mubr.msk.f32.mxu1 %vm290_vm0, %v271_v62  ;;  %v279_v4 = vmax.f32 %v1860_v53, 0.0  ;;  %v284_v53 = vmax.f32 %v1904_v12, 0.0 }
  0x38   :  { %1445 = vmatprep.mubr.msk.f32.mxu0 %vm290_vm0, %v249_v8  ;;  %v280_v8 = vmax.f32 %v1872_v58, 0.0  ;;  %v285_v58 = vmax.f32 %v1907_v13, 0.0 }
  0x39   :  { %v273_v51 = vmax.f32 %v209_v23, 0.0 }
  0x3a   :  { %1479 = vmatmul.mubr.msk.f32.gmra.mxu1 %vm290_vm0, %v272_v45 }
  0x3b   :  { %1446 = vmatmul.mubr.msk.f32.gmra.mxu0 %vm290_vm0, %v250_v35  ;;  %1481 = vmatprep.mubr.msk.f32.mxu1 %vm290_vm0, %v273_v51 }
  0x3c   :  { %1448 = vmatprep.mubr.msk.f32.mxu0 %vm290_vm0, %v251_v39 }
  0x3e   :  { %1482 = vmatmul.mubr.msk.f32.gmra.mxu1 %vm290_vm0, %v274_v57 }
  0x3f   :  { %1449 = vmatmul.mubr.msk.f32.gmra.mxu0 %vm290_vm0, %v252_v44  ;;  %1484 = vmatprep.mubr.msk.f32.mxu1 %vm290_vm0, %v275_v63 }
  0x40   :  { %1451 = vmatprep.mubr.msk.f32.mxu0 %vm290_vm0, %v253_v50 }
  0x42   :  { %1485 = vmatmul.mubr.msk.f32.gmra.mxu1 %vm290_vm0, %v276_v3 }
  0x43   :  { %1452 = vmatmul.mubr.msk.f32.gmra.mxu0 %vm290_vm0, %v254_v55  ;;  %1487 = vmatprep.mubr.msk.f32.mxu1 %vm290_vm0, %v277_v5 }
  0x44   :  { %1454 = vmatprep.mubr.msk.f32.mxu0 %vm290_vm0, %v255_v60 }
  0x46   :  { %1488 = vmatmul.mubr.msk.f32.gmra.mxu1 %vm290_vm0, %v278_v6 }
  0x47   :  { %1455 = vmatmul.mubr.msk.f32.gmra.mxu0 %vm290_vm0, %v256_v2  ;;  %1490 = vmatprep.mubr.msk.f32.mxu1 %vm290_vm0, %v279_v4 }
  0x4a   :  { %1491 = vmatmul.mubr.msk.f32.gmra.mxu1 %vm290_vm0, %v280_v8 }
  0x4b   :  { %1493 = vmatprep.mubr.msk.f32.mxu1 %vm290_vm0, %v281_v48 }
  0x4e   :  { %1494 = vmatmul.mubr.msk.f32.gmra.mxu1 %vm290_vm0, %v282_v10 }
  0x4f   :  { %1496 = vmatprep.mubr.msk.f32.mxu1 %vm290_vm0, %v283_v46 }
  0x52   :  { %1497 = vmatmul.mubr.msk.f32.gmra.mxu1 %vm290_vm0, %v284_v53 }
  0x53   :  { %1499 = vmatprep.mubr.msk.f32.mxu1 %vm290_vm0, %v285_v58 }
  0x56   :  { %1500 = vmatmul.mubr.msk.f32.gmra.mxu1 %vm290_vm0, %v286_v1 }
  0x57   :  { %1502 = vmatprep.mubr.msk.f32.mxu1 %vm290_vm0, %v287_v7 }
  0x5a   :  { %1503 = vmatmul.mubr.msk.f32.gmra.mxu1 %vm290_vm0, %v288_v9 }
  0xcb   :  { %v1411_v11 = vpop.f32.mrf.mxu0 }
  0xcc   :  { %870 = vst.msk [vmem:[%s2599_s4 + $0x8] sm:$0xff] %vm868_vm1, %v1411_v11  ;;  %v1067_v13 = vmul.f32 %v1411_v11, %v1411_v11  ;;  %v934_v17 = vsel %vm868_vm1, %v1411_v11, 0.0 }
  0xcd   :  { %v549_v12 = vpop.f32.mrf.mxu0 }
  0xce   :  { %869 = vst.msk [vmem:[%s2599_s4] sm:$0xff] %vm868_vm1, %v549_v12  ;;  %v933_v14 = vsel %vm868_vm1, %v549_v12, 0.0  ;;  %v1066_v15 = vmul.f32 %v549_v12, %v549_v12  ;;  %v1131_v21 = vsel %vm868_vm1, %v1067_v13, 0.0 }
  0xcf   :  { %v1414_v16 = vpop.f32.mrf.mxu0  ;;  %v935_v19 = vadd.f32 %v934_v17, %v933_v14 }
  0xd0   :  { %v1130_v18 = vsel %vm868_vm1, %v1066_v15, 0.0  ;;  %872 = vst.msk [vmem:[%s2599_s4 + $0x18] sm:$0xff] %vm868_vm1, %v1414_v16  ;;  %v1069_v24 = vmul.f32 %v1414_v16, %v1414_v16  ;;  %v938_v30 = vsel %vm868_vm1, %v1414_v16, 0.0 }
  0xd1   :  { %v559_v20 = vpop.f32.mrf.mxu0  ;;  %v1132_v29 = vadd.f32 %v1131_v21, %v1130_v18 }
  0xd2   :  { %871 = vst.msk [vmem:[%s2599_s4 + $0x10] sm:$0xff] %vm868_vm1, %v559_v20  ;;  %v936_v25 = vsel %vm868_vm1, %v559_v20, 0.0  ;;  %v1068_v28 = vmul.f32 %v559_v20, %v559_v20  ;;  %v1135_v36 = vsel %vm868_vm1, %v1069_v24, 0.0 }
  0xd3   :  { %v937_v61 = vadd.f32 %v936_v25, %v935_v19  ;;  %v1417_v22 = vpop.f32.mrf.mxu0 }
  0xd4   :  { %v1133_v31 = vsel %vm868_vm1, %v1068_v28, 0.0  ;;  %874 = vst.msk [vmem:[%s2599_s4 + $0x28] sm:$0xff] %vm868_vm1, %v1417_v22  ;;  %v1071_v26 = vmul.f32 %v1417_v22, %v1417_v22  ;;  %v942_v33 = vsel %vm868_vm1, %v1417_v22, 0.0 }
  0xd5   :  { %v1134_v32 = vadd.f32 %v1133_v31, %v1132_v29  ;;  %v569_v34 = vpop.f32.mrf.mxu0  ;;  %v939_v35 = vadd.f32 %v938_v30, %v937_v61 }
  0xd6   :  { %873 = vst.msk [vmem:[%s2599_s4 + $0x20] sm:$0xff] %vm868_vm1, %v569_v34  ;;  %v940_v37 = vsel %vm868_vm1, %v569_v34, 0.0  ;;  %v1070_v27 = vmul.f32 %v569_v34, %v569_v34  ;;  %v1139_v38 = vsel %vm868_vm1, %v1071_v26, 0.0 }
  0xd7   :  { %v941_v39 = vadd.f32 %v940_v37, %v939_v35  ;;  %v1136_v62 = vadd.f32 %v1135_v36, %v1134_v32  ;;  %v1420_v23 = vpop.f32.mrf.mxu0  ;;  %v2084_v12 = vpop.f32.mrf.mxu1 }
  0xd8   :  { %v1137_v40 = vsel %vm868_vm1, %v1070_v27, 0.0  ;;  %876 = vst.msk [vmem:[%s2599_s4 + $0x38] sm:$0xff] %vm868_vm1, %v1420_v23  ;;  %v1073_v44 = vmul.f32 %v1420_v23, %v1420_v23  ;;  %v946_v52 = vsel %vm868_vm1, %v1420_v23, 0.0  ;;  %902 = vst.msk [vmem:[%s2599_s4 + $0x108] sm:$0xff] %vm868_vm1, %v2084_v12 }
  0xd9   :  { %v1138_v41 = vadd.f32 %v1137_v40, %v1136_v62  ;;  %v579_v42 = vpop.f32.mrf.mxu0  ;;  %v943_v43 = vadd.f32 %v942_v33, %v941_v39  ;;  %v2097_v18 = vpop.f32.mrf.mxu1 }
  0xda   :  { %875 = vst.msk [vmem:[%s2599_s4 + $0x30] sm:$0xff] %vm868_vm1, %v579_v42  ;;  %v944_v45 = vsel %vm868_vm1, %v579_v42, 0.0  ;;  %v1072_v47 = vmul.f32 %v579_v42, %v579_v42  ;;  %v1143_v59 = vsel %vm868_vm1, %v1073_v44, 0.0  ;;  %901 = vst.msk [vmem:[%s2599_s4 + $0x100] sm:$0xff] %vm868_vm1, %v2097_v18 }
  0xdb   :  { %v945_v49 = vadd.f32 %v944_v45, %v943_v43  ;;  %v1140_v50 = vadd.f32 %v1139_v38, %v1138_v41  ;;  %v1423_v51 = vpop.f32.mrf.mxu0  ;;  %v2110_v61 = vpop.f32.mrf.mxu1 }
  0xdc   :  { %v1141_v54 = vsel %vm868_vm1, %v1072_v47, 0.0  ;;  %878 = vst.msk [vmem:[%s2599_s4 + $0x48] sm:$0xff] %vm868_vm1, %v1423_v51  ;;  %v1075_v60 = vmul.f32 %v1423_v51, %v1423_v51  ;;  %v950_v6 = vsel %vm868_vm1, %v1423_v51, 0.0  ;;  %904 = vst.msk [vmem:[%s2599_s4 + $0x118] sm:$0xff] %vm868_vm1, %v2110_v61 }
  0xdd   :  { %v1142_v55 = vadd.f32 %v1141_v54, %v1140_v50  ;;  %v589_v56 = vpop.f32.mrf.mxu0  ;;  %v947_v57 = vadd.f32 %v946_v52, %v945_v49  ;;  %v2123_v35 = vpop.f32.mrf.mxu1 }
  0xde   :  { %877 = vst.msk [vmem:[%s2599_s4 + $0x40] sm:$0xff] %vm868_vm1, %v589_v56  ;;  %v948_v63 = vsel %vm868_vm1, %v589_v56, 0.0  ;;  %v1074_v0 = vmul.f32 %v589_v56, %v589_v56  ;;  %v1147_v46 = vsel %vm868_vm1, %v1075_v60, 0.0  ;;  %903 = vst.msk [vmem:[%s2599_s4 + $0x110] sm:$0xff] %vm868_vm1, %v2123_v35 }
  0xdf   :  { %v949_v2 = vadd.f32 %v948_v63, %v947_v57  ;;  %v1144_v3 = vadd.f32 %v1143_v59, %v1142_v55  ;;  %v1426_v5 = vpop.f32.mrf.mxu0  ;;  %v2136_v33 = vpop.f32.mrf.mxu1 }
  0xe0   :  { %v1145_v4 = vsel %vm868_vm1, %v1074_v0, 0.0  ;;  %880 = vst.msk [vmem:[%s2599_s4 + $0x58] sm:$0xff] %vm868_vm1, %v1426_v5  ;;  %v1077_v53 = vmul.f32 %v1426_v5, %v1426_v5  ;;  %v954_v13 = vsel %vm868_vm1, %v1426_v5, 0.0  ;;  %906 = vst.msk [vmem:[%s2599_s4 + $0x128] sm:$0xff] %vm868_vm1, %v2136_v33 }
  0xe1   :  { %v1146_v8 = vadd.f32 %v1145_v4, %v1144_v3  ;;  %v599_v48 = vpop.f32.mrf.mxu0  ;;  %v951_v10 = vadd.f32 %v950_v6, %v949_v2  ;;  %v2149_v44 = vpop.f32.mrf.mxu1 }
  0xe2   :  { %879 = vst.msk [vmem:[%s2599_s4 + $0x50] sm:$0xff] %vm868_vm1, %v599_v48  ;;  %v952_v58 = vsel %vm868_vm1, %v599_v48, 0.0  ;;  %v1076_v1 = vmul.f32 %v599_v48, %v599_v48  ;;  %v1151_v19 = vsel %vm868_vm1, %v1077_v53, 0.0  ;;  %905 = vst.msk [vmem:[%s2599_s4 + $0x120] sm:$0xff] %vm868_vm1, %v2149_v44 }
  0xe3   :  { %v953_v7 = vadd.f32 %v952_v58, %v951_v10  ;;  %v1148_v9 = vadd.f32 %v1147_v46, %v1146_v8  ;;  %v1429_v11 = vpop.f32.mrf.mxu0  ;;  %v2162_v55 = vpop.f32.mrf.mxu1 }
  0xe4   :  { %v1149_v14 = vsel %vm868_vm1, %v1076_v1, 0.0  ;;  %882 = vst.msk [vmem:[%s2599_s4 + $0x68] sm:$0xff] %vm868_vm1, %v1429_v11  ;;  %v1079_v20 = vmul.f32 %v1429_v11, %v1429_v11  ;;  %v958_v22 = vsel %vm868_vm1, %v1429_v11, 0.0  ;;  %908 = vst.msk [vmem:[%s2599_s4 + $0x138] sm:$0xff] %vm868_vm1, %v2162_v55 }
  0xe5   :  { %v1150_v15 = vadd.f32 %v1149_v14, %v1148_v9  ;;  %v609_v16 = vpop.f32.mrf.mxu0  ;;  %v955_v17 = vadd.f32 %v954_v13, %v953_v7  ;;  %v2175_v0 = vpop.f32.mrf.mxu1 }
  0xe6   :  { %881 = vst.msk [vmem:[%s2599_s4 + $0x60] sm:$0xff] %vm868_vm1, %v609_v16  ;;  %v956_v21 = vsel %vm868_vm1, %v609_v16, 0.0  ;;  %v1078_v24 = vmul.f32 %v609_v16, %v609_v16  ;;  %v1155_v36 = vsel %vm868_vm1, %v1079_v20, 0.0  ;;  %907 = vst.msk [vmem:[%s2599_s4 + $0x130] sm:$0xff] %vm868_vm1, %v2175_v0 }
  0xe7   :  { %v957_v25 = vadd.f32 %v956_v21, %v955_v17  ;;  %v1152_v28 = vadd.f32 %v1151_v19, %v1150_v15  ;;  %v1432_v29 = vpop.f32.mrf.mxu0  ;;  %v2188_v10 = vpop.f32.mrf.mxu1 }
  0xe8   :  { %v1153_v30 = vsel %vm868_vm1, %v1078_v24, 0.0  ;;  %884 = vst.msk [vmem:[%s2599_s4 + $0x78] sm:$0xff] %vm868_vm1, %v1432_v29  ;;  %v1081_v26 = vmul.f32 %v1432_v29, %v1432_v29  ;;  %v962_v40 = vsel %vm868_vm1, %v1432_v29, 0.0  ;;  %910 = vst.msk [vmem:[%s2599_s4 + $0x148] sm:$0xff] %vm868_vm1, %v2188_v10 }
  0xe9   :  { %v1154_v31 = vadd.f32 %v1153_v30, %v1152_v28  ;;  %v619_v32 = vpop.f32.mrf.mxu0  ;;  %v959_v34 = vadd.f32 %v958_v22, %v957_v25  ;;  %v2201_v9 = vpop.f32.mrf.mxu1 }
  0xea   :  { %883 = vst.msk [vmem:[%s2599_s4 + $0x70] sm:$0xff] %vm868_vm1, %v619_v32  ;;  %v960_v37 = vsel %vm868_vm1, %v619_v32, 0.0  ;;  %v1080_v27 = vmul.f32 %v619_v32, %v619_v32  ;;  %v1159_v45 = vsel %vm868_vm1, %v1081_v26, 0.0  ;;  %909 = vst.msk [vmem:[%s2599_s4 + $0x140] sm:$0xff] %vm868_vm1, %v2201_v9 }
  0xeb   :  { %v961_v39 = vadd.f32 %v960_v37, %v959_v34  ;;  %v1156_v62 = vadd.f32 %v1155_v36, %v1154_v31  ;;  %v1435_v23 = vpop.f32.mrf.mxu0  ;;  %v2214_v20 = vpop.f32.mrf.mxu1 }
  0xec   :  { %v1157_v41 = vsel %vm868_vm1, %v1080_v27, 0.0  ;;  %886 = vst.msk [vmem:[%s2599_s4 + $0x88] sm:$0xff] %vm868_vm1, %v1435_v23  ;;  %v1083_v47 = vmul.f32 %v1435_v23, %v1435_v23  ;;  %v966_v56 = vsel %vm868_vm1, %v1435_v23, 0.0  ;;  %912 = vst.msk [vmem:[%s2599_s4 + $0x158] sm:$0xff] %vm868_vm1, %v2214_v20 }
  0xed   :  { %v1158_v42 = vadd.f32 %v1157_v41, %v1156_v62  ;;  %v629_v43 = vpop.f32.mrf.mxu0  ;;  %v963_v38 = vadd.f32 %v962_v40, %v961_v39  ;;  %v2227_v22 = vpop.f32.mrf.mxu1 }
  0xee   :  { %885 = vst.msk [vmem:[%s2599_s4 + $0x80] sm:$0xff] %vm868_vm1, %v629_v43  ;;  %v964_v49 = vsel %vm868_vm1, %v629_v43, 0.0  ;;  %v1082_v50 = vmul.f32 %v629_v43, %v629_v43  ;;  %v1163_v2 = vsel %vm868_vm1, %v1083_v47, 0.0  ;;  %911 = vst.msk [vmem:[%s2599_s4 + $0x150] sm:$0xff] %vm868_vm1, %v2227_v22 }
  0xef   :  { %v965_v51 = vadd.f32 %v964_v49, %v963_v38  ;;  %v1160_v52 = vadd.f32 %v1159_v45, %v1158_v42  ;;  %v1438_v54 = vpop.f32.mrf.mxu0 }
  0xf0   :  { %v1161_v57 = vsel %vm868_vm1, %v1082_v50, 0.0  ;;  %888 = vst.msk [vmem:[%s2599_s4 + $0x98] sm:$0xff] %vm868_vm1, %v1438_v54  ;;  %v1085_v3 = vmul.f32 %v1438_v54, %v1438_v54  ;;  %v970_v46 = vsel %vm868_vm1, %v1438_v54, 0.0 }
  0xf1   :  { %v1162_v59 = vadd.f32 %v1161_v57, %v1160_v52  ;;  %v639_v60 = vpop.f32.mrf.mxu0  ;;  %v967_v63 = vadd.f32 %v966_v56, %v965_v51 }
  0xf2   :  { %887 = vst.msk [vmem:[%s2599_s4 + $0x90] sm:$0xff] %vm868_vm1, %v639_v60  ;;  %v968_v5 = vsel %vm868_vm1, %v639_v60, 0.0  ;;  %v1084_v6 = vmul.f32 %v639_v60, %v639_v60  ;;  %v1167_v11 = vsel %vm868_vm1, %v1085_v3, 0.0 }
  0xf3   :  { %v969_v4 = vadd.f32 %v968_v5, %v967_v63  ;;  %v1164_v8 = vadd.f32 %v1163_v2, %v1162_v59  ;;  %v1441_v48 = vpop.f32.mrf.mxu0 }
  0xf4   :  { %v1165_v53 = vsel %vm868_vm1, %v1084_v6, 0.0  ;;  %890 = vst.msk [vmem:[%s2599_s4 + $0xa8] sm:$0xff] %vm868_vm1, %v1441_v48  ;;  %v1087_v13 = vmul.f32 %v1441_v48, %v1441_v48  ;;  %v974_v21 = vsel %vm868_vm1, %v1441_v48, 0.0 }
  0xf5   :  { %v1166_v58 = vadd.f32 %v1165_v53, %v1164_v8  ;;  %v649_v1 = vpop.f32.mrf.mxu0  ;;  %v971_v7 = vadd.f32 %v970_v46, %v969_v4 }
  0xf6   :  { %889 = vst.msk [vmem:[%s2599_s4 + $0xa0] sm:$0xff] %vm868_vm1, %v649_v1  ;;  %v972_v14 = vsel %vm868_vm1, %v649_v1, 0.0  ;;  %v1086_v15 = vmul.f32 %v649_v1, %v649_v1  ;;  %v1171_v30 = vsel %vm868_vm1, %v1087_v13, 0.0  ;;  %v2240_v27 = vpop.f32.mrf.mxu1 }
  0xf7   :  { %v973_v16 = vadd.f32 %v972_v14, %v971_v7  ;;  %v1168_v17 = vadd.f32 %v1167_v11, %v1166_v58  ;;  %v1444_v19 = vpop.f32.mrf.mxu0  ;;  %914 = vst.msk [vmem:[%s2599_s4 + $0x168] sm:$0xff] %vm868_vm1, %v2240_v27 }
  0xf8   :  { %v1169_v24 = vsel %vm868_vm1, %v1086_v15, 0.0  ;;  %892 = vst.msk [vmem:[%s2599_s4 + $0xb8] sm:$0xff] %vm868_vm1, %v1444_v19  ;;  %v1089_v31 = vmul.f32 %v1444_v19, %v1444_v19  ;;  %v978_v39 = vsel %vm868_vm1, %v1444_v19, 0.0  ;;  %v2253_v42 = vpop.f32.mrf.mxu1 }
  0xf9   :  { %v1170_v25 = vadd.f32 %v1169_v24, %v1168_v17  ;;  %v659_v28 = vpop.f32.mrf.mxu0  ;;  %v975_v29 = vadd.f32 %v974_v21, %v973_v16  ;;  %913 = vst.msk [vmem:[%s2599_s4 + $0x160] sm:$0xff] %vm868_vm1, %v2253_v42 }
  0xfa   :  { %891 = vst.msk [vmem:[%s2599_s4 + $0xb0] sm:$0xff] %vm868_vm1, %v659_v28  ;;  %v976_v32 = vsel %vm868_vm1, %v659_v28, 0.0  ;;  %v1088_v34 = vmul.f32 %v659_v28, %v659_v28  ;;  %v1175_v43 = vsel %vm868_vm1, %v1089_v31, 0.0  ;;  %v2266_v52 = vpop.f32.mrf.mxu1 }
  0xfb   :  { %v977_v36 = vadd.f32 %v976_v32, %v975_v29  ;;  %v1172_v26 = vadd.f32 %v1171_v30, %v1170_v25  ;;  %v1447_v37 = vpop.f32.mrf.mxu0  ;;  %916 = vst.msk [vmem:[%s2599_s4 + $0x178] sm:$0xff] %vm868_vm1, %v2266_v52 }
  0xfc   :  { %v1173_v62 = vsel %vm868_vm1, %v1088_v34, 0.0  ;;  %894 = vst.msk [vmem:[%s2599_s4 + $0xc8] sm:$0xff] %vm868_vm1, %v1447_v37  ;;  %v1091_v38 = vmul.f32 %v1447_v37, %v1447_v37  ;;  %v982_v54 = vsel %vm868_vm1, %v1447_v37, 0.0  ;;  %v2279_v63 = vpop.f32.mrf.mxu1 }
  0xfd   :  { %v1174_v23 = vadd.f32 %v1173_v62, %v1172_v26  ;;  %v669_v40 = vpop.f32.mrf.mxu0  ;;  %v979_v41 = vadd.f32 %v978_v39, %v977_v36  ;;  %915 = vst.msk [vmem:[%s2599_s4 + $0x170] sm:$0xff] %vm868_vm1, %v2279_v63 }
  0xfe   :  { %893 = vst.msk [vmem:[%s2599_s4 + $0xc0] sm:$0xff] %vm868_vm1, %v669_v40  ;;  %v980_v45 = vsel %vm868_vm1, %v669_v40, 0.0  ;;  %v1090_v47 = vmul.f32 %v669_v40, %v669_v40  ;;  %v1179_v2 = vsel %vm868_vm1, %v1091_v38, 0.0  ;;  %v2292_v46 = vpop.f32.mrf.mxu1  ;;  %v1098_v38 = vmul.f32 %v2097_v18, %v2097_v18 }
  0xff   :  { %v981_v49 = vadd.f32 %v980_v45, %v979_v41  ;;  %v1176_v50 = vadd.f32 %v1175_v43, %v1174_v23  ;;  %v1450_v51 = vpop.f32.mrf.mxu0  ;;  %918 = vst.msk [vmem:[%s2599_s4 + $0x188] sm:$0xff] %vm868_vm1, %v2292_v46 }
 0x100   :  { %v1177_v56 = vsel %vm868_vm1, %v1090_v47, 0.0  ;;  %896 = vst.msk [vmem:[%s2599_s4 + $0xd8] sm:$0xff] %vm868_vm1, %v1450_v51  ;;  %v1093_v3 = vmul.f32 %v1450_v51, %v1450_v51  ;;  %v986_v53 = vsel %vm868_vm1, %v1450_v51, 0.0  ;;  %v2305_v13 = vpop.f32.mrf.mxu1  ;;  %v1099_v51 = vmul.f32 %v2084_v12, %v2084_v12 }
 0x101   :  { %v1178_v57 = vadd.f32 %v1177_v56, %v1176_v50  ;;  %v679_v59 = vpop.f32.mrf.mxu0  ;;  %v983_v60 = vadd.f32 %v982_v54, %v981_v49  ;;  %917 = vst.msk [vmem:[%s2599_s4 + $0x180] sm:$0xff] %vm868_vm1, %v2305_v13  ;;  %v996_v54 = vsel %vm868_vm1, %v2097_v18, 0.0 }
 0x102   :  { %895 = vst.msk [vmem:[%s2599_s4 + $0xd0] sm:$0xff] %vm868_vm1, %v679_v59  ;;  %v984_v5 = vsel %vm868_vm1, %v679_v59, 0.0  ;;  %v1092_v6 = vmul.f32 %v679_v59, %v679_v59  ;;  %v1183_v14 = vsel %vm868_vm1, %v1093_v3, 0.0  ;;  %v2318_v25 = vpop.f32.mrf.mxu1  ;;  %v1100_v3 = vmul.f32 %v2123_v35, %v2123_v35 }
 0x103   :  { %v985_v4 = vadd.f32 %v984_v5, %v983_v60  ;;  %v1180_v8 = vadd.f32 %v1179_v2, %v1178_v57  ;;  %v1453_v48 = vpop.f32.mrf.mxu0  ;;  %920 = vst.msk [vmem:[%s2599_s4 + $0x198] sm:$0xff] %vm868_vm1, %v2318_v25  ;;  %v998_v60 = vsel %vm868_vm1, %v2084_v12, 0.0  ;;  %v1193_v2 = vsel %vm868_vm1, %v1098_v38, 0.0 }
 0x104   :  { %v1181_v58 = vsel %vm868_vm1, %v1092_v6, 0.0  ;;  %898 = vst.msk [vmem:[%s2599_s4 + $0xe8] sm:$0xff] %vm868_vm1, %v1453_v48  ;;  %v1095_v15 = vmul.f32 %v1453_v48, %v1453_v48  ;;  %v990_v28 = vsel %vm868_vm1, %v1453_v48, 0.0  ;;  %v2331_v34 = vpop.f32.mrf.mxu1  ;;  %v1101_v12 = vmul.f32 %v2110_v61, %v2110_v61 }
 0x105   :  { %v1182_v1 = vadd.f32 %v1181_v58, %v1180_v8  ;;  %v689_v7 = vpop.f32.mrf.mxu0  ;;  %v987_v11 = vadd.f32 %v986_v53, %v985_v4  ;;  %919 = vst.msk [vmem:[%s2599_s4 + $0x190] sm:$0xff] %vm868_vm1, %v2331_v34  ;;  %v1195_v4 = vsel %vm868_vm1, %v1099_v51, 0.0  ;;  %v1000_v8 = vsel %vm868_vm1, %v2123_v35, 0.0 }
 0x106   :  { %897 = vst.msk [vmem:[%s2599_s4 + $0xe0] sm:$0xff] %vm868_vm1, %v689_v7  ;;  %v988_v16 = vsel %vm868_vm1, %v689_v7, 0.0  ;;  %v1094_v17 = vmul.f32 %v689_v7, %v689_v7  ;;  %v1187_v36 = vsel %vm868_vm1, %v1095_v15, 0.0  ;;  %v2344_v40 = vpop.f32.mrf.mxu1  ;;  %v1197_v7 = vsel %vm868_vm1, %v1100_v3, 0.0 }
 0x107   :  { %v989_v19 = vadd.f32 %v988_v16, %v987_v11  ;;  %v1184_v21 = vadd.f32 %v1183_v14, %v1182_v1  ;;  %v1456_v24 = vpop.f32.mrf.mxu0  ;;  %922 = vst.msk [vmem:[%s2599_s4 + $0x1a8] sm:$0xff] %vm868_vm1, %v2344_v40  ;;  %v1002_v1 = vsel %vm868_vm1, %v2110_v61, 0.0  ;;  %v1102_v11 = vmul.f32 %v2149_v44, %v2149_v44 }
 0x108   :  { %v1185_v29 = vsel %vm868_vm1, %v1094_v17, 0.0  ;;  %900 = vst.msk [vmem:[%s2599_s4 + $0xf8] sm:$0xff] %vm868_vm1, %v1456_v24  ;;  %v1097_v26 = vmul.f32 %v1456_v24, %v1456_v24  ;;  %v994_v41 = vsel %vm868_vm1, %v1456_v24, 0.0  ;;  %v2355_v49 = vpop.f32.mrf.mxu1  ;;  %v1199_v16 = vsel %vm868_vm1, %v1101_v12, 0.0 }
 0x109   :  { %v1186_v30 = vadd.f32 %v1185_v29, %v1184_v21  ;;  %v699_v31 = vpop.f32.mrf.mxu0  ;;  %v991_v32 = vadd.f32 %v990_v28, %v989_v19  ;;  %921 = vst.msk [vmem:[%s2599_s4 + $0x1a0] sm:$0xff] %vm868_vm1, %v2355_v49  ;;  %v1103_v61 = vmul.f32 %v2136_v33, %v2136_v33  ;;  %v1004_v17 = vsel %vm868_vm1, %v2149_v44, 0.0 }
 0x10a   :  { %899 = vst.msk [vmem:[%s2599_s4 + $0xf0] sm:$0xff] %vm868_vm1, %v699_v31  ;;  %v992_v37 = vsel %vm868_vm1, %v699_v31, 0.0  ;;  %v1096_v39 = vmul.f32 %v699_v31, %v699_v31  ;;  %v1191_v50 = vsel %vm868_vm1, %v1097_v26, 0.0  ;;  %v2367_v59 = vpop.f32.mrf.mxu1  ;;  %v1006_v28 = vsel %vm868_vm1, %v2136_v33, 0.0 }
 0x10b   :  { %v993_v62 = vadd.f32 %v992_v37, %v991_v32  ;;  %v1188_v23 = vadd.f32 %v1187_v36, %v1186_v30  ;;  %924 = vst.msk [vmem:[%s2599_s4 + $0x1b8] sm:$0xff] %vm868_vm1, %v2367_v59  ;;  %v1201_v29 = vsel %vm868_vm1, %v1102_v11, 0.0  ;;  %v1104_v30 = vmul.f32 %v2175_v0, %v2175_v0 }
 0x10c   :  { %v1189_v43 = vsel %vm868_vm1, %v1096_v39, 0.0  ;;  %v2379_v6 = vpop.f32.mrf.mxu1  ;;  %v1203_v36 = vsel %vm868_vm1, %v1103_v61, 0.0  ;;  %v1105_v33 = vmul.f32 %v2162_v55, %v2162_v55  ;;  %v1008_v26 = vsel %vm868_vm1, %v2175_v0, 0.0 }
 0x10d   :  { %v995_v45 = vadd.f32 %v994_v41, %v993_v62  ;;  %v1190_v47 = vadd.f32 %v1189_v43, %v1188_v23  ;;  %923 = vst.msk [vmem:[%s2599_s4 + $0x1b0] sm:$0xff] %vm868_vm1, %v2379_v6  ;;  %v1010_v23 = vsel %vm868_vm1, %v2162_v55, 0.0  ;;  %v1205_v41 = vsel %vm868_vm1, %v1104_v30, 0.0 }
 0x10e   :  { %v2391_v58 = vpop.f32.mrf.mxu1  ;;  %v1106_v43 = vmul.f32 %v2201_v9, %v2201_v9  ;;  %v1107_v55 = vmul.f32 %v2188_v10, %v2188_v10  ;;  %v1113_v30 = vmul.f32 %v2266_v52, %v2266_v52 }
 0x10f   :  { %v1192_v56 = vadd.f32 %v1191_v50, %v1190_v47  ;;  %v997_v57 = vadd.f32 %v996_v54, %v995_v45  ;;  %926 = vst.msk [vmem:[%s2599_s4 + $0x1c8] sm:$0xff] %vm868_vm1, %v2391_v58  ;;  %v1207_v47 = vsel %vm868_vm1, %v1105_v33, 0.0  ;;  %v1012_v50 = vsel %vm868_vm1, %v2201_v9, 0.0 }
 0x110   :  { %v2403_v15 = vpop.f32.mrf.mxu1  ;;  %v1114_v33 = vmul.f32 %v2305_v13, %v2305_v13 }
 0x111   :  { %v1194_v18 = vadd.f32 %v1193_v2, %v1192_v56  ;;  %v999_v5 = vadd.f32 %v998_v60, %v997_v57  ;;  %925 = vst.msk [vmem:[%s2599_s4 + $0x1c0] sm:$0xff] %vm868_vm1, %v2403_v15  ;;  %v1014_v57 = vsel %vm868_vm1, %v2188_v10, 0.0  ;;  %v1209_v60 = vsel %vm868_vm1, %v1106_v43, 0.0 }
 0x112   :  { %v2415_v24 = vpop.f32.mrf.mxu1  ;;  %v1108_v2 = vmul.f32 %v2227_v22, %v2227_v22  ;;  %v1109_v10 = vmul.f32 %v2214_v20, %v2214_v20 }
 0x113   :  { %v1001_v48 = vadd.f32 %v1000_v8, %v999_v5  ;;  %v1196_v53 = vadd.f32 %v1195_v4, %v1194_v18  ;;  %928 = vst.msk [vmem:[%s2599_s4 + $0x1d8] sm:$0xff] %vm868_vm1, %v2415_v24  ;;  %v1211_v5 = vsel %vm868_vm1, %v1107_v55, 0.0  ;;  %v1016_v4 = vsel %vm868_vm1, %v2227_v22, 0.0 }
 0x114   :  { %v2427_v32 = vpop.f32.mrf.mxu1  ;;  %v1215_v22 = vsel %vm868_vm1, %v1109_v10, 0.0  ;;  %v1119_v10 = vmul.f32 %v2344_v40, %v2344_v40 }
 0x115   :  { %v1198_v35 = vadd.f32 %v1197_v7, %v1196_v53  ;;  %v1003_v14 = vadd.f32 %v1002_v1, %v1001_v48  ;;  %927 = vst.msk [vmem:[%s2599_s4 + $0x1d0] sm:$0xff] %vm868_vm1, %v2427_v32  ;;  %v1018_v48 = vsel %vm868_vm1, %v2214_v20, 0.0  ;;  %v1213_v53 = vsel %vm868_vm1, %v1108_v2, 0.0 }
 0x116   :  { %v2439_v62 = vpop.f32.mrf.mxu1  ;;  %v1110_v1 = vmul.f32 %v2253_v42, %v2253_v42  ;;  %v1022_v20 = vsel %vm868_vm1, %v2240_v27, 0.0  ;;  %v1118_v2 = vmul.f32 %v2355_v49, %v2355_v49 }
 0x117   :  { %v1005_v19 = vadd.f32 %v1004_v17, %v1003_v14  ;;  %v1200_v21 = vadd.f32 %v1199_v16, %v1198_v35  ;;  %930 = vst.msk [vmem:[%s2599_s4 + $0x1e8] sm:$0xff] %vm868_vm1, %v2439_v62  ;;  %v1111_v35 = vmul.f32 %v2240_v27, %v2240_v27  ;;  %v1020_v14 = vsel %vm868_vm1, %v2253_v42, 0.0 }
 0x118   :  { %v2451_v45 = vpop.f32.mrf.mxu1  ;;  %v1217_v17 = vsel %vm868_vm1, %v1110_v1, 0.0  ;;  %v1024_v42 = vsel %vm868_vm1, %v2279_v63, 0.0  ;;  %v1026_v27 = vsel %vm868_vm1, %v2266_v52, 0.0  ;;  %v1030_v52 = vsel %vm868_vm1, %v2292_v46, 0.0 }
 0x119   :  { %v1202_v44 = vadd.f32 %v1201_v29, %v1200_v21  ;;  %v1007_v31 = vadd.f32 %v1006_v28, %v1005_v19  ;;  %929 = vst.msk [vmem:[%s2599_s4 + $0x1e0] sm:$0xff] %vm868_vm1, %v2451_v45  ;;  %v1112_v19 = vmul.f32 %v2279_v63, %v2279_v63  ;;  %v1219_v29 = vsel %vm868_vm1, %v1111_v35, 0.0 }
 0x11a   :  { %v2463_v56 = vpop.f32.mrf.mxu1  ;;  %v1028_v63 = vsel %vm868_vm1, %v2305_v13, 0.0  ;;  %v1032_v13 = vsel %vm868_vm1, %v2331_v34, 0.0 }
 0x11b   :  { %v1009_v37 = vadd.f32 %v1008_v26, %v1007_v31  ;;  %v1204_v39 = vadd.f32 %v1203_v36, %v1202_v44  ;;  %932 = vst.msk [vmem:[%s2599_s4 + $0x1f8] sm:$0xff] %vm868_vm1, %v2463_v56  ;;  %v1221_v36 = vsel %vm868_vm1, %v1112_v19, 0.0  ;;  %v1123_v19 = vmul.f32 %v2391_v58, %v2391_v58 }
 0x11c   :  { %v2475_v18 = vpop.f32.mrf.mxu1 }
 0x11d   :  { %v1206_v0 = vadd.f32 %v1205_v41, %v1204_v39  ;;  %v1011_v38 = vadd.f32 %v1010_v23, %v1009_v37  ;;  %931 = vst.msk [vmem:[%s2599_s4 + $0x1f0] sm:$0xff] %vm868_vm1, %v2475_v18  ;;  %v1223_v39 = vsel %vm868_vm1, %v1113_v30, 0.0  ;;  %v1115_v23 = vmul.f32 %v2292_v46, %v2292_v46 }
 0x11e   :  { %v1034_v46 = vsel %vm868_vm1, %v2318_v25, 0.0  ;;  %v1124_v30 = vmul.f32 %v2427_v32, %v2427_v32 }
 0x11f   :  { %v1013_v51 = vadd.f32 %v1012_v50, %v1011_v38  ;;  %v1208_v54 = vadd.f32 %v1207_v47, %v1206_v0  ;;  %v1225_v0 = vsel %vm868_vm1, %v1114_v33, 0.0  ;;  %v1116_v38 = vmul.f32 %v2331_v34, %v2331_v34 }
 0x120   :  { %v1227_v50 = vsel %vm868_vm1, %v1115_v23, 0.0  ;;  %v1036_v34 = vsel %vm868_vm1, %v2355_v49, 0.0  ;;  %v1040_v49 = vsel %vm868_vm1, %v2379_v6, 0.0 }
 0x121   :  { %v1210_v9 = vadd.f32 %v1209_v60, %v1208_v54  ;;  %v1015_v3 = vadd.f32 %v1014_v57, %v1013_v51  ;;  %v1117_v51 = vmul.f32 %v2318_v25, %v2318_v25  ;;  %v1229_v60 = vsel %vm868_vm1, %v1116_v38, 0.0 }
 0x122   :  { %v1038_v25 = vsel %vm868_vm1, %v2344_v40, 0.0  ;;  %v1042_v40 = vsel %vm868_vm1, %v2367_v59, 0.0  ;;  %v1128_v38 = vmul.f32 %v2475_v18, %v2475_v18 }
 0x123   :  { %v1017_v12 = vadd.f32 %v1016_v4, %v1015_v3  ;;  %v1212_v8 = vadd.f32 %v1211_v5, %v1210_v9  ;;  %v1231_v5 = vsel %vm868_vm1, %v1117_v51, 0.0  ;;  %v1129_v51 = vmul.f32 %v2463_v56, %v2463_v56 }
 0x125   :  { %v1214_v7 = vadd.f32 %v1213_v53, %v1212_v8  ;;  %v1019_v11 = vadd.f32 %v1018_v48, %v1017_v12  ;;  %v1233_v8 = vsel %vm868_vm1, %v1118_v2, 0.0  ;;  %v1120_v48 = vmul.f32 %v2379_v6, %v2379_v6 }
 0x126   :  { %v1044_v6 = vsel %vm868_vm1, %v2403_v15, 0.0  ;;  %v1255_v2 = vsel %vm868_vm1, %v1129_v51, 0.0 }
 0x127   :  { %v1021_v16 = vadd.f32 %v1020_v14, %v1019_v11  ;;  %v1216_v61 = vadd.f32 %v1215_v22, %v1214_v7  ;;  %v1235_v7 = vsel %vm868_vm1, %v1119_v10, 0.0  ;;  %v1121_v11 = vmul.f32 %v2367_v59, %v2367_v59 }
 0x128   :  { %v1237_v14 = vsel %vm868_vm1, %v1120_v48, 0.0  ;;  %v1046_v59 = vsel %vm868_vm1, %v2391_v58, 0.0  ;;  %v1050_v58 = vsel %vm868_vm1, %v2415_v24, 0.0 }
 0x129   :  { %v1218_v21 = vadd.f32 %v1217_v17, %v1216_v61  ;;  %v1023_v28 = vadd.f32 %v1022_v20, %v1021_v16  ;;  %v1122_v16 = vmul.f32 %v2403_v15, %v2403_v15  ;;  %v1239_v17 = vsel %vm868_vm1, %v1121_v11, 0.0 }
 0x12a   :  { %v1048_v15 = vsel %vm868_vm1, %v2427_v32, 0.0  ;;  %v1052_v32 = vsel %vm868_vm1, %v2451_v45, 0.0 }
 0x12b   :  { %v1025_v44 = vadd.f32 %v1024_v42, %v1023_v28  ;;  %v1220_v31 = vadd.f32 %v1219_v29, %v1218_v21  ;;  %v1241_v29 = vsel %vm868_vm1, %v1122_v16, 0.0 }
 0x12d   :  { %v1222_v26 = vadd.f32 %v1221_v36, %v1220_v31  ;;  %v1027_v37 = vadd.f32 %v1026_v27, %v1025_v44  ;;  %v1243_v31 = vsel %vm868_vm1, %v1123_v19, 0.0  ;;  %v1125_v27 = vmul.f32 %v2415_v24, %v2415_v24 }
 0x12e   :  { %v1054_v24 = vsel %vm868_vm1, %v2439_v62, 0.0 }
 0x12f   :  { %v1029_v41 = vadd.f32 %v1028_v63, %v1027_v37  ;;  %v1224_v43 = vadd.f32 %v1223_v39, %v1222_v26  ;;  %v1245_v26 = vsel %vm868_vm1, %v1124_v30, 0.0  ;;  %v1126_v37 = vmul.f32 %v2451_v45, %v2451_v45 }
 0x130   :  { %v1247_v63 = vsel %vm868_vm1, %v1125_v27, 0.0  ;;  %v1056_v45 = vsel %vm868_vm1, %v2475_v18, 0.0 }
 0x131   :  { %v1226_v47 = vadd.f32 %v1225_v0, %v1224_v43  ;;  %v1031_v55 = vadd.f32 %v1030_v52, %v1029_v41  ;;  %v1127_v41 = vmul.f32 %v2439_v62, %v2439_v62  ;;  %v1249_v0 = vsel %vm868_vm1, %v1126_v37, 0.0 }
 0x132   :  { %v1058_v62 = vsel %vm868_vm1, %v2463_v56, 0.0 }
 0x133   :  { %v1033_v54 = vadd.f32 %v1032_v13, %v1031_v55  ;;  %v1228_v57 = vadd.f32 %v1227_v50, %v1226_v47  ;;  %v1251_v50 = vsel %vm868_vm1, %v1127_v41, 0.0 }
 0x135   :  { %v1230_v9 = vadd.f32 %v1229_v60, %v1228_v57  ;;  %v1035_v3 = vadd.f32 %v1034_v46, %v1033_v54  ;;  %v1253_v57 = vsel %vm868_vm1, %v1128_v38, 0.0 }
 0x137   :  { %v1037_v4 = vadd.f32 %v1036_v34, %v1035_v3  ;;  %v1232_v12 = vadd.f32 %v1231_v5, %v1230_v9 }
 0x139   :  { %v1234_v53 = vadd.f32 %v1233_v8, %v1232_v12  ;;  %v1039_v1 = vadd.f32 %v1038_v25, %v1037_v4 }
 0x13b   :  { %v1041_v22 = vadd.f32 %v1040_v49, %v1039_v1  ;;  %v1236_v35 = vadd.f32 %v1235_v7, %v1234_v53 }
 0x13d   :  { %v1238_v61 = vadd.f32 %v1237_v14, %v1236_v35  ;;  %v1043_v20 = vadd.f32 %v1042_v40, %v1041_v22 }
 0x13f   :  { %v1045_v21 = vadd.f32 %v1044_v6, %v1043_v20  ;;  %v1240_v28 = vadd.f32 %v1239_v17, %v1238_v61 }
 0x141   :  { %v1242_v42 = vadd.f32 %v1241_v29, %v1240_v28  ;;  %v1047_v44 = vadd.f32 %v1046_v59, %v1045_v21 }
 0x143   :  { %v1049_v36 = vadd.f32 %v1048_v15, %v1047_v44  ;;  %v1244_v33 = vadd.f32 %v1243_v31, %v1242_v42 }
 0x145   :  { %v1246_v39 = vadd.f32 %v1245_v26, %v1244_v33  ;;  %v1051_v23 = vadd.f32 %v1050_v58, %v1049_v36 }
 0x147   :  { %v1053_v43 = vadd.f32 %v1052_v32, %v1051_v23  ;;  %v1248_v52 = vadd.f32 %v1247_v63, %v1246_v39 }
 0x149   :  { %v1250_v47 = vadd.f32 %v1249_v0, %v1248_v52  ;;  %v1055_v55 = vadd.f32 %v1054_v24, %v1053_v43 }
 0x14b   :  { %v1057_v13 = vadd.f32 %v1056_v45, %v1055_v55  ;;  %v1252_v54 = vadd.f32 %v1251_v50, %v1250_v47 }
 0x14d   :  { %v1059_v46 = vadd.f32 %v1058_v62, %v1057_v13  ;;  %v1254_v60 = vadd.f32 %v1253_v57, %v1252_v54 }
 0x14f   :  { %v1060_v9 = vrot.slane %v1059_v46, 4  ;;  %v1256_v3 = vadd.f32 %v1255_v2, %v1254_v60 }
 0x151   :  { %v1061_v5 = vadd.f32 %v1060_v9, %v1059_v46  ;;  %v1257_v10 = vrot.slane %v1256_v3, 4 }
 0x153   :  { %v1062_v34 = vrot.slane %v1061_v5, 2  ;;  %v1258_v4 = vadd.f32 %v1257_v10, %v1256_v3 }
 0x155   :  { %v1063_v12 = vadd.f32 %v1062_v34, %v1061_v5  ;;  %v1259_v25 = vrot.slane %v1258_v4, 2 }
 0x157   :  { %v1064_v18 = vrot.slane %v1063_v12, 1  ;;  %v1260_v8 = vadd.f32 %v1259_v25, %v1258_v4 }
 0x159   :  { %v1261_v48 = vrot.slane %v1260_v8, 1  ;;  %v1065_v53 = vadd.f32 %v1064_v18, %v1063_v12 }
 0x15b   :  { %v1262_v56 = vadd.f32 %v1261_v48, %v1260_v8 }
 0x15d   :  { %v1264_v1 = vsel %vm1263_vm2, %v1065_v53, %v1262_v56 }
 0x15e   :  { %v1266_v7 = vsel %vm1265_vm3, %v1264_v1, 0.0 }
 0x15f   :  { %1267 = vst.msk [vmem:[%s2600_s5] sm:$0xff] %vm868_vm1, %v1266_v7 }

// kernel: dense_block_forward.5
= control target key start
LH: loop header
LB: loop body
LE: loop exit
PB: predicated region body
PF: predicated region fallthrough
CT: control target
= control target key end

     0   :  { %s3498_s21 = smov 0   ;;  %s5044_s0 = inlined_call_operand.vmem [shape: f32[2,16,16,4], index: 0, kind: input, shape index: {}]   ;;  %s5045_s1 = inlined_call_operand.vmem [shape: f32[2,16,16,16], index: 1, kind: input, shape index: {}]   ;;  %s5046_s2 = inlined_call_operand.vmem [shape: f32[1,1,16], index: 2, kind: input, shape index: {}]   ;;  %s5047_s3 = inlined_call_operand.vmem [shape: f32[1,1,16], index: 3, kind: input, shape index: {}]   ;;  %s5048_s4 = inlined_call_operand.vmem [shape: f32[144,4], index: 4, kind: input, shape index: {}]   ;;  %s5049_s5 = inlined_call_operand.vmem [shape: f32[2,16,16,8], index: 5, kind: output, shape index: {0}]   ;;  %s5050_s6 = inlined_call_operand.vmem [shape: f32[2,8,4], index: 6, kind: output, shape index: {1}]  }
   0x1 LB: > { %s2767_s22 = sadd.s32 4294967295, %s3452_s21   ;;  %p2771_p0 = scmp.ge.s32.totalorder %s3452_s21, 1  ;;  %s3452_s21 = sphi %s3498_s21, %s17_s21  }
   0x2   : > { %p225_p1 = scmp.lt.s32.totalorder %s3452_s21, 3 }
   0x4   : > { %p226_p2 = pnand %p2771_p0, %p225_p1 }
   0x6   : > { %229 = sbr.rel (%p226_p2) target bundleno = 702 (0x2be), region = 40 }
   0xb   : > { %vm283_vm0 = vcmask 130048   ;;  %vm286_vm1 = vcmask 123904   ;;  %p3508_p3 = scmp.lt.s32.totalorder %s2767_s22, 1  ;;  %v3454_v0 = vmov 0.0   ;;  %v3634_v1 = vld [vmem:[%s5046_s2] ss:$0 sm:$0xff] }
   0xc   : > { %284 = vst.msk [vmem:[#allocation2] sm:$0xff] %vm283_vm0, %v3454_v0  ;;  %285 = vst.msk [vmem:[#allocation2 + $0x8] sm:$0xff] %vm283_vm0, %v3454_v0  ;;  %2043 = vmatprep.subr.mxu0 %v3454_v0  ;;  %2818 = vmatprep.subr.mxu1 %v3454_v0  ;;  %v3645_v2 = vld [vmem:[%s5047_s3] ss:$0 sm:$0xff]  ;;  %s3455_s8 = smov 16   ;;  %s3456_s9 = smov 32  }
   0xd   : > { %287 = vst.msk [vmem:[#allocation2 + $0x10] sm:$0x3] %vm286_vm1, %v3454_v0  ;;  %290 = vst.msk [vmem:[#allocation2 + $0x28] sm:$0x3] %vm286_vm1, %v3454_v0  ;;  %s5101_s22 = smov (!%p3508_p3, %s2767_s22), 1  ;;  %s3457_s14 = smov 48  }
   0xe   : > { %288 = vst.msk [vmem:[#allocation2 + $0x18] sm:$0xff] %vm283_vm0, %v3454_v0  ;;  %289 = vst.msk [vmem:[#allocation2 + $0x20] sm:$0xff] %vm283_vm0, %v3454_v0  ;;  %s3629_s24 = sshll.u32 %s5101_s22, 8  ;;  %s3458_s20 = smov 64   ;;  %vm1731_vm2 = vcmask 261120   ;;  %vm1764_vm3 = vcmask 392192  }
   0xf   : > { %291 = vst.msk [vmem:[#allocation2 + $0x30] sm:$0xff] %vm283_vm0, %v3454_v0  ;;  %292 = vst.msk [vmem:[#allocation2 + $0x38] sm:$0xff] %vm283_vm0, %v3454_v0  ;;  %s3640_s29 = scalar_lea.vmem %s5045_s1, %s3629_s24  ;;  %s3459_s23 = smov 80   ;;  %vm1797_vm4 = vcmask 523264   ;;  %vm1830_vm5 = vcmask 654336   ;;  %vm1863_vm6 = vcmask 785408  }
  0x10   : > { %293 = vst.msk [vmem:[#allocation2 + $0x40] sm:$0x3] %vm286_vm1, %v3454_v0  ;;  %296 = vst.msk [vmem:[#allocation2 + $0x58] sm:$0x3] %vm286_vm1, %v3454_v0  ;;  %v341_v3 = vld [vmem:[%s3640_s29 + $0x10] sm:$0xff]  ;;  %v342_v4 = vld [vmem:[%s3640_s29 + $0x18] sm:$0xff]  ;;  %s4782_s13 = scalar_lea.vmem %s5044_s0, %s3629_s24  ;;  %s4789_s16 = scalar_lea.vmem %s5049_s5, %s3629_s24 }
  0x11   : > { %294 = vst.msk [vmem:[#allocation2 + $0x48] sm:$0xff] %vm283_vm0, %v3454_v0  ;;  %295 = vst.msk [vmem:[#allocation2 + $0x50] sm:$0xff] %vm283_vm0, %v3454_v0  ;;  %v339_v5 = vld [vmem:[%s3640_s29] sm:$0xff]  ;;  %v380_v6 = vmul.f32 %v3634_v1, %v341_v3  ;;  %v381_v7 = vmul.f32 %v3634_v1, %v342_v4  ;;  %v340_v8 = vld [vmem:[%s3640_s29 + $0x8] sm:$0xff]  ;;  %s3460_s27 = smov 96   ;;  %s3461_s10 = smov 112  }
  0x12   : > { %297 = vst.msk [vmem:[#allocation2 + $0x60] sm:$0xff] %vm283_vm0, %v3454_v0  ;;  %298 = vst.msk [vmem:[#allocation2 + $0x68] sm:$0xff] %vm283_vm0, %v3454_v0  ;;  %v378_v9 = vmul.f32 %v3634_v1, %v339_v5  ;;  %v343_v10 = vld [vmem:[%s3640_s29 + $0x20] sm:$0xff]  ;;  %v344_v11 = vld [vmem:[%s3640_s29 + $0x28] sm:$0xff]  ;;  %v379_v14 = vmul.f32 %v3634_v1, %v340_v8  ;;  %vm1896_vm7 = vcmask 916480   ;;  %vm2428_vm8 = vcmask 31744  }
  0x13   : > { %299 = vst.msk [vmem:[#allocation2 + $0x70] sm:$0x3] %vm286_vm1, %v3454_v0  ;;  %302 = vst.msk [vmem:[#allocation2 + $0x88] sm:$0x3] %vm286_vm1, %v3454_v0  ;;  %v546_v12 = vld [vmem:[#allocation2 + $0x1] sm:$0xff]  ;;  %v382_v15 = vmul.f32 %v3634_v1, %v343_v10  ;;  %v383_v16 = vmul.f32 %v3634_v1, %v344_v11  ;;  %v345_v17 = vld [vmem:[%s3640_s29 + $0x30] sm:$0xff]  ;;  %v419_v19 = vadd.f32 %v3645_v2, %v380_v6 }
  0x14   : > { %300 = vst.msk [vmem:[#allocation2 + $0x78] sm:$0xff] %vm283_vm0, %v3454_v0  ;;  %301 = vst.msk [vmem:[#allocation2 + $0x80] sm:$0xff] %vm283_vm0, %v3454_v0  ;;  %v547_v13 = vld [vmem:[#allocation2 + $0x9] sm:$0xff]  ;;  %v420_v20 = vadd.f32 %v3645_v2, %v381_v7  ;;  %v417_v21 = vadd.f32 %v3645_v2, %v378_v9  ;;  %v346_v22 = vld [vmem:[%s3640_s29 + $0x38] sm:$0xff]  ;;  %v418_v23 = vadd.f32 %v3645_v2, %v379_v14  ;;  %vm2461_vm9 = vcmask 64512   ;;  %s2778_s24 = sshll.u32 %s5101_s22, 3 }
  0x15   : > { %303 = vst.msk [vmem:[#allocation2 + $0x90] sm:$0xff] %vm283_vm0, %v3454_v0  ;;  %304 = vst.msk [vmem:[#allocation2 + $0x98] sm:$0xff] %vm283_vm0, %v3454_v0  ;;  %v2871_v18 = vpack.i.bf16 %v547_v13, %v546_v12  ;;  %v421_v24 = vadd.f32 %v3645_v2, %v382_v15  ;;  %v422_v25 = vadd.f32 %v3645_v2, %v383_v16  ;;  %v347_v27 = vld [vmem:[%s3640_s29 + $0x40] sm:$0xff]  ;;  %v348_v28 = vld [vmem:[%s3640_s29 + $0x48] sm:$0xff]  ;;  %v451_v30 = vmax.f32 %v419_v19, 0.0  ;;  %s282_s22 = scalar_lea.vmem %s5050_s6, %s2778_s24 }
  0x16   : > { %305 = vst.msk [vmem:[#allocation2 + $0xa0] sm:$0x3] %vm286_vm1, %v3454_v0  ;;  %308 = vst.msk [vmem:[#allocation2 + $0xb8] sm:$0x3] %vm286_vm1, %v3454_v0  ;;  %v384_v26 = vmul.f32 %v3634_v1, %v345_v17  ;;  %v349_v29 = vld [vmem:[%s3640_s29 + $0x50] sm:$0xff]  ;;  %v452_v31 = vmax.f32 %v420_v20, 0.0  ;;  %v385_v33 = vmul.f32 %v3634_v1, %v346_v22  ;;  %v386_v42 = vmul.f32 %v3634_v1, %v347_v27 }
  0x17   : > { %306 = vst.msk [vmem:[#allocation2 + $0xa8] sm:$0xff] %vm283_vm0, %v3454_v0  ;;  %307 = vst.msk [vmem:[#allocation2 + $0xb0] sm:$0xff] %vm283_vm0, %v3454_v0  ;;  %2872 = vrot.lane.b32.xlu0 %v2871_v18, %s3455_s8  ;;  %v449_v32 = vmax.f32 %v417_v21, 0.0  ;;  %v350_v34 = vld [vmem:[%s3640_s29 + $0x58] sm:$0xff]  ;;  %v351_v35 = vld [vmem:[%s3640_s29 + $0x60] sm:$0xff]  ;;  %v450_v37 = vmax.f32 %v418_v23, 0.0  ;;  %v387_v43 = vmul.f32 %v3634_v1, %v348_v28  ;;  %v388_v44 = vmul.f32 %v3634_v1, %v349_v29 }
  0x18   : > { %309 = vst.msk [vmem:[#allocation2 + $0xc0] sm:$0xff] %vm283_vm0, %v3454_v0  ;;  %310 = vst.msk [vmem:[#allocation2 + $0xc8] sm:$0xff] %vm283_vm0, %v3454_v0  ;;  %v352_v36 = vld [vmem:[%s3640_s29 + $0x68] sm:$0xff]  ;;  %v453_v38 = vmax.f32 %v421_v24, 0.0  ;;  %v454_v39 = vmax.f32 %v422_v25, 0.0  ;;  %v423_v40 = vadd.f32 %v3645_v2, %v384_v26  ;;  %v424_v41 = vadd.f32 %v3645_v2, %v385_v33  ;;  %v353_v45 = vld [vmem:[%s3640_s29 + $0x70] sm:$0xff] }
  0x19   : > { %311 = vst.msk [vmem:[#allocation2 + $0xd0] sm:$0x3] %vm286_vm1, %v3454_v0  ;;  %314 = vst.msk [vmem:[#allocation2 + $0xe8] sm:$0x3] %vm286_vm1, %v3454_v0  ;;  %v389_v47 = vmul.f32 %v3634_v1, %v350_v34  ;;  %v390_v48 = vmul.f32 %v3634_v1, %v351_v35  ;;  %v391_v49 = vmul.f32 %v3634_v1, %v352_v36  ;;  %v354_v50 = vld [vmem:[%s3640_s29 + $0x78] sm:$0xff]  ;;  %v355_v59 = vld [vmem:[%s3640_s29 + $0x80] sm:$0xff] }
  0x1a   : > { %312 = vst.msk [vmem:[#allocation2 + $0xd8] sm:$0xff] %vm283_vm0, %v3454_v0  ;;  %313 = vst.msk [vmem:[#allocation2 + $0xe0] sm:$0xff] %vm283_vm0, %v3454_v0  ;;  %v455_v46 = vmax.f32 %v423_v40, 0.0  ;;  %v456_v51 = vmax.f32 %v424_v41, 0.0  ;;  %v425_v52 = vadd.f32 %v3645_v2, %v386_v42  ;;  %v426_v53 = vadd.f32 %v3645_v2, %v387_v43  ;;  %v356_v60 = vld [vmem:[%s3640_s29 + $0x88] sm:$0xff]  ;;  %v357_v61 = vld [vmem:[%s3640_s29 + $0x90] sm:$0xff] }
  0x1b   : > { %315 = vst.msk [vmem:[#allocation2 + $0xf0] sm:$0xff] %vm283_vm0, %v3454_v0  ;;  %316 = vst.msk [vmem:[#allocation2 + $0xf8] sm:$0xff] %vm283_vm0, %v3454_v0  ;;  %v427_v54 = vadd.f32 %v3645_v2, %v388_v44  ;;  %v428_v55 = vadd.f32 %v3645_v2, %v389_v47  ;;  %v429_v56 = vadd.f32 %v3645_v2, %v390_v48  ;;  %v358_v5 = vld [vmem:[%s3640_s29 + $0x98] sm:$0xff]  ;;  %v359_v6 = vld [vmem:[%s3640_s29 + $0xa0] sm:$0xff]  ;;  %vm2664_vm10 = vcmask 1040384  }
  0x1c   : > { %317 = vst.msk [vmem:[#allocation2 + $0x100] sm:$0x3] %vm286_vm1, %v3454_v0  ;;  %320 = vst.msk [vmem:[#allocation2 + $0x118] sm:$0x3] %vm286_vm1, %v3454_v0  ;;  %v430_v57 = vadd.f32 %v3645_v2, %v391_v49  ;;  %v392_v58 = vmul.f32 %v3634_v1, %v353_v45  ;;  %v457_v62 = vmax.f32 %v425_v52, 0.0  ;;  %v458_v63 = vmax.f32 %v426_v53, 0.0 }
  0x1d   : > { %318 = vst.msk [vmem:[#allocation2 + $0x108] sm:$0xff] %vm283_vm0, %v3454_v0  ;;  %319 = vst.msk [vmem:[#allocation2 + $0x110] sm:$0xff] %vm283_vm0, %v3454_v0  ;;  %v459_v3 = vmax.f32 %v427_v54, 0.0  ;;  %v393_v4 = vmul.f32 %v3634_v1, %v354_v50  ;;  %v360_v7 = vld [vmem:[%s3640_s29 + $0xa8] sm:$0xff]  ;;  %v460_v8 = vmax.f32 %v428_v55, 0.0  ;;  %v461_v9 = vmax.f32 %v429_v56, 0.0 }
  0x1e   : > { %321 = vst.msk [vmem:[#allocation2 + $0x120] sm:$0xff] %vm283_vm0, %v3454_v0  ;;  %322 = vst.msk [vmem:[#allocation2 + $0x128] sm:$0xff] %vm283_vm0, %v3454_v0  ;;  %v462_v10 = vmax.f32 %v430_v57, 0.0  ;;  %v431_v11 = vadd.f32 %v3645_v2, %v392_v58  ;;  %v394_v13 = vmul.f32 %v3634_v1, %v355_v59  ;;  %v395_v14 = vmul.f32 %v3634_v1, %v356_v60  ;;  %v361_v16 = vld [vmem:[%s3640_s29 + $0xb0] sm:$0xff]  ;;  %v362_v17 = vld [vmem:[%s3640_s29 + $0xb8] sm:$0xff] }
  0x1f   : > { %323 = vst.msk [vmem:[#allocation2 + $0x130] sm:$0x3] %vm286_vm1, %v3454_v0  ;;  %326 = vst.msk [vmem:[#allocation2 + $0x148] sm:$0x3] %vm286_vm1, %v3454_v0  ;;  %v432_v12 = vadd.f32 %v3645_v2, %v393_v4  ;;  %v396_v15 = vmul.f32 %v3634_v1, %v357_v61  ;;  %v397_v22 = vmul.f32 %v3634_v1, %v358_v5  ;;  %v363_v36 = vld [vmem:[%s3640_s29 + $0xc0] sm:$0xff]  ;;  %v364_v42 = vld [vmem:[%s3640_s29 + $0xc8] sm:$0xff] }
  0x20   : > { %324 = vst.msk [vmem:[#allocation2 + $0x138] sm:$0xff] %vm283_vm0, %v3454_v0  ;;  %325 = vst.msk [vmem:[#allocation2 + $0x140] sm:$0xff] %vm283_vm0, %v3454_v0  ;;  %v463_v21 = vmax.f32 %v431_v11, 0.0  ;;  %v398_v23 = vmul.f32 %v3634_v1, %v359_v6  ;;  %v399_v24 = vmul.f32 %v3634_v1, %v360_v7  ;;  %v365_v43 = vld [vmem:[%s3640_s29 + $0xd0] sm:$0xff]  ;;  %v400_v47 = vmul.f32 %v3634_v1, %v361_v16  ;;  %v366_v49 = vld [vmem:[%s3640_s29 + $0xd8] sm:$0xff] }
  0x21   : > { %327 = vst.msk [vmem:[#allocation2 + $0x150] sm:$0xff] %vm283_vm0, %v3454_v0  ;;  %328 = vst.msk [vmem:[#allocation2 + $0x158] sm:$0xff] %vm283_vm0, %v3454_v0  ;;  %v464_v29 = vmax.f32 %v432_v12, 0.0  ;;  %v435_v34 = vadd.f32 %v3645_v2, %v396_v15  ;;  %v436_v35 = vadd.f32 %v3645_v2, %v397_v22  ;;  %v401_v48 = vmul.f32 %v3634_v1, %v362_v17  ;;  %v367_v50 = vld [vmem:[%s3640_s29 + $0xe0] sm:$0xff]  ;;  %v368_v5 = vld [vmem:[%s3640_s29 + $0xe8] sm:$0xff] }
  0x22   : > { %329 = vst.msk [vmem:[#allocation2 + $0x160] sm:$0x3] %vm286_vm1, %v3454_v0  ;;  %332 = vst.msk [vmem:[#allocation2 + $0x178] sm:$0x3] %vm286_vm1, %v3454_v0  ;;  %v437_v40 = vadd.f32 %v3645_v2, %v398_v23  ;;  %v438_v41 = vadd.f32 %v3645_v2, %v399_v24  ;;  %v402_v54 = vmul.f32 %v3634_v1, %v363_v36  ;;  %vm2666_vm11 = vcmask 1041408  }
  0x23   : > { %330 = vst.msk [vmem:[#allocation2 + $0x168] sm:$0xff] %vm283_vm0, %v3454_v0  ;;  %331 = vst.msk [vmem:[#allocation2 + $0x170] sm:$0xff] %vm283_vm0, %v3454_v0  ;;  %v467_v45 = vmax.f32 %v435_v34, 0.0  ;;  %v439_v58 = vadd.f32 %v3645_v2, %v400_v47  ;;  %v440_v59 = vadd.f32 %v3645_v2, %v401_v48  ;;  %v403_v60 = vmul.f32 %v3634_v1, %v364_v42 }
  0x24   : > { %333 = vst.msk [vmem:[#allocation2 + $0x180] sm:$0xff] %vm283_vm0, %v3454_v0  ;;  %334 = vst.msk [vmem:[#allocation2 + $0x188] sm:$0xff] %vm283_vm0, %v3454_v0  ;;  %v469_v52 = vmax.f32 %v437_v40, 0.0  ;;  %v470_v53 = vmax.f32 %v438_v41, 0.0  ;;  %v404_v61 = vmul.f32 %v3634_v1, %v365_v43  ;;  %v405_v4 = vmul.f32 %v3634_v1, %v366_v49 }
  0x25   : > { %335 = vst.msk [vmem:[#allocation2 + $0x190] sm:$0x3] %vm286_vm1, %v3454_v0  ;;  %338 = vst.msk [vmem:[#allocation2 + $0x1a8] sm:$0x3] %vm286_vm1, %v3454_v0  ;;  %v406_v6 = vmul.f32 %v3634_v1, %v367_v50  ;;  %v472_v11 = vmax.f32 %v440_v59, 0.0 }
  0x26   : > { %336 = vst.msk [vmem:[#allocation2 + $0x198] sm:$0xff] %vm283_vm0, %v3454_v0  ;;  %337 = vst.msk [vmem:[#allocation2 + $0x1a0] sm:$0xff] %vm283_vm0, %v3454_v0  ;;  %v443_v15 = vadd.f32 %v3645_v2, %v404_v61  ;;  %v444_v16 = vadd.f32 %v3645_v2, %v405_v4 }
  0x27   : > { %484 = vst.msk [vmem:[#allocation2 + $0x31] sm:$0xff] %vm283_vm0, %v451_v30  ;;  %485 = vst.msk [vmem:[#allocation2 + $0x39] sm:$0xff] %vm283_vm0, %v452_v31  ;;  %v433_v30 = vadd.f32 %v3645_v2, %v394_v13  ;;  %v434_v31 = vadd.f32 %v3645_v2, %v395_v14  ;;  %v442_v13 = vadd.f32 %v3645_v2, %v403_v60 }
  0x28   : > { %482 = vst.msk [vmem:[#allocation2 + $0x19] sm:$0xff] %vm283_vm0, %v449_v32  ;;  %483 = vst.msk [vmem:[#allocation2 + $0x21] sm:$0xff] %vm283_vm0, %v450_v37  ;;  %v445_v22 = vadd.f32 %v3645_v2, %v406_v6 }
  0x29   : > { %486 = vst.msk [vmem:[#allocation2 + $0x49] sm:$0xff] %vm283_vm0, %v453_v38  ;;  %487 = vst.msk [vmem:[#allocation2 + $0x51] sm:$0xff] %vm283_vm0, %v454_v39  ;;  %v465_v38 = vmax.f32 %v433_v30, 0.0  ;;  %v466_v39 = vmax.f32 %v434_v31, 0.0  ;;  %v474_v24 = vmax.f32 %v442_v13, 0.0 }
  0x2a   : > { %488 = vst.msk [vmem:[#allocation2 + $0x61] sm:$0xff] %vm283_vm0, %v455_v46  ;;  %489 = vst.msk [vmem:[#allocation2 + $0x69] sm:$0xff] %vm283_vm0, %v456_v51  ;;  %v468_v46 = vmax.f32 %v436_v35, 0.0  ;;  %v477_v34 = vmax.f32 %v445_v22, 0.0 }
  0x2b   : > { %490 = vst.msk [vmem:[#allocation2 + $0x79] sm:$0xff] %vm283_vm0, %v457_v62  ;;  %491 = vst.msk [vmem:[#allocation2 + $0x81] sm:$0xff] %vm283_vm0, %v458_v63 }
  0x2c   : > { %492 = vst.msk [vmem:[#allocation2 + $0x91] sm:$0xff] %vm283_vm0, %v459_v3  ;;  %493 = vst.msk [vmem:[#allocation2 + $0x99] sm:$0xff] %vm283_vm0, %v460_v8  ;;  %v441_v3 = vadd.f32 %v3645_v2, %v402_v54 }
  0x2d   : > { %494 = vst.msk [vmem:[#allocation2 + $0xa9] sm:$0xff] %vm283_vm0, %v461_v9  ;;  %495 = vst.msk [vmem:[#allocation2 + $0xb1] sm:$0xff] %vm283_vm0, %v462_v10  ;;  %v471_v10 = vmax.f32 %v439_v58, 0.0 }
  0x2e   : > { %v3718_v18 = vld [vmem:[#allocation2 + $0x31] sm:$0xff]  ;;  %v3720_v19 = vld [vmem:[#allocation2 + $0x39] sm:$0xff]  ;;  %496 = vst.msk [vmem:[#allocation2 + $0xc1] sm:$0xff] %vm283_vm0, %v463_v21  ;;  %497 = vst.msk [vmem:[#allocation2 + $0xc9] sm:$0xff] %vm283_vm0, %v464_v29  ;;  %v473_v14 = vmax.f32 %v441_v3, 0.0  ;;  %v407_v21 = vmul.f32 %v3634_v1, %v368_v5  ;;  %v476_v29 = vmax.f32 %v444_v16, 0.0 }
  0x2f   : > { %v3722_v20 = vld [vmem:[#allocation2 + $0x19] sm:$0xff]  ;;  %v2881_v25 = vpack.i.bf16 %v3720_v19, %v3718_v18  ;;  %v3732_v26 = vld [vmem:[#allocation2 + $0x21] sm:$0xff]  ;;  %498 = vst.msk [vmem:[#allocation2 + $0xd9] sm:$0xff] %vm283_vm0, %v465_v38  ;;  %499 = vst.msk [vmem:[#allocation2 + $0xe1] sm:$0xff] %vm283_vm0, %v466_v39 }
  0x30   : > { %v3734_v27 = vld [vmem:[#allocation2 + $0x49] sm:$0xff]  ;;  %v3736_v28 = vld [vmem:[#allocation2 + $0x51] sm:$0xff]  ;;  %v2876_v32 = vpack.i.bf16 %v3732_v26, %v3722_v20  ;;  %500 = vst.msk [vmem:[#allocation2 + $0xf1] sm:$0xff] %vm283_vm0, %v467_v45  ;;  %501 = vst.msk [vmem:[#allocation2 + $0xf9] sm:$0xff] %vm283_vm0, %v468_v46 }
  0x31   : > { %v2886_v33 = vpack.i.bf16 %v3736_v28, %v3734_v27  ;;  %2882 = vrot.lane.b32.xlu1 %v2881_v25, %s3455_s8  ;;  %v3749_v37 = vld [vmem:[#allocation2 + $0x61] sm:$0xff]  ;;  %v3757_v44 = vld [vmem:[#allocation2 + $0x69] sm:$0xff]  ;;  %502 = vst.msk [vmem:[#allocation2 + $0x109] sm:$0xff] %vm283_vm0, %v469_v52  ;;  %503 = vst.msk [vmem:[#allocation2 + $0x111] sm:$0xff] %vm283_vm0, %v470_v53  ;;  %v475_v25 = vmax.f32 %v443_v15, 0.0 }
  0x32   : > { %2877 = vrot.lane.b32.xlu0 %v2876_v32, %s3455_s8  ;;  %v2891_v51 = vpack.i.bf16 %v3757_v44, %v3749_v37  ;;  %v3768_v55 = vld [vmem:[#allocation2 + $0x79] sm:$0xff]  ;;  %v3770_v56 = vld [vmem:[#allocation2 + $0x81] sm:$0xff]  ;;  %504 = vst.msk [vmem:[#allocation2 + $0x121] sm:$0xff] %vm283_vm0, %v471_v10  ;;  %505 = vst.msk [vmem:[#allocation2 + $0x129] sm:$0xff] %vm283_vm0, %v472_v11 }
  0x33   : > { %v558_v57 = vld [vmem:[#allocation2 + $0x91] sm:$0xff]  ;;  %v2896_v62 = vpack.i.bf16 %v3770_v56, %v3768_v55  ;;  %v559_v63 = vld [vmem:[#allocation2 + $0x99] sm:$0xff]  ;;  %506 = vst.msk [vmem:[#allocation2 + $0x139] sm:$0xff] %vm283_vm0, %v473_v14  ;;  %507 = vst.msk [vmem:[#allocation2 + $0x141] sm:$0xff] %vm283_vm0, %v474_v24 }
  0x34   : > { %v2901_v7 = vpack.i.bf16 %v559_v63, %v558_v57  ;;  %v560_v8 = vld [vmem:[#allocation2 + $0xa9] sm:$0xff]  ;;  %v561_v9 = vld [vmem:[#allocation2 + $0xb1] sm:$0xff]  ;;  %508 = vst.msk [vmem:[#allocation2 + $0x151] sm:$0xff] %vm283_vm0, %v475_v25  ;;  %509 = vst.msk [vmem:[#allocation2 + $0x159] sm:$0xff] %vm283_vm0, %v476_v29 }
  0x35   : > { %2887 = vrot.lane.b32.xlu1 %v2886_v33, %s3455_s8  ;;  %v562_v12 = vld [vmem:[#allocation2 + $0xc1] sm:$0xff]  ;;  %v563_v17 = vld [vmem:[#allocation2 + $0xc9] sm:$0xff]  ;;  %v2906_v23 = vpack.i.bf16 %v561_v9, %v560_v8  ;;  %v446_v33 = vadd.f32 %v3645_v2, %v407_v21  ;;  %510 = vst.msk [vmem:[#allocation2 + $0x169] sm:$0xff] %vm283_vm0, %v477_v34  ;;  %v3819_v48 = vld [vmem:[#allocation2 + $0x52] sm:$0xff] }
  0x36   : > { %2892 = vrot.lane.b32.xlu0 %v2891_v51, %s3455_s8  ;;  %v2911_v30 = vpack.i.bf16 %v563_v17, %v562_v12  ;;  %v3798_v31 = vld [vmem:[#allocation2 + $0xd9] sm:$0xff]  ;;  %v3800_v32 = vld [vmem:[#allocation2 + $0xe1] sm:$0xff]  ;;  %v3843_v60 = vld [vmem:[#allocation2 + $0x6a] sm:$0xff] }
  0x37   : > { %v3803_v35 = vld [vmem:[#allocation2 + $0xf1] sm:$0xff]  ;;  %v567_v36 = vld [vmem:[#allocation2 + $0xf9] sm:$0xff]  ;;  %v478_v38 = vmax.f32 %v446_v33, 0.0  ;;  %v2916_v39 = vpack.i.bf16 %v3800_v32, %v3798_v31  ;;  %v3821_v49 = vld [vmem:[#allocation2 + $0x62] sm:$0xff] }
  0x38   : > { %v2921_v40 = vpack.i.bf16 %v567_v36, %v3803_v35  ;;  %v568_v41 = vld [vmem:[#allocation2 + $0x109] sm:$0xff]  ;;  %v569_v42 = vld [vmem:[#allocation2 + $0x111] sm:$0xff]  ;;  %v3816_v46 = vpack.i.bf16 %v567_v36, %v3720_v19  ;;  %v3856_v4 = vld [vmem:[#allocation2 + $0x7a] sm:$0xff]  ;;  %v2971_v34 = vpack.i.bf16 %v3843_v60, %v3821_v49 }
  0x39   : > { %2897 = vrot.lane.b32.xlu1 %v2896_v62, %s3455_s8  ;;  %511 = vst.msk [vmem:[#allocation2 + $0x171] sm:$0xff] %vm283_vm0, %v478_v38  ;;  %v570_v43 = vld [vmem:[#allocation2 + $0x121] sm:$0xff]  ;;  %v571_v45 = vld [vmem:[#allocation2 + $0x129] sm:$0xff]  ;;  %v2926_v47 = vpack.i.bf16 %v569_v42, %v568_v41  ;;  %v3824_v50 = vpack.i.bf16 %v568_v41, %v3734_v27  ;;  %v3829_v54 = vld [vmem:[#allocation2 + $0x112] sm:$0xff]  ;;  %v3832_v19 = vpack.i.bf16 %v569_v42, %v3736_v28 }
  0x3a   : > { %2902 = vrot.lane.b32.xlu0 %v2901_v7, %s3455_s8  ;;  %v2931_v51 = vpack.i.bf16 %v571_v45, %v570_v43  ;;  %v572_v52 = vld [vmem:[#allocation2 + $0x139] sm:$0xff]  ;;  %v3827_v53 = vld [vmem:[#allocation2 + $0x141] sm:$0xff]  ;;  %v3841_v27 = vpack.i.bf16 %v570_v43, %v3749_v37  ;;  %v3845_v61 = vld [vmem:[#allocation2 + $0x12a] sm:$0xff]  ;;  %v3166_v62 = vpack.i.bf16 %v3829_v54, %v3819_v48  ;;  %v3850_v63 = vpack.i.bf16 %v571_v45, %v3757_v44 }
  0x3b   : > { %v3834_v57 = vld [vmem:[#allocation2 + $0x151] sm:$0xff]  ;;  %v3836_v58 = vld [vmem:[#allocation2 + $0x159] sm:$0xff]  ;;  %v3838_v59 = vld [vmem:[#allocation2 + $0x122] sm:$0xff]  ;;  %v2936_v3 = vpack.i.bf16 %v3827_v53, %v572_v52  ;;  %v3859_v37 = vpack.i.bf16 %v572_v52, %v3768_v55  ;;  %v3216_v5 = vpack.i.bf16 %v3845_v61, %v3843_v60  ;;  %v3231_v9 = vpack.i.bf16 %v3827_v53, %v3770_v56 }
  0x3c   : > { %v3191_v28 = vpack.i.bf16 %v3838_v59, %v3821_v49  ;;  %v2941_v44 = vpack.i.bf16 %v3836_v58, %v3834_v57  ;;  %v576_v6 = vld [vmem:[#allocation2 + $0x169] sm:$0xff]  ;;  %v3866_v8 = vld [vmem:[#allocation2 + $0x13a] sm:$0xff]  ;;  %v3878_v16 = vld [vmem:[#allocation2 + $0x32] sm:$0xff] }
  0x3d   : > { %2907 = vrot.lane.b32.xlu1 %v2906_v23, %s3455_s8  ;;  %v578_v10 = vld [vmem:[#allocation2 + $0x2] sm:$0xff]  ;;  %v579_v11 = vld [vmem:[#allocation2 + $0xa] sm:$0xff]  ;;  %v3241_v55 = vpack.i.bf16 %v3866_v8, %v3856_v4  ;;  %v3874_v14 = vld [vmem:[#allocation2 + $0x1a] sm:$0xff] }
  0x3e   : > { %2912 = vrot.lane.b32.xlu0 %v2911_v30, %s3455_s8  ;;  %v2951_v13 = vpack.i.bf16 %v579_v11, %v578_v10  ;;  %v3876_v15 = vld [vmem:[#allocation2 + $0x22] sm:$0xff]  ;;  %v3880_v17 = vld [vmem:[#allocation2 + $0x3a] sm:$0xff]  ;;  %v3894_v29 = vld [vmem:[#allocation2 + $0x4a] sm:$0xff] }
  0x3f   : > { %v3882_v21 = vld [vmem:[#allocation2 + $0x82] sm:$0xff]  ;;  %v2956_v24 = vpack.i.bf16 %v3876_v15, %v3874_v14  ;;  %v2961_v25 = vpack.i.bf16 %v3880_v17, %v3878_v16  ;;  %v1944_v30 = vld [vmem:[%s5048_s4 + $0x78] sm:$0xff]  ;;  %v2966_v33 = vpack.i.bf16 %v3819_v48, %v3894_v29  ;;  %v1943_v36 = vld [vmem:[%s5048_s4 + $0x70] sm:$0xff] }
  0x40   : > { %v577_v7 = vld [vmem:[#allocation2 + $0x171] sm:$0xff]  ;;  %v3884_v22 = vld [vmem:[#allocation2 + $0x142] sm:$0xff]  ;;  %2044 = vmatpush1.msra.mxu0 %v1944_v30  ;;  %2836 = vmatpush1.msra.mxu1 %v1944_v30  ;;  %v2976_v43 = vpack.i.bf16 %v3882_v21, %v3856_v4  ;;  %v3936_v11 = vld [vmem:[#allocation2 + $0xda] sm:$0xff] }
  0x41   : > { %2917 = vrot.lane.b32.xlu1 %v2916_v39, %s3455_s8  ;;  %v2946_v12 = vpack.i.bf16 %v577_v7, %v576_v6  ;;  %v3266_v23 = vpack.i.bf16 %v3884_v22, %v3882_v21  ;;  %v3908_v38 = vld [vmem:[#allocation2 + $0x92] sm:$0xff]  ;;  %v591_v39 = vld [vmem:[#allocation2 + $0x9a] sm:$0xff]  ;;  %2045 = vmatprep.subr.mxu0 %v3454_v0  ;;  %v1942_v41 = vld [vmem:[%s5048_s4 + $0x68] sm:$0xff] }
  0x42   : > { %2922 = vrot.lane.b32.xlu0 %v2921_v40, %s3455_s8  ;;  %v3910_v40 = vld [vmem:[#allocation2 + $0x152] sm:$0xff]  ;;  %2819 = vmatprep.subr.mxu1 %v3454_v0  ;;  %v2981_v45 = vpack.i.bf16 %v591_v39, %v3908_v38  ;;  %v1941_v52 = vld [vmem:[%s5048_s4 + $0x60] sm:$0xff]  ;;  %v1938_v39 = vld [vmem:[%s5048_s4 + $0x48] sm:$0xff] }
  0x43   : > { %2046 = vmatpush1.msra.mxu0 %v1943_v36  ;;  %2837 = vmatpush1.msra.mxu1 %v1943_v36  ;;  %v3291_v42 = vpack.i.bf16 %v3910_v40, %v3908_v38  ;;  %v1940_v7 = vld [vmem:[%s5048_s4 + $0x58] sm:$0xff]  ;;  %v3957_v36 = vld [vmem:[#allocation2 + $0x10a] sm:$0xff]  ;;  %v651_v56 = vld [vmem:[#allocation2 + $0x81] sm:$0xff] }
  0x44   : > { %2047 = vmatprep.subr.mxu0 %v3454_v0  ;;  %2820 = vmatprep.subr.mxu1 %v3454_v0  ;;  %v527_v4 = vld [vmem:[#allocation2 + $0x98] sm:$0xff]  ;;  %v529_v38 = vld [vmem:[#allocation2 + $0xb0] sm:$0xff] }
  0x45   : > { %2927 = vrot.lane.b32.xlu1 %v2926_v47, %s3455_s8  ;;  %v592_v47 = vld [vmem:[#allocation2 + $0xaa] sm:$0xff]  ;;  %2048 = vmatpush1.msra.mxu0 %v1942_v41 }
  0x46   : > { %2932 = vrot.lane.b32.xlu0 %v2931_v51, %s3455_s8  ;;  %v593_v51 = vld [vmem:[#allocation2 + $0xb2] sm:$0xff]  ;;  %2838 = vmatpush1.msra.mxu1 %v1942_v41 }
  0x47   : > { %2049 = vmatprep.subr.mxu0 %v3454_v0  ;;  %2821 = vmatprep.subr.mxu1 %v3454_v0  ;;  %v2986_v6 = vpack.i.bf16 %v593_v51, %v592_v47  ;;  %v1937_v47 = vld [vmem:[%s5048_s4 + $0x40] sm:$0xff]  ;;  %v3011_v51 = vpack.i.bf16 %v3845_v61, %v3838_v59  ;;  %v747_v61 = vld [vmem:[#allocation2 + $0x91] sm:$0xff] }
  0x48   : > { %2050 = vmatpush1.msra.mxu0 %v1941_v52  ;;  %2839 = vmatpush1.msra.mxu1 %v1941_v52 }
  0x49   : > { %2937 = vrot.lane.b32.xlu1 %v2936_v3, %s3455_s8  ;;  %v594_v3 = vld [vmem:[#allocation2 + $0xc2] sm:$0xff]  ;;  %2051 = vmatprep.subr.mxu0 %v3454_v0 }
  0x4a   : > { %2942 = vrot.lane.b32.xlu0 %v2941_v44, %s3455_s8  ;;  %v595_v44 = vld [vmem:[#allocation2 + $0xca] sm:$0xff]  ;;  %2822 = vmatprep.subr.mxu1 %v3454_v0 }
  0x4b   : > { %v2991_v10 = vpack.i.bf16 %v595_v44, %v594_v3  ;;  %2052 = vmatpush1.msra.mxu0 %v1940_v7  ;;  %2840 = vmatpush1.msra.mxu1 %v1940_v7  ;;  %v3976_v3 = vld [vmem:[#allocation2 + $0x15a] sm:$0xff] }
  0x4c   : > { %2053 = vmatprep.subr.mxu0 %v3454_v0  ;;  %2823 = vmatprep.subr.mxu1 %v3454_v0  ;;  %v1936_v44 = vld [vmem:[%s5048_s4 + $0x38] sm:$0xff] }
  0x4d   : > { %2947 = vrot.lane.b32.xlu1 %v2946_v12, %s3455_s8  ;;  %v3938_v12 = vld [vmem:[#allocation2 + $0xe2] sm:$0xff]  ;;  %v370_v7 = vld [vmem:[%s3640_s29 + $0xf8] sm:$0xff] }
  0x4e   : > { %2952 = vrot.lane.b32.xlu0 %v2951_v13, %s3456_s9  ;;  %v3940_v13 = vld [vmem:[#allocation2 + $0xf2] sm:$0xff]  ;;  %v2996_v30 = vpack.i.bf16 %v3938_v12, %v3936_v11 }
  0x51   : > { %2957 = vrot.lane.b32.xlu1 %v2956_v24, %s3456_s9  ;;  %v3942_v24 = vld [vmem:[#allocation2 + $0xfa] sm:$0xff] }
  0x52   : > { %2962 = vrot.lane.b32.xlu0 %v2961_v25, %s3456_s9  ;;  %v1939_v25 = vld [vmem:[%s5048_s4 + $0x50] sm:$0xff] }
  0x53   : > { %2054 = vmatpush1.msra.mxu0 %v1939_v25  ;;  %2841 = vmatpush1.msra.mxu1 %v1939_v25  ;;  %v608_v25 = vld [vmem:[#allocation2 + $0x16a] sm:$0xff] }
  0x54   : > { %2055 = vmatprep.subr.mxu0 %v3454_v0  ;;  %2824 = vmatprep.subr.mxu1 %v3454_v0 }
  0x55   : > { %2967 = vrot.lane.b32.xlu1 %v2966_v33, %s3456_s9  ;;  %v369_v33 = vld [vmem:[%s3640_s29 + $0xf0] sm:$0xff]  ;;  %2056 = vmatpush1.msra.mxu0 %v1938_v39  ;;  %s3462_s29 = smov 4  }
  0x56   : > { %2972 = vrot.lane.b32.xlu0 %v2971_v34, %s3456_s9  ;;  %v3001_v34 = vpack.i.bf16 %v3942_v24, %v3940_v13  ;;  %v408_v41 = vmul.f32 %v3634_v1, %v369_v33  ;;  %2842 = vmatpush1.msra.mxu1 %v1938_v39  ;;  %v1935_v33 = vld [vmem:[%s5048_s4 + $0x30] sm:$0xff]  ;;  %v3997_v39 = vld [vmem:[#allocation2 + $0x18] sm:$0xff] }
  0x57   : > { %2057 = vmatprep.subr.mxu0 %v3454_v0  ;;  %2825 = vmatprep.subr.mxu1 %v3454_v0 }
  0x58   : > { %2058 = vmatpush1.msra.mxu0 %v1937_v47  ;;  %2843 = vmatpush1.msra.mxu1 %v1937_v47 }
  0x59   : > { %2977 = vrot.lane.b32.xlu1 %v2976_v43, %s3456_s9  ;;  %v447_v43 = vadd.f32 %v3645_v2, %v408_v41  ;;  %2059 = vmatprep.subr.mxu0 %v3454_v0  ;;  %v3999_v41 = vld [vmem:[#allocation2 + $0x20] sm:$0xff] }
  0x5a   : > { %2982 = vrot.lane.b32.xlu0 %v2981_v45, %s3456_s9  ;;  %v3006_v45 = vpack.i.bf16 %v3829_v54, %v3957_v36  ;;  %2826 = vmatprep.subr.mxu1 %v3454_v0  ;;  %v3031_v47 = vpack.i.bf16 %v3999_v41, %v3997_v39 }
  0x5b   : > { %v479_v52 = vmax.f32 %v447_v43, 0.0  ;;  %2060 = vmatpush1.msra.mxu0 %v1936_v44  ;;  %2844 = vmatpush1.msra.mxu1 %v1936_v44 }
  0x5c   : > { %2061 = vmatprep.subr.mxu0 %v3454_v0  ;;  %2827 = vmatprep.subr.mxu1 %v3454_v0 }
  0x5d   : > { %2987 = vrot.lane.b32.xlu1 %v2986_v6, %s3456_s9  ;;  %512 = vst.msk [vmem:[#allocation2 + $0x181] sm:$0xff] %vm283_vm0, %v479_v52  ;;  %v3016_v6 = vpack.i.bf16 %v3884_v22, %v3866_v8  ;;  %2062 = vmatpush1.msra.mxu0 %v1935_v33  ;;  %v4013_v52 = vld [vmem:[#allocation2 + $0x38] sm:$0xff]  ;;  %v765_v22 = vld [vmem:[#allocation2 + $0x169] sm:$0xff] }
  0x5e   : > { %2992 = vrot.lane.b32.xlu0 %v2991_v10, %s3456_s9  ;;  %v3021_v10 = vpack.i.bf16 %v3976_v3, %v3910_v40  ;;  %2845 = vmatpush1.msra.mxu1 %v1935_v33  ;;  %v3046_v33 = vpack.i.bf16 %v3798_v31, %v3722_v20  ;;  %v1930_v20 = vld [vmem:[%s5048_s4 + $0x8] sm:$0xff]  ;;  %v543_v8 = vld [vmem:[#allocation2 + $0x158] sm:$0xff]  ;;  %v545_v40 = vld [vmem:[#allocation2 + $0x170] sm:$0xff] }
  0x5f   : > { %2063 = vmatprep.subr.mxu0 %v3454_v0  ;;  %2828 = vmatprep.subr.mxu1 %v3454_v0 }
  0x61   : > { %2997 = vrot.lane.b32.xlu1 %v2996_v30, %s3456_s9  ;;  %v609_v30 = vld [vmem:[#allocation2 + $0x172] sm:$0xff] }
  0x62   : > { %3002 = vrot.lane.b32.xlu0 %v3001_v34, %s3456_s9  ;;  %v409_v34 = vmul.f32 %v3634_v1, %v370_v7  ;;  %v1934_v1 = vld [vmem:[%s5048_s4 + $0x28] sm:$0xff]  ;;  %v1933_v7 = vld [vmem:[%s5048_s4 + $0x20] sm:$0xff] }
  0x63   : > { %2064 = vmatpush1.msra.mxu0 %v1934_v1  ;;  %2846 = vmatpush1.msra.mxu1 %v1934_v1  ;;  %v4049_v1 = vld [vmem:[#allocation2 + $0xe0] sm:$0xff] }
  0x64   : > { %v448_v43 = vadd.f32 %v3645_v2, %v409_v34  ;;  %v4015_v2 = vld [vmem:[#allocation2 + $0x48] sm:$0xff]  ;;  %2065 = vmatprep.subr.mxu0 %v3454_v0  ;;  %2829 = vmatprep.subr.mxu1 %v3454_v0  ;;  %v1931_v34 = vld [vmem:[%s5048_s4 + $0x10] sm:$0xff] }
  0x65   : > { %3007 = vrot.lane.b32.xlu1 %v3006_v45, %s3456_s9  ;;  %v3026_v45 = vpack.i.bf16 %v609_v30, %v608_v25  ;;  %v1932_v30 = vld [vmem:[%s5048_s4 + $0x18] sm:$0xff]  ;;  %2066 = vmatpush1.msra.mxu0 %v1933_v7 }
  0x66   : > { %3012 = vrot.lane.b32.xlu0 %v3011_v51, %s3456_s9  ;;  %v4011_v51 = vld [vmem:[#allocation2 + $0x30] sm:$0xff]  ;;  %v480_v44 = vmax.f32 %v448_v43, 0.0  ;;  %2847 = vmatpush1.msra.mxu1 %v1933_v7  ;;  %v3051_v43 = vpack.i.bf16 %v3936_v11, %v3874_v14  ;;  %v1929_v11 = vld [vmem:[%s5048_s4] sm:$0xff]  ;;  %v3071_v7 = vpack.i.bf16 %v3800_v32, %v3732_v26 }
  0x67   : > { %2067 = vmatprep.subr.mxu0 %v3454_v0  ;;  %2830 = vmatprep.subr.mxu1 %v3454_v0  ;;  %v771_v26 = vld [vmem:[#allocation2 + $0x32] sm:$0xff] }
  0x68   : > { %513 = vst.msk [vmem:[#allocation2 + $0x189] sm:$0xff] %vm283_vm0, %v480_v44  ;;  %2068 = vmatpush1.msra.mxu0 %v1932_v30  ;;  %2848 = vmatpush1.msra.mxu1 %v1932_v30  ;;  %v1946_v44 = vld [vmem:[%s5048_s4 + $0x88] sm:$0xff]  ;;  %v787_v32 = vld [vmem:[#allocation2 + $0xf2] sm:$0xff] }
  0x69   : > { %3017 = vrot.lane.b32.xlu1 %v3016_v6, %s3456_s9  ;;  %v4017_v6 = vld [vmem:[#allocation2 + $0xd8] sm:$0xff]  ;;  %2069 = vmatprep.subr.mxu0 %v3454_v0 }
  0x6a   : > { %3022 = vrot.lane.b32.xlu0 %v3021_v10, %s3456_s9  ;;  %v3036_v10 = vpack.i.bf16 %v4013_v52, %v4011_v51  ;;  %v3041_v25 = vpack.i.bf16 %v4017_v6, %v4015_v2  ;;  %2831 = vmatprep.subr.mxu1 %v3454_v0 }
  0x6b   : > { %2070 = vmatpush1.msra.mxu0 %v1931_v34  ;;  %2849 = vmatpush1.msra.mxu1 %v1931_v34  ;;  %v4131_v34 = vld [vmem:[#allocation2 + $0x120] sm:$0xff] }
  0x6c   : > { %2071 = vmatprep.subr.mxu0 %v3454_v0  ;;  %2832 = vmatprep.subr.mxu1 %v3454_v0 }
  0x6d   : > { %3027 = vrot.lane.b32.xlu1 %v3026_v45, %s3456_s9  ;;  %v4047_v45 = vld [vmem:[#allocation2 + $0xf0] sm:$0xff]  ;;  %2072 = vmatpush1.msra.mxu0 %v1930_v20 }
  0x6e   : > { %3032 = vrot.lane.b32.xlu0 %v3031_v47, %s3457_s14  ;;  %v3056_v31 = vpack.i.bf16 %v4047_v45, %v4011_v51  ;;  %v3061_v14 = vpack.i.bf16 %v4047_v45, %v4049_v1  ;;  %2850 = vmatpush1.msra.mxu1 %v1930_v20  ;;  %v3066_v47 = vpack.i.bf16 %v3803_v35, %v3718_v18  ;;  %v1945_v18 = vld [vmem:[%s5048_s4 + $0x80] sm:$0xff]  ;;  %v712_v20 = vld [vmem:[#allocation2 + $0x68] sm:$0xff] }
  0x6f   : > { %2073 = vmatprep.subr.mxu0 %v3454_v0  ;;  %2833 = vmatprep.subr.mxu1 %v3454_v0  ;;  %v3076_v35 = vpack.i.bf16 %v3938_v12, %v3876_v15  ;;  %v4097_v15 = vld [vmem:[#allocation2 + $0x108] sm:$0xff]  ;;  %v3096_v12 = vpack.i.bf16 %v3940_v13, %v3878_v16  ;;  %v3121_v16 = vpack.i.bf16 %v3942_v24, %v3880_v17  ;;  %v4115_v13 = vld [vmem:[#allocation2 + $0x50] sm:$0xff]  ;;  %v4129_v24 = vld [vmem:[#allocation2 + $0x60] sm:$0xff] }
  0x70   : > { %2074 = vmatpush1.msra.mxu0 %v1929_v11  ;;  %2851 = vmatpush1.msra.mxu1 %v1929_v11  ;;  %v3141_v17 = vpack.i.bf16 %v3957_v36, %v3894_v29  ;;  %v728_v29 = vld [vmem:[#allocation2 + $0x128] sm:$0xff] }
  0x71   : > { %3037 = vrot.lane.b32.xlu1 %v3036_v10, %s3457_s14  ;;  %v4078_v10 = vld [vmem:[#allocation2 + $0xf8] sm:$0xff]  ;;  %2103 = vmatprep.subr.mxu0 %v3454_v0 }
  0x72   : > { %3042 = vrot.lane.b32.xlu0 %v3041_v25, %s3457_s14  ;;  %2834 = vmatprep.subr.mxu1 %v3454_v0  ;;  %v3081_v25 = vpack.i.bf16 %v4078_v10, %v4013_v52  ;;  %v3106_v30 = vpack.i.bf16 %v4097_v15, %v4078_v10 }
  0x73   : > { %2104 = vmatpush2.msra.mxu0 %v1946_v44  ;;  %2852 = vmatpush2.msra.mxu1 %v1946_v44 }
  0x74   : > { %2105 = vmatprep.subr.mxu0 %v3454_v0  ;;  %2835 = vmatprep.subr.mxu1 %v3454_v0  ;;  %v3101_v0 = vpack.i.bf16 %v4097_v15, %v4015_v2 }
  0x75   : > { %3047 = vrot.lane.b32.xlu1 %v3046_v33, %s3458_s20  ;;  %2106 = vmatpush2.msra.mxu0 %v1945_v18  ;;  %v4117_v33 = vld [vmem:[#allocation2 + $0x110] sm:$0xff] }
  0x76   : > { %3052 = vrot.lane.b32.xlu0 %v3051_v43, %s3459_s23  ;;  %2853 = vmatpush2.msra.mxu1 %v1945_v18  ;;  %v3126_v2 = vpack.i.bf16 %v4117_v33, %v4115_v13 }
  0x77   : > { %2781 = vmatprep.mubr.msk.f32.mxu0 %vm283_vm0, %v771_v26  ;;  %2797 = vmatprep.mubr.msk.f32.mxu1 %vm283_vm0, %v787_v32 }
  0x79   : > { %3057 = vrot.lane.b32.xlu1 %v3056_v31, %s3460_s27 }
  0x7a   : > { %3062 = vrot.lane.b32.xlu0 %v3061_v14, %s3457_s14 }
  0x7d   : > { %3067 = vrot.lane.b32.xlu1 %v3066_v47, %s3461_s10 }
  0x7e   : > { %3072 = vrot.lane.b32.xlu0 %v3071_v7, %s3458_s20 }
  0x81   : > { %3077 = vrot.lane.b32.xlu1 %v3076_v35, %s3459_s23  ;;  %v730_v35 = vld [vmem:[#allocation2 + $0x140] sm:$0xff] }
  0x82   : > { %3082 = vrot.lane.b32.xlu0 %v3081_v25, %s3460_s27 }
  0x85   : > { %3087 = vrot.lane.b32.xlu1 %v3816_v46, %s3461_s10 }
  0x86   : > { %3092 = vrot.lane.b32.xlu0 %v3066_v47, %s3458_s20  ;;  %v729_v47 = vld [vmem:[#allocation2 + $0x138] sm:$0xff] }
  0x89   : > { %3097 = vrot.lane.b32.xlu1 %v3096_v12, %s3459_s23  ;;  %v4140_v43 = vpop.permute.xlu0 %2872  ;;  %v526_v12 = vld [vmem:[#allocation2 + $0x90] sm:$0xff] }
  0x8a   : > { %3102 = vrot.lane.b32.xlu0 %v3101_v0, %s3460_s27  ;;  %v542_v0 = vld [vmem:[#allocation2 + $0x150] sm:$0xff] }
  0x8b   : > { %v3246_v60 = vpack.i.bf16 %v542_v0, %v526_v12 }
  0x8d   : > { %3107 = vrot.lane.b32.xlu1 %v3106_v30, %s3457_s14 }
  0x8e   : > { %3112 = vrot.lane.b32.xlu0 %v3824_v50, %s3461_s10 }
  0x91   : > { %3117 = vrot.lane.b32.xlu1 %v3816_v46, %s3458_s20  ;;  %v3146_v46 = vpack.i.bf16 %v4131_v34, %v4129_v24 }
  0x92   : > { %3122 = vrot.lane.b32.xlu0 %v3121_v16, %s3459_s23  ;;  %v3256_v16 = vpack.i.bf16 %v3834_v57, %v747_v61 }
  0x95   : > { %3127 = vrot.lane.b32.xlu1 %v3126_v2, %s3460_s27 }
  0x96   : > { %3132 = vrot.lane.b32.xlu0 %v3832_v19, %s3461_s10 }
  0x99   : > { %3137 = vrot.lane.b32.xlu1 %v3824_v50, %s3458_s20  ;;  %v3171_v50 = vpack.i.bf16 %v728_v29, %v712_v20  ;;  %v748_v20 = vld [vmem:[#allocation2 + $0x99] sm:$0xff] }
  0x9a   : > { %3142 = vrot.lane.b32.xlu0 %v3141_v17, %s3459_s23 }
  0x9d   : > { %3147 = vrot.lane.b32.xlu1 %v3146_v46, %s3460_s27 }
  0x9e   : > { %3152 = vrot.lane.b32.xlu0 %v3126_v2, %s3457_s14 }
  0xa1   : > { %3157 = vrot.lane.b32.xlu1 %v3841_v27, %s3461_s10 }
  0xa2   : > { %3162 = vrot.lane.b32.xlu0 %v3832_v19, %s3458_s20  ;;  %v524_v19 = vld [vmem:[#allocation2 + $0x78] sm:$0xff] }
  0xa3   : > { %v4146_v36 = vpop.permute.xlu1 %2882  ;;  %v3196_v48 = vpack.i.bf16 %v729_v47, %v524_v19  ;;  %v528_v47 = vld [vmem:[#allocation2 + $0xa8] sm:$0xff] }
  0xa4   : > { %v4148_v31 = vpop.permute.xlu0 %2877 }
  0xa5   : > { %3167 = vrot.lane.b32.xlu1 %v3166_v62, %s3459_s23 }
  0xa6   : > { %3172 = vrot.lane.b32.xlu0 %v3171_v50, %s3460_s27 }
  0xa7   : > { %v4155_v14 = vpop.permute.xlu1 %2887 }
  0xa8   : > { %v4157_v11 = vpop.permute.xlu0 %2892 }
  0xa9   : > { %3177 = vrot.lane.b32.xlu1 %v3146_v46, %s3457_s14 }
  0xaa   : > { %3182 = vrot.lane.b32.xlu0 %v3850_v63, %s3461_s10 }
  0xab   : > { %v4162_v44 = vpop.permute.xlu1 %2897 }
  0xac   : > { %5068 = vst [vmem:[#allocation3_spill] sm:$0xff] %v4162_v44  ;;  %v4164_v7 = vpop.permute.xlu0 %2902 }
  0xad   : > { %5069 = vst [vmem:[#allocation4_spill] sm:$0xff] %v4164_v7  ;;  %3187 = vrot.lane.b32.xlu1 %v3841_v27, %s3458_s20  ;;  %v525_v27 = vld [vmem:[#allocation2 + $0x80] sm:$0xff] }
  0xae   : > { %3192 = vrot.lane.b32.xlu0 %v3191_v28, %s3459_s23  ;;  %v3221_v49 = vpack.i.bf16 %v730_v35, %v525_v27  ;;  %v669_v27 = vld [vmem:[#allocation2 + $0x159] sm:$0xff]  ;;  %v767_v7 = vld [vmem:[#allocation2 + $0x181] sm:$0xff] }
  0xaf   : > { %v4172_v54 = vpop.permute.xlu1 %2907  ;;  %v3311_v0 = vpack.i.bf16 %v669_v27, %v748_v20 }
  0xb0   : > { %5070 = vst [vmem:[#allocation5_spill] sm:$0xff] %v4172_v54  ;;  %v4174_v62 = vpop.permute.xlu0 %2912 }
  0xb1   : > { %3197 = vrot.lane.b32.xlu1 %v3196_v48, %s3460_s27  ;;  %v2914_v27 = vunpack.i.l.bf16 %v4174_v62 }
  0xb2   : > { %3202 = vrot.lane.b32.xlu0 %v3171_v50, %s3457_s14 }
  0xb3   : > { %v4178_v18 = vpop.permute.xlu1 %2917 }
  0xb4   : > { %v4180_v26 = vpop.permute.xlu0 %2922 }
  0xb5   : > { %3207 = vrot.lane.b32.xlu1 %v3859_v37, %s3461_s10 }
  0xb6   : > { %3212 = vrot.lane.b32.xlu0 %v3850_v63, %s3458_s20 }
  0xb7   : > { %v4186_v59 = vpop.permute.xlu1 %2927 }
  0xb8   : > { %v4188_v28 = vpop.permute.xlu0 %2932 }
  0xb9   : > { %3217 = vrot.lane.b32.xlu1 %v3216_v5, %s3459_s23 }
  0xba   : > { %3222 = vrot.lane.b32.xlu0 %v3221_v49, %s3460_s27 }
  0xbb   : > { %v4195_v32 = vpop.permute.xlu1 %2937 }
  0xbc   : > { %5071 = vst [vmem:[#allocation6_spill] sm:$0xff] %v4195_v32  ;;  %v4197_v25 = vpop.permute.xlu0 %2942 }
  0xbd   : > { %5072 = vst [vmem:[#allocation7_spill] sm:$0xff] %v4197_v25  ;;  %3227 = vrot.lane.b32.xlu1 %v3196_v48, %s3457_s14  ;;  %v544_v48 = vld [vmem:[#allocation2 + $0x168] sm:$0xff] }
  0xbe   : > { %3232 = vrot.lane.b32.xlu0 %v3231_v9, %s3461_s10  ;;  %v3296_v21 = vpack.i.bf16 %v544_v48, %v528_v47  ;;  %v4279_v47 = vld [vmem:[#allocation2 + $0xaa] sm:$0xff]  ;;  %v751_v25 = vld [vmem:[#allocation2 + $0xc1] sm:$0xff] }
  0xbf   : > { %v4204_v63 = vpop.permute.xlu1 %2947  ;;  %5080 = vst [vmem:[#allocation15_spill] sm:$0xff] %v4279_v47 }
  0xc0   : > { %5073 = vst [vmem:[#allocation8_spill] sm:$0xff] %v4204_v63  ;;  %v4206_v30 = vpop.permute.xlu0 %2952 }
  0xc1   : > { %3237 = vrot.lane.b32.xlu1 %v3859_v37, %s3458_s20  ;;  %v3261_v37 = vpack.i.bf16 %v3827_v53, %v651_v56  ;;  %v3281_v53 = vpack.i.bf16 %v3836_v58, %v748_v20  ;;  %v749_v58 = vld [vmem:[#allocation2 + $0xa9] sm:$0xff] }
  0xc2   : > { %3242 = vrot.lane.b32.xlu0 %v3241_v55, %s3459_s23  ;;  %v3271_v55 = vpack.i.bf16 %v543_v8, %v527_v4  ;;  %v3306_v12 = vpack.i.bf16 %v765_v22, %v749_v58  ;;  %v750_v4 = vld [vmem:[#allocation2 + $0xb1] sm:$0xff]  ;;  %v2874_v58 = vunpack.i.l.bf16 %v4140_v43  ;;  %v514_v22 = vld [vmem:[#allocation2] sm:$0xff] }
  0xc3   : > { %v4214_v5 = vpop.permute.xlu1 %2957  ;;  %v766_v8 = vld [vmem:[#allocation2 + $0x171] sm:$0xff] }
  0xc4   : > { %v4216_v9 = vpop.permute.xlu0 %2962  ;;  %v4275_v20 = vpack.i.bf16 %v766_v8, %v750_v4  ;;  %v1699_v54 = vsel %vm283_vm0, %v514_v22, %v2874_v58 }
  0xc5   : > { %3247 = vrot.lane.b32.xlu1 %v3246_v60, %s3460_s27 }
  0xc6   : > { %3252 = vrot.lane.b32.xlu0 %v3221_v49, %s3457_s14 }
  0xc7   : > { %v4222_v2 = vpop.permute.xlu1 %2967 }
  0xc8   : > { %v4224_v17 = vpop.permute.xlu0 %2972 }
  0xc9   : > { %3257 = vrot.lane.b32.xlu1 %v3256_v16, %s3461_s10 }
  0xca   : > { %3262 = vrot.lane.b32.xlu0 %v3261_v37, %s3458_s20 }
  0xcb   : > { %v4228_v46 = vpop.permute.xlu1 %2977 }
  0xcc   : > { %5074 = vst [vmem:[#allocation9_spill] sm:$0xff] %v4228_v46  ;;  %v4230_v29 = vpop.permute.xlu0 %2982 }
  0xcd   : > { %5075 = vst [vmem:[#allocation10_spill] sm:$0xff] %v4230_v29  ;;  %3267 = vrot.lane.b32.xlu1 %v3266_v23, %s3459_s23 }
  0xce   : > { %3272 = vrot.lane.b32.xlu0 %v3271_v55, %s3460_s27 }
  0xcf   : > { %v4238_v57 = vpop.permute.xlu1 %2987 }
  0xd0   : > { %5076 = vst [vmem:[#allocation11_spill] sm:$0xff] %v4238_v57  ;;  %v4240_v50 = vpop.permute.xlu0 %2992 }
  0xd1   : > { %3277 = vrot.lane.b32.xlu1 %v3246_v60, %s3457_s14  ;;  %v4259_v60 = vld [vmem:[#allocation2 + $0x9a] sm:$0xff]  ;;  %v2994_v4 = vunpack.i.l.bf16 %v4240_v50 }
  0xd2   : > { %3282 = vrot.lane.b32.xlu0 %v3281_v53, %s3461_s10 }
  0xd3   : > { %v4244_v19 = vpop.permute.xlu1 %2997 }
  0xd4   : > { %v4246_v35 = vpop.permute.xlu0 %3002 }
  0xd5   : > { %3287 = vrot.lane.b32.xlu1 %v3256_v16, %s3458_s20  ;;  %v3321_v16 = vpack.i.bf16 %v545_v40, %v529_v38  ;;  %v735_v40 = vld [vmem:[#allocation2 + $0x180] sm:$0xff] }
  0xd6   : > { %3292 = vrot.lane.b32.xlu0 %v3291_v42, %s3459_s23  ;;  %v3316_v42 = vpack.i.bf16 %v3976_v3, %v4259_v60  ;;  %v4281_v3 = vld [vmem:[#allocation2 + $0x16a] sm:$0xff] }
  0xd7   : > { %v4253_v23 = vpop.permute.xlu1 %3007  ;;  %5081 = vst [vmem:[#allocation16_spill] sm:$0xff] %v4281_v3  ;;  %v3341_v38 = vpack.i.bf16 %v4281_v3, %v4279_v47 }
  0xd8   : > { %v4255_v49 = vpop.permute.xlu0 %3012 }
  0xd9   : > { %3297 = vrot.lane.b32.xlu1 %v3296_v21, %s3460_s27 }
  0xda   : > { %3302 = vrot.lane.b32.xlu0 %v3271_v55, %s3457_s14 }
  0xdb   : > { %v4261_v61 = vpop.permute.xlu1 %3017 }
  0xdc   : > { %5077 = vst [vmem:[#allocation12_spill] sm:$0xff] %v4261_v61  ;;  %v4263_v56 = vpop.permute.xlu0 %3022 }
  0xdd   : > { %5078 = vst [vmem:[#allocation13_spill] sm:$0xff] %v4263_v56  ;;  %3307 = vrot.lane.b32.xlu1 %v3306_v12, %s3461_s10 }
  0xde   : > { %3312 = vrot.lane.b32.xlu0 %v3311_v0, %s3458_s20  ;;  %v2954_v0 = vunpack.i.l.bf16 %v4206_v30 }
  0xdf   : > { %v4269_v37 = vpop.permute.xlu1 %3027 }
  0xe0   : > { %5079 = vst [vmem:[#allocation14_spill] sm:$0xff] %v4269_v37  ;;  %v4271_v55 = vpop.permute.xlu0 %3032  ;;  %v1732_v47 = vsel %vm1731_vm2, %v1699_v54, %v2954_v0 }
  0xe1   : > { %3317 = vrot.lane.b32.xlu1 %v3316_v42, %s3459_s23  ;;  %v530_v42 = vld [vmem:[#allocation2 + $0xc0] sm:$0xff]  ;;  %v3034_v8 = vunpack.i.l.bf16 %v4271_v55 }
  0xe2   : > { %3322 = vrot.lane.b32.xlu0 %v3321_v16, %s3460_s27  ;;  %v4298_v29 = vpack.i.bf16 %v735_v40, %v530_v42  ;;  %v1715_v3 = vsel %vm283_vm0, %v530_v42, %v2914_v27  ;;  %v736_v40 = vld [vmem:[#allocation2 + $0x188] sm:$0xff] }
  0xe3   : > { %v4277_v53 = vpop.permute.xlu1 %3037  ;;  %v1748_v61 = vsel %vm1731_vm2, %v1715_v3, %v2994_v4  ;;  %v1765_v46 = vsel %vm1764_vm3, %v1732_v47, %v3034_v8  ;;  %v531_v3 = vld [vmem:[#allocation2 + $0xc8] sm:$0xff]  ;;  %v2875_v8 = vunpack.i.h.bf16 %v4140_v43 }
  0xe4   : > { %v4283_v48 = vpop.permute.xlu0 %3042 }
  0xe5   : > { %3327 = vrot.lane.b32.xlu1 %v3296_v21, %s3457_s14  ;;  %v3045_v21 = vunpack.i.h.bf16 %v4283_v48 }
  0xe6   : > { %3332 = vrot.lane.b32.xlu0 %v4275_v20, %s3461_s10 }
  0xe7   : > { %v3048_v37 = vpop.permute.xlu1 %3047  ;;  %v1781_v32 = vsel %vm1764_vm3, %v1748_v61, %v3045_v21  ;;  %v2915_v61 = vunpack.i.h.bf16 %v4174_v62 }
  0xe8   : > { %v3049_v57 = vunpack.i.l.bf16 %v3048_v37  ;;  %v3053_v63 = vpop.permute.xlu0 %3052  ;;  %v3050_v56 = vunpack.i.h.bf16 %v3048_v37  ;;  %v4305_v37 = vld [vmem:[#allocation2 + $0xb2] sm:$0xff] }
  0xe9   : > { %3337 = vrot.lane.b32.xlu1 %v3306_v12, %s3458_s20  ;;  %v3054_v58 = vunpack.i.l.bf16 %v3053_v63  ;;  %5082 = vst [vmem:[#allocation17_spill] sm:$0xff] %v4305_v37  ;;  %v4307_v12 = vld [vmem:[#allocation2 + $0x172] sm:$0xff]  ;;  %v3055_v54 = vunpack.i.h.bf16 %v3053_v63 }
  0xea   : > { %3342 = vrot.lane.b32.xlu0 %v3341_v38, %s3459_s23  ;;  %5083 = vst [vmem:[#allocation18_spill] sm:$0xff] %v4307_v12  ;;  %v1798_v27 = vsel %vm1797_vm4, %v1765_v46, %v3049_v57  ;;  %v4313_v38 = vpack.i.bf16 %v767_v7, %v751_v25  ;;  %v1814_v47 = vsel %vm1797_vm4, %v1781_v32, %v3050_v56  ;;  %v515_v25 = vld [vmem:[#allocation2 + $0x8] sm:$0xff]  ;;  %v2955_v32 = vunpack.i.h.bf16 %v4206_v30 }
  0xeb   : > { %v3058_v22 = vpop.permute.xlu1 %3057  ;;  %v3366_v63 = vpack.i.bf16 %v4307_v12, %v4305_v37  ;;  %v4323_v7 = vpack.i.bf16 %v736_v40, %v531_v3  ;;  %v2995_v46 = vunpack.i.h.bf16 %v4240_v50  ;;  %v3035_v57 = vunpack.i.h.bf16 %v4271_v55  ;;  %v772_v55 = vld [vmem:[#allocation2 + $0x3a] sm:$0xff] }
  0xec   : > { %v4311_v0 = vpop.permute.xlu0 %3062  ;;  %v3060_v42 = vunpack.i.h.bf16 %v3058_v22  ;;  %v3059_v4 = vunpack.i.l.bf16 %v3058_v22  ;;  %v1831_v21 = vsel %vm1830_vm5, %v1798_v27, %v3054_v58  ;;  %v1847_v44 = vsel %vm1830_vm5, %v1814_v47, %v3055_v54  ;;  %v788_v37 = vld [vmem:[#allocation2 + $0xfa] sm:$0xff] }
  0xed   : > { %3347 = vrot.lane.b32.xlu1 %v4298_v29, %s3460_s27  ;;  %v3064_v43 = vunpack.i.l.bf16 %v4311_v0  ;;  %v1700_v58 = vsel %vm283_vm0, %v515_v25, %v2875_v8  ;;  %v1716_v27 = vsel %vm283_vm0, %v531_v3, %v2915_v61 }
  0xee   : > { %3352 = vrot.lane.b32.xlu0 %v3321_v16, %s3457_s14  ;;  %v1864_v30 = vsel %vm1863_vm6, %v1831_v21, %v3059_v4  ;;  %v1880_v50 = vsel %vm1863_vm6, %v1847_v44, %v3060_v42  ;;  %v752_v44 = vld [vmem:[#allocation2 + $0xc9] sm:$0xff] }
  0xef   : > { %v3068_v56 = vpop.permute.xlu1 %3067  ;;  %v768_v42 = vld [vmem:[#allocation2 + $0x189] sm:$0xff] }
  0xf0   : > { %v3070_v62 = vunpack.i.h.bf16 %v3068_v56  ;;  %v3069_v22 = vunpack.i.l.bf16 %v3068_v56  ;;  %v3073_v16 = vpop.permute.xlu0 %3072  ;;  %v1733_v56 = vsel %vm1731_vm2, %v1700_v58, %v2955_v32  ;;  %v4347_v21 = vld [vmem:[#allocation2 + $0xc2] sm:$0xff]  ;;  %v2959_v58 = vunpack.i.l.bf16 %v4214_v5 }
  0xf1   : > { %v3075_v12 = vunpack.i.h.bf16 %v3073_v16  ;;  %v3074_v40 = vunpack.i.l.bf16 %v3073_v16  ;;  %3357 = vrot.lane.b32.xlu1 %v4313_v38, %s3461_s10  ;;  %v1749_v16 = vsel %vm1731_vm2, %v1716_v27, %v2995_v46  ;;  %v1766_v8 = vsel %vm1764_vm3, %v1733_v56, %v3035_v57  ;;  %v4349_v32 = vld [vmem:[#allocation2 + $0x182] sm:$0xff] }
  0xf2   : > { %3362 = vrot.lane.b32.xlu0 %v4275_v20, %s3458_s20  ;;  %v1897_v54 = vsel %vm1896_vm7, %v1864_v30, %v3069_v22  ;;  %v1913_v47 = vsel %vm1896_vm7, %v1880_v50, %v3070_v62  ;;  %v1782_v3 = vsel %vm1764_vm3, %v1749_v16, %v3064_v43  ;;  %v4356_v57 = vpack.i.bf16 %v768_v42, %v752_v44  ;;  %v773_v42 = vld [vmem:[#allocation2 + $0x4a] sm:$0xff] }
  0xf3   : > { %v3078_v4 = vpop.permute.xlu1 %3077  ;;  %2108 = vmatmul.mubr.f32.vlgmr.msra.gmra.mxu0 %v1897_v54  ;;  %2188 = vmatmul.mubr.f32.vlgmr.msra.gmra.mxu1 %v1913_v47  ;;  %v1799_v46 = vsel %vm1797_vm4, %v1766_v8, %v3074_v40  ;;  %v1815_v62 = vsel %vm1797_vm4, %v1782_v3, %v3075_v12  ;;  %v2879_v50 = vunpack.i.l.bf16 %v4148_v31  ;;  %v3391_v12 = vpack.i.bf16 %v4349_v32, %v4347_v21  ;;  %v789_v8 = vld [vmem:[#allocation2 + $0x10a] sm:$0xff] }
  0xf4   : > { %v3080_v61 = vunpack.i.h.bf16 %v3078_v4  ;;  %v3079_v25 = vunpack.i.l.bf16 %v3078_v4  ;;  %v3083_v20 = vpop.permute.xlu0 %3082  ;;  %2782 = vmatprep.mubr.msk.f32.mxu0 %vm283_vm0, %v772_v55  ;;  %2798 = vmatprep.mubr.msk.f32.mxu1 %vm283_vm0, %v788_v37  ;;  %v2919_v55 = vunpack.i.l.bf16 %v4178_v18  ;;  %v3039_v56 = vunpack.i.l.bf16 %v4277_v53 }
  0xf5   : > { %v3085_v22 = vunpack.i.h.bf16 %v3083_v20  ;;  %v3084_v30 = vunpack.i.l.bf16 %v3083_v20  ;;  %3367 = vrot.lane.b32.xlu1 %v3366_v63, %s3459_s23  ;;  %v2999_v63 = vunpack.i.l.bf16 %v4244_v19  ;;  %v3065_v16 = vunpack.i.h.bf16 %v4311_v0  ;;  %v737_v0 = vld [vmem:[#allocation2 + $0x198] sm:$0xff] }
  0xf6   : > { %3372 = vrot.lane.b32.xlu0 %v4323_v7, %s3460_s27  ;;  %v1832_v43 = vsel %vm1830_vm5, %v1799_v46, %v3079_v25  ;;  %v1848_v37 = vsel %vm1830_vm5, %v1815_v62, %v3080_v61  ;;  %v721_v46 = vld [vmem:[#allocation2 + $0xd8] sm:$0xff]  ;;  %v1717_v62 = vsel %vm283_vm0, %v4017_v6, %v2919_v55 }
  0xf7   : > { %v3088_v40 = vpop.permute.xlu1 %3087  ;;  %v1865_v4 = vsel %vm1863_vm6, %v1832_v43, %v3084_v30  ;;  %v1881_v44 = vsel %vm1863_vm6, %v1848_v37, %v3085_v22  ;;  %v1750_v43 = vsel %vm1731_vm2, %v1717_v62, %v2999_v63  ;;  %v3396_v6 = vpack.i.bf16 %v737_v0, %v721_v46  ;;  %v769_v55 = vld [vmem:[#allocation2 + $0x199] sm:$0xff] }
  0xf8   : > { %v3090_v27 = vunpack.i.h.bf16 %v3088_v40  ;;  %v3089_v54 = vunpack.i.l.bf16 %v3088_v40  ;;  %v3093_v47 = vpop.permute.xlu0 %3092 }
  0xf9   : > { %3377 = vrot.lane.b32.xlu1 %v4298_v29, %s3457_s14  ;;  %v3095_v3 = vunpack.i.h.bf16 %v3093_v47  ;;  %v3094_v61 = vunpack.i.l.bf16 %v3093_v47  ;;  %v1701_v29 = vsel %vm283_vm0, %v3997_v39, %v2879_v50  ;;  %v1783_v39 = vsel %vm1764_vm3, %v1750_v43, %v3065_v16  ;;  %v753_v50 = vld [vmem:[#allocation2 + $0xd9] sm:$0xff] }
  0xfa   : > { %3382 = vrot.lane.b32.xlu0 %v4356_v57, %s3461_s10  ;;  %v1898_v25 = vsel %vm1896_vm7, %v1865_v4, %v3089_v54  ;;  %v1914_v20 = vsel %vm1896_vm7, %v1881_v44, %v3090_v27  ;;  %v1734_v30 = vsel %vm1731_vm2, %v1701_v29, %v2959_v58  ;;  %v2880_v44 = vunpack.i.h.bf16 %v4148_v31 }
  0xfb   : > { %v3098_v22 = vpop.permute.xlu1 %3097  ;;  %2113 = vmatmul.mubr.f32.gmra.mxu0 %v1898_v25  ;;  %2193 = vmatmul.mubr.f32.gmra.mxu1 %v1914_v20  ;;  %v1767_v27 = vsel %vm1764_vm3, %v1734_v30, %v3039_v56  ;;  %v1816_v63 = vsel %vm1797_vm4, %v1783_v39, %v3095_v3  ;;  %v2920_v56 = vunpack.i.h.bf16 %v4178_v18  ;;  %v4399_v25 = vld [vmem:[#allocation2 + $0x18a] sm:$0xff]  ;;  %v2960_v3 = vunpack.i.h.bf16 %v4214_v5 }
  0xfc   : > { %v3100_v37 = vunpack.i.h.bf16 %v3098_v22  ;;  %v3099_v40 = vunpack.i.l.bf16 %v3098_v22  ;;  %v3103_v54 = vpop.permute.xlu0 %3102  ;;  %2783 = vmatprep.mubr.msk.f32.mxu0 %vm283_vm0, %v773_v42  ;;  %2799 = vmatprep.mubr.msk.f32.mxu1 %vm283_vm0, %v789_v8  ;;  %v1800_v58 = vsel %vm1797_vm4, %v1767_v27, %v3094_v61  ;;  %v4397_v8 = vld [vmem:[#allocation2 + $0xca] sm:$0xff]  ;;  %v3000_v61 = vunpack.i.h.bf16 %v4244_v19  ;;  %v774_v19 = vld [vmem:[#allocation2 + $0x52] sm:$0xff] }
  0xfd   : > { %3387 = vrot.lane.b32.xlu1 %v4313_v38, %s3458_s20  ;;  %v3105_v47 = vunpack.i.h.bf16 %v3103_v54  ;;  %v3104_v4 = vunpack.i.l.bf16 %v3103_v54  ;;  %v3040_v31 = vunpack.i.h.bf16 %v4277_v53  ;;  %v3416_v5 = vpack.i.bf16 %v4399_v25, %v4397_v8  ;;  %v790_v54 = vld [vmem:[#allocation2 + $0x112] sm:$0xff] }
  0xfe   : > { %3392 = vrot.lane.b32.xlu0 %v3391_v12, %s3459_s23  ;;  %v1833_v16 = vsel %vm1830_vm5, %v1800_v58, %v3099_v40  ;;  %v1849_v38 = vsel %vm1830_vm5, %v1816_v63, %v3100_v37  ;;  %v3406_v12 = vpack.i.bf16 %v769_v55, %v753_v50  ;;  %v1702_v53 = vsel %vm283_vm0, %v3999_v41, %v2880_v44  ;;  %v738_v40 = vld [vmem:[#allocation2 + $0x1a0] sm:$0xff] }
  0xff   : > { %v4393_v42 = vpop.permute.xlu1 %3107  ;;  %v1866_v29 = vsel %vm1863_vm6, %v1833_v16, %v3104_v4  ;;  %v1882_v62 = vsel %vm1863_vm6, %v1849_v38, %v3105_v47  ;;  %v1718_v22 = vsel %vm283_vm0, %v4049_v1, %v2920_v56  ;;  %v1735_v27 = vsel %vm1731_vm2, %v1702_v53, %v2960_v3  ;;  %v754_v47 = vld [vmem:[#allocation2 + $0xe1] sm:$0xff] }
 0x100   : > { %v3113_v20 = vpop.permute.xlu0 %3112  ;;  %v3109_v18 = vunpack.i.l.bf16 %v4393_v42  ;;  %v1751_v39 = vsel %vm1731_vm2, %v1718_v22, %v3000_v61  ;;  %v1768_v41 = vsel %vm1764_vm3, %v1735_v27, %v3040_v31  ;;  %v770_v4 = vld [vmem:[#allocation2 + $0x1a1] sm:$0xff]  ;;  %v2964_v22 = vunpack.i.l.bf16 %v4216_v9 }
 0x101   : > { %v3115_v46 = vunpack.i.h.bf16 %v3113_v20  ;;  %v3114_v0 = vunpack.i.l.bf16 %v3113_v20  ;;  %3397 = vrot.lane.b32.xlu1 %v3396_v6, %s3460_s27  ;;  %v3426_v31 = vpack.i.bf16 %v770_v4, %v754_v47  ;;  %v775_v53 = vld [vmem:[#allocation2 + $0x62] sm:$0xff] }
 0x102   : > { %3402 = vrot.lane.b32.xlu0 %v4323_v7, %s3457_s14  ;;  %v722_v7 = vld [vmem:[#allocation2 + $0xe0] sm:$0xff]  ;;  %v1784_v1 = vsel %vm1764_vm3, %v1751_v39, %v3109_v18 }
 0x103   : > { %v3118_v30 = vpop.permute.xlu1 %3117  ;;  %v1899_v43 = vsel %vm1896_vm7, %v1866_v29, %v3114_v0  ;;  %v1915_v37 = vsel %vm1896_vm7, %v1882_v62, %v3115_v46  ;;  %v3421_v16 = vpack.i.bf16 %v738_v40, %v722_v7  ;;  %v2884_v29 = vunpack.i.l.bf16 %v4146_v36  ;;  %v791_v7 = vld [vmem:[#allocation2 + $0x122] sm:$0xff] }
 0x104   : > { %v3120_v6 = vunpack.i.h.bf16 %v3118_v30  ;;  %v3119_v50 = vunpack.i.l.bf16 %v3118_v30  ;;  %v3123_v55 = vpop.permute.xlu0 %3122  ;;  %2118 = vmatmul.mubr.f32.gmra.mxu0 %v1899_v43  ;;  %2198 = vmatmul.mubr.f32.gmra.mxu1 %v1915_v37  ;;  %v3004_v30 = vunpack.i.l.bf16 %v4246_v35  ;;  %v3044_v40 = vunpack.i.l.bf16 %v4283_v48 }
 0x105   : > { %v3125_v58 = vunpack.i.h.bf16 %v3123_v55  ;;  %v3124_v63 = vunpack.i.l.bf16 %v3123_v55  ;;  %3407 = vrot.lane.b32.xlu1 %v3406_v12, %s3461_s10  ;;  %2784 = vmatprep.mubr.msk.f32.mxu0 %vm283_vm0, %v774_v19 }
 0x106   : > { %v1801_v44 = vsel %vm1797_vm4, %v1768_v41, %v3119_v50  ;;  %v1817_v56 = vsel %vm1797_vm4, %v1784_v1, %v3120_v6  ;;  %3412 = vrot.lane.b32.xlu0 %v4356_v57, %s3458_s20  ;;  %2800 = vmatprep.mubr.msk.f32.mxu1 %vm283_vm0, %v790_v54  ;;  %v2924_v57 = vunpack.i.l.bf16 %v4180_v26  ;;  %v3110_v54 = vunpack.i.h.bf16 %v4393_v42 }
 0x107   : > { %v3128_v38 = vpop.permute.xlu1 %3127  ;;  %v1834_v46 = vsel %vm1830_vm5, %v1801_v44, %v3124_v63  ;;  %v1850_v0 = vsel %vm1830_vm5, %v1817_v56, %v3125_v58  ;;  %v1703_v50 = vsel %vm283_vm0, %v4011_v51, %v2884_v29 }
 0x108   : > { %v3130_v3 = vunpack.i.h.bf16 %v3128_v38  ;;  %v3129_v61 = vunpack.i.l.bf16 %v3128_v38  ;;  %v3133_v20 = vpop.permute.xlu0 %3132  ;;  %v1719_v55 = vsel %vm283_vm0, %v4047_v45, %v2924_v57  ;;  %v1736_v48 = vsel %vm1731_vm2, %v1703_v50, %v2964_v22 }
 0x109   : > { %v3135_v12 = vunpack.i.h.bf16 %v3133_v20  ;;  %v3134_v18 = vunpack.i.l.bf16 %v3133_v20  ;;  %3417 = vrot.lane.b32.xlu1 %v3416_v5, %s3459_s23  ;;  %v1752_v42 = vsel %vm1731_vm2, %v1719_v55, %v3004_v30  ;;  %v1769_v1 = vsel %vm1764_vm3, %v1736_v48, %v3044_v40 }
 0x10a   : > { %3422 = vrot.lane.b32.xlu0 %v3421_v16, %s3460_s27  ;;  %v1867_v62 = vsel %vm1863_vm6, %v1834_v46, %v3129_v61  ;;  %v1883_v19 = vsel %vm1863_vm6, %v1850_v0, %v3130_v3  ;;  %v1785_v58 = vsel %vm1764_vm3, %v1752_v42, %v3110_v54  ;;  %v2885_v16 = vunpack.i.h.bf16 %v4146_v36 }
 0x10b   : > { %v3138_v5 = vpop.permute.xlu1 %3137  ;;  %v1900_v43 = vsel %vm1896_vm7, %v1867_v62, %v3134_v18  ;;  %v1916_v37 = vsel %vm1896_vm7, %v1883_v19, %v3135_v12  ;;  %v2925_v38 = vunpack.i.h.bf16 %v4180_v26  ;;  %v2965_v3 = vunpack.i.h.bf16 %v4216_v9  ;;  %v776_v19 = vld [vmem:[#allocation2 + $0x6a] sm:$0xff] }
 0x10c   : > { %v3143_v27 = vpop.permute.xlu0 %3142  ;;  %2123 = vmatmul.mubr.f32.gmra.mxu0 %v1900_v43  ;;  %2203 = vmatmul.mubr.f32.gmra.mxu1 %v1916_v37  ;;  %v3140_v39 = vunpack.i.h.bf16 %v3138_v5  ;;  %v3139_v6 = vunpack.i.l.bf16 %v3138_v5  ;;  %v3005_v61 = vunpack.i.h.bf16 %v4246_v35  ;;  %v792_v26 = vld [vmem:[#allocation2 + $0x12a] sm:$0xff]  ;;  %v1704_v30 = vsel %vm283_vm0, %v4013_v52, %v2885_v16 }
 0x10d   : > { %3427 = vrot.lane.b32.xlu1 %v3426_v31, %s3461_s10  ;;  %2785 = vmatprep.mubr.msk.f32.mxu0 %vm283_vm0, %v775_v53  ;;  %v3145_v63 = vunpack.i.h.bf16 %v3143_v27  ;;  %v3144_v47 = vunpack.i.l.bf16 %v3143_v27  ;;  %v1720_v5 = vsel %vm283_vm0, %v4078_v10, %v2925_v38  ;;  %v1737_v37 = vsel %vm1731_vm2, %v1704_v30, %v2965_v3 }
 0x10e   : > { %2801 = vmatprep.mubr.msk.f32.mxu1 %vm283_vm0, %v791_v7  ;;  %v1802_v44 = vsel %vm1797_vm4, %v1769_v1, %v3139_v6  ;;  %v1818_v51 = vsel %vm1797_vm4, %v1785_v58, %v3140_v39  ;;  %v1753_v7 = vsel %vm1731_vm2, %v1720_v5, %v3005_v61  ;;  %v2969_v16 = vunpack.i.l.bf16 %v4222_v2 }
 0x10f   : > { %v3148_v41 = vpop.permute.xlu1 %3147  ;;  %v1835_v46 = vsel %vm1830_vm5, %v1802_v44, %v3144_v47  ;;  %v1851_v0 = vsel %vm1830_vm5, %v1818_v51, %v3145_v63  ;;  %v2889_v47 = vunpack.i.l.bf16 %v4155_v14  ;;  %v3009_v38 = vunpack.i.l.bf16 %v4253_v23 }
 0x110   : > { %v3153_v4 = vpop.permute.xlu0 %3152  ;;  %v3150_v56 = vunpack.i.h.bf16 %v3148_v41  ;;  %v3149_v45 = vunpack.i.l.bf16 %v3148_v41 }
 0x111   : > { %v3155_v29 = vunpack.i.h.bf16 %v3153_v4  ;;  %v3154_v57 = vunpack.i.l.bf16 %v3153_v4  ;;  %v2929_v4 = vunpack.i.l.bf16 %v4186_v59 }
 0x112   : > { %v1868_v62 = vsel %vm1863_vm6, %v1835_v46, %v3149_v45  ;;  %v1884_v36 = vsel %vm1863_vm6, %v1851_v0, %v3150_v56  ;;  %v777_v56 = vld [vmem:[#allocation2 + $0x7a] sm:$0xff] }
 0x113   : > { %v3158_v20 = vpop.permute.xlu1 %3157  ;;  %v1770_v39 = vsel %vm1764_vm3, %v1737_v37, %v3154_v57  ;;  %v1786_v52 = vsel %vm1764_vm3, %v1753_v7, %v3155_v29  ;;  %v793_v45 = vld [vmem:[#allocation2 + $0x13a] sm:$0xff]  ;;  %v3431_v29 = vld [vmem:[#allocation2 + $0x48] sm:$0xff] }
 0x114   : > { %v3160_v31 = vunpack.i.h.bf16 %v3158_v20  ;;  %v3159_v12 = vunpack.i.l.bf16 %v3158_v20  ;;  %v3163_v18 = vpop.permute.xlu0 %3162  ;;  %v1705_v57 = vsel %vm283_vm0, %v3431_v29, %v2889_v47 }
 0x115   : > { %v3165_v53 = vunpack.i.h.bf16 %v3163_v18  ;;  %v3164_v9 = vunpack.i.l.bf16 %v3163_v18 }
 0x116   : > { %v1901_v35 = vsel %vm1896_vm7, %v1868_v62, %v3159_v12  ;;  %v1917_v22 = vsel %vm1896_vm7, %v1884_v36, %v3160_v31  ;;  %v1721_v62 = vsel %vm283_vm0, %v4097_v15, %v2929_v4  ;;  %v1738_v36 = vsel %vm1731_vm2, %v1705_v57, %v2969_v16 }
 0x117   : > { %v3168_v43 = vpop.permute.xlu1 %3167  ;;  %2128 = vmatmul.mubr.f32.gmra.mxu0 %v1901_v35  ;;  %2208 = vmatmul.mubr.f32.gmra.mxu1 %v1917_v22  ;;  %v1803_v10 = vsel %vm1797_vm4, %v1770_v39, %v3164_v9  ;;  %v1819_v6 = vsel %vm1797_vm4, %v1786_v52, %v3165_v53  ;;  %v2890_v15 = vunpack.i.h.bf16 %v4155_v14 }
 0x118   : > { %v3170_v40 = vunpack.i.h.bf16 %v3168_v43  ;;  %v3169_v54 = vunpack.i.l.bf16 %v3168_v43  ;;  %v3173_v27 = vpop.permute.xlu0 %3172  ;;  %2786 = vmatprep.mubr.msk.f32.mxu0 %vm283_vm0, %v776_v19  ;;  %2802 = vmatprep.mubr.msk.f32.mxu1 %vm283_vm0, %v792_v26  ;;  %v1754_v19 = vsel %vm1731_vm2, %v1721_v62, %v3009_v38  ;;  %v2894_v62 = vunpack.i.l.bf16 %v4157_v11 }
 0x119   : > { %v3175_v50 = vunpack.i.h.bf16 %v3173_v27  ;;  %v3174_v55 = vunpack.i.l.bf16 %v3173_v27  ;;  %v3010_v27 = vunpack.i.h.bf16 %v4253_v23  ;;  %v1706_v47 = vsel %vm283_vm0, %v4115_v13, %v2890_v15 }
 0x11a   : > { %v1836_v42 = vsel %vm1830_vm5, %v1803_v10, %v3169_v54  ;;  %v1852_v41 = vsel %vm1830_vm5, %v1819_v6, %v3170_v40  ;;  %v2930_v40 = vunpack.i.h.bf16 %v4186_v59  ;;  %v2970_v54 = vunpack.i.h.bf16 %v4222_v2  ;;  %v794_v59 = vld [vmem:[#allocation2 + $0x142] sm:$0xff] }
 0x11b   : > { %v3178_v48 = vpop.permute.xlu1 %3177  ;;  %v1869_v44 = vsel %vm1863_vm6, %v1836_v42, %v3174_v55  ;;  %v1885_v51 = vsel %vm1863_vm6, %v1852_v41, %v3175_v50 }
 0x11c   : > { %v3183_v1 = vpop.permute.xlu0 %3182  ;;  %v3180_v31 = vunpack.i.h.bf16 %v3178_v48  ;;  %v3179_v12 = vunpack.i.l.bf16 %v3178_v48  ;;  %v1722_v4 = vsel %vm283_vm0, %v4117_v33, %v2930_v40 }
 0x11d   : > { %v3185_v58 = vunpack.i.h.bf16 %v3183_v1  ;;  %v3184_v63 = vunpack.i.l.bf16 %v3183_v1  ;;  %v778_v1 = vld [vmem:[#allocation2 + $0x82] sm:$0xff] }
 0x11e   : > { %v1771_v53 = vsel %vm1764_vm3, %v1738_v36, %v3179_v12  ;;  %v1787_v9 = vsel %vm1764_vm3, %v1754_v19, %v3180_v31  ;;  %v2934_v36 = vunpack.i.l.bf16 %v4188_v28 }
 0x11f   : > { %v3188_v3 = vpop.permute.xlu1 %3187  ;;  %v1902_v61 = vsel %vm1896_vm7, %v1869_v44, %v3184_v63  ;;  %v1918_v20 = vsel %vm1896_vm7, %v1885_v51, %v3185_v58  ;;  %v1739_v51 = vsel %vm1731_vm2, %v1706_v47, %v2970_v54 }
 0x120   : > { %v3193_v18 = vpop.permute.xlu0 %3192  ;;  %2133 = vmatmul.mubr.f32.gmra.mxu0 %v1902_v61  ;;  %2213 = vmatmul.mubr.f32.gmra.mxu1 %v1918_v20  ;;  %v3190_v46 = vunpack.i.h.bf16 %v3188_v3  ;;  %v3189_v0 = vunpack.i.l.bf16 %v3188_v3 }
 0x121   : > { %2787 = vmatprep.mubr.msk.f32.mxu0 %vm283_vm0, %v777_v56  ;;  %2803 = vmatprep.mubr.msk.f32.mxu1 %vm283_vm0, %v793_v45  ;;  %v3195_v35 = vunpack.i.h.bf16 %v3193_v18  ;;  %v3194_v22 = vunpack.i.l.bf16 %v3193_v18  ;;  %v1755_v56 = vsel %vm1731_vm2, %v1722_v4, %v3010_v27  ;;  %v1707_v27 = vsel %vm283_vm0, %v4129_v24, %v2894_v62 }
 0x122   : > { %v1804_v5 = vsel %vm1797_vm4, %v1771_v53, %v3189_v0  ;;  %v1820_v43 = vsel %vm1797_vm4, %v1787_v9, %v3190_v46  ;;  %v779_v53 = vld [vmem:[#allocation2 + $0x92] sm:$0xff] }
 0x123   : > { %v3198_v26 = vpop.permute.xlu1 %3197  ;;  %v1837_v50 = vsel %vm1830_vm5, %v1804_v5, %v3194_v22  ;;  %v1853_v55 = vsel %vm1830_vm5, %v1820_v43, %v3195_v35  ;;  %v795_v9 = vld [vmem:[#allocation2 + $0x152] sm:$0xff]  ;;  %v2974_v35 = vunpack.i.l.bf16 %v4224_v17  ;;  %v3014_v22 = vunpack.i.l.bf16 %v4255_v49 }
 0x124   : > { %v3203_v30 = vpop.permute.xlu0 %3202  ;;  %v3200_v37 = vunpack.i.h.bf16 %v3198_v26  ;;  %v3199_v7 = vunpack.i.l.bf16 %v3198_v26 }
 0x125   : > { %v3205_v48 = vunpack.i.h.bf16 %v3203_v30  ;;  %v3204_v42 = vunpack.i.l.bf16 %v3203_v30 }
 0x126   : > { %v1870_v41 = vsel %vm1863_vm6, %v1837_v50, %v3199_v7  ;;  %v1886_v14 = vsel %vm1863_vm6, %v1853_v55, %v3200_v37 }
 0x127   : > { %v3208_v39 = vpop.permute.xlu1 %3207  ;;  %v1788_v3 = vsel %vm1764_vm3, %v1755_v56, %v3205_v48  ;;  %v1772_v13 = vsel %vm1764_vm3, %v1739_v51, %v3204_v42 }
 0x128   : > { %v3210_v52 = vunpack.i.h.bf16 %v3208_v39  ;;  %v3209_v10 = vunpack.i.l.bf16 %v3208_v39  ;;  %v3213_v6 = vpop.permute.xlu0 %3212  ;;  %v1723_v39 = vsel %vm283_vm0, %v4131_v34, %v2934_v36  ;;  %v2895_v34 = vunpack.i.h.bf16 %v4157_v11 }
 0x129   : > { %v3215_v58 = vunpack.i.h.bf16 %v3213_v6  ;;  %v3214_v2 = vunpack.i.l.bf16 %v3213_v6 }
 0x12a   : > { %v1903_v23 = vsel %vm1896_vm7, %v1870_v41, %v3209_v10  ;;  %v1919_v63 = vsel %vm1896_vm7, %v1886_v14, %v3210_v52  ;;  %v1740_v52 = vsel %vm1731_vm2, %v1707_v27, %v2974_v35  ;;  %v1756_v10 = vsel %vm1731_vm2, %v1723_v39, %v3014_v22  ;;  %v5086_v39 = vld [vmem:[#allocation9_spill] sm:$0xff] }
 0x12b   : > { %v3218_v44 = vpop.permute.xlu1 %3217  ;;  %2138 = vmatmul.mubr.f32.gmra.mxu0 %v1903_v23  ;;  %2218 = vmatmul.mubr.f32.gmra.mxu1 %v1919_v63  ;;  %v1805_v33 = vsel %vm1797_vm4, %v1772_v13, %v3214_v2  ;;  %v1821_v61 = vsel %vm1797_vm4, %v1788_v3, %v3215_v58  ;;  %v2935_v58 = vunpack.i.h.bf16 %v4188_v28  ;;  %v2975_v2 = vunpack.i.h.bf16 %v4224_v17  ;;  %v796_v3 = vld [vmem:[#allocation2 + $0x15a] sm:$0xff] }
 0x12c   : > { %v3220_v45 = vunpack.i.h.bf16 %v3218_v44  ;;  %v3219_v16 = vunpack.i.l.bf16 %v3218_v44  ;;  %v3223_v38 = vpop.permute.xlu0 %3222  ;;  %2788 = vmatprep.mubr.msk.f32.mxu0 %vm283_vm0, %v778_v1  ;;  %2804 = vmatprep.mubr.msk.f32.mxu1 %vm283_vm0, %v794_v59  ;;  %v3015_v23 = vunpack.i.h.bf16 %v4255_v49 }
 0x12d   : > { %v3225_v20 = vunpack.i.h.bf16 %v3223_v38  ;;  %v3224_v31 = vunpack.i.l.bf16 %v3223_v38 }
 0x12e   : > { %v1838_v18 = vsel %vm1830_vm5, %v1805_v33, %v3219_v16  ;;  %v1854_v46 = vsel %vm1830_vm5, %v1821_v61, %v3220_v45  ;;  %v3432_v33 = vld [vmem:[#allocation2 + $0x68] sm:$0xff] }
 0x12f   : > { %v3228_v12 = vpop.permute.xlu1 %3227  ;;  %v1871_v19 = vsel %vm1863_vm6, %v1838_v18, %v3224_v31  ;;  %v1887_v26 = vsel %vm1863_vm6, %v1854_v46, %v3225_v20  ;;  %v1708_v61 = vsel %vm283_vm0, %v3432_v33, %v2895_v34  ;;  %v3433_v20 = vld [vmem:[#allocation2 + $0x128] sm:$0xff]  ;;  %v5089_v34 = vld [vmem:[#allocation16_spill] sm:$0xff]  ;;  %v2980_v33 = vunpack.i.h.bf16 %v5086_v39 }
 0x130   : > { %v3233_v0 = vpop.permute.xlu0 %3232  ;;  %v3230_v37 = vunpack.i.h.bf16 %v3228_v12  ;;  %v3229_v7 = vunpack.i.l.bf16 %v3228_v12  ;;  %v1724_v31 = vsel %vm283_vm0, %v3433_v20, %v2935_v58  ;;  %v1741_v18 = vsel %vm1731_vm2, %v1708_v61, %v2975_v2  ;;  %v3434_v58 = vld [vmem:[#allocation2 + $0x78] sm:$0xff] }
 0x131   : > { %v3235_v29 = vunpack.i.h.bf16 %v3233_v0  ;;  %v3234_v57 = vunpack.i.l.bf16 %v3233_v0  ;;  %v1757_v46 = vsel %vm1731_vm2, %v1724_v31, %v3015_v23  ;;  %v3435_v23 = vld [vmem:[#allocation2 + $0x138] sm:$0xff] }
 0x132   : > { %v1773_v50 = vsel %vm1764_vm3, %v1740_v52, %v3229_v7  ;;  %v1789_v55 = vsel %vm1764_vm3, %v1756_v10, %v3230_v37  ;;  %v5084_v37 = vld [vmem:[#allocation3_spill] sm:$0xff]  ;;  %v2979_v52 = vunpack.i.l.bf16 %v5086_v39  ;;  %v5087_v10 = vld [vmem:[#allocation12_spill] sm:$0xff] }
 0x133   : > { %v3238_v30 = vpop.permute.xlu1 %3237  ;;  %v1904_v5 = vsel %vm1896_vm7, %v1871_v19, %v3234_v57  ;;  %v1920_v43 = vsel %vm1896_vm7, %v1887_v26, %v3235_v29  ;;  %v2899_v7 = vunpack.i.l.bf16 %v5084_v37  ;;  %v3020_v61 = vunpack.i.h.bf16 %v5087_v10 }
 0x134   : > { %v3243_v15 = vpop.permute.xlu0 %3242  ;;  %2143 = vmatmul.mubr.f32.gmra.mxu0 %v1904_v5  ;;  %2223 = vmatmul.mubr.f32.gmra.mxu1 %v1920_v43  ;;  %v3240_v40 = vunpack.i.h.bf16 %v3238_v30  ;;  %v3239_v54 = vunpack.i.l.bf16 %v3238_v30 }
 0x135   : > { %2789 = vmatprep.mubr.msk.f32.mxu0 %vm283_vm0, %v779_v53  ;;  %2805 = vmatprep.mubr.msk.f32.mxu1 %vm283_vm0, %v795_v9  ;;  %v3245_v48 = vunpack.i.h.bf16 %v3243_v15  ;;  %v3244_v42 = vunpack.i.l.bf16 %v3243_v15  ;;  %v5085_v15 = vld [vmem:[#allocation6_spill] sm:$0xff]  ;;  %v1709_v2 = vsel %vm283_vm0, %v3434_v58, %v2899_v7  ;;  %v5093_v58 = vld [vmem:[#allocation7_spill] sm:$0xff] }
 0x136   : > { %v1806_v14 = vsel %vm1797_vm4, %v1773_v50, %v3239_v54  ;;  %v1822_v1 = vsel %vm1797_vm4, %v1789_v55, %v3240_v40  ;;  %v2939_v40 = vunpack.i.l.bf16 %v5085_v15 }
 0x137   : > { %v3248_v6 = vpop.permute.xlu1 %3247  ;;  %v1839_v51 = vsel %vm1830_vm5, %v1806_v14, %v3244_v42  ;;  %v1855_v56 = vsel %vm1830_vm5, %v1822_v1, %v3245_v48 }
 0x138   : > { %v3253_v41 = vpop.permute.xlu0 %3252  ;;  %v3250_v24 = vunpack.i.h.bf16 %v3248_v6  ;;  %v3249_v59 = vunpack.i.l.bf16 %v3248_v6  ;;  %v3019_v6 = vunpack.i.l.bf16 %v5087_v10 }
 0x139   : > { %v3255_v45 = vunpack.i.h.bf16 %v3253_v41  ;;  %v3254_v16 = vunpack.i.l.bf16 %v3253_v41 }
 0x13a   : > { %v1872_v38 = vsel %vm1863_vm6, %v1839_v51, %v3249_v59  ;;  %v1888_v11 = vsel %vm1863_vm6, %v1855_v56, %v3250_v24  ;;  %v5088_v59 = vld [vmem:[#allocation15_spill] sm:$0xff] }
 0x13b   : > { %v3258_v63 = vpop.permute.xlu1 %3257  ;;  %v1774_v62 = vsel %vm1764_vm3, %v1741_v18, %v3254_v16  ;;  %v1790_v36 = vsel %vm1764_vm3, %v1757_v46, %v3255_v45 }
 0x13c   : > { %v3260_v47 = vunpack.i.h.bf16 %v3258_v63  ;;  %v3259_v4 = vunpack.i.l.bf16 %v3258_v63  ;;  %v3263_v44 = vpop.permute.xlu0 %3262  ;;  %v1725_v63 = vsel %vm283_vm0, %v3435_v23, %v2939_v40 }
 0x13d   : > { %v3265_v28 = vunpack.i.h.bf16 %v3263_v44  ;;  %v3264_v13 = vunpack.i.l.bf16 %v3263_v44 }
 0x13e   : > { %v1905_v17 = vsel %vm1896_vm7, %v1872_v38, %v3259_v4  ;;  %v1921_v49 = vsel %vm1896_vm7, %v1888_v11, %v3260_v47  ;;  %v1742_v47 = vsel %vm1731_vm2, %v1709_v2, %v2979_v52  ;;  %v1758_v4 = vsel %vm1731_vm2, %v1725_v63, %v3019_v6 }
 0x13f   : > { %v3268_v12 = vpop.permute.xlu1 %3267  ;;  %2148 = vmatmul.mubr.f32.gmra.mxu0 %v1905_v17  ;;  %2228 = vmatmul.mubr.f32.gmra.mxu1 %v1921_v49  ;;  %v1807_v19 = vsel %vm1797_vm4, %v1774_v62, %v3264_v13  ;;  %v1823_v26 = vsel %vm1797_vm4, %v1790_v36, %v3265_v28  ;;  %v2900_v17 = vunpack.i.h.bf16 %v5084_v37  ;;  %v2940_v49 = vunpack.i.h.bf16 %v5085_v15 }
 0x140   : > { %v3270_v0 = vunpack.i.h.bf16 %v3268_v12  ;;  %v3269_v29 = vunpack.i.l.bf16 %v3268_v12  ;;  %v3273_v57 = vpop.permute.xlu0 %3272  ;;  %2790 = vmatprep.mubr.msk.f32.mxu0 %vm283_vm0, %v4259_v60  ;;  %2806 = vmatprep.mubr.msk.f32.mxu1 %vm283_vm0, %v796_v3  ;;  %v2944_v2 = vunpack.i.l.bf16 %v5093_v58 }
 0x141   : > { %v3275_v53 = vunpack.i.h.bf16 %v3273_v57  ;;  %v3274_v9 = vunpack.i.l.bf16 %v3273_v57 }
 0x142   : > { %v1840_v22 = vsel %vm1830_vm5, %v1807_v19, %v3269_v29  ;;  %v1856_v30 = vsel %vm1830_vm5, %v1823_v26, %v3270_v0 }
 0x143   : > { %v3278_v35 = vpop.permute.xlu1 %3277  ;;  %v1873_v54 = vsel %vm1863_vm6, %v1840_v22, %v3274_v9  ;;  %v1889_v27 = vsel %vm1863_vm6, %v1856_v30, %v3275_v53  ;;  %v3437_v30 = vld [vmem:[#allocation2 + $0x140] sm:$0xff] }
 0x144   : > { %v3283_v5 = vpop.permute.xlu0 %3282  ;;  %v3280_v42 = vunpack.i.h.bf16 %v3278_v35  ;;  %v3279_v41 = vunpack.i.l.bf16 %v3278_v35  ;;  %v3436_v35 = vld [vmem:[#allocation2 + $0x80] sm:$0xff] }
 0x145   : > { %v3285_v43 = vunpack.i.h.bf16 %v3283_v5  ;;  %v3284_v60 = vunpack.i.l.bf16 %v3283_v5  ;;  %v1710_v22 = vsel %vm283_vm0, %v3436_v35, %v2900_v17  ;;  %v1726_v5 = vsel %vm283_vm0, %v3437_v30, %v2940_v49  ;;  %v3438_v17 = vld [vmem:[#allocation2 + $0x90] sm:$0xff] }
 0x146   : > { %v1775_v51 = vsel %vm1764_vm3, %v1742_v47, %v3279_v41  ;;  %v1791_v56 = vsel %vm1764_vm3, %v1758_v4, %v3280_v42  ;;  %v1759_v37 = vsel %vm1731_vm2, %v1726_v5, %v3020_v61  ;;  %v5094_v47 = vld [vmem:[#allocation10_spill] sm:$0xff] }
 0x147   : > { %v3288_v50 = vpop.permute.xlu1 %3287  ;;  %v1906_v55 = vsel %vm1896_vm7, %v1873_v54, %v3284_v60  ;;  %v1922_v48 = vsel %vm1896_vm7, %v1889_v27, %v3285_v43  ;;  %v1743_v60 = vsel %vm1731_vm2, %v1710_v22, %v2980_v33  ;;  %v5090_v54 = vld [vmem:[#allocation17_spill] sm:$0xff]  ;;  %v5091_v27 = vld [vmem:[#allocation18_spill] sm:$0xff]  ;;  %v2984_v4 = vunpack.i.l.bf16 %v5094_v47  ;;  %v3439_v33 = vld [vmem:[#allocation2 + $0x150] sm:$0xff] }
 0x148   : > { %v3293_v14 = vpop.permute.xlu0 %3292  ;;  %2153 = vmatmul.mubr.f32.gmra.mxu0 %v1906_v55  ;;  %2233 = vmatmul.mubr.f32.gmra.mxu1 %v1922_v48  ;;  %v3290_v1 = vunpack.i.h.bf16 %v3288_v50  ;;  %v3289_v24 = vunpack.i.l.bf16 %v3288_v50  ;;  %v1727_v61 = vsel %vm283_vm0, %v3439_v33, %v2944_v2  ;;  %v785_v33 = vld [vmem:[#allocation2 + $0xda] sm:$0xff] }
 0x149   : > { %2791 = vmatprep.mubr.msk.f32.mxu0 %vm283_vm0, %v5088_v59  ;;  %2807 = vmatprep.mubr.msk.f32.mxu1 %vm283_vm0, %v5089_v34  ;;  %v3295_v45 = vunpack.i.h.bf16 %v3293_v14  ;;  %v3294_v16 = vunpack.i.l.bf16 %v3293_v14  ;;  %v5092_v59 = vld [vmem:[#allocation4_spill] sm:$0xff] }
 0x14a   : > { %v1808_v11 = vsel %vm1797_vm4, %v1775_v51, %v3289_v24  ;;  %v1824_v3 = vsel %vm1797_vm4, %v1791_v56, %v3290_v1  ;;  %v2904_v34 = vunpack.i.l.bf16 %v5092_v59 }
 0x14b   : > { %v3298_v44 = vpop.permute.xlu1 %3297  ;;  %v1841_v46 = vsel %vm1830_vm5, %v1808_v11, %v3294_v16  ;;  %v1857_v0 = vsel %vm1830_vm5, %v1824_v3, %v3295_v45 }
 0x14c   : > { %v3303_v38 = vpop.permute.xlu0 %3302  ;;  %v3300_v28 = vunpack.i.h.bf16 %v3298_v44  ;;  %v3299_v13 = vunpack.i.l.bf16 %v3298_v44  ;;  %v5095_v44 = vld [vmem:[#allocation13_spill] sm:$0xff]  ;;  %v1711_v49 = vsel %vm283_vm0, %v3438_v17, %v2904_v34 }
 0x14d   : > { %v3305_v29 = vunpack.i.h.bf16 %v3303_v38  ;;  %v3304_v57 = vunpack.i.l.bf16 %v3303_v38  ;;  %v3024_v51 = vunpack.i.l.bf16 %v5095_v44 }
 0x14e   : > { %v1874_v62 = vsel %vm1863_vm6, %v1841_v46, %v3299_v13  ;;  %v1890_v36 = vsel %vm1863_vm6, %v1857_v0, %v3300_v28 }
 0x14f   : > { %v3308_v20 = vpop.permute.xlu1 %3307  ;;  %v1792_v39 = vsel %vm1764_vm3, %v1759_v37, %v3305_v29  ;;  %v1776_v52 = vsel %vm1764_vm3, %v1743_v60, %v3304_v57 }
 0x150   : > { %v3310_v31 = vunpack.i.h.bf16 %v3308_v20  ;;  %v3309_v12 = vunpack.i.l.bf16 %v3308_v20  ;;  %v3313_v18 = vpop.permute.xlu0 %3312  ;;  %v1744_v20 = vsel %vm1731_vm2, %v1711_v49, %v2984_v4 }
 0x151   : > { %v3315_v19 = vunpack.i.h.bf16 %v3313_v18  ;;  %v3314_v26 = vunpack.i.l.bf16 %v3313_v18 }
 0x152   : > { %v1907_v53 = vsel %vm1896_vm7, %v1874_v62, %v3309_v12  ;;  %v1923_v9 = vsel %vm1896_vm7, %v1890_v36, %v3310_v31  ;;  %v1760_v31 = vsel %vm1731_vm2, %v1727_v61, %v3024_v51  ;;  %v801_v61 = vld [vmem:[#allocation2 + $0x19a] sm:$0xff] }
 0x153   : > { %v3318_v43 = vpop.permute.xlu1 %3317  ;;  %2158 = vmatmul.mubr.f32.gmra.mxu0 %v1907_v53  ;;  %2238 = vmatmul.mubr.f32.gmra.mxu1 %v1923_v9  ;;  %v1809_v10 = vsel %vm1797_vm4, %v1776_v52, %v3314_v26  ;;  %v1825_v6 = vsel %vm1797_vm4, %v1792_v39, %v3315_v19  ;;  %v2905_v19 = vunpack.i.h.bf16 %v5092_v59  ;;  %v2945_v26 = vunpack.i.h.bf16 %v5093_v58 }
 0x154   : > { %v3320_v7 = vunpack.i.h.bf16 %v3318_v43  ;;  %v3319_v15 = vunpack.i.l.bf16 %v3318_v43  ;;  %v3323_v40 = vpop.permute.xlu0 %3322  ;;  %2792 = vmatprep.mubr.msk.f32.mxu0 %vm283_vm0, %v5090_v54  ;;  %2808 = vmatprep.mubr.msk.f32.mxu1 %vm283_vm0, %v5091_v27  ;;  %v2985_v53 = vunpack.i.h.bf16 %v5094_v47  ;;  %v3025_v9 = vunpack.i.h.bf16 %v5095_v44 }
 0x155   : > { %v3325_v50 = vunpack.i.h.bf16 %v3323_v40  ;;  %v3324_v55 = vunpack.i.l.bf16 %v3323_v40 }
 0x156   : > { %v1842_v42 = vsel %vm1830_vm5, %v1809_v10, %v3319_v15  ;;  %v1858_v41 = vsel %vm1830_vm5, %v1825_v6, %v3320_v7  ;;  %v3440_v10 = vld [vmem:[#allocation2 + $0x98] sm:$0xff] }
 0x157   : > { %v3328_v48 = vpop.permute.xlu1 %3327  ;;  %v1875_v23 = vsel %vm1863_vm6, %v1842_v42, %v3324_v55  ;;  %v1891_v63 = vsel %vm1863_vm6, %v1858_v41, %v3325_v50  ;;  %v1712_v6 = vsel %vm283_vm0, %v3440_v10, %v2905_v19  ;;  %v3441_v50 = vld [vmem:[#allocation2 + $0x158] sm:$0xff] }
 0x158   : > { %v3333_v14 = vpop.permute.xlu0 %3332  ;;  %v3330_v38 = vunpack.i.h.bf16 %v3328_v48  ;;  %v3329_v11 = vunpack.i.l.bf16 %v3328_v48  ;;  %v1728_v55 = vsel %vm283_vm0, %v3441_v50, %v2945_v26  ;;  %v1745_v42 = vsel %vm1731_vm2, %v1712_v6, %v2985_v53 }
 0x159   : > { %v3335_v1 = vunpack.i.h.bf16 %v3333_v14  ;;  %v3334_v24 = vunpack.i.l.bf16 %v3333_v14  ;;  %v1761_v41 = vsel %vm1731_vm2, %v1728_v55, %v3025_v9 }
 0x15a   : > { %v1777_v18 = vsel %vm1764_vm3, %v1744_v20, %v3329_v11  ;;  %v1793_v46 = vsel %vm1764_vm3, %v1760_v31, %v3330_v38  ;;  %v5098_v11 = vld [vmem:[#allocation11_spill] sm:$0xff] }
 0x15b   : > { %v3338_v56 = vpop.permute.xlu1 %3337  ;;  %v1908_v45 = vsel %vm1896_vm7, %v1875_v23, %v3334_v24  ;;  %v1924_v16 = vsel %vm1896_vm7, %v1891_v63, %v3335_v1 }
 0x15c   : > { %v3343_v3 = vpop.permute.xlu0 %3342  ;;  %2163 = vmatmul.mubr.f32.gmra.mxu0 %v1908_v45  ;;  %2243 = vmatmul.mubr.f32.gmra.mxu1 %v1924_v16  ;;  %v3340_v28 = vunpack.i.h.bf16 %v3338_v56  ;;  %v3339_v13 = vunpack.i.l.bf16 %v3338_v56  ;;  %v5097_v45 = vld [vmem:[#allocation8_spill] sm:$0xff] }
 0x15d   : > { %2793 = vmatprep.mubr.msk.f32.mxu0 %vm283_vm0, %v4347_v21  ;;  %2809 = vmatprep.mubr.msk.f32.mxu1 %vm283_vm0, %v4349_v32  ;;  %v3345_v0 = vunpack.i.h.bf16 %v3343_v3  ;;  %v3344_v21 = vunpack.i.l.bf16 %v3343_v3  ;;  %v2989_v3 = vunpack.i.l.bf16 %v5098_v11 }
 0x15e   : > { %v1810_v32 = vsel %vm1797_vm4, %v1777_v18, %v3339_v13  ;;  %v1826_v57 = vsel %vm1797_vm4, %v1793_v46, %v3340_v28  ;;  %v5099_v28 = vld [vmem:[#allocation14_spill] sm:$0xff] }
 0x15f   : > { %v3348_v12 = vpop.permute.xlu1 %3347  ;;  %v1843_v43 = vsel %vm1830_vm5, %v1810_v32, %v3344_v21  ;;  %v1859_v60 = vsel %vm1830_vm5, %v1826_v57, %v3345_v0  ;;  %v3029_v13 = vunpack.i.l.bf16 %v5099_v28  ;;  %v3442_v32 = vld [vmem:[#allocation2 + $0xa8] sm:$0xff] }
 0x160   : > { %v3353_v29 = vpop.permute.xlu0 %3352  ;;  %v3350_v62 = vunpack.i.h.bf16 %v3348_v12  ;;  %v3349_v36 = vunpack.i.l.bf16 %v3348_v12 }
 0x161   : > { %v3355_v37 = vunpack.i.h.bf16 %v3353_v29  ;;  %v3354_v7 = vunpack.i.l.bf16 %v3353_v29 }
 0x162   : > { %v1876_v15 = vsel %vm1863_vm6, %v1843_v43, %v3349_v36  ;;  %v1892_v40 = vsel %vm1863_vm6, %v1859_v60, %v3350_v62  ;;  %v3443_v62 = vld [vmem:[#allocation2 + $0x168] sm:$0xff] }
 0x163   : > { %v3358_v35 = vpop.permute.xlu1 %3357  ;;  %v1778_v59 = vsel %vm1764_vm3, %v1745_v42, %v3354_v7  ;;  %v1794_v34 = vsel %vm1764_vm3, %v1761_v41, %v3355_v37 }
 0x164   : > { %v3360_v22 = vunpack.i.h.bf16 %v3358_v35  ;;  %v3359_v30 = vunpack.i.l.bf16 %v3358_v35  ;;  %v3363_v5 = vpop.permute.xlu0 %3362 }
 0x165   : > { %v3365_v54 = vunpack.i.h.bf16 %v3363_v5  ;;  %v3364_v27 = vunpack.i.l.bf16 %v3363_v5 }
 0x166   : > { %v1909_v39 = vsel %vm1896_vm7, %v1876_v15, %v3359_v30  ;;  %v1925_v52 = vsel %vm1896_vm7, %v1892_v40, %v3360_v22  ;;  %v2950_v40 = vunpack.i.h.bf16 %v5097_v45 }
 0x167   : > { %v3368_v48 = vpop.permute.xlu1 %3367  ;;  %2168 = vmatmul.mubr.f32.gmra.mxu0 %v1909_v39  ;;  %2248 = vmatmul.mubr.f32.gmra.mxu1 %v1925_v52  ;;  %v1811_v58 = vsel %vm1797_vm4, %v1778_v59, %v3364_v27  ;;  %v1827_v2 = vsel %vm1797_vm4, %v1794_v34, %v3365_v54  ;;  %v2990_v54 = vunpack.i.h.bf16 %v5098_v11  ;;  %v3030_v27 = vunpack.i.h.bf16 %v5099_v28  ;;  %v786_v59 = vld [vmem:[#allocation2 + $0xe2] sm:$0xff] }
 0x168   : > { %v3370_v14 = vunpack.i.h.bf16 %v3368_v48  ;;  %v3369_v1 = vunpack.i.l.bf16 %v3368_v48  ;;  %v3373_v24 = vpop.permute.xlu0 %3372  ;;  %2794 = vmatprep.mubr.msk.f32.mxu0 %vm283_vm0, %v4397_v8  ;;  %2810 = vmatprep.mubr.msk.f32.mxu1 %vm283_vm0, %v4399_v25  ;;  %v5096_v8 = vld [vmem:[#allocation5_spill] sm:$0xff]  ;;  %v2949_v25 = vunpack.i.l.bf16 %v5097_v45 }
 0x169   : > { %v3375_v23 = vunpack.i.h.bf16 %v3373_v24  ;;  %v3374_v63 = vunpack.i.l.bf16 %v3373_v24  ;;  %v2909_v56 = vunpack.i.l.bf16 %v5096_v8  ;;  %v2910_v15 = vunpack.i.h.bf16 %v5096_v8  ;;  %v802_v34 = vld [vmem:[#allocation2 + $0x1a2] sm:$0xff] }
 0x16a   : > { %v1844_v4 = vsel %vm1830_vm5, %v1811_v58, %v3369_v1  ;;  %v1860_v44 = vsel %vm1830_vm5, %v1827_v2, %v3370_v14  ;;  %v1729_v36 = vsel %vm283_vm0, %v3443_v62, %v2949_v25  ;;  %v3444_v58 = vld [vmem:[#allocation2 + $0xb0] sm:$0xff] }
 0x16b   : > { %v3378_v47 = vpop.permute.xlu1 %3377  ;;  %v1877_v17 = vsel %vm1863_vm6, %v1844_v4, %v3374_v63  ;;  %v1893_v49 = vsel %vm1863_vm6, %v1860_v44, %v3375_v23  ;;  %v1713_v57 = vsel %vm283_vm0, %v3442_v32, %v2909_v56  ;;  %v1762_v26 = vsel %vm1731_vm2, %v1729_v36, %v3029_v13  ;;  %v3445_v23 = vld [vmem:[#allocation2 + $0x170] sm:$0xff] }
 0x16c   : > { %v3383_v51 = vpop.permute.xlu0 %3382  ;;  %v3380_v20 = vunpack.i.h.bf16 %v3378_v47  ;;  %v3379_v31 = vunpack.i.l.bf16 %v3378_v47  ;;  %v1746_v19 = vsel %vm1731_vm2, %v1713_v57, %v2989_v3  ;;  %v1714_v2 = vsel %vm283_vm0, %v3444_v58, %v2910_v15 }
 0x16d   : > { %v3385_v16 = vunpack.i.h.bf16 %v3383_v51  ;;  %v3384_v38 = vunpack.i.l.bf16 %v3383_v51  ;;  %v1730_v63 = vsel %vm283_vm0, %v3445_v23, %v2950_v40  ;;  %v1747_v44 = vsel %vm1731_vm2, %v1714_v2, %v2990_v54 }
 0x16e   : > { %v1779_v53 = vsel %vm1764_vm3, %v1746_v19, %v3379_v31  ;;  %v1795_v9 = vsel %vm1764_vm3, %v1762_v26, %v3380_v20  ;;  %v1763_v51 = vsel %vm1731_vm2, %v1730_v63, %v3030_v27 }
 0x16f   : > { %v3388_v12 = vpop.permute.xlu1 %3387  ;;  %v1910_v18 = vsel %vm1896_vm7, %v1877_v17, %v3384_v38  ;;  %v1926_v46 = vsel %vm1896_vm7, %v1893_v49, %v3385_v16 }
 0x170   : > { %v3390_v0 = vunpack.i.h.bf16 %v3388_v12  ;;  %v3389_v21 = vunpack.i.l.bf16 %v3388_v12  ;;  %v3393_v29 = vpop.permute.xlu0 %3392  ;;  %2173 = vmatmul.mubr.f32.gmra.mxu0 %v1910_v18  ;;  %2253 = vmatmul.mubr.f32.gmra.mxu1 %v1926_v46 }
 0x171   : > { %2795 = vmatprep.mubr.msk.f32.mxu0 %vm283_vm0, %v785_v33  ;;  %2811 = vmatprep.mubr.msk.f32.mxu1 %vm283_vm0, %v801_v61  ;;  %v3395_v35 = vunpack.i.h.bf16 %v3393_v29  ;;  %v3394_v22 = vunpack.i.l.bf16 %v3393_v29 }
 0x172   : > { %v1812_v5 = vsel %vm1797_vm4, %v1779_v53, %v3389_v21  ;;  %v1828_v43 = vsel %vm1797_vm4, %v1795_v9, %v3390_v0 }
 0x173   : > { %v3398_v30 = vpop.permute.xlu1 %3397  ;;  %v1845_v52 = vsel %vm1830_vm5, %v1812_v5, %v3394_v22  ;;  %v1861_v10 = vsel %vm1830_vm5, %v1828_v43, %v3395_v35 }
 0x174   : > { %v3403_v60 = vpop.permute.xlu0 %3402  ;;  %v3400_v37 = vunpack.i.h.bf16 %v3398_v30  ;;  %v3399_v7 = vunpack.i.l.bf16 %v3398_v30 }
 0x175   : > { %v3405_v6 = vunpack.i.h.bf16 %v3403_v60  ;;  %v3404_v50 = vunpack.i.l.bf16 %v3403_v60 }
 0x176   : > { %v1878_v1 = vsel %vm1863_vm6, %v1845_v52, %v3399_v7  ;;  %v1894_v24 = vsel %vm1863_vm6, %v1861_v10, %v3400_v37 }
 0x177   : > { %v3408_v39 = vpop.permute.xlu1 %3407  ;;  %v1796_v56 = vsel %vm1764_vm3, %v1763_v51, %v3405_v6  ;;  %v1780_v45 = vsel %vm1764_vm3, %v1747_v44, %v3404_v50 }
 0x178   : > { %v3410_v55 = vunpack.i.h.bf16 %v3408_v39  ;;  %v3409_v48 = vunpack.i.l.bf16 %v3408_v39  ;;  %v3413_v42 = vpop.permute.xlu0 %3412 }
 0x179   : > { %v3415_v41 = vunpack.i.h.bf16 %v3413_v42  ;;  %v3414_v14 = vunpack.i.l.bf16 %v3413_v42 }
 0x17a   : > { %v1911_v47 = vsel %vm1896_vm7, %v1878_v1, %v3409_v48  ;;  %v1927_v4 = vsel %vm1896_vm7, %v1894_v24, %v3410_v55 }
 0x17b   : > { %v3418_v8 = vpop.permute.xlu1 %3417  ;;  %2178 = vmatmul.mubr.f32.gmra.mxu0 %v1911_v47  ;;  %2258 = vmatmul.mubr.f32.gmra.mxu1 %v1927_v4  ;;  %v1813_v11 = vsel %vm1797_vm4, %v1780_v45, %v3414_v14  ;;  %v1829_v3 = vsel %vm1797_vm4, %v1796_v56, %v3415_v41 }
 0x17c   : > { %v3420_v25 = vunpack.i.h.bf16 %v3418_v8  ;;  %v3419_v16 = vunpack.i.l.bf16 %v3418_v8  ;;  %v3423_v38 = vpop.permute.xlu0 %3422  ;;  %2796 = vmatprep.mubr.msk.f32.mxu0 %vm283_vm0, %v786_v59  ;;  %2812 = vmatprep.mubr.msk.f32.mxu1 %vm283_vm0, %v802_v34 }
 0x17d   : > { %v3425_v28 = vunpack.i.h.bf16 %v3423_v38  ;;  %v3424_v13 = vunpack.i.l.bf16 %v3423_v38 }
 0x17e   : > { %v1846_v17 = vsel %vm1830_vm5, %v1813_v11, %v3419_v16  ;;  %v1862_v49 = vsel %vm1830_vm5, %v1829_v3, %v3420_v25 }
 0x17f   : > { %v3428_v33 = vpop.permute.xlu1 %3427  ;;  %v1879_v31 = vsel %vm1863_vm6, %v1846_v17, %v3424_v13  ;;  %v1895_v12 = vsel %vm1863_vm6, %v1862_v49, %v3425_v28 }
 0x180   : > { %v3430_v61 = vunpack.i.h.bf16 %v3428_v33  ;;  %v3429_v20 = vunpack.i.l.bf16 %v3428_v33 }
 0x182   : > { %v1912_v18 = vsel %vm1896_vm7, %v1879_v31, %v3429_v20  ;;  %v1928_v46 = vsel %vm1896_vm7, %v1895_v12, %v3430_v61 }
 0x183   : > { %2183 = vmatmul.mubr.f32.gmra.mxu0 %v1912_v18  ;;  %2263 = vmatmul.mubr.f32.gmra.mxu1 %v1928_v46 }
 0x1b3   : > { %v2109_v0 = vpop.f32.mrf.mxu0  ;;  %v4698_v21 = vpop.f32.mrf.mxu1 }
 0x1b4   : > { %2332 = vrot.lane.b32.xlu0 %v2109_v0, %s3462_s29  ;;  %v2563_v57 = vmul.f32 %v2109_v0, %v2109_v0  ;;  %v2494_v19 = vsel %vm2428_vm8, %v2109_v0, 0.0 }
 0x1b5   : > { %v2111_v29 = vpop.f32.mrf.mxu0  ;;  %v2191_v32 = vpop.f32.mrf.mxu1 }
 0x1b6   : > { %v2595_v30 = vsel %vm2428_vm8, %v2563_v57, 0.0 }
 0x1b8   : > { %2364 = vrot.lane.b32.xlu0 %v4698_v21, %s3462_s29 }
 0x1bb   : > { %v2114_v62 = vpop.f32.mrf.mxu0  ;;  %v4703_v36 = vpop.f32.mrf.mxu1 }
 0x1bc   : > { %v2495_v26 = vsel %vm2428_vm8, %v2114_v62, 0.0  ;;  %v2564_v53 = vmul.f32 %v2114_v62, %v2114_v62  ;;  %2334 = vrot.lane.b32.xlu1 %v2114_v62, %s3462_s29 }
 0x1bd   : > { %v2496_v9 = vadd.f32 %v2495_v26, %v2494_v19  ;;  %v2116_v35 = vpop.f32.mrf.mxu0  ;;  %v2196_v22 = vpop.f32.mrf.mxu1 }
 0x1be   : > { %v2596_v5 = vsel %vm2428_vm8, %v2564_v53, 0.0 }
 0x1bf   : > { %v2597_v43 = vadd.f32 %v2596_v5, %v2595_v30 }
 0x1c0   : > { %2366 = vrot.lane.b32.xlu1 %v4703_v36, %s3462_s29 }
 0x1c4   : > { %v2119_v60 = vpop.f32.mrf.mxu0  ;;  %v4712_v37 = vpop.f32.mrf.mxu1 }
 0x1c5   : > { %v2497_v7 = vsel %vm2428_vm8, %v2119_v60, 0.0  ;;  %v2565_v15 = vmul.f32 %v2119_v60, %v2119_v60  ;;  %2336 = vrot.lane.b32.xlu0 %v2119_v60, %s3462_s29 }
 0x1c6   : > { %v2498_v40 = vadd.f32 %v2497_v7, %v2496_v9  ;;  %v2121_v54 = vpop.f32.mrf.mxu0  ;;  %v2201_v27 = vpop.f32.mrf.mxu1 }
 0x1c7   : > { %v2598_v39 = vsel %vm2428_vm8, %v2565_v15, 0.0 }
 0x1c8   : > { %v2599_v52 = vadd.f32 %v2598_v39, %v2597_v43 }
 0x1c9   : > { %2368 = vrot.lane.b32.xlu0 %v4712_v37, %s3462_s29 }
 0x1cc   : > { %v2124_v10 = vpop.f32.mrf.mxu0  ;;  %v4719_v6 = vpop.f32.mrf.mxu1 }
 0x1cd   : > { %v2499_v50 = vsel %vm2428_vm8, %v2124_v10, 0.0  ;;  %v2566_v55 = vmul.f32 %v2124_v10, %v2124_v10  ;;  %2338 = vrot.lane.b32.xlu1 %v2124_v10, %s3462_s29  ;;  %v2268_v10 = vld [vmem:[%s4782_s13] sm:$0xff] }
 0x1ce   : > { %v2500_v48 = vadd.f32 %v2499_v50, %v2498_v40  ;;  %v2126_v42 = vpop.f32.mrf.mxu0  ;;  %v2206_v41 = vpop.f32.mrf.mxu1 }
 0x1cf   : > { %v2600_v14 = vsel %vm2428_vm8, %v2566_v55, 0.0  ;;  %v2284_v41 = vld [vmem:[%s4782_s13 + $0x80] sm:$0xff] }
 0x1d0   : > { %v2601_v1 = vadd.f32 %v2600_v14, %v2599_v52 }
 0x1d1   : > { %2370 = vrot.lane.b32.xlu1 %v4719_v6, %s3462_s29 }
 0x1d7   : > { %v2129_v24 = vpop.f32.mrf.mxu0  ;;  %v4726_v59 = vpop.f32.mrf.mxu1 }
 0x1d8   : > { %v2501_v34 = vsel %vm2428_vm8, %v2129_v24, 0.0  ;;  %v2567_v58 = vmul.f32 %v2129_v24, %v2129_v24  ;;  %2340 = vrot.lane.b32.xlu0 %v2129_v24, %s3462_s29 }
 0x1d9   : > { %v2502_v2 = vadd.f32 %v2501_v34, %v2500_v48  ;;  %v2131_v23 = vpop.f32.mrf.mxu0  ;;  %v2211_v63 = vpop.f32.mrf.mxu1 }
 0x1da   : > { %v2602_v47 = vsel %vm2428_vm8, %v2567_v58, 0.0  ;;  %v2269_v58 = vld [vmem:[%s4782_s13 + $0x8] sm:$0xff] }
 0x1db   : > { %v2603_v4 = vadd.f32 %v2602_v47, %v2601_v1 }
 0x1dc   : > { %2372 = vrot.lane.b32.xlu0 %v4726_v59, %s3462_s29 }
 0x1e0   : > { %v2134_v44 = vpop.f32.mrf.mxu0  ;;  %v4733_v51 = vpop.f32.mrf.mxu1 }
 0x1e1   : > { %v2503_v8 = vsel %vm2428_vm8, %v2134_v44, 0.0  ;;  %v2568_v56 = vmul.f32 %v2134_v44, %v2134_v44  ;;  %2342 = vrot.lane.b32.xlu1 %v2134_v44, %s3462_s29 }
 0x1e2   : > { %v2504_v45 = vadd.f32 %v2503_v8, %v2502_v2  ;;  %v2136_v25 = vpop.f32.mrf.mxu0  ;;  %v2216_v16 = vpop.f32.mrf.mxu1 }
 0x1e3   : > { %v2604_v38 = vsel %vm2428_vm8, %v2568_v56, 0.0 }
 0x1e4   : > { %v2605_v11 = vadd.f32 %v2604_v38, %v2603_v4  ;;  %v2285_v4 = vld [vmem:[%s4782_s13 + $0x88] sm:$0xff] }
 0x1e5   : > { %2374 = vrot.lane.b32.xlu1 %v4733_v51, %s3462_s29 }
 0x1eb   : > { %v2139_v3 = vpop.f32.mrf.mxu0  ;;  %v4740_v28 = vpop.f32.mrf.mxu1 }
 0x1ec   : > { %v2505_v13 = vsel %vm2428_vm8, %v2139_v3, 0.0  ;;  %v2569_v17 = vmul.f32 %v2139_v3, %v2139_v3  ;;  %2344 = vrot.lane.b32.xlu0 %v2139_v3, %s3462_s29 }
 0x1ed   : > { %v2506_v49 = vadd.f32 %v2505_v13, %v2504_v45  ;;  %v2141_v33 = vpop.f32.mrf.mxu0  ;;  %v2221_v61 = vpop.f32.mrf.mxu1 }
 0x1ee   : > { %v2606_v20 = vsel %vm2428_vm8, %v2569_v17, 0.0 }
 0x1ef   : > { %v2607_v31 = vadd.f32 %v2606_v20, %v2605_v11  ;;  %v2270_v11 = vld [vmem:[%s4782_s13 + $0x10] sm:$0xff] }
 0x1f0   : > { %2376 = vrot.lane.b32.xlu0 %v4740_v28, %s3462_s29 }
 0x1f4   : > { %v2144_v12 = vpop.f32.mrf.mxu0  ;;  %v4747_v18 = vpop.f32.mrf.mxu1 }
 0x1f5   : > { %v2507_v46 = vsel %vm2428_vm8, %v2144_v12, 0.0  ;;  %v2570_v0 = vmul.f32 %v2144_v12, %v2144_v12  ;;  %2346 = vrot.lane.b32.xlu1 %v2144_v12, %s3462_s29 }
 0x1f6   : > { %v4751_v29 = vadd.f32 %v2507_v46, %v2506_v49  ;;  %v2146_v32 = vpop.f32.mrf.mxu0  ;;  %v2226_v57 = vpop.f32.mrf.mxu1  ;;  %v2286_v46 = vld [vmem:[%s4782_s13 + $0x90] sm:$0xff] }
 0x1f7   : > { %v2608_v62 = vsel %vm2428_vm8, %v2570_v0, 0.0 }
 0x1f8   : > { %v4754_v19 = vadd.f32 %v2608_v62, %v2607_v31 }
 0x1f9   : > { %2378 = vrot.lane.b32.xlu1 %v4747_v18, %s3462_s29 }
 0x1ff   : > { %v2149_v26 = vpop.f32.mrf.mxu0  ;;  %v4758_v53 = vpop.f32.mrf.mxu1 }
 0x200   : > { %2348 = vrot.lane.b32.xlu0 %v2149_v26, %s3462_s29  ;;  %v2571_v56 = vmul.f32 %v2149_v26, %v2149_v26  ;;  %v2509_v16 = vsel %vm2428_vm8, %v2149_v26, 0.0 }
 0x201   : > { %v2151_v9 = vpop.f32.mrf.mxu0  ;;  %v2231_v35 = vpop.f32.mrf.mxu1  ;;  %v2510_v33 = vadd.f32 %v2509_v16, %v4751_v29 }
 0x202   : > { %v2610_v3 = vsel %vm2428_vm8, %v2571_v56, 0.0 }
 0x203   : > { %v2611_v0 = vadd.f32 %v2610_v3, %v4754_v19 }
 0x204   : > { %2380 = vrot.lane.b32.xlu0 %v4758_v53, %s3462_s29 }
 0x208   : > { %v2154_v22 = vpop.f32.mrf.mxu0  ;;  %v4763_v30 = vpop.f32.mrf.mxu1 }
 0x209   : > { %2350 = vrot.lane.b32.xlu1 %v2154_v22, %s3462_s29  ;;  %v2572_v38 = vmul.f32 %v2154_v22, %v2154_v22  ;;  %v2511_v13 = vsel %vm2428_vm8, %v2154_v22, 0.0 }
 0x20a   : > { %v2156_v5 = vpop.f32.mrf.mxu0  ;;  %v2236_v43 = vpop.f32.mrf.mxu1  ;;  %v2512_v32 = vadd.f32 %v2511_v13, %v2510_v33 }
 0x20b   : > { %v2612_v20 = vsel %vm2428_vm8, %v2572_v38, 0.0  ;;  %v2579_v38 = vmul.f32 %v4698_v21, %v4698_v21 }
 0x20c   : > { %v2613_v35 = vadd.f32 %v2612_v20, %v2611_v0  ;;  %v2580_v20 = vmul.f32 %v4703_v36, %v4703_v36  ;;  %v2272_v0 = vld [vmem:[%s4782_s13 + $0x20] sm:$0xff] }
 0x20d   : > { %2382 = vrot.lane.b32.xlu1 %v4763_v30, %s3462_s29 }
 0x213   : > { %v2159_v60 = vpop.f32.mrf.mxu0  ;;  %v4768_v7 = vpop.f32.mrf.mxu1 }
 0x214   : > { %2352 = vrot.lane.b32.xlu0 %v2159_v60, %s3462_s29  ;;  %v2573_v17 = vmul.f32 %v2159_v60, %v2159_v60  ;;  %v2513_v31 = vsel %vm2428_vm8, %v2159_v60, 0.0 }
 0x215   : > { %v2161_v15 = vpop.f32.mrf.mxu0  ;;  %v2241_v40 = vpop.f32.mrf.mxu1  ;;  %v2514_v22 = vadd.f32 %v2513_v31, %v2512_v32  ;;  %v2626_v32 = vsel %vm2428_vm8, %v2579_v38, 0.0 }
 0x216   : > { %v2614_v57 = vsel %vm2428_vm8, %v2573_v17, 0.0 }
 0x218   : > { %2384 = vrot.lane.b32.xlu0 %v4768_v7, %s3462_s29 }
 0x21c   : > { %v2164_v54 = vpop.f32.mrf.mxu0  ;;  %v4773_v27 = vpop.f32.mrf.mxu1 }
 0x21d   : > { %2354 = vrot.lane.b32.xlu1 %v2164_v54, %s3462_s29  ;;  %v2574_v12 = vmul.f32 %v2164_v54, %v2164_v54  ;;  %v2515_v62 = vsel %vm2428_vm8, %v2164_v54, 0.0  ;;  %v2271_v54 = vld [vmem:[%s4782_s13 + $0x18] sm:$0xff] }
 0x21e   : > { %v2166_v39 = vpop.f32.mrf.mxu0  ;;  %v2246_v52 = vpop.f32.mrf.mxu1 }
 0x21f   : > { %v2616_v60 = vsel %vm2428_vm8, %v2574_v12, 0.0  ;;  %v2615_v39 = vadd.f32 %v2614_v57, %v2613_v35  ;;  %v2516_v52 = vadd.f32 %v2515_v62, %v2514_v22  ;;  %v2527_v57 = vsel %vm2428_vm8, %v4703_v36, 0.0 }
 0x220   : > { %v2581_v62 = vmul.f32 %v4712_v37, %v4712_v37  ;;  %v2529_v35 = vsel %vm2428_vm8, %v4712_v37, 0.0  ;;  %v2582_v22 = vmul.f32 %v4719_v6, %v4719_v6  ;;  %v2583_v37 = vmul.f32 %v4726_v59, %v4726_v59 }
 0x221   : > { %2386 = vrot.lane.b32.xlu1 %v4773_v27, %s3462_s29 }
 0x226   : > { %v2333_v50 = vpop.permute.xlu0 %2332 }
 0x227   : > { %v2429_v55 = vsel %vm2428_vm8, %v2268_v10, %v2333_v50  ;;  %v2169_v48 = vpop.f32.mrf.mxu0  ;;  %v4792_v42 = vpop.f32.mrf.mxu1 }
 0x228   : > { %2462 = vst.msk [vmem:[%s4789_s16] sm:$0xff] %vm2461_vm9, %v2429_v55  ;;  %2356 = vrot.lane.b32.xlu0 %v2169_v48, %s3462_s29  ;;  %v2575_v29 = vmul.f32 %v2169_v48, %v2169_v48  ;;  %v2517_v19 = vsel %vm2428_vm8, %v2169_v48, 0.0 }
 0x229   : > { %v2171_v14 = vpop.f32.mrf.mxu0  ;;  %v2251_v1 = vpop.f32.mrf.mxu1 }
 0x22a   : > { %v2365_v24 = vpop.permute.xlu0 %2364  ;;  %v2618_v50 = vsel %vm2428_vm8, %v2575_v29, 0.0  ;;  %v2617_v1 = vadd.f32 %v2616_v60, %v2615_v39 }
 0x22b   : > { %v2445_v34 = vsel %vm2428_vm8, %v2284_v41, %v2365_v24  ;;  %v2518_v24 = vadd.f32 %v2517_v19, %v2516_v52  ;;  %v2288_v19 = vld [vmem:[%s4782_s13 + $0xa0] sm:$0xff] }
 0x22c   : > { %2478 = vst.msk [vmem:[%s4789_s16 + $0x80] sm:$0xff] %vm2461_vm9, %v2445_v34  ;;  %2388 = vrot.lane.b32.xlu0 %v4792_v42, %s3462_s29 }
 0x22e   : > { %v2335_v2 = vpop.permute.xlu1 %2334 }
 0x22f   : > { %v2430_v23 = vsel %vm2428_vm8, %v2269_v58, %v2335_v2  ;;  %v2287_v2 = vld [vmem:[%s4782_s13 + $0x98] sm:$0xff] }
 0x230   : > { %2463 = vst.msk [vmem:[%s4789_s16 + $0x8] sm:$0xff] %vm2461_vm9, %v2430_v23  ;;  %v2174_v63 = vpop.f32.mrf.mxu0  ;;  %v4807_v47 = vpop.f32.mrf.mxu1  ;;  %v2619_v23 = vadd.f32 %v2618_v50, %v2617_v1  ;;  %v2533_v50 = vsel %vm2428_vm8, %v4726_v59, 0.0  ;;  %v2273_v59 = vld [vmem:[%s4782_s13 + $0x28] sm:$0xff] }
 0x231   : > { %2358 = vrot.lane.b32.xlu1 %v2174_v63, %s3462_s29  ;;  %v2576_v15 = vmul.f32 %v2174_v63, %v2174_v63  ;;  %v2519_v55 = vsel %vm2428_vm8, %v2174_v63, 0.0 }
 0x232   : > { %v2176_v44 = vpop.f32.mrf.mxu0  ;;  %v2256_v8 = vpop.f32.mrf.mxu1 }
 0x233   : > { %v2367_v45 = vpop.permute.xlu1 %2366  ;;  %v2620_v34 = vsel %vm2428_vm8, %v2576_v15, 0.0  ;;  %v2630_v15 = vsel %vm2428_vm8, %v2581_v62, 0.0 }
 0x234   : > { %v2446_v25 = vsel %vm2428_vm8, %v2285_v4, %v2367_v45  ;;  %v2520_v4 = vadd.f32 %v2519_v55, %v2518_v24  ;;  %v2621_v56 = vadd.f32 %v2620_v34, %v2619_v23  ;;  %v2584_v55 = vmul.f32 %v4733_v51, %v4733_v51 }
 0x235   : > { %2479 = vst.msk [vmem:[%s4789_s16 + $0x88] sm:$0xff] %vm2461_vm9, %v2446_v25  ;;  %2390 = vrot.lane.b32.xlu1 %v4807_v47, %s3462_s29  ;;  %v2535_v24 = vsel %vm2428_vm8, %v4733_v51, 0.0  ;;  %v2537_v23 = vsel %vm2428_vm8, %v4740_v28, 0.0 }
 0x237   : > { %v2337_v49 = vpop.permute.xlu0 %2336 }
 0x238   : > { %v2431_v61 = vsel %vm2428_vm8, %v2270_v11, %v2337_v49 }
 0x239   : > { %2464 = vst.msk [vmem:[%s4789_s16 + $0x10] sm:$0xff] %vm2461_vm9, %v2431_v61  ;;  %v2525_v61 = vsel %vm2428_vm8, %v4698_v21, 0.0 }
 0x23b   : > { %v2369_v26 = vpop.permute.xlu0 %2368  ;;  %v2179_v9 = vpop.f32.mrf.mxu0 }
 0x23c   : > { %v2447_v5 = vsel %vm2428_vm8, %v2286_v46, %v2369_v26  ;;  %v4831_v43 = vpop.f32.mrf.mxu1  ;;  %2360 = vrot.lane.b32.xlu0 %v2179_v9, %s3462_s29  ;;  %v2577_v41 = vmul.f32 %v2179_v9, %v2179_v9  ;;  %v2521_v58 = vsel %vm2428_vm8, %v2179_v9, 0.0  ;;  %v2628_v9 = vsel %vm2428_vm8, %v2580_v20, 0.0 }
 0x23d   : > { %2480 = vst.msk [vmem:[%s4789_s16 + $0x90] sm:$0xff] %vm2461_vm9, %v2447_v5  ;;  %v2181_v40 = vpop.f32.mrf.mxu0  ;;  %v2522_v45 = vadd.f32 %v2521_v58, %v2520_v4  ;;  %v2586_v4 = vmul.f32 %v4747_v18, %v4747_v18 }
 0x23e   : > { %v2261_v10 = vpop.f32.mrf.mxu1  ;;  %v2622_v63 = vsel %vm2428_vm8, %v2577_v41, 0.0  ;;  %v2531_v40 = vsel %vm2428_vm8, %v4719_v6, 0.0  ;;  %v2634_v6 = vsel %vm2428_vm8, %v2583_v37, 0.0 }
 0x23f   : > { %v2339_v14 = vpop.permute.xlu1 %2338  ;;  %v2623_v17 = vadd.f32 %v2622_v63, %v2621_v56  ;;  %v2632_v10 = vsel %vm2428_vm8, %v2582_v22, 0.0 }
 0x240   : > { %v2432_v48 = vsel %vm2428_vm8, %v2271_v54, %v2339_v14  ;;  %2392 = vrot.lane.b32.xlu0 %v4831_v43, %s3462_s29 }
 0x241   : > { %2465 = vst.msk [vmem:[%s4789_s16 + $0x18] sm:$0xff] %vm2461_vm9, %v2432_v48  ;;  %v2585_v48 = vmul.f32 %v4740_v28, %v4740_v28  ;;  %v2289_v28 = vld [vmem:[%s4782_s13 + $0xa8] sm:$0xff] }
 0x243   : > { %v4850_v44 = vpop.f32.mrf.mxu1  ;;  %v2371_v8 = vpop.permute.xlu1 %2370 }
 0x244   : > { %v2448_v25 = vsel %vm2428_vm8, %v2287_v2, %v2371_v8  ;;  %v2184_v16 = vpop.f32.mrf.mxu0  ;;  %v2636_v2 = vsel %vm2428_vm8, %v2584_v55, 0.0  ;;  %v2553_v55 = vsel %vm2428_vm8, %v4831_v43, 0.0 }
 0x245   : > { %2481 = vst.msk [vmem:[%s4789_s16 + $0x98] sm:$0xff] %vm2461_vm9, %v2448_v25  ;;  %v2523_v11 = vsel %vm2428_vm8, %v2184_v16, 0.0  ;;  %v2578_v3 = vmul.f32 %v2184_v16, %v2184_v16  ;;  %2362 = vrot.lane.b32.xlu1 %v2184_v16, %s3462_s29  ;;  %v2266_v13 = vpop.f32.mrf.mxu1  ;;  %v2539_v25 = vsel %vm2428_vm8, %v4747_v18, 0.0  ;;  %v2587_v16 = vmul.f32 %v4758_v53, %v4758_v53 }
 0x246   : > { %v2524_v49 = vadd.f32 %v2523_v11, %v2522_v45  ;;  %v2186_v33 = vpop.f32.mrf.mxu0  ;;  %v2638_v45 = vsel %vm2428_vm8, %v2585_v48, 0.0  ;;  %v2541_v13 = vsel %vm2428_vm8, %v4758_v53, 0.0  ;;  %v2275_v48 = vld [vmem:[%s4782_s13 + $0x38] sm:$0xff] }
 0x247   : > { %v2624_v31 = vsel %vm2428_vm8, %v2578_v3, 0.0  ;;  %v2640_v3 = vsel %vm2428_vm8, %v2586_v4, 0.0  ;;  %v2642_v20 = vsel %vm2428_vm8, %v2587_v16, 0.0 }
 0x248   : > { %v2526_v12 = vadd.f32 %v2525_v61, %v2524_v49  ;;  %v2625_v46 = vadd.f32 %v2624_v31, %v2623_v17  ;;  %v2588_v17 = vmul.f32 %v4763_v30, %v4763_v30  ;;  %v2543_v31 = vsel %vm2428_vm8, %v4763_v30, 0.0  ;;  %v2274_v30 = vld [vmem:[%s4782_s13 + $0x30] sm:$0xff] }
 0x249   : > { %2394 = vrot.lane.b32.xlu1 %v4850_v44, %s3462_s29 }
 0x24a   : > { %v2528_v21 = vadd.f32 %v2527_v57, %v2526_v12  ;;  %v2627_v29 = vadd.f32 %v2626_v32, %v2625_v46  ;;  %v2341_v26 = vpop.permute.xlu0 %2340  ;;  %v2589_v12 = vmul.f32 %v4768_v7, %v4768_v7  ;;  %v2545_v32 = vsel %vm2428_vm8, %v4768_v7, 0.0 }
 0x24b   : > { %v2433_v5 = vsel %vm2428_vm8, %v2272_v0, %v2341_v26  ;;  %v2644_v0 = vsel %vm2428_vm8, %v2588_v17, 0.0  ;;  %v2590_v57 = vmul.f32 %v4773_v27, %v4773_v27  ;;  %v2547_v26 = vsel %vm2428_vm8, %v4773_v27, 0.0  ;;  %v2290_v27 = vld [vmem:[%s4782_s13 + $0xb0] sm:$0xff] }
 0x24c   : > { %v2530_v36 = vadd.f32 %v2529_v35, %v2528_v21  ;;  %v2629_v60 = vadd.f32 %v2628_v9, %v2627_v29  ;;  %2466 = vst.msk [vmem:[%s4789_s16 + $0x20] sm:$0xff] %vm2461_vm9, %v2433_v5  ;;  %v2646_v29 = vsel %vm2428_vm8, %v2589_v12, 0.0  ;;  %v2591_v9 = vmul.f32 %v4792_v42, %v4792_v42 }
 0x24d   : > { %v2648_v7 = vsel %vm2428_vm8, %v2590_v57, 0.0  ;;  %v2293_v57 = vld [vmem:[%s4782_s13 + $0xc8] sm:$0xff] }
 0x24e   : > { %v2532_v54 = vadd.f32 %v2531_v40, %v2530_v36  ;;  %v2631_v39 = vadd.f32 %v2630_v15, %v2629_v60  ;;  %v2373_v52 = vpop.permute.xlu0 %2372  ;;  %v2549_v36 = vsel %vm2428_vm8, %v4792_v42, 0.0  ;;  %v2592_v60 = vmul.f32 %v4807_v47, %v4807_v47 }
 0x24f   : > { %v2449_v41 = vsel %vm2428_vm8, %v2288_v19, %v2373_v52  ;;  %v2650_v37 = vsel %vm2428_vm8, %v2591_v9, 0.0  ;;  %v2593_v42 = vmul.f32 %v4831_v43, %v4831_v43  ;;  %v2294_v9 = vld [vmem:[%s4782_s13 + $0xd0] sm:$0xff] }
 0x250   : > { %v2534_v14 = vadd.f32 %v2533_v50, %v2532_v54  ;;  %v2633_v1 = vadd.f32 %v2632_v10, %v2631_v39  ;;  %2482 = vst.msk [vmem:[%s4789_s16 + $0xa0] sm:$0xff] %vm2461_vm9, %v2449_v41  ;;  %v2551_v54 = vsel %vm2428_vm8, %v4807_v47, 0.0  ;;  %v2652_v50 = vsel %vm2428_vm8, %v2592_v60, 0.0  ;;  %v2295_v60 = vld [vmem:[%s4782_s13 + $0xd8] sm:$0xff] }
 0x251   : > { %v2594_v41 = vmul.f32 %v4850_v44, %v4850_v44 }
 0x252   : > { %v2536_v34 = vadd.f32 %v2535_v24, %v2534_v14  ;;  %v2635_v58 = vadd.f32 %v2634_v6, %v2633_v1  ;;  %v2654_v6 = vsel %vm2428_vm8, %v2593_v42, 0.0  ;;  %v2555_v24 = vsel %vm2428_vm8, %v4850_v44, 0.0 }
 0x253   : > { %v2343_v63 = vpop.permute.xlu1 %2342 }
 0x254   : > { %v2538_v8 = vadd.f32 %v2537_v23, %v2536_v34  ;;  %v2637_v56 = vadd.f32 %v2636_v2, %v2635_v58  ;;  %v2434_v51 = vsel %vm2428_vm8, %v2273_v59, %v2343_v63  ;;  %v2656_v34 = vsel %vm2428_vm8, %v2594_v41, 0.0  ;;  %v2291_v63 = vld [vmem:[%s4782_s13 + $0xb8] sm:$0xff] }
 0x255   : > { %2467 = vst.msk [vmem:[%s4789_s16 + $0x28] sm:$0xff] %vm2461_vm9, %v2434_v51 }
 0x256   : > { %v2540_v38 = vadd.f32 %v2539_v25, %v2538_v8  ;;  %v2639_v11 = vadd.f32 %v2638_v45, %v2637_v56 }
 0x257   : > { %v2375_v49 = vpop.permute.xlu1 %2374 }
 0x258   : > { %v2542_v18 = vadd.f32 %v2541_v13, %v2540_v38  ;;  %v2641_v33 = vadd.f32 %v2640_v3, %v2639_v11  ;;  %v2450_v61 = vsel %vm2428_vm8, %v2289_v28, %v2375_v49  ;;  %v2276_v3 = vld [vmem:[%s4782_s13 + $0x40] sm:$0xff] }
 0x259   : > { %2483 = vst.msk [vmem:[%s4789_s16 + $0xa8] sm:$0xff] %vm2461_vm9, %v2450_v61  ;;  %v2292_v61 = vld [vmem:[%s4782_s13 + $0xc0] sm:$0xff] }
 0x25a   : > { %v2544_v53 = vadd.f32 %v2543_v31, %v2542_v18  ;;  %v2643_v46 = vadd.f32 %v2642_v20, %v2641_v33 }
 0x25c   : > { %v2546_v62 = vadd.f32 %v2545_v32, %v2544_v53  ;;  %v2645_v21 = vadd.f32 %v2644_v0, %v2643_v46  ;;  %v2277_v46 = vld [vmem:[%s4782_s13 + $0x48] sm:$0xff] }
 0x25e   : > { %v2548_v35 = vadd.f32 %v2547_v26, %v2546_v62  ;;  %v2647_v22 = vadd.f32 %v2646_v29, %v2645_v21  ;;  %v2345_v5 = vpop.permute.xlu0 %2344 }
 0x25f   : > { %v2435_v19 = vsel %vm2428_vm8, %v2274_v30, %v2345_v5  ;;  %v2278_v30 = vld [vmem:[%s4782_s13 + $0x50] sm:$0xff]  ;;  %v2279_v5 = vld [vmem:[%s4782_s13 + $0x58] sm:$0xff] }
 0x260   : > { %v2550_v15 = vadd.f32 %v2549_v36, %v2548_v35  ;;  %v2649_v40 = vadd.f32 %v2648_v7, %v2647_v22  ;;  %2468 = vst.msk [vmem:[%s4789_s16 + $0x30] sm:$0xff] %vm2461_vm9, %v2435_v19 }
 0x262   : > { %v2552_v39 = vadd.f32 %v2551_v54, %v2550_v15  ;;  %v2651_v52 = vadd.f32 %v2650_v37, %v2649_v40  ;;  %v2377_v10 = vpop.permute.xlu0 %2376  ;;  %v2280_v40 = vld [vmem:[%s4782_s13 + $0x60] sm:$0xff] }
 0x263   : > { %v2451_v14 = vsel %vm2428_vm8, %v2290_v27, %v2377_v10  ;;  %v2296_v54 = vld [vmem:[%s4782_s13 + $0xe0] sm:$0xff] }
 0x264   : > { %v2554_v1 = vadd.f32 %v2553_v55, %v2552_v39  ;;  %v2653_v47 = vadd.f32 %v2652_v50, %v2651_v52  ;;  %2484 = vst.msk [vmem:[%s4789_s16 + $0xb0] sm:$0xff] %vm2461_vm9, %v2451_v14  ;;  %v2281_v52 = vld [vmem:[%s4782_s13 + $0x68] sm:$0xff] }
 0x265   : > { %v2297_v55 = vld [vmem:[%s4782_s13 + $0xe8] sm:$0xff] }
 0x266   : > { %v2556_v59 = vadd.f32 %v2555_v24, %v2554_v1  ;;  %v2655_v43 = vadd.f32 %v2654_v6, %v2653_v47  ;;  %v2282_v1 = vld [vmem:[%s4782_s13 + $0x70] sm:$0xff] }
 0x267   : > { %v2347_v58 = vpop.permute.xlu1 %2346  ;;  %v2298_v24 = vld [vmem:[%s4782_s13 + $0xf0] sm:$0xff] }
 0x268   : > { %v2557_v2 = vrot.slane %v2556_v59, 4  ;;  %v2657_v23 = vadd.f32 %v2656_v34, %v2655_v43  ;;  %v2436_v4 = vsel %vm2428_vm8, %v2275_v48, %v2347_v58  ;;  %v2283_v43 = vld [vmem:[%s4782_s13 + $0x78] sm:$0xff] }
 0x269   : > { %2469 = vst.msk [vmem:[%s4789_s16 + $0x38] sm:$0xff] %vm2461_vm9, %v2436_v4 }
 0x26a   : > { %v2558_v8 = vadd.f32 %v2557_v2, %v2556_v59  ;;  %v2658_v56 = vrot.slane %v2657_v23, 4  ;;  %v2299_v2 = vld [vmem:[%s4782_s13 + $0xf8] sm:$0xff] }
 0x26b   : > { %v2379_v51 = vpop.permute.xlu1 %2378 }
 0x26c   : > { %v2559_v44 = vrot.slane %v2558_v8, 2  ;;  %v2659_v45 = vadd.f32 %v2658_v56, %v2657_v23  ;;  %v2452_v25 = vsel %vm2428_vm8, %v2291_v63, %v2379_v51 }
 0x26d   : > { %2485 = vst.msk [vmem:[%s4789_s16 + $0xb8] sm:$0xff] %vm2461_vm9, %v2452_v25 }
 0x26e   : > { %v2560_v16 = vadd.f32 %v2559_v44, %v2558_v8  ;;  %v2660_v28 = vrot.slane %v2659_v45, 2 }
 0x270   : > { %v2561_v38 = vrot.slane %v2560_v16, 1  ;;  %v2661_v11 = vadd.f32 %v2660_v28, %v2659_v45 }
 0x272   : > { %v2662_v13 = vrot.slane %v2661_v11, 1  ;;  %v2349_v17 = vpop.permute.xlu0 %2348  ;;  %v2562_v18 = vadd.f32 %v2561_v38, %v2560_v16 }
 0x273   : > { %v2437_v49 = vsel %vm2428_vm8, %v2276_v3, %v2349_v17 }
 0x274   : > { %v2663_v33 = vadd.f32 %v2662_v13, %v2661_v11  ;;  %2470 = vst.msk [vmem:[%s4789_s16 + $0x40] sm:$0xff] %vm2461_vm9, %v2437_v49 }
 0x276   : > { %v2665_v20 = vsel %vm2664_vm10, %v2562_v18, %v2663_v33  ;;  %v2381_v31 = vpop.permute.xlu0 %2380 }
 0x277   : > { %v2667_v12 = vsel %vm2666_vm11, %v2665_v20, 0.0  ;;  %v2453_v53 = vsel %vm2428_vm8, %v2292_v61, %v2381_v31 }
 0x278   : > { %2668 = vst.msk [vmem:[%s282_s22] sm:$0xff] %vm2428_vm8, %v2667_v12 }
 0x279   : > { %2486 = vst.msk [vmem:[%s4789_s16 + $0xc0] sm:$0xff] %vm2461_vm9, %v2453_v53 }
 0x27b   : > { %v2351_v0 = vpop.permute.xlu1 %2350 }
 0x27c   : > { %v2438_v32 = vsel %vm2428_vm8, %v2277_v46, %v2351_v0 }
 0x27d   : > { %2471 = vst.msk [vmem:[%s4789_s16 + $0x48] sm:$0xff] %vm2461_vm9, %v2438_v32 }
 0x27f   : > { %v2383_v62 = vpop.permute.xlu1 %2382 }
 0x280   : > { %v2454_v21 = vsel %vm2428_vm8, %v2293_v57, %v2383_v62 }
 0x281   : > { %2487 = vst.msk [vmem:[%s4789_s16 + $0xc8] sm:$0xff] %vm2461_vm9, %v2454_v21 }
 0x286   : > { %v2353_v29 = vpop.permute.xlu0 %2352 }
 0x287   : > { %v2439_v26 = vsel %vm2428_vm8, %v2278_v30, %v2353_v29 }
 0x288   : > { %2472 = vst.msk [vmem:[%s4789_s16 + $0x50] sm:$0xff] %vm2461_vm9, %v2439_v26 }
 0x28a   : > { %v2385_v35 = vpop.permute.xlu0 %2384 }
 0x28b   : > { %v2455_v22 = vsel %vm2428_vm8, %v2294_v9, %v2385_v35 }
 0x28c   : > { %2488 = vst.msk [vmem:[%s4789_s16 + $0xd0] sm:$0xff] %vm2461_vm9, %v2455_v22 }
 0x28f   : > { %v2355_v7 = vpop.permute.xlu1 %2354 }
 0x290   : > { %v2440_v36 = vsel %vm2428_vm8, %v2279_v5, %v2355_v7 }
 0x291   : > { %2473 = vst.msk [vmem:[%s4789_s16 + $0x58] sm:$0xff] %vm2461_vm9, %v2440_v36 }
 0x293   : > { %v2387_v19 = vpop.permute.xlu1 %2386 }
 0x294   : > { %v2456_v15 = vsel %vm2428_vm8, %v2295_v60, %v2387_v19 }
 0x295   : > { %2489 = vst.msk [vmem:[%s4789_s16 + $0xd8] sm:$0xff] %vm2461_vm9, %v2456_v15 }
 0x29a   : > { %v2357_v27 = vpop.permute.xlu0 %2356 }
 0x29b   : > { %v2441_v37 = vsel %vm2428_vm8, %v2280_v40, %v2357_v27 }
 0x29c   : > { %2474 = vst.msk [vmem:[%s4789_s16 + $0x60] sm:$0xff] %vm2461_vm9, %v2441_v37 }
 0x29e   : > { %v2389_v42 = vpop.permute.xlu0 %2388 }
 0x29f   : > { %v2457_v39 = vsel %vm2428_vm8, %v2296_v54, %v2389_v42 }
 0x2a0   : > { %2490 = vst.msk [vmem:[%s4789_s16 + $0xe0] sm:$0xff] %vm2461_vm9, %v2457_v39 }
 0x2a3   : > { %v2359_v10 = vpop.permute.xlu1 %2358 }
 0x2a4   : > { %v2442_v50 = vsel %vm2428_vm8, %v2281_v52, %v2359_v10 }
 0x2a5   : > { %2475 = vst.msk [vmem:[%s4789_s16 + $0x68] sm:$0xff] %vm2461_vm9, %v2442_v50 }
 0x2a7   : > { %v2391_v41 = vpop.permute.xlu1 %2390 }
 0x2a8   : > { %v2458_v14 = vsel %vm2428_vm8, %v2297_v55, %v2391_v41 }
 0x2a9   : > { %2491 = vst.msk [vmem:[%s4789_s16 + $0xe8] sm:$0xff] %vm2461_vm9, %v2458_v14 }
 0x2ae   : > { %v2361_v47 = vpop.permute.xlu0 %2360 }
 0x2af   : > { %v2443_v6 = vsel %vm2428_vm8, %v2282_v1, %v2361_v47 }
 0x2b0   : > { %2476 = vst.msk [vmem:[%s4789_s16 + $0x70] sm:$0xff] %vm2461_vm9, %v2443_v6 }
 0x2b2   : > { %v2393_v48 = vpop.permute.xlu0 %2392 }
 0x2b3   : > { %v2459_v59 = vsel %vm2428_vm8, %v2298_v24, %v2393_v48 }
 0x2b4   : > { %2492 = vst.msk [vmem:[%s4789_s16 + $0xf0] sm:$0xff] %vm2461_vm9, %v2459_v59 }
 0x2b7   : > { %v2363_v34 = vpop.permute.xlu1 %2362 }
 0x2b8   : > { %v2444_v58 = vsel %vm2428_vm8, %v2283_v43, %v2363_v34 }
 0x2b9   : > { %2477 = vst.msk [vmem:[%s4789_s16 + $0x78] sm:$0xff] %vm2461_vm9, %v2444_v58 }
 0x2bb   : > { %v2395_v23 = vpop.permute.xlu1 %2394 }
 0x2bc   : > { %v2460_v4 = vsel %vm2428_vm8, %v2299_v2, %v2395_v23 }
 0x2bd   : > { %2493 = vst.msk [vmem:[%s4789_s16 + $0xf8] sm:$0xff] %vm2461_vm9, %v2460_v4 }
 0x2be PF: > { %s17_s21 = sadd.s32 1, %s3452_s21  }
 0x2bf   : > { %p14_p4 = scmp.ge.s32.totalorder %s17_s21, 4  }
 0x2c1   :  { %16 = sbr.rel (!%p14_p4) target bundleno = 1 (0x1), region = 87 }

// kernel: dense_block_forward.7
= control target key start
LH: loop header
LB: loop body
LE: loop exit
PB: predicated region body
PF: predicated region fallthrough
CT: control target
= control target key end

     0   :  { %12 = vsyncpa [#allocation4], 0  ;;  %s5226_s0 = inlined_call_operand.vmem [shape: f32[2,16,16,8], index: 0, kind: input, shape index: {}]   ;;  %s5227_s1 = inlined_call_operand.vmem [shape: f32[2,16,16,16], index: 1, kind: input, shape index: {}]   ;;  %s5228_s2 = inlined_call_operand.vmem [shape: f32[1,1,16], index: 2, kind: input, shape index: {}]   ;;  %s5229_s3 = inlined_call_operand.vmem [shape: f32[1,1,16], index: 3, kind: input, shape index: {}]   ;;  %s5230_s4 = inlined_call_operand.vmem [shape: f32[144,4], index: 4, kind: input, shape index: {}]   ;;  %s5231_s5 = inlined_call_operand.vmem [shape: f32[2,16,16,12], index: 5, kind: output, shape index: {0}]   ;;  %s5232_s6 = inlined_call_operand.hbm [shape: f32[2,8,4], index: 6, kind: output, shape index: {1}]  }
   0x1   :  { %14 = vsyncpa [#allocation4 + $0x1], 0  ;;  %s3606_s21 = smov 0   ;;  %s3608_s22 = smov 0  }
   0x2   :  { %s3610_s23 = smov 0   ;;  %s3612_s24 = smov 0  }
   0x3 LB: > { %s3627_s25 = sadd.s32 4294967295, %s3559_s24   ;;  %s2788_s26 = sadd.s32 4294967294, %s3559_s24   ;;  %s3559_s24 = sphi %s3612_s24, %s5286_s24   ;;  %s3555_s23 = sphi %s3610_s23, %s5285_s23   ;;  %s3551_s22 = sphi %s3608_s22, %s5284_s22   ;;  %s3547_s21 = sphi %s3606_s21, %s5283_s21  }
   0x4   : > { %s3631_s27 = sadd.s32 1, %s3559_s24   ;;  %s168_s28 = sadd.s32 1, %s3555_s23 }
   0x5   : > { %s165_s29 = ssub.s32 %s3559_s24, %s3631_s27  ;;  %p178_p0 = scmp.ne.s32.totalorder %s3555_s23, %s3551_s22 }
   0x6   : > { %p166_p1 = scmp.eq.s32.totalorder %s165_s29, 0  ;;  %p179_p2 = scmp.eq.s32.totalorder %s3627_s25, 1 }
   0x7   : > { %p184_p3 = scmp.ne.s32.totalorder %s3551_s22, %s3547_s21  ;;  %p185_p4 = scmp.eq.s32.totalorder %s2788_s26, 1 }
   0x8   : > { %s3642_s30 = scalar_select %p166_p1, %s3555_s23, %s168_s28  }
   0x9   : > { %p3644_p5 = por %p179_p2, %p178_p0  ;;  %p3648_p6 = por %p185_p4, %p184_p3 }
   0xa   : > { %p2791_p7 = scmp.ge.s32.totalorder %s3559_s24, 1  ;;  %p228_p8 = scmp.lt.s32.totalorder %s3559_s24, 3 }
   0xc   : > { %p229_p9 = pnand %p2791_p7, %p228_p8 }
   0xe   : > { %232 = sbr.rel (%p229_p9) target bundleno = 710 (0x2c6), region = 40 }
  0x13   : > { %vm283_vm0 = vcmask 130048   ;;  %vm286_vm1 = vcmask 123904   ;;  %p268_p10 = scmp.lt.s32.totalorder %s3627_s25, 1  ;;  %v3561_v0 = vmov 0.0   ;;  %v3773_v1 = vld [vmem:[%s5228_s2] ss:$0 sm:$0xff] }
  0x14   : > { %284 = vst.msk [vmem:[#allocation2] sm:$0xff] %vm283_vm0, %v3561_v0  ;;  %285 = vst.msk [vmem:[#allocation2 + $0x8] sm:$0xff] %vm283_vm0, %v3561_v0  ;;  %2043 = vmatprep.subr.mxu0 %v3561_v0  ;;  %2840 = vmatprep.subr.mxu1 %v3561_v0  ;;  %v3784_v2 = vld [vmem:[%s5229_s3] ss:$0 sm:$0xff]  ;;  %s3562_s18 = smov 16   ;;  %s3563_s19 = smov 32  }
  0x15   : > { %287 = vst.msk [vmem:[#allocation2 + $0x10] sm:$0x3] %vm286_vm1, %v3561_v0  ;;  %290 = vst.msk [vmem:[#allocation2 + $0x28] sm:$0x3] %vm286_vm1, %v3561_v0  ;;  %s269_s9 = scalar_select %p268_p10, %s3627_s25, 1  ;;  %vm1731_vm2 = vcmask 261120  }
  0x16   : > { %288 = vst.msk [vmem:[#allocation2 + $0x18] sm:$0xff] %vm283_vm0, %v3561_v0  ;;  %289 = vst.msk [vmem:[#allocation2 + $0x20] sm:$0xff] %vm283_vm0, %v3561_v0  ;;  %s3565_s11 = smov 64   ;;  %s3566_s12 = smov 80   ;;  %vm1764_vm3 = vcmask 392192   ;;  %vm1797_vm4 = vcmask 523264  }
  0x17   : > { %291 = vst.msk [vmem:[#allocation2 + $0x30] sm:$0xff] %vm283_vm0, %v3561_v0  ;;  %292 = vst.msk [vmem:[#allocation2 + $0x38] sm:$0xff] %vm283_vm0, %v3561_v0  ;;  %s3768_s10 = sshll.u32 %s269_s9, 8  ;;  %s3567_s14 = smov 96   ;;  %vm1830_vm5 = vcmask 654336   ;;  %vm1863_vm6 = vcmask 785408  }
  0x18   : > { %293 = vst.msk [vmem:[#allocation2 + $0x40] sm:$0x3] %vm286_vm1, %v3561_v0  ;;  %296 = vst.msk [vmem:[#allocation2 + $0x58] sm:$0x3] %vm286_vm1, %v3561_v0  ;;  %s3779_s15 = scalar_lea.vmem %s5227_s1, %s3768_s10  ;;  %vm1896_vm7 = vcmask 916480   ;;  %vm2494_vm8 = vcmask 31744   ;;  %s4921_s9 = scalar_lea.vmem %s5226_s0, %s3768_s10 }
  0x19   : > { %294 = vst.msk [vmem:[#allocation2 + $0x48] sm:$0xff] %vm283_vm0, %v3561_v0  ;;  %295 = vst.msk [vmem:[#allocation2 + $0x50] sm:$0xff] %vm283_vm0, %v3561_v0  ;;  %v341_v3 = vld [vmem:[%s3779_s15 + $0x10] sm:$0xff]  ;;  %v342_v4 = vld [vmem:[%s3779_s15 + $0x18] sm:$0xff]  ;;  %vm2428_vm9 = vcmask 64512   ;;  %s4928_s13 = scalar_lea.vmem %s5231_s5, %s3768_s10  ;;  %vm2461_vm10 = vcmask 97280  }
  0x1a   : > { %297 = vst.msk [vmem:[#allocation2 + $0x60] sm:$0xff] %vm283_vm0, %v3561_v0  ;;  %298 = vst.msk [vmem:[#allocation2 + $0x68] sm:$0xff] %vm283_vm0, %v3561_v0  ;;  %v339_v5 = vld [vmem:[%s3779_s15] sm:$0xff]  ;;  %v380_v6 = vmul.f32 %v3773_v1, %v341_v3  ;;  %v381_v7 = vmul.f32 %v3773_v1, %v342_v4  ;;  %v340_v8 = vld [vmem:[%s3779_s15 + $0x8] sm:$0xff]  ;;  %s265_s10 = sand.u32 1, %s3551_s22   ;;  %vm2665_vm11 = vcmask 1040384  }
  0x1b   : > { %299 = vst.msk [vmem:[#allocation2 + $0x70] sm:$0x3] %vm286_vm1, %v3561_v0  ;;  %302 = vst.msk [vmem:[#allocation2 + $0x88] sm:$0x3] %vm286_vm1, %v3561_v0  ;;  %v378_v9 = vmul.f32 %v3773_v1, %v339_v5  ;;  %v343_v10 = vld [vmem:[%s3779_s15 + $0x20] sm:$0xff]  ;;  %v344_v11 = vld [vmem:[%s3779_s15 + $0x28] sm:$0xff]  ;;  %v379_v14 = vmul.f32 %v3773_v1, %v340_v8 }
  0x1c   : > { %300 = vst.msk [vmem:[#allocation2 + $0x78] sm:$0xff] %vm283_vm0, %v3561_v0  ;;  %301 = vst.msk [vmem:[#allocation2 + $0x80] sm:$0xff] %vm283_vm0, %v3561_v0  ;;  %v546_v12 = vld [vmem:[#allocation2 + $0x1] sm:$0xff]  ;;  %v547_v13 = vld [vmem:[#allocation2 + $0x9] sm:$0xff]  ;;  %v382_v15 = vmul.f32 %v3773_v1, %v343_v10  ;;  %v383_v16 = vmul.f32 %v3773_v1, %v344_v11  ;;  %v419_v19 = vadd.f32 %v3784_v2, %v380_v6  ;;  %vm2667_vm12 = vcmask 1041408   ;;  %s3570_s28 = smov [#allocation3]  }
  0x1d   : > { %303 = vst.msk [vmem:[#allocation2 + $0x90] sm:$0xff] %vm283_vm0, %v3561_v0  ;;  %304 = vst.msk [vmem:[#allocation2 + $0x98] sm:$0xff] %vm283_vm0, %v3561_v0  ;;  %v345_v17 = vld [vmem:[%s3779_s15 + $0x30] sm:$0xff]  ;;  %v2924_v18 = vpack.i.bf16 %v547_v13, %v546_v12  ;;  %v420_v20 = vadd.f32 %v3784_v2, %v381_v7  ;;  %v417_v21 = vadd.f32 %v3784_v2, %v378_v9  ;;  %v346_v22 = vld [vmem:[%s3779_s15 + $0x38] sm:$0xff]  ;;  %s3503_s29 = sshll.u32 %s3570_s28, 4  ;;  %s3504_s29 = int_to_ptr.vmem [resolvable:$false] %s3503_s29 }
  0x1e   : > { %305 = vst.msk [vmem:[#allocation2 + $0xa0] sm:$0x3] %vm286_vm1, %v3561_v0  ;;  %308 = vst.msk [vmem:[#allocation2 + $0xb8] sm:$0x3] %vm286_vm1, %v3561_v0  ;;  %v418_v23 = vadd.f32 %v3784_v2, %v379_v14  ;;  %v421_v24 = vadd.f32 %v3784_v2, %v382_v15  ;;  %v422_v25 = vadd.f32 %v3784_v2, %v383_v16  ;;  %v347_v27 = vld [vmem:[%s3779_s15 + $0x40] sm:$0xff]  ;;  %v348_v28 = vld [vmem:[%s3779_s15 + $0x48] sm:$0xff] }
  0x1f   : > { %306 = vst.msk [vmem:[#allocation2 + $0xa8] sm:$0xff] %vm283_vm0, %v3561_v0  ;;  %307 = vst.msk [vmem:[#allocation2 + $0xb0] sm:$0xff] %vm283_vm0, %v3561_v0  ;;  %v384_v26 = vmul.f32 %v3773_v1, %v345_v17  ;;  %v349_v29 = vld [vmem:[%s3779_s15 + $0x50] sm:$0xff]  ;;  %2925 = vrot.lane.b32.xlu0 %v2924_v18, %s3562_s18  ;;  %v451_v30 = vmax.f32 %v419_v19, 0.0  ;;  %v452_v31 = vmax.f32 %v420_v20, 0.0  ;;  %v449_v32 = vmax.f32 %v417_v21, 0.0 }
  0x20   : > { %309 = vst.msk [vmem:[#allocation2 + $0xc0] sm:$0xff] %vm283_vm0, %v3561_v0  ;;  %310 = vst.msk [vmem:[#allocation2 + $0xc8] sm:$0xff] %vm283_vm0, %v3561_v0  ;;  %v385_v33 = vmul.f32 %v3773_v1, %v346_v22  ;;  %v350_v34 = vld [vmem:[%s3779_s15 + $0x58] sm:$0xff]  ;;  %v351_v35 = vld [vmem:[%s3779_s15 + $0x60] sm:$0xff]  ;;  %v450_v37 = vmax.f32 %v418_v23, 0.0  ;;  %v453_v38 = vmax.f32 %v421_v24, 0.0  ;;  %v386_v42 = vmul.f32 %v3773_v1, %v347_v27 }
  0x21   : > { %311 = vst.msk [vmem:[#allocation2 + $0xd0] sm:$0x3] %vm286_vm1, %v3561_v0  ;;  %314 = vst.msk [vmem:[#allocation2 + $0xe8] sm:$0x3] %vm286_vm1, %v3561_v0  ;;  %v352_v36 = vld [vmem:[%s3779_s15 + $0x68] sm:$0xff]  ;;  %v454_v39 = vmax.f32 %v422_v25, 0.0  ;;  %v423_v40 = vadd.f32 %v3784_v2, %v384_v26  ;;  %v387_v43 = vmul.f32 %v3773_v1, %v348_v28  ;;  %v388_v44 = vmul.f32 %v3773_v1, %v349_v29 }
  0x22   : > { %312 = vst.msk [vmem:[#allocation2 + $0xd8] sm:$0xff] %vm283_vm0, %v3561_v0  ;;  %313 = vst.msk [vmem:[#allocation2 + $0xe0] sm:$0xff] %vm283_vm0, %v3561_v0  ;;  %v424_v41 = vadd.f32 %v3784_v2, %v385_v33  ;;  %v353_v45 = vld [vmem:[%s3779_s15 + $0x70] sm:$0xff]  ;;  %v389_v47 = vmul.f32 %v3773_v1, %v350_v34  ;;  %v390_v48 = vmul.f32 %v3773_v1, %v351_v35  ;;  %v354_v50 = vld [vmem:[%s3779_s15 + $0x78] sm:$0xff] }
  0x23   : > { %315 = vst.msk [vmem:[#allocation2 + $0xf0] sm:$0xff] %vm283_vm0, %v3561_v0  ;;  %316 = vst.msk [vmem:[#allocation2 + $0xf8] sm:$0xff] %vm283_vm0, %v3561_v0  ;;  %v455_v46 = vmax.f32 %v423_v40, 0.0  ;;  %v391_v49 = vmul.f32 %v3773_v1, %v352_v36  ;;  %v425_v52 = vadd.f32 %v3784_v2, %v386_v42  ;;  %v426_v53 = vadd.f32 %v3784_v2, %v387_v43  ;;  %v355_v59 = vld [vmem:[%s3779_s15 + $0x80] sm:$0xff]  ;;  %v356_v60 = vld [vmem:[%s3779_s15 + $0x88] sm:$0xff] }
  0x24   : > { %317 = vst.msk [vmem:[#allocation2 + $0x100] sm:$0x3] %vm286_vm1, %v3561_v0  ;;  %320 = vst.msk [vmem:[#allocation2 + $0x118] sm:$0x3] %vm286_vm1, %v3561_v0  ;;  %v456_v51 = vmax.f32 %v424_v41, 0.0  ;;  %v427_v54 = vadd.f32 %v3784_v2, %v388_v44  ;;  %v428_v55 = vadd.f32 %v3784_v2, %v389_v47  ;;  %v429_v56 = vadd.f32 %v3784_v2, %v390_v48  ;;  %v357_v61 = vld [vmem:[%s3779_s15 + $0x90] sm:$0xff] }
  0x25   : > { %318 = vst.msk [vmem:[#allocation2 + $0x108] sm:$0xff] %vm283_vm0, %v3561_v0  ;;  %319 = vst.msk [vmem:[#allocation2 + $0x110] sm:$0xff] %vm283_vm0, %v3561_v0  ;;  %v430_v57 = vadd.f32 %v3784_v2, %v391_v49  ;;  %v392_v58 = vmul.f32 %v3773_v1, %v353_v45  ;;  %v457_v62 = vmax.f32 %v425_v52, 0.0  ;;  %v458_v63 = vmax.f32 %v426_v53, 0.0  ;;  %v358_v5 = vld [vmem:[%s3779_s15 + $0x98] sm:$0xff]  ;;  %v359_v6 = vld [vmem:[%s3779_s15 + $0xa0] sm:$0xff] }
  0x26   : > { %321 = vst.msk [vmem:[#allocation2 + $0x120] sm:$0xff] %vm283_vm0, %v3561_v0  ;;  %322 = vst.msk [vmem:[#allocation2 + $0x128] sm:$0xff] %vm283_vm0, %v3561_v0  ;;  %v459_v3 = vmax.f32 %v427_v54, 0.0  ;;  %v393_v4 = vmul.f32 %v3773_v1, %v354_v50  ;;  %v360_v7 = vld [vmem:[%s3779_s15 + $0xa8] sm:$0xff]  ;;  %v460_v8 = vmax.f32 %v428_v55, 0.0  ;;  %v461_v9 = vmax.f32 %v429_v56, 0.0 }
  0x27   : > { %323 = vst.msk [vmem:[#allocation2 + $0x130] sm:$0x3] %vm286_vm1, %v3561_v0  ;;  %326 = vst.msk [vmem:[#allocation2 + $0x148] sm:$0x3] %vm286_vm1, %v3561_v0  ;;  %v462_v10 = vmax.f32 %v430_v57, 0.0  ;;  %v431_v11 = vadd.f32 %v3784_v2, %v392_v58  ;;  %v394_v13 = vmul.f32 %v3773_v1, %v355_v59  ;;  %v395_v14 = vmul.f32 %v3773_v1, %v356_v60  ;;  %v361_v16 = vld [vmem:[%s3779_s15 + $0xb0] sm:$0xff] }
  0x28   : > { %324 = vst.msk [vmem:[#allocation2 + $0x138] sm:$0xff] %vm283_vm0, %v3561_v0  ;;  %325 = vst.msk [vmem:[#allocation2 + $0x140] sm:$0xff] %vm283_vm0, %v3561_v0  ;;  %v432_v12 = vadd.f32 %v3784_v2, %v393_v4  ;;  %v396_v15 = vmul.f32 %v3773_v1, %v357_v61  ;;  %v362_v17 = vld [vmem:[%s3779_s15 + $0xb8] sm:$0xff]  ;;  %v397_v22 = vmul.f32 %v3773_v1, %v358_v5  ;;  %v363_v36 = vld [vmem:[%s3779_s15 + $0xc0] sm:$0xff] }
  0x29   : > { %327 = vst.msk [vmem:[#allocation2 + $0x150] sm:$0xff] %vm283_vm0, %v3561_v0  ;;  %328 = vst.msk [vmem:[#allocation2 + $0x158] sm:$0xff] %vm283_vm0, %v3561_v0  ;;  %v463_v21 = vmax.f32 %v431_v11, 0.0  ;;  %v398_v23 = vmul.f32 %v3773_v1, %v359_v6  ;;  %v399_v24 = vmul.f32 %v3773_v1, %v360_v7  ;;  %v364_v42 = vld [vmem:[%s3779_s15 + $0xc8] sm:$0xff]  ;;  %v365_v43 = vld [vmem:[%s3779_s15 + $0xd0] sm:$0xff]  ;;  %v400_v47 = vmul.f32 %v3773_v1, %v361_v16 }
  0x2a   : > { %329 = vst.msk [vmem:[#allocation2 + $0x160] sm:$0x3] %vm286_vm1, %v3561_v0  ;;  %332 = vst.msk [vmem:[#allocation2 + $0x178] sm:$0x3] %vm286_vm1, %v3561_v0  ;;  %v464_v29 = vmax.f32 %v432_v12, 0.0  ;;  %v435_v34 = vadd.f32 %v3784_v2, %v396_v15  ;;  %v436_v35 = vadd.f32 %v3784_v2, %v397_v22  ;;  %v401_v48 = vmul.f32 %v3773_v1, %v362_v17  ;;  %v366_v49 = vld [vmem:[%s3779_s15 + $0xd8] sm:$0xff] }
  0x2b   : > { %330 = vst.msk [vmem:[#allocation2 + $0x168] sm:$0xff] %vm283_vm0, %v3561_v0  ;;  %331 = vst.msk [vmem:[#allocation2 + $0x170] sm:$0xff] %vm283_vm0, %v3561_v0  ;;  %v437_v40 = vadd.f32 %v3784_v2, %v398_v23  ;;  %v438_v41 = vadd.f32 %v3784_v2, %v399_v24  ;;  %v367_v50 = vld [vmem:[%s3779_s15 + $0xe0] sm:$0xff]  ;;  %v402_v54 = vmul.f32 %v3773_v1, %v363_v36  ;;  %v368_v5 = vld [vmem:[%s3779_s15 + $0xe8] sm:$0xff] }
  0x2c   : > { %333 = vst.msk [vmem:[#allocation2 + $0x180] sm:$0xff] %vm283_vm0, %v3561_v0  ;;  %334 = vst.msk [vmem:[#allocation2 + $0x188] sm:$0xff] %vm283_vm0, %v3561_v0  ;;  %v467_v45 = vmax.f32 %v435_v34, 0.0  ;;  %v439_v58 = vadd.f32 %v3784_v2, %v400_v47  ;;  %v440_v59 = vadd.f32 %v3784_v2, %v401_v48  ;;  %v403_v60 = vmul.f32 %v3773_v1, %v364_v42 }
  0x2d   : > { %335 = vst.msk [vmem:[#allocation2 + $0x190] sm:$0x3] %vm286_vm1, %v3561_v0  ;;  %338 = vst.msk [vmem:[#allocation2 + $0x1a8] sm:$0x3] %vm286_vm1, %v3561_v0  ;;  %v469_v52 = vmax.f32 %v437_v40, 0.0  ;;  %v470_v53 = vmax.f32 %v438_v41, 0.0  ;;  %v404_v61 = vmul.f32 %v3773_v1, %v365_v43  ;;  %v405_v4 = vmul.f32 %v3773_v1, %v366_v49 }
  0x2e   : > { %336 = vst.msk [vmem:[#allocation2 + $0x198] sm:$0xff] %vm283_vm0, %v3561_v0  ;;  %337 = vst.msk [vmem:[#allocation2 + $0x1a0] sm:$0xff] %vm283_vm0, %v3561_v0  ;;  %v406_v6 = vmul.f32 %v3773_v1, %v367_v50  ;;  %v472_v11 = vmax.f32 %v440_v59, 0.0 }
  0x2f   : > { %484 = vst.msk [vmem:[#allocation2 + $0x31] sm:$0xff] %vm283_vm0, %v451_v30  ;;  %485 = vst.msk [vmem:[#allocation2 + $0x39] sm:$0xff] %vm283_vm0, %v452_v31  ;;  %v433_v30 = vadd.f32 %v3784_v2, %v394_v13  ;;  %v434_v31 = vadd.f32 %v3784_v2, %v395_v14  ;;  %v442_v13 = vadd.f32 %v3784_v2, %v403_v60 }
  0x30   : > { %482 = vst.msk [vmem:[#allocation2 + $0x19] sm:$0xff] %vm283_vm0, %v449_v32  ;;  %483 = vst.msk [vmem:[#allocation2 + $0x21] sm:$0xff] %vm283_vm0, %v450_v37  ;;  %v443_v15 = vadd.f32 %v3784_v2, %v404_v61  ;;  %v444_v16 = vadd.f32 %v3784_v2, %v405_v4  ;;  %v445_v22 = vadd.f32 %v3784_v2, %v406_v6 }
  0x31   : > { %486 = vst.msk [vmem:[#allocation2 + $0x49] sm:$0xff] %vm283_vm0, %v453_v38  ;;  %487 = vst.msk [vmem:[#allocation2 + $0x51] sm:$0xff] %vm283_vm0, %v454_v39  ;;  %v465_v38 = vmax.f32 %v433_v30, 0.0  ;;  %v466_v39 = vmax.f32 %v434_v31, 0.0  ;;  %v474_v24 = vmax.f32 %v442_v13, 0.0 }
  0x32   : > { %488 = vst.msk [vmem:[#allocation2 + $0x61] sm:$0xff] %vm283_vm0, %v455_v46  ;;  %489 = vst.msk [vmem:[#allocation2 + $0x69] sm:$0xff] %vm283_vm0, %v456_v51  ;;  %v468_v46 = vmax.f32 %v436_v35, 0.0  ;;  %v477_v34 = vmax.f32 %v445_v22, 0.0 }
  0x33   : > { %490 = vst.msk [vmem:[#allocation2 + $0x79] sm:$0xff] %vm283_vm0, %v457_v62  ;;  %491 = vst.msk [vmem:[#allocation2 + $0x81] sm:$0xff] %vm283_vm0, %v458_v63 }
  0x34   : > { %492 = vst.msk [vmem:[#allocation2 + $0x91] sm:$0xff] %vm283_vm0, %v459_v3  ;;  %493 = vst.msk [vmem:[#allocation2 + $0x99] sm:$0xff] %vm283_vm0, %v460_v8  ;;  %v441_v3 = vadd.f32 %v3784_v2, %v402_v54 }
  0x35   : > { %494 = vst.msk [vmem:[#allocation2 + $0xa9] sm:$0xff] %vm283_vm0, %v461_v9  ;;  %495 = vst.msk [vmem:[#allocation2 + $0xb1] sm:$0xff] %vm283_vm0, %v462_v10  ;;  %v471_v10 = vmax.f32 %v439_v58, 0.0 }
  0x36   : > { %v3857_v18 = vld [vmem:[#allocation2 + $0x31] sm:$0xff]  ;;  %v3859_v19 = vld [vmem:[#allocation2 + $0x39] sm:$0xff]  ;;  %496 = vst.msk [vmem:[#allocation2 + $0xc1] sm:$0xff] %vm283_vm0, %v463_v21  ;;  %497 = vst.msk [vmem:[#allocation2 + $0xc9] sm:$0xff] %vm283_vm0, %v464_v29  ;;  %v473_v14 = vmax.f32 %v441_v3, 0.0  ;;  %v407_v21 = vmul.f32 %v3773_v1, %v368_v5  ;;  %v476_v29 = vmax.f32 %v444_v16, 0.0 }
  0x37   : > { %v3861_v20 = vld [vmem:[#allocation2 + $0x19] sm:$0xff]  ;;  %v2934_v25 = vpack.i.bf16 %v3859_v19, %v3857_v18  ;;  %v3871_v26 = vld [vmem:[#allocation2 + $0x21] sm:$0xff]  ;;  %498 = vst.msk [vmem:[#allocation2 + $0xd9] sm:$0xff] %vm283_vm0, %v465_v38  ;;  %499 = vst.msk [vmem:[#allocation2 + $0xe1] sm:$0xff] %vm283_vm0, %v466_v39 }
  0x38   : > { %v3873_v27 = vld [vmem:[#allocation2 + $0x49] sm:$0xff]  ;;  %v3875_v28 = vld [vmem:[#allocation2 + $0x51] sm:$0xff]  ;;  %v2929_v32 = vpack.i.bf16 %v3871_v26, %v3861_v20  ;;  %500 = vst.msk [vmem:[#allocation2 + $0xf1] sm:$0xff] %vm283_vm0, %v467_v45  ;;  %501 = vst.msk [vmem:[#allocation2 + $0xf9] sm:$0xff] %vm283_vm0, %v468_v46 }
  0x39   : > { %v2939_v33 = vpack.i.bf16 %v3875_v28, %v3873_v27  ;;  %2935 = vrot.lane.b32.xlu1 %v2934_v25, %s3562_s18  ;;  %v3888_v37 = vld [vmem:[#allocation2 + $0x61] sm:$0xff]  ;;  %v3896_v44 = vld [vmem:[#allocation2 + $0x69] sm:$0xff]  ;;  %502 = vst.msk [vmem:[#allocation2 + $0x109] sm:$0xff] %vm283_vm0, %v469_v52  ;;  %503 = vst.msk [vmem:[#allocation2 + $0x111] sm:$0xff] %vm283_vm0, %v470_v53  ;;  %v475_v25 = vmax.f32 %v443_v15, 0.0 }
  0x3a   : > { %2930 = vrot.lane.b32.xlu0 %v2929_v32, %s3562_s18  ;;  %v2944_v51 = vpack.i.bf16 %v3896_v44, %v3888_v37  ;;  %v3907_v55 = vld [vmem:[#allocation2 + $0x79] sm:$0xff]  ;;  %v3909_v56 = vld [vmem:[#allocation2 + $0x81] sm:$0xff]  ;;  %504 = vst.msk [vmem:[#allocation2 + $0x121] sm:$0xff] %vm283_vm0, %v471_v10  ;;  %505 = vst.msk [vmem:[#allocation2 + $0x129] sm:$0xff] %vm283_vm0, %v472_v11 }
  0x3b   : > { %v558_v57 = vld [vmem:[#allocation2 + $0x91] sm:$0xff]  ;;  %v2949_v62 = vpack.i.bf16 %v3909_v56, %v3907_v55  ;;  %v559_v63 = vld [vmem:[#allocation2 + $0x99] sm:$0xff]  ;;  %506 = vst.msk [vmem:[#allocation2 + $0x139] sm:$0xff] %vm283_vm0, %v473_v14  ;;  %507 = vst.msk [vmem:[#allocation2 + $0x141] sm:$0xff] %vm283_vm0, %v474_v24 }
  0x3c   : > { %v2954_v7 = vpack.i.bf16 %v559_v63, %v558_v57  ;;  %v560_v8 = vld [vmem:[#allocation2 + $0xa9] sm:$0xff]  ;;  %v561_v9 = vld [vmem:[#allocation2 + $0xb1] sm:$0xff]  ;;  %508 = vst.msk [vmem:[#allocation2 + $0x151] sm:$0xff] %vm283_vm0, %v475_v25  ;;  %509 = vst.msk [vmem:[#allocation2 + $0x159] sm:$0xff] %vm283_vm0, %v476_v29 }
  0x3d   : > { %2940 = vrot.lane.b32.xlu1 %v2939_v33, %s3562_s18  ;;  %v562_v12 = vld [vmem:[#allocation2 + $0xc1] sm:$0xff]  ;;  %v563_v17 = vld [vmem:[#allocation2 + $0xc9] sm:$0xff]  ;;  %v2959_v23 = vpack.i.bf16 %v561_v9, %v560_v8  ;;  %v446_v33 = vadd.f32 %v3784_v2, %v407_v21  ;;  %510 = vst.msk [vmem:[#allocation2 + $0x169] sm:$0xff] %vm283_vm0, %v477_v34  ;;  %v3958_v48 = vld [vmem:[#allocation2 + $0x52] sm:$0xff] }
  0x3e   : > { %2945 = vrot.lane.b32.xlu0 %v2944_v51, %s3562_s18  ;;  %v2964_v30 = vpack.i.bf16 %v563_v17, %v562_v12  ;;  %v3937_v31 = vld [vmem:[#allocation2 + $0xd9] sm:$0xff]  ;;  %v3939_v32 = vld [vmem:[#allocation2 + $0xe1] sm:$0xff]  ;;  %v3982_v60 = vld [vmem:[#allocation2 + $0x6a] sm:$0xff] }
  0x3f   : > { %v3942_v35 = vld [vmem:[#allocation2 + $0xf1] sm:$0xff]  ;;  %v567_v36 = vld [vmem:[#allocation2 + $0xf9] sm:$0xff]  ;;  %v478_v38 = vmax.f32 %v446_v33, 0.0  ;;  %v2969_v39 = vpack.i.bf16 %v3939_v32, %v3937_v31  ;;  %v3960_v49 = vld [vmem:[#allocation2 + $0x62] sm:$0xff] }
  0x40   : > { %v2974_v40 = vpack.i.bf16 %v567_v36, %v3942_v35  ;;  %v568_v41 = vld [vmem:[#allocation2 + $0x109] sm:$0xff]  ;;  %v569_v42 = vld [vmem:[#allocation2 + $0x111] sm:$0xff]  ;;  %v3955_v46 = vpack.i.bf16 %v567_v36, %v3859_v19  ;;  %v3995_v4 = vld [vmem:[#allocation2 + $0x7a] sm:$0xff]  ;;  %v3024_v34 = vpack.i.bf16 %v3982_v60, %v3960_v49 }
  0x41   : > { %2950 = vrot.lane.b32.xlu1 %v2949_v62, %s3562_s18  ;;  %511 = vst.msk [vmem:[#allocation2 + $0x171] sm:$0xff] %vm283_vm0, %v478_v38  ;;  %v570_v43 = vld [vmem:[#allocation2 + $0x121] sm:$0xff]  ;;  %v571_v45 = vld [vmem:[#allocation2 + $0x129] sm:$0xff]  ;;  %v2979_v47 = vpack.i.bf16 %v569_v42, %v568_v41  ;;  %v3963_v50 = vpack.i.bf16 %v568_v41, %v3873_v27  ;;  %v3968_v54 = vld [vmem:[#allocation2 + $0x112] sm:$0xff]  ;;  %v3971_v19 = vpack.i.bf16 %v569_v42, %v3875_v28 }
  0x42   : > { %2955 = vrot.lane.b32.xlu0 %v2954_v7, %s3562_s18  ;;  %v2984_v51 = vpack.i.bf16 %v571_v45, %v570_v43  ;;  %v572_v52 = vld [vmem:[#allocation2 + $0x139] sm:$0xff]  ;;  %v3966_v53 = vld [vmem:[#allocation2 + $0x141] sm:$0xff]  ;;  %v3980_v27 = vpack.i.bf16 %v570_v43, %v3888_v37  ;;  %v3984_v61 = vld [vmem:[#allocation2 + $0x12a] sm:$0xff]  ;;  %v3219_v62 = vpack.i.bf16 %v3968_v54, %v3958_v48  ;;  %v3989_v63 = vpack.i.bf16 %v571_v45, %v3896_v44 }
  0x43   : > { %v3973_v57 = vld [vmem:[#allocation2 + $0x151] sm:$0xff]  ;;  %v3975_v58 = vld [vmem:[#allocation2 + $0x159] sm:$0xff]  ;;  %v3977_v59 = vld [vmem:[#allocation2 + $0x122] sm:$0xff]  ;;  %v2989_v3 = vpack.i.bf16 %v3966_v53, %v572_v52  ;;  %v3998_v37 = vpack.i.bf16 %v572_v52, %v3907_v55  ;;  %v3269_v5 = vpack.i.bf16 %v3984_v61, %v3982_v60  ;;  %v3284_v9 = vpack.i.bf16 %v3966_v53, %v3909_v56 }
  0x44   : > { %v3244_v28 = vpack.i.bf16 %v3977_v59, %v3960_v49  ;;  %v2994_v44 = vpack.i.bf16 %v3975_v58, %v3973_v57  ;;  %v576_v6 = vld [vmem:[#allocation2 + $0x169] sm:$0xff]  ;;  %v4005_v8 = vld [vmem:[#allocation2 + $0x13a] sm:$0xff]  ;;  %v4017_v16 = vld [vmem:[#allocation2 + $0x32] sm:$0xff] }
  0x45   : > { %2960 = vrot.lane.b32.xlu1 %v2959_v23, %s3562_s18  ;;  %v578_v10 = vld [vmem:[#allocation2 + $0x2] sm:$0xff]  ;;  %v579_v11 = vld [vmem:[#allocation2 + $0xa] sm:$0xff]  ;;  %v3294_v55 = vpack.i.bf16 %v4005_v8, %v3995_v4  ;;  %v4013_v14 = vld [vmem:[#allocation2 + $0x1a] sm:$0xff] }
  0x46   : > { %2965 = vrot.lane.b32.xlu0 %v2964_v30, %s3562_s18  ;;  %v3004_v13 = vpack.i.bf16 %v579_v11, %v578_v10  ;;  %v4015_v15 = vld [vmem:[#allocation2 + $0x22] sm:$0xff]  ;;  %v4019_v17 = vld [vmem:[#allocation2 + $0x3a] sm:$0xff]  ;;  %v4033_v29 = vld [vmem:[#allocation2 + $0x4a] sm:$0xff] }
  0x47   : > { %v4021_v21 = vld [vmem:[#allocation2 + $0x82] sm:$0xff]  ;;  %v3009_v24 = vpack.i.bf16 %v4015_v15, %v4013_v14  ;;  %v3014_v25 = vpack.i.bf16 %v4019_v17, %v4017_v16  ;;  %v1944_v30 = vld [vmem:[%s5230_s4 + $0x78] sm:$0xff]  ;;  %v3019_v33 = vpack.i.bf16 %v3958_v48, %v4033_v29  ;;  %v1943_v36 = vld [vmem:[%s5230_s4 + $0x70] sm:$0xff] }
  0x48   : > { %v577_v7 = vld [vmem:[#allocation2 + $0x171] sm:$0xff]  ;;  %v4023_v22 = vld [vmem:[#allocation2 + $0x142] sm:$0xff]  ;;  %2044 = vmatpush1.msra.mxu0 %v1944_v30  ;;  %2858 = vmatpush1.msra.mxu1 %v1944_v30  ;;  %v3029_v43 = vpack.i.bf16 %v4021_v21, %v3995_v4  ;;  %v4075_v11 = vld [vmem:[#allocation2 + $0xda] sm:$0xff] }
  0x49   : > { %2970 = vrot.lane.b32.xlu1 %v2969_v39, %s3562_s18  ;;  %v2999_v12 = vpack.i.bf16 %v577_v7, %v576_v6  ;;  %v3319_v23 = vpack.i.bf16 %v4023_v22, %v4021_v21  ;;  %v4047_v38 = vld [vmem:[#allocation2 + $0x92] sm:$0xff]  ;;  %v591_v39 = vld [vmem:[#allocation2 + $0x9a] sm:$0xff]  ;;  %2045 = vmatprep.subr.mxu0 %v3561_v0  ;;  %v1942_v41 = vld [vmem:[%s5230_s4 + $0x68] sm:$0xff] }
  0x4a   : > { %2975 = vrot.lane.b32.xlu0 %v2974_v40, %s3562_s18  ;;  %v4049_v40 = vld [vmem:[#allocation2 + $0x152] sm:$0xff]  ;;  %2841 = vmatprep.subr.mxu1 %v3561_v0  ;;  %v3034_v45 = vpack.i.bf16 %v591_v39, %v4047_v38  ;;  %v1941_v52 = vld [vmem:[%s5230_s4 + $0x60] sm:$0xff]  ;;  %v1938_v39 = vld [vmem:[%s5230_s4 + $0x48] sm:$0xff] }
  0x4b   : > { %2046 = vmatpush1.msra.mxu0 %v1943_v36  ;;  %2859 = vmatpush1.msra.mxu1 %v1943_v36  ;;  %v3344_v42 = vpack.i.bf16 %v4049_v40, %v4047_v38  ;;  %v1940_v7 = vld [vmem:[%s5230_s4 + $0x58] sm:$0xff]  ;;  %v4096_v36 = vld [vmem:[#allocation2 + $0x10a] sm:$0xff]  ;;  %v651_v56 = vld [vmem:[#allocation2 + $0x81] sm:$0xff] }
  0x4c   : > { %2047 = vmatprep.subr.mxu0 %v3561_v0  ;;  %2842 = vmatprep.subr.mxu1 %v3561_v0  ;;  %v527_v4 = vld [vmem:[#allocation2 + $0x98] sm:$0xff]  ;;  %v529_v38 = vld [vmem:[#allocation2 + $0xb0] sm:$0xff] }
  0x4d   : > { %2980 = vrot.lane.b32.xlu1 %v2979_v47, %s3562_s18  ;;  %v592_v47 = vld [vmem:[#allocation2 + $0xaa] sm:$0xff]  ;;  %2048 = vmatpush1.msra.mxu0 %v1942_v41 }
  0x4e   : > { %2985 = vrot.lane.b32.xlu0 %v2984_v51, %s3562_s18  ;;  %v593_v51 = vld [vmem:[#allocation2 + $0xb2] sm:$0xff]  ;;  %2860 = vmatpush1.msra.mxu1 %v1942_v41 }
  0x4f   : > { %2049 = vmatprep.subr.mxu0 %v3561_v0  ;;  %2843 = vmatprep.subr.mxu1 %v3561_v0  ;;  %v3039_v6 = vpack.i.bf16 %v593_v51, %v592_v47  ;;  %v1937_v47 = vld [vmem:[%s5230_s4 + $0x40] sm:$0xff]  ;;  %v3064_v51 = vpack.i.bf16 %v3984_v61, %v3977_v59  ;;  %v747_v61 = vld [vmem:[#allocation2 + $0x91] sm:$0xff] }
  0x50   : > { %2050 = vmatpush1.msra.mxu0 %v1941_v52  ;;  %2861 = vmatpush1.msra.mxu1 %v1941_v52 }
  0x51   : > { %2990 = vrot.lane.b32.xlu1 %v2989_v3, %s3562_s18  ;;  %v594_v3 = vld [vmem:[#allocation2 + $0xc2] sm:$0xff]  ;;  %2051 = vmatprep.subr.mxu0 %v3561_v0 }
  0x52   : > { %2995 = vrot.lane.b32.xlu0 %v2994_v44, %s3562_s18  ;;  %v595_v44 = vld [vmem:[#allocation2 + $0xca] sm:$0xff]  ;;  %2844 = vmatprep.subr.mxu1 %v3561_v0 }
  0x53   : > { %v3044_v10 = vpack.i.bf16 %v595_v44, %v594_v3  ;;  %2052 = vmatpush1.msra.mxu0 %v1940_v7  ;;  %2862 = vmatpush1.msra.mxu1 %v1940_v7  ;;  %v4115_v3 = vld [vmem:[#allocation2 + $0x15a] sm:$0xff] }
  0x54   : > { %2053 = vmatprep.subr.mxu0 %v3561_v0  ;;  %2845 = vmatprep.subr.mxu1 %v3561_v0  ;;  %v1936_v44 = vld [vmem:[%s5230_s4 + $0x38] sm:$0xff] }
  0x55   : > { %3000 = vrot.lane.b32.xlu1 %v2999_v12, %s3562_s18  ;;  %v4077_v12 = vld [vmem:[#allocation2 + $0xe2] sm:$0xff]  ;;  %v370_v7 = vld [vmem:[%s3779_s15 + $0xf8] sm:$0xff]  ;;  %s3564_s18 = smov 48  }
  0x56   : > { %3005 = vrot.lane.b32.xlu0 %v3004_v13, %s3563_s19  ;;  %v4079_v13 = vld [vmem:[#allocation2 + $0xf2] sm:$0xff]  ;;  %v3049_v30 = vpack.i.bf16 %v4077_v12, %v4075_v11 }
  0x59   : > { %3010 = vrot.lane.b32.xlu1 %v3009_v24, %s3563_s19  ;;  %v4081_v24 = vld [vmem:[#allocation2 + $0xfa] sm:$0xff] }
  0x5a   : > { %3015 = vrot.lane.b32.xlu0 %v3014_v25, %s3563_s19  ;;  %v1939_v25 = vld [vmem:[%s5230_s4 + $0x50] sm:$0xff] }
  0x5b   : > { %2054 = vmatpush1.msra.mxu0 %v1939_v25  ;;  %2863 = vmatpush1.msra.mxu1 %v1939_v25  ;;  %v608_v25 = vld [vmem:[#allocation2 + $0x16a] sm:$0xff] }
  0x5c   : > { %2055 = vmatprep.subr.mxu0 %v3561_v0  ;;  %2846 = vmatprep.subr.mxu1 %v3561_v0 }
  0x5d   : > { %3020 = vrot.lane.b32.xlu1 %v3019_v33, %s3563_s19  ;;  %v369_v33 = vld [vmem:[%s3779_s15 + $0xf0] sm:$0xff]  ;;  %2056 = vmatpush1.msra.mxu0 %v1938_v39  ;;  %s2792_s15 = sshll.u32 %s265_s10, 3 }
  0x5e   : > { %3025 = vrot.lane.b32.xlu0 %v3024_v34, %s3563_s19  ;;  %v3054_v34 = vpack.i.bf16 %v4081_v24, %v4079_v13  ;;  %v408_v41 = vmul.f32 %v3773_v1, %v369_v33  ;;  %2864 = vmatpush1.msra.mxu1 %v1938_v39  ;;  %v1935_v33 = vld [vmem:[%s5230_s4 + $0x30] sm:$0xff]  ;;  %v4136_v39 = vld [vmem:[#allocation2 + $0x18] sm:$0xff]  ;;  %s267_s16 = scalar_lea.vmem [#allocation3], %s2792_s15 }
  0x5f   : > { %2057 = vmatprep.subr.mxu0 %v3561_v0  ;;  %2847 = vmatprep.subr.mxu1 %v3561_v0  ;;  %s2692_s17 = sshll.u32 %s267_s16, 4  ;;  %s5125_s17 = int_to_ptr.vmem [resolvable:$true] %s2692_s17 }
  0x60   : > { %2058 = vmatpush1.msra.mxu0 %v1937_v47  ;;  %2865 = vmatpush1.msra.mxu1 %v1937_v47  ;;  %p3506_p0 = scmp.lt.s32.totalorder %s5125_s17, %s3504_s29 }
  0x61   : > { %3030 = vrot.lane.b32.xlu1 %v3029_v43, %s3563_s19  ;;  %v447_v43 = vadd.f32 %v3784_v2, %v408_v41  ;;  %2059 = vmatprep.subr.mxu0 %v3561_v0  ;;  %v4138_v41 = vld [vmem:[#allocation2 + $0x20] sm:$0xff] }
  0x62   : > { %3035 = vrot.lane.b32.xlu0 %v3034_v45, %s3563_s19  ;;  %v3059_v45 = vpack.i.bf16 %v3968_v54, %v4096_v36  ;;  %2848 = vmatprep.subr.mxu1 %v3561_v0  ;;  %v3084_v47 = vpack.i.bf16 %v4138_v41, %v4136_v39 }
  0x63   : > { %v479_v52 = vmax.f32 %v447_v43, 0.0  ;;  %2060 = vmatpush1.msra.mxu0 %v1936_v44  ;;  %2866 = vmatpush1.msra.mxu1 %v1936_v44 }
  0x64   : > { %2061 = vmatprep.subr.mxu0 %v3561_v0  ;;  %2849 = vmatprep.subr.mxu1 %v3561_v0 }
  0x65   : > { %3040 = vrot.lane.b32.xlu1 %v3039_v6, %s3563_s19  ;;  %512 = vst.msk [vmem:[#allocation2 + $0x181] sm:$0xff] %vm283_vm0, %v479_v52  ;;  %v3069_v6 = vpack.i.bf16 %v4023_v22, %v4005_v8  ;;  %2062 = vmatpush1.msra.mxu0 %v1935_v33  ;;  %v4152_v52 = vld [vmem:[#allocation2 + $0x38] sm:$0xff]  ;;  %v765_v22 = vld [vmem:[#allocation2 + $0x169] sm:$0xff] }
  0x66   : > { %3045 = vrot.lane.b32.xlu0 %v3044_v10, %s3563_s19  ;;  %v3074_v10 = vpack.i.bf16 %v4115_v3, %v4049_v40  ;;  %2867 = vmatpush1.msra.mxu1 %v1935_v33  ;;  %v3099_v33 = vpack.i.bf16 %v3937_v31, %v3861_v20  ;;  %v1930_v20 = vld [vmem:[%s5230_s4 + $0x8] sm:$0xff]  ;;  %v543_v8 = vld [vmem:[#allocation2 + $0x158] sm:$0xff]  ;;  %v545_v40 = vld [vmem:[#allocation2 + $0x170] sm:$0xff] }
  0x67   : > { %2063 = vmatprep.subr.mxu0 %v3561_v0  ;;  %2850 = vmatprep.subr.mxu1 %v3561_v0 }
  0x69   : > { %3050 = vrot.lane.b32.xlu1 %v3049_v30, %s3563_s19  ;;  %v609_v30 = vld [vmem:[#allocation2 + $0x172] sm:$0xff] }
  0x6a   : > { %3055 = vrot.lane.b32.xlu0 %v3054_v34, %s3563_s19  ;;  %v409_v34 = vmul.f32 %v3773_v1, %v370_v7  ;;  %v1934_v1 = vld [vmem:[%s5230_s4 + $0x28] sm:$0xff]  ;;  %v1933_v7 = vld [vmem:[%s5230_s4 + $0x20] sm:$0xff] }
  0x6b   : > { %2064 = vmatpush1.msra.mxu0 %v1934_v1  ;;  %2868 = vmatpush1.msra.mxu1 %v1934_v1  ;;  %v4188_v1 = vld [vmem:[#allocation2 + $0xe0] sm:$0xff] }
  0x6c   : > { %v448_v43 = vadd.f32 %v3784_v2, %v409_v34  ;;  %v4154_v2 = vld [vmem:[#allocation2 + $0x48] sm:$0xff]  ;;  %2065 = vmatprep.subr.mxu0 %v3561_v0  ;;  %2851 = vmatprep.subr.mxu1 %v3561_v0  ;;  %v1931_v34 = vld [vmem:[%s5230_s4 + $0x10] sm:$0xff] }
  0x6d   : > { %3060 = vrot.lane.b32.xlu1 %v3059_v45, %s3563_s19  ;;  %v3079_v45 = vpack.i.bf16 %v609_v30, %v608_v25  ;;  %v1932_v30 = vld [vmem:[%s5230_s4 + $0x18] sm:$0xff]  ;;  %2066 = vmatpush1.msra.mxu0 %v1933_v7 }
  0x6e   : > { %3065 = vrot.lane.b32.xlu0 %v3064_v51, %s3563_s19  ;;  %v4150_v51 = vld [vmem:[#allocation2 + $0x30] sm:$0xff]  ;;  %v480_v44 = vmax.f32 %v448_v43, 0.0  ;;  %2869 = vmatpush1.msra.mxu1 %v1933_v7  ;;  %v3104_v43 = vpack.i.bf16 %v4075_v11, %v4013_v14  ;;  %v1929_v11 = vld [vmem:[%s5230_s4] sm:$0xff]  ;;  %v3124_v7 = vpack.i.bf16 %v3939_v32, %v3871_v26 }
  0x6f   : > { %2067 = vmatprep.subr.mxu0 %v3561_v0  ;;  %2852 = vmatprep.subr.mxu1 %v3561_v0  ;;  %v771_v26 = vld [vmem:[#allocation2 + $0x32] sm:$0xff] }
  0x70   : > { %513 = vst.msk [vmem:[#allocation2 + $0x189] sm:$0xff] %vm283_vm0, %v480_v44  ;;  %2068 = vmatpush1.msra.mxu0 %v1932_v30  ;;  %2870 = vmatpush1.msra.mxu1 %v1932_v30  ;;  %v1946_v44 = vld [vmem:[%s5230_s4 + $0x88] sm:$0xff]  ;;  %v787_v32 = vld [vmem:[#allocation2 + $0xf2] sm:$0xff] }
  0x71   : > { %3070 = vrot.lane.b32.xlu1 %v3069_v6, %s3563_s19  ;;  %v4156_v6 = vld [vmem:[#allocation2 + $0xd8] sm:$0xff]  ;;  %2069 = vmatprep.subr.mxu0 %v3561_v0 }
  0x72   : > { %3075 = vrot.lane.b32.xlu0 %v3074_v10, %s3563_s19  ;;  %v3089_v10 = vpack.i.bf16 %v4152_v52, %v4150_v51  ;;  %v3094_v25 = vpack.i.bf16 %v4156_v6, %v4154_v2  ;;  %2853 = vmatprep.subr.mxu1 %v3561_v0 }
  0x73   : > { %2070 = vmatpush1.msra.mxu0 %v1931_v34  ;;  %2871 = vmatpush1.msra.mxu1 %v1931_v34  ;;  %v4270_v34 = vld [vmem:[#allocation2 + $0x120] sm:$0xff] }
  0x74   : > { %2071 = vmatprep.subr.mxu0 %v3561_v0  ;;  %2854 = vmatprep.subr.mxu1 %v3561_v0 }
  0x75   : > { %3080 = vrot.lane.b32.xlu1 %v3079_v45, %s3563_s19  ;;  %v4186_v45 = vld [vmem:[#allocation2 + $0xf0] sm:$0xff]  ;;  %2072 = vmatpush1.msra.mxu0 %v1930_v20  ;;  %s3568_s19 = smov 112  }
  0x76   : > { %3085 = vrot.lane.b32.xlu0 %v3084_v47, %s3564_s18  ;;  %v3109_v31 = vpack.i.bf16 %v4186_v45, %v4150_v51  ;;  %v3114_v14 = vpack.i.bf16 %v4186_v45, %v4188_v1  ;;  %2872 = vmatpush1.msra.mxu1 %v1930_v20  ;;  %v3119_v47 = vpack.i.bf16 %v3942_v35, %v3857_v18  ;;  %v1945_v18 = vld [vmem:[%s5230_s4 + $0x80] sm:$0xff]  ;;  %v712_v20 = vld [vmem:[#allocation2 + $0x68] sm:$0xff] }
  0x77   : > { %2073 = vmatprep.subr.mxu0 %v3561_v0  ;;  %2855 = vmatprep.subr.mxu1 %v3561_v0  ;;  %v3129_v35 = vpack.i.bf16 %v4077_v12, %v4015_v15  ;;  %v4236_v15 = vld [vmem:[#allocation2 + $0x108] sm:$0xff]  ;;  %v3149_v12 = vpack.i.bf16 %v4079_v13, %v4017_v16  ;;  %v3174_v16 = vpack.i.bf16 %v4081_v24, %v4019_v17  ;;  %v4254_v13 = vld [vmem:[#allocation2 + $0x50] sm:$0xff]  ;;  %v4268_v24 = vld [vmem:[#allocation2 + $0x60] sm:$0xff] }
  0x78   : > { %2074 = vmatpush1.msra.mxu0 %v1929_v11  ;;  %2873 = vmatpush1.msra.mxu1 %v1929_v11  ;;  %v3194_v17 = vpack.i.bf16 %v4096_v36, %v4033_v29  ;;  %v728_v29 = vld [vmem:[#allocation2 + $0x128] sm:$0xff] }
  0x79   : > { %3090 = vrot.lane.b32.xlu1 %v3089_v10, %s3564_s18  ;;  %v4217_v10 = vld [vmem:[#allocation2 + $0xf8] sm:$0xff]  ;;  %2103 = vmatprep.subr.mxu0 %v3561_v0 }
  0x7a   : > { %3095 = vrot.lane.b32.xlu0 %v3094_v25, %s3564_s18  ;;  %2856 = vmatprep.subr.mxu1 %v3561_v0  ;;  %v3134_v25 = vpack.i.bf16 %v4217_v10, %v4152_v52  ;;  %v3159_v30 = vpack.i.bf16 %v4236_v15, %v4217_v10 }
  0x7b   : > { %2104 = vmatpush2.msra.mxu0 %v1946_v44  ;;  %2874 = vmatpush2.msra.mxu1 %v1946_v44 }
  0x7c   : > { %2105 = vmatprep.subr.mxu0 %v3561_v0  ;;  %2857 = vmatprep.subr.mxu1 %v3561_v0  ;;  %v3154_v0 = vpack.i.bf16 %v4236_v15, %v4154_v2 }
  0x7d   : > { %3100 = vrot.lane.b32.xlu1 %v3099_v33, %s3565_s11  ;;  %2106 = vmatpush2.msra.mxu0 %v1945_v18  ;;  %v4256_v33 = vld [vmem:[#allocation2 + $0x110] sm:$0xff] }
  0x7e   : > { %3105 = vrot.lane.b32.xlu0 %v3104_v43, %s3566_s12  ;;  %2875 = vmatpush2.msra.mxu1 %v1945_v18  ;;  %v3179_v2 = vpack.i.bf16 %v4256_v33, %v4254_v13 }
  0x7f   : > { %2801 = vmatprep.mubr.msk.f32.mxu0 %vm283_vm0, %v771_v26  ;;  %2817 = vmatprep.mubr.msk.f32.mxu1 %vm283_vm0, %v787_v32 }
  0x81   : > { %3110 = vrot.lane.b32.xlu1 %v3109_v31, %s3567_s14 }
  0x82   : > { %3115 = vrot.lane.b32.xlu0 %v3114_v14, %s3564_s18 }
  0x85   : > { %3120 = vrot.lane.b32.xlu1 %v3119_v47, %s3568_s19 }
  0x86   : > { %3125 = vrot.lane.b32.xlu0 %v3124_v7, %s3565_s11 }
  0x89   : > { %3130 = vrot.lane.b32.xlu1 %v3129_v35, %s3566_s12  ;;  %v730_v35 = vld [vmem:[#allocation2 + $0x140] sm:$0xff] }
  0x8a   : > { %3135 = vrot.lane.b32.xlu0 %v3134_v25, %s3567_s14 }
  0x8d   : > { %3140 = vrot.lane.b32.xlu1 %v3955_v46, %s3568_s19 }
  0x8e   : > { %3145 = vrot.lane.b32.xlu0 %v3119_v47, %s3565_s11  ;;  %v729_v47 = vld [vmem:[#allocation2 + $0x138] sm:$0xff] }
  0x91   : > { %3150 = vrot.lane.b32.xlu1 %v3149_v12, %s3566_s12  ;;  %v4279_v43 = vpop.permute.xlu0 %2925  ;;  %v526_v12 = vld [vmem:[#allocation2 + $0x90] sm:$0xff] }
  0x92   : > { %3155 = vrot.lane.b32.xlu0 %v3154_v0, %s3567_s14  ;;  %v542_v0 = vld [vmem:[#allocation2 + $0x150] sm:$0xff] }
  0x93   : > { %v3299_v60 = vpack.i.bf16 %v542_v0, %v526_v12 }
  0x95   : > { %3160 = vrot.lane.b32.xlu1 %v3159_v30, %s3564_s18 }
  0x96   : > { %3165 = vrot.lane.b32.xlu0 %v3963_v50, %s3568_s19 }
  0x99   : > { %3170 = vrot.lane.b32.xlu1 %v3955_v46, %s3565_s11  ;;  %v3199_v46 = vpack.i.bf16 %v4270_v34, %v4268_v24 }
  0x9a   : > { %3175 = vrot.lane.b32.xlu0 %v3174_v16, %s3566_s12  ;;  %v3309_v16 = vpack.i.bf16 %v3973_v57, %v747_v61 }
  0x9d   : > { %3180 = vrot.lane.b32.xlu1 %v3179_v2, %s3567_s14 }
  0x9e   : > { %3185 = vrot.lane.b32.xlu0 %v3971_v19, %s3568_s19 }
  0xa1   : > { %3190 = vrot.lane.b32.xlu1 %v3963_v50, %s3565_s11  ;;  %v3224_v50 = vpack.i.bf16 %v728_v29, %v712_v20  ;;  %v748_v20 = vld [vmem:[#allocation2 + $0x99] sm:$0xff] }
  0xa2   : > { %3195 = vrot.lane.b32.xlu0 %v3194_v17, %s3566_s12 }
  0xa5   : > { %3200 = vrot.lane.b32.xlu1 %v3199_v46, %s3567_s14 }
  0xa6   : > { %3205 = vrot.lane.b32.xlu0 %v3179_v2, %s3564_s18 }
  0xa9   : > { %3210 = vrot.lane.b32.xlu1 %v3980_v27, %s3568_s19 }
  0xaa   : > { %3215 = vrot.lane.b32.xlu0 %v3971_v19, %s3565_s11  ;;  %v524_v19 = vld [vmem:[#allocation2 + $0x78] sm:$0xff] }
  0xab   : > { %v4285_v36 = vpop.permute.xlu1 %2935  ;;  %v3249_v48 = vpack.i.bf16 %v729_v47, %v524_v19  ;;  %v528_v47 = vld [vmem:[#allocation2 + $0xa8] sm:$0xff] }
  0xac   : > { %v4287_v31 = vpop.permute.xlu0 %2930 }
  0xad   : > { %3220 = vrot.lane.b32.xlu1 %v3219_v62, %s3566_s12 }
  0xae   : > { %3225 = vrot.lane.b32.xlu0 %v3224_v50, %s3567_s14 }
  0xaf   : > { %v4294_v14 = vpop.permute.xlu1 %2940 }
  0xb0   : > { %v4296_v11 = vpop.permute.xlu0 %2945 }
  0xb1   : > { %3230 = vrot.lane.b32.xlu1 %v3199_v46, %s3564_s18 }
  0xb2   : > { %3235 = vrot.lane.b32.xlu0 %v3989_v63, %s3568_s19 }
  0xb3   : > { %v4301_v44 = vpop.permute.xlu1 %2950 }
  0xb4   : > { %5251 = vst [vmem:[#allocation6_spill] sm:$0xff] %v4301_v44  ;;  %v4303_v7 = vpop.permute.xlu0 %2955 }
  0xb5   : > { %5252 = vst [vmem:[#allocation7_spill] sm:$0xff] %v4303_v7  ;;  %3240 = vrot.lane.b32.xlu1 %v3980_v27, %s3565_s11  ;;  %v525_v27 = vld [vmem:[#allocation2 + $0x80] sm:$0xff] }
  0xb6   : > { %3245 = vrot.lane.b32.xlu0 %v3244_v28, %s3566_s12  ;;  %v3274_v49 = vpack.i.bf16 %v730_v35, %v525_v27  ;;  %v669_v27 = vld [vmem:[#allocation2 + $0x159] sm:$0xff]  ;;  %v767_v7 = vld [vmem:[#allocation2 + $0x181] sm:$0xff] }
  0xb7   : > { %v4311_v54 = vpop.permute.xlu1 %2960  ;;  %v3364_v0 = vpack.i.bf16 %v669_v27, %v748_v20 }
  0xb8   : > { %5253 = vst [vmem:[#allocation8_spill] sm:$0xff] %v4311_v54  ;;  %v4313_v62 = vpop.permute.xlu0 %2965 }
  0xb9   : > { %3250 = vrot.lane.b32.xlu1 %v3249_v48, %s3567_s14  ;;  %v2967_v27 = vunpack.i.l.bf16 %v4313_v62 }
  0xba   : > { %3255 = vrot.lane.b32.xlu0 %v3224_v50, %s3564_s18 }
  0xbb   : > { %v4317_v18 = vpop.permute.xlu1 %2970 }
  0xbc   : > { %v4319_v26 = vpop.permute.xlu0 %2975 }
  0xbd   : > { %3260 = vrot.lane.b32.xlu1 %v3998_v37, %s3568_s19 }
  0xbe   : > { %3265 = vrot.lane.b32.xlu0 %v3989_v63, %s3565_s11 }
  0xbf   : > { %v4325_v59 = vpop.permute.xlu1 %2980 }
  0xc0   : > { %v4327_v28 = vpop.permute.xlu0 %2985 }
  0xc1   : > { %3270 = vrot.lane.b32.xlu1 %v3269_v5, %s3566_s12 }
  0xc2   : > { %3275 = vrot.lane.b32.xlu0 %v3274_v49, %s3567_s14 }
  0xc3   : > { %v4334_v32 = vpop.permute.xlu1 %2990 }
  0xc4   : > { %5254 = vst [vmem:[#allocation9_spill] sm:$0xff] %v4334_v32  ;;  %v4336_v25 = vpop.permute.xlu0 %2995 }
  0xc5   : > { %5255 = vst [vmem:[#allocation10_spill] sm:$0xff] %v4336_v25  ;;  %3280 = vrot.lane.b32.xlu1 %v3249_v48, %s3564_s18  ;;  %v544_v48 = vld [vmem:[#allocation2 + $0x168] sm:$0xff] }
  0xc6   : > { %3285 = vrot.lane.b32.xlu0 %v3284_v9, %s3568_s19  ;;  %v3349_v21 = vpack.i.bf16 %v544_v48, %v528_v47  ;;  %v4418_v47 = vld [vmem:[#allocation2 + $0xaa] sm:$0xff]  ;;  %v751_v25 = vld [vmem:[#allocation2 + $0xc1] sm:$0xff] }
  0xc7   : > { %v4343_v63 = vpop.permute.xlu1 %3000  ;;  %5263 = vst [vmem:[#allocation18_spill] sm:$0xff] %v4418_v47 }
  0xc8   : > { %5256 = vst [vmem:[#allocation11_spill] sm:$0xff] %v4343_v63  ;;  %v4345_v30 = vpop.permute.xlu0 %3005 }
  0xc9   : > { %3290 = vrot.lane.b32.xlu1 %v3998_v37, %s3565_s11  ;;  %v3314_v37 = vpack.i.bf16 %v3966_v53, %v651_v56  ;;  %v3334_v53 = vpack.i.bf16 %v3975_v58, %v748_v20  ;;  %v749_v58 = vld [vmem:[#allocation2 + $0xa9] sm:$0xff] }
  0xca   : > { %3295 = vrot.lane.b32.xlu0 %v3294_v55, %s3566_s12  ;;  %v3324_v55 = vpack.i.bf16 %v543_v8, %v527_v4  ;;  %v3359_v12 = vpack.i.bf16 %v765_v22, %v749_v58  ;;  %v750_v4 = vld [vmem:[#allocation2 + $0xb1] sm:$0xff]  ;;  %v2927_v58 = vunpack.i.l.bf16 %v4279_v43  ;;  %v514_v22 = vld [vmem:[#allocation2] sm:$0xff] }
  0xcb   : > { %v4353_v5 = vpop.permute.xlu1 %3010  ;;  %v766_v8 = vld [vmem:[#allocation2 + $0x171] sm:$0xff] }
  0xcc   : > { %v4355_v9 = vpop.permute.xlu0 %3015  ;;  %v4414_v20 = vpack.i.bf16 %v766_v8, %v750_v4  ;;  %v1699_v54 = vsel %vm283_vm0, %v514_v22, %v2927_v58 }
  0xcd   : > { %3300 = vrot.lane.b32.xlu1 %v3299_v60, %s3567_s14 }
  0xce   : > { %3305 = vrot.lane.b32.xlu0 %v3274_v49, %s3564_s18 }
  0xcf   : > { %v4361_v2 = vpop.permute.xlu1 %3020 }
  0xd0   : > { %v4363_v17 = vpop.permute.xlu0 %3025 }
  0xd1   : > { %3310 = vrot.lane.b32.xlu1 %v3309_v16, %s3568_s19 }
  0xd2   : > { %3315 = vrot.lane.b32.xlu0 %v3314_v37, %s3565_s11 }
  0xd3   : > { %v4367_v46 = vpop.permute.xlu1 %3030 }
  0xd4   : > { %5257 = vst [vmem:[#allocation12_spill] sm:$0xff] %v4367_v46  ;;  %v4369_v29 = vpop.permute.xlu0 %3035 }
  0xd5   : > { %5258 = vst [vmem:[#allocation13_spill] sm:$0xff] %v4369_v29  ;;  %3320 = vrot.lane.b32.xlu1 %v3319_v23, %s3566_s12 }
  0xd6   : > { %3325 = vrot.lane.b32.xlu0 %v3324_v55, %s3567_s14 }
  0xd7   : > { %v4377_v57 = vpop.permute.xlu1 %3040 }
  0xd8   : > { %5259 = vst [vmem:[#allocation14_spill] sm:$0xff] %v4377_v57  ;;  %v4379_v50 = vpop.permute.xlu0 %3045 }
  0xd9   : > { %3330 = vrot.lane.b32.xlu1 %v3299_v60, %s3564_s18  ;;  %v4398_v60 = vld [vmem:[#allocation2 + $0x9a] sm:$0xff]  ;;  %v3047_v4 = vunpack.i.l.bf16 %v4379_v50 }
  0xda   : > { %3335 = vrot.lane.b32.xlu0 %v3334_v53, %s3568_s19 }
  0xdb   : > { %v4383_v19 = vpop.permute.xlu1 %3050 }
  0xdc   : > { %v4385_v35 = vpop.permute.xlu0 %3055 }
  0xdd   : > { %3340 = vrot.lane.b32.xlu1 %v3309_v16, %s3565_s11  ;;  %v3374_v16 = vpack.i.bf16 %v545_v40, %v529_v38  ;;  %v735_v40 = vld [vmem:[#allocation2 + $0x180] sm:$0xff] }
  0xde   : > { %3345 = vrot.lane.b32.xlu0 %v3344_v42, %s3566_s12  ;;  %v3369_v42 = vpack.i.bf16 %v4115_v3, %v4398_v60  ;;  %v4420_v3 = vld [vmem:[#allocation2 + $0x16a] sm:$0xff] }
  0xdf   : > { %v4392_v23 = vpop.permute.xlu1 %3060  ;;  %5264 = vst [vmem:[#allocation19_spill] sm:$0xff] %v4420_v3  ;;  %v3394_v38 = vpack.i.bf16 %v4420_v3, %v4418_v47 }
  0xe0   : > { %v4394_v49 = vpop.permute.xlu0 %3065 }
  0xe1   : > { %3350 = vrot.lane.b32.xlu1 %v3349_v21, %s3567_s14 }
  0xe2   : > { %3355 = vrot.lane.b32.xlu0 %v3324_v55, %s3564_s18 }
  0xe3   : > { %v4400_v61 = vpop.permute.xlu1 %3070 }
  0xe4   : > { %5260 = vst [vmem:[#allocation15_spill] sm:$0xff] %v4400_v61  ;;  %v4402_v56 = vpop.permute.xlu0 %3075 }
  0xe5   : > { %5261 = vst [vmem:[#allocation16_spill] sm:$0xff] %v4402_v56  ;;  %3360 = vrot.lane.b32.xlu1 %v3359_v12, %s3568_s19 }
  0xe6   : > { %3365 = vrot.lane.b32.xlu0 %v3364_v0, %s3565_s11  ;;  %v3007_v0 = vunpack.i.l.bf16 %v4345_v30 }
  0xe7   : > { %v4408_v37 = vpop.permute.xlu1 %3080 }
  0xe8   : > { %5262 = vst [vmem:[#allocation17_spill] sm:$0xff] %v4408_v37  ;;  %v4410_v55 = vpop.permute.xlu0 %3085  ;;  %v1732_v47 = vsel %vm1731_vm2, %v1699_v54, %v3007_v0 }
  0xe9   : > { %3370 = vrot.lane.b32.xlu1 %v3369_v42, %s3566_s12  ;;  %v530_v42 = vld [vmem:[#allocation2 + $0xc0] sm:$0xff]  ;;  %v3087_v8 = vunpack.i.l.bf16 %v4410_v55 }
  0xea   : > { %3375 = vrot.lane.b32.xlu0 %v3374_v16, %s3567_s14  ;;  %v4437_v29 = vpack.i.bf16 %v735_v40, %v530_v42  ;;  %v1715_v3 = vsel %vm283_vm0, %v530_v42, %v2967_v27  ;;  %v736_v40 = vld [vmem:[#allocation2 + $0x188] sm:$0xff] }
  0xeb   : > { %v4416_v53 = vpop.permute.xlu1 %3090  ;;  %v1748_v61 = vsel %vm1731_vm2, %v1715_v3, %v3047_v4  ;;  %v1765_v46 = vsel %vm1764_vm3, %v1732_v47, %v3087_v8  ;;  %v531_v3 = vld [vmem:[#allocation2 + $0xc8] sm:$0xff]  ;;  %v2928_v8 = vunpack.i.h.bf16 %v4279_v43 }
  0xec   : > { %v4422_v48 = vpop.permute.xlu0 %3095 }
  0xed   : > { %3380 = vrot.lane.b32.xlu1 %v3349_v21, %s3564_s18  ;;  %v3098_v21 = vunpack.i.h.bf16 %v4422_v48 }
  0xee   : > { %3385 = vrot.lane.b32.xlu0 %v4414_v20, %s3568_s19 }
  0xef   : > { %v3101_v37 = vpop.permute.xlu1 %3100  ;;  %v1781_v32 = vsel %vm1764_vm3, %v1748_v61, %v3098_v21  ;;  %v2968_v61 = vunpack.i.h.bf16 %v4313_v62 }
  0xf0   : > { %v3102_v57 = vunpack.i.l.bf16 %v3101_v37  ;;  %v3106_v63 = vpop.permute.xlu0 %3105  ;;  %v3103_v56 = vunpack.i.h.bf16 %v3101_v37  ;;  %v4444_v37 = vld [vmem:[#allocation2 + $0xb2] sm:$0xff] }
  0xf1   : > { %3390 = vrot.lane.b32.xlu1 %v3359_v12, %s3565_s11  ;;  %v3107_v58 = vunpack.i.l.bf16 %v3106_v63  ;;  %5265 = vst [vmem:[#allocation20_spill] sm:$0xff] %v4444_v37  ;;  %v4446_v12 = vld [vmem:[#allocation2 + $0x172] sm:$0xff]  ;;  %v3108_v54 = vunpack.i.h.bf16 %v3106_v63 }
  0xf2   : > { %3395 = vrot.lane.b32.xlu0 %v3394_v38, %s3566_s12  ;;  %5266 = vst [vmem:[#allocation21_spill] sm:$0xff] %v4446_v12  ;;  %v1798_v27 = vsel %vm1797_vm4, %v1765_v46, %v3102_v57  ;;  %v4452_v38 = vpack.i.bf16 %v767_v7, %v751_v25  ;;  %v1814_v47 = vsel %vm1797_vm4, %v1781_v32, %v3103_v56  ;;  %v515_v25 = vld [vmem:[#allocation2 + $0x8] sm:$0xff]  ;;  %v3008_v32 = vunpack.i.h.bf16 %v4345_v30 }
  0xf3   : > { %v3111_v22 = vpop.permute.xlu1 %3110  ;;  %v3419_v63 = vpack.i.bf16 %v4446_v12, %v4444_v37  ;;  %v4462_v7 = vpack.i.bf16 %v736_v40, %v531_v3  ;;  %v3048_v46 = vunpack.i.h.bf16 %v4379_v50  ;;  %v3088_v57 = vunpack.i.h.bf16 %v4410_v55  ;;  %v772_v55 = vld [vmem:[#allocation2 + $0x3a] sm:$0xff] }
  0xf4   : > { %v4450_v0 = vpop.permute.xlu0 %3115  ;;  %v3113_v42 = vunpack.i.h.bf16 %v3111_v22  ;;  %v3112_v4 = vunpack.i.l.bf16 %v3111_v22  ;;  %v1831_v21 = vsel %vm1830_vm5, %v1798_v27, %v3107_v58  ;;  %v1847_v44 = vsel %vm1830_vm5, %v1814_v47, %v3108_v54  ;;  %v788_v37 = vld [vmem:[#allocation2 + $0xfa] sm:$0xff] }
  0xf5   : > { %3400 = vrot.lane.b32.xlu1 %v4437_v29, %s3567_s14  ;;  %v3117_v43 = vunpack.i.l.bf16 %v4450_v0  ;;  %v1700_v58 = vsel %vm283_vm0, %v515_v25, %v2928_v8  ;;  %v1716_v27 = vsel %vm283_vm0, %v531_v3, %v2968_v61 }
  0xf6   : > { %3405 = vrot.lane.b32.xlu0 %v3374_v16, %s3564_s18  ;;  %v1864_v30 = vsel %vm1863_vm6, %v1831_v21, %v3112_v4  ;;  %v1880_v50 = vsel %vm1863_vm6, %v1847_v44, %v3113_v42  ;;  %v752_v44 = vld [vmem:[#allocation2 + $0xc9] sm:$0xff] }
  0xf7   : > { %v3121_v56 = vpop.permute.xlu1 %3120  ;;  %v768_v42 = vld [vmem:[#allocation2 + $0x189] sm:$0xff] }
  0xf8   : > { %v3123_v62 = vunpack.i.h.bf16 %v3121_v56  ;;  %v3122_v22 = vunpack.i.l.bf16 %v3121_v56  ;;  %v3126_v16 = vpop.permute.xlu0 %3125  ;;  %v1733_v56 = vsel %vm1731_vm2, %v1700_v58, %v3008_v32  ;;  %v4486_v21 = vld [vmem:[#allocation2 + $0xc2] sm:$0xff]  ;;  %v3012_v58 = vunpack.i.l.bf16 %v4353_v5 }
  0xf9   : > { %v3128_v12 = vunpack.i.h.bf16 %v3126_v16  ;;  %v3127_v40 = vunpack.i.l.bf16 %v3126_v16  ;;  %3410 = vrot.lane.b32.xlu1 %v4452_v38, %s3568_s19  ;;  %v1749_v16 = vsel %vm1731_vm2, %v1716_v27, %v3048_v46  ;;  %v1766_v8 = vsel %vm1764_vm3, %v1733_v56, %v3088_v57  ;;  %v4488_v32 = vld [vmem:[#allocation2 + $0x182] sm:$0xff] }
  0xfa   : > { %3415 = vrot.lane.b32.xlu0 %v4414_v20, %s3565_s11  ;;  %v1897_v54 = vsel %vm1896_vm7, %v1864_v30, %v3122_v22  ;;  %v1913_v47 = vsel %vm1896_vm7, %v1880_v50, %v3123_v62  ;;  %v1782_v3 = vsel %vm1764_vm3, %v1749_v16, %v3117_v43  ;;  %v4495_v57 = vpack.i.bf16 %v768_v42, %v752_v44  ;;  %v773_v42 = vld [vmem:[#allocation2 + $0x4a] sm:$0xff] }
  0xfb   : > { %v3131_v4 = vpop.permute.xlu1 %3130  ;;  %2108 = vmatmul.mubr.f32.vlgmr.msra.gmra.mxu0 %v1897_v54  ;;  %2188 = vmatmul.mubr.f32.vlgmr.msra.gmra.mxu1 %v1913_v47  ;;  %v1799_v46 = vsel %vm1797_vm4, %v1766_v8, %v3127_v40  ;;  %v1815_v62 = vsel %vm1797_vm4, %v1782_v3, %v3128_v12  ;;  %v2932_v50 = vunpack.i.l.bf16 %v4287_v31  ;;  %v3444_v12 = vpack.i.bf16 %v4488_v32, %v4486_v21  ;;  %v789_v8 = vld [vmem:[#allocation2 + $0x10a] sm:$0xff] }
  0xfc   : > { %v3133_v61 = vunpack.i.h.bf16 %v3131_v4  ;;  %v3132_v25 = vunpack.i.l.bf16 %v3131_v4  ;;  %v3136_v20 = vpop.permute.xlu0 %3135  ;;  %2802 = vmatprep.mubr.msk.f32.mxu0 %vm283_vm0, %v772_v55  ;;  %2818 = vmatprep.mubr.msk.f32.mxu1 %vm283_vm0, %v788_v37  ;;  %v2972_v55 = vunpack.i.l.bf16 %v4317_v18  ;;  %v3092_v56 = vunpack.i.l.bf16 %v4416_v53 }
  0xfd   : > { %v3138_v22 = vunpack.i.h.bf16 %v3136_v20  ;;  %v3137_v30 = vunpack.i.l.bf16 %v3136_v20  ;;  %3420 = vrot.lane.b32.xlu1 %v3419_v63, %s3566_s12  ;;  %v3052_v63 = vunpack.i.l.bf16 %v4383_v19  ;;  %v3118_v16 = vunpack.i.h.bf16 %v4450_v0  ;;  %v737_v0 = vld [vmem:[#allocation2 + $0x198] sm:$0xff] }
  0xfe   : > { %3425 = vrot.lane.b32.xlu0 %v4462_v7, %s3567_s14  ;;  %v1832_v43 = vsel %vm1830_vm5, %v1799_v46, %v3132_v25  ;;  %v1848_v37 = vsel %vm1830_vm5, %v1815_v62, %v3133_v61  ;;  %v721_v46 = vld [vmem:[#allocation2 + $0xd8] sm:$0xff]  ;;  %v1717_v62 = vsel %vm283_vm0, %v4156_v6, %v2972_v55 }
  0xff   : > { %v3141_v40 = vpop.permute.xlu1 %3140  ;;  %v1865_v4 = vsel %vm1863_vm6, %v1832_v43, %v3137_v30  ;;  %v1881_v44 = vsel %vm1863_vm6, %v1848_v37, %v3138_v22  ;;  %v1750_v43 = vsel %vm1731_vm2, %v1717_v62, %v3052_v63  ;;  %v3449_v6 = vpack.i.bf16 %v737_v0, %v721_v46  ;;  %v769_v55 = vld [vmem:[#allocation2 + $0x199] sm:$0xff] }
 0x100   : > { %v3143_v27 = vunpack.i.h.bf16 %v3141_v40  ;;  %v3142_v54 = vunpack.i.l.bf16 %v3141_v40  ;;  %v3146_v47 = vpop.permute.xlu0 %3145 }
 0x101   : > { %3430 = vrot.lane.b32.xlu1 %v4437_v29, %s3564_s18  ;;  %v3148_v3 = vunpack.i.h.bf16 %v3146_v47  ;;  %v3147_v61 = vunpack.i.l.bf16 %v3146_v47  ;;  %v1701_v29 = vsel %vm283_vm0, %v4136_v39, %v2932_v50  ;;  %v1783_v39 = vsel %vm1764_vm3, %v1750_v43, %v3118_v16  ;;  %v753_v50 = vld [vmem:[#allocation2 + $0xd9] sm:$0xff] }
 0x102   : > { %3435 = vrot.lane.b32.xlu0 %v4495_v57, %s3568_s19  ;;  %v1898_v25 = vsel %vm1896_vm7, %v1865_v4, %v3142_v54  ;;  %v1914_v20 = vsel %vm1896_vm7, %v1881_v44, %v3143_v27  ;;  %v1734_v30 = vsel %vm1731_vm2, %v1701_v29, %v3012_v58  ;;  %v2933_v44 = vunpack.i.h.bf16 %v4287_v31 }
 0x103   : > { %v3151_v22 = vpop.permute.xlu1 %3150  ;;  %2113 = vmatmul.mubr.f32.gmra.mxu0 %v1898_v25  ;;  %2193 = vmatmul.mubr.f32.gmra.mxu1 %v1914_v20  ;;  %v1767_v27 = vsel %vm1764_vm3, %v1734_v30, %v3092_v56  ;;  %v1816_v63 = vsel %vm1797_vm4, %v1783_v39, %v3148_v3  ;;  %v2973_v56 = vunpack.i.h.bf16 %v4317_v18  ;;  %v4538_v25 = vld [vmem:[#allocation2 + $0x18a] sm:$0xff]  ;;  %v3013_v3 = vunpack.i.h.bf16 %v4353_v5 }
 0x104   : > { %v3153_v37 = vunpack.i.h.bf16 %v3151_v22  ;;  %v3152_v40 = vunpack.i.l.bf16 %v3151_v22  ;;  %v3156_v54 = vpop.permute.xlu0 %3155  ;;  %2803 = vmatprep.mubr.msk.f32.mxu0 %vm283_vm0, %v773_v42  ;;  %2819 = vmatprep.mubr.msk.f32.mxu1 %vm283_vm0, %v789_v8  ;;  %v1800_v58 = vsel %vm1797_vm4, %v1767_v27, %v3147_v61  ;;  %v4536_v8 = vld [vmem:[#allocation2 + $0xca] sm:$0xff]  ;;  %v3053_v61 = vunpack.i.h.bf16 %v4383_v19  ;;  %v774_v19 = vld [vmem:[#allocation2 + $0x52] sm:$0xff] }
 0x105   : > { %3440 = vrot.lane.b32.xlu1 %v4452_v38, %s3565_s11  ;;  %v3158_v47 = vunpack.i.h.bf16 %v3156_v54  ;;  %v3157_v4 = vunpack.i.l.bf16 %v3156_v54  ;;  %v3093_v31 = vunpack.i.h.bf16 %v4416_v53  ;;  %v3469_v5 = vpack.i.bf16 %v4538_v25, %v4536_v8  ;;  %v790_v54 = vld [vmem:[#allocation2 + $0x112] sm:$0xff] }
 0x106   : > { %3445 = vrot.lane.b32.xlu0 %v3444_v12, %s3566_s12  ;;  %v1833_v16 = vsel %vm1830_vm5, %v1800_v58, %v3152_v40  ;;  %v1849_v38 = vsel %vm1830_vm5, %v1816_v63, %v3153_v37  ;;  %v3459_v12 = vpack.i.bf16 %v769_v55, %v753_v50  ;;  %v1702_v53 = vsel %vm283_vm0, %v4138_v41, %v2933_v44  ;;  %v738_v40 = vld [vmem:[#allocation2 + $0x1a0] sm:$0xff] }
 0x107   : > { %v4532_v42 = vpop.permute.xlu1 %3160  ;;  %v1866_v29 = vsel %vm1863_vm6, %v1833_v16, %v3157_v4  ;;  %v1882_v62 = vsel %vm1863_vm6, %v1849_v38, %v3158_v47  ;;  %v1718_v22 = vsel %vm283_vm0, %v4188_v1, %v2973_v56  ;;  %v1735_v27 = vsel %vm1731_vm2, %v1702_v53, %v3013_v3  ;;  %v754_v47 = vld [vmem:[#allocation2 + $0xe1] sm:$0xff] }
 0x108   : > { %v3166_v20 = vpop.permute.xlu0 %3165  ;;  %v3162_v18 = vunpack.i.l.bf16 %v4532_v42  ;;  %v1751_v39 = vsel %vm1731_vm2, %v1718_v22, %v3053_v61  ;;  %v1768_v41 = vsel %vm1764_vm3, %v1735_v27, %v3093_v31  ;;  %v770_v4 = vld [vmem:[#allocation2 + $0x1a1] sm:$0xff]  ;;  %v3017_v22 = vunpack.i.l.bf16 %v4355_v9 }
 0x109   : > { %v3168_v46 = vunpack.i.h.bf16 %v3166_v20  ;;  %v3167_v0 = vunpack.i.l.bf16 %v3166_v20  ;;  %3450 = vrot.lane.b32.xlu1 %v3449_v6, %s3567_s14  ;;  %v3479_v31 = vpack.i.bf16 %v770_v4, %v754_v47  ;;  %v775_v53 = vld [vmem:[#allocation2 + $0x62] sm:$0xff] }
 0x10a   : > { %3455 = vrot.lane.b32.xlu0 %v4462_v7, %s3564_s18  ;;  %v722_v7 = vld [vmem:[#allocation2 + $0xe0] sm:$0xff]  ;;  %v1784_v1 = vsel %vm1764_vm3, %v1751_v39, %v3162_v18  ;;  %s3569_s18 = smov 8  }
 0x10b   : > { %v3171_v30 = vpop.permute.xlu1 %3170  ;;  %v1899_v43 = vsel %vm1896_vm7, %v1866_v29, %v3167_v0  ;;  %v1915_v37 = vsel %vm1896_vm7, %v1882_v62, %v3168_v46  ;;  %v3474_v16 = vpack.i.bf16 %v738_v40, %v722_v7  ;;  %v2937_v29 = vunpack.i.l.bf16 %v4285_v36  ;;  %v791_v7 = vld [vmem:[#allocation2 + $0x122] sm:$0xff] }
 0x10c   : > { %v3173_v6 = vunpack.i.h.bf16 %v3171_v30  ;;  %v3172_v50 = vunpack.i.l.bf16 %v3171_v30  ;;  %v3176_v55 = vpop.permute.xlu0 %3175  ;;  %2118 = vmatmul.mubr.f32.gmra.mxu0 %v1899_v43  ;;  %2198 = vmatmul.mubr.f32.gmra.mxu1 %v1915_v37  ;;  %v3057_v30 = vunpack.i.l.bf16 %v4385_v35  ;;  %v3097_v40 = vunpack.i.l.bf16 %v4422_v48 }
 0x10d   : > { %v3178_v58 = vunpack.i.h.bf16 %v3176_v55  ;;  %v3177_v63 = vunpack.i.l.bf16 %v3176_v55  ;;  %3460 = vrot.lane.b32.xlu1 %v3459_v12, %s3568_s19  ;;  %2804 = vmatprep.mubr.msk.f32.mxu0 %vm283_vm0, %v774_v19 }
 0x10e   : > { %v1801_v44 = vsel %vm1797_vm4, %v1768_v41, %v3172_v50  ;;  %v1817_v56 = vsel %vm1797_vm4, %v1784_v1, %v3173_v6  ;;  %3465 = vrot.lane.b32.xlu0 %v4495_v57, %s3565_s11  ;;  %2820 = vmatprep.mubr.msk.f32.mxu1 %vm283_vm0, %v790_v54  ;;  %v2977_v57 = vunpack.i.l.bf16 %v4319_v26  ;;  %v3163_v54 = vunpack.i.h.bf16 %v4532_v42  ;;  %s3505_s11 = scalar_lea.vmem %s3504_s29, 256 }
 0x10f   : > { %v3181_v38 = vpop.permute.xlu1 %3180  ;;  %v1834_v46 = vsel %vm1830_vm5, %v1801_v44, %v3177_v63  ;;  %v1850_v0 = vsel %vm1830_vm5, %v1817_v56, %v3178_v58  ;;  %v1703_v50 = vsel %vm283_vm0, %v4150_v51, %v2937_v29 }
 0x110   : > { %v3183_v3 = vunpack.i.h.bf16 %v3181_v38  ;;  %v3182_v61 = vunpack.i.l.bf16 %v3181_v38  ;;  %v3186_v20 = vpop.permute.xlu0 %3185  ;;  %v1719_v55 = vsel %vm283_vm0, %v4186_v45, %v2977_v57  ;;  %v1736_v48 = vsel %vm1731_vm2, %v1703_v50, %v3017_v22 }
 0x111   : > { %v3188_v12 = vunpack.i.h.bf16 %v3186_v20  ;;  %v3187_v18 = vunpack.i.l.bf16 %v3186_v20  ;;  %3470 = vrot.lane.b32.xlu1 %v3469_v5, %s3566_s12  ;;  %v1752_v42 = vsel %vm1731_vm2, %v1719_v55, %v3057_v30  ;;  %v1769_v1 = vsel %vm1764_vm3, %v1736_v48, %v3097_v40 }
 0x112   : > { %3475 = vrot.lane.b32.xlu0 %v3474_v16, %s3567_s14  ;;  %v1867_v62 = vsel %vm1863_vm6, %v1834_v46, %v3182_v61  ;;  %v1883_v19 = vsel %vm1863_vm6, %v1850_v0, %v3183_v3  ;;  %v1785_v58 = vsel %vm1764_vm3, %v1752_v42, %v3163_v54  ;;  %v2938_v16 = vunpack.i.h.bf16 %v4285_v36  ;;  %s2834_s14 = sshll.u32 %s3627_s25, 7  ;;  %s2676_s25 = scalar_lea.sflag [#allocation4], %s265_s10 }
 0x113   : > { %v3191_v5 = vpop.permute.xlu1 %3190  ;;  %v1900_v43 = vsel %vm1896_vm7, %v1867_v62, %v3187_v18  ;;  %v1916_v37 = vsel %vm1896_vm7, %v1883_v19, %v3188_v12  ;;  %v2978_v38 = vunpack.i.h.bf16 %v4319_v26  ;;  %v3018_v3 = vunpack.i.h.bf16 %v4355_v9  ;;  %v776_v19 = vld [vmem:[#allocation2 + $0x6a] sm:$0xff] }
 0x114   : > { %v3196_v27 = vpop.permute.xlu0 %3195  ;;  %2123 = vmatmul.mubr.f32.gmra.mxu0 %v1900_v43  ;;  %2203 = vmatmul.mubr.f32.gmra.mxu1 %v1916_v37  ;;  %v3193_v39 = vunpack.i.h.bf16 %v3191_v5  ;;  %v3192_v6 = vunpack.i.l.bf16 %v3191_v5  ;;  %v3058_v61 = vunpack.i.h.bf16 %v4385_v35  ;;  %v792_v26 = vld [vmem:[#allocation2 + $0x12a] sm:$0xff]  ;;  %v1704_v30 = vsel %vm283_vm0, %v4152_v52, %v2938_v16 }
 0x115   : > { %3480 = vrot.lane.b32.xlu1 %v3479_v31, %s3568_s19  ;;  %2805 = vmatprep.mubr.msk.f32.mxu0 %vm283_vm0, %v775_v53  ;;  %v3198_v63 = vunpack.i.h.bf16 %v3196_v27  ;;  %v3197_v47 = vunpack.i.l.bf16 %v3196_v27  ;;  %v1720_v5 = vsel %vm283_vm0, %v4217_v10, %v2978_v38  ;;  %v1737_v37 = vsel %vm1731_vm2, %v1704_v30, %v3018_v3  ;;  %s5123_s19 = scalar_lea.hbm %s5232_s6, %s2834_s14 }
 0x116   : > { %2821 = vmatprep.mubr.msk.f32.mxu1 %vm283_vm0, %v791_v7  ;;  %v1802_v44 = vsel %vm1797_vm4, %v1769_v1, %v3192_v6  ;;  %v1818_v51 = vsel %vm1797_vm4, %v1785_v58, %v3193_v39  ;;  %v1753_v7 = vsel %vm1731_vm2, %v1720_v5, %v3058_v61  ;;  %v3022_v16 = vunpack.i.l.bf16 %v4361_v2 }
 0x117   : > { %v3201_v41 = vpop.permute.xlu1 %3200  ;;  %v1835_v46 = vsel %vm1830_vm5, %v1802_v44, %v3197_v47  ;;  %v1851_v0 = vsel %vm1830_vm5, %v1818_v51, %v3198_v63  ;;  %v2942_v47 = vunpack.i.l.bf16 %v4294_v14  ;;  %v3062_v38 = vunpack.i.l.bf16 %v4392_v23 }
 0x118   : > { %v3206_v4 = vpop.permute.xlu0 %3205  ;;  %v3203_v56 = vunpack.i.h.bf16 %v3201_v41  ;;  %v3202_v45 = vunpack.i.l.bf16 %v3201_v41 }
 0x119   : > { %v3208_v29 = vunpack.i.h.bf16 %v3206_v4  ;;  %v3207_v57 = vunpack.i.l.bf16 %v3206_v4  ;;  %v2982_v4 = vunpack.i.l.bf16 %v4325_v59 }
 0x11a   : > { %v1868_v62 = vsel %vm1863_vm6, %v1835_v46, %v3202_v45  ;;  %v1884_v36 = vsel %vm1863_vm6, %v1851_v0, %v3203_v56  ;;  %v777_v56 = vld [vmem:[#allocation2 + $0x7a] sm:$0xff] }
 0x11b   : > { %v3211_v20 = vpop.permute.xlu1 %3210  ;;  %v1770_v39 = vsel %vm1764_vm3, %v1737_v37, %v3207_v57  ;;  %v1786_v52 = vsel %vm1764_vm3, %v1753_v7, %v3208_v29  ;;  %v793_v45 = vld [vmem:[#allocation2 + $0x13a] sm:$0xff]  ;;  %v3484_v29 = vld [vmem:[#allocation2 + $0x48] sm:$0xff] }
 0x11c   : > { %v3213_v31 = vunpack.i.h.bf16 %v3211_v20  ;;  %v3212_v12 = vunpack.i.l.bf16 %v3211_v20  ;;  %v3216_v18 = vpop.permute.xlu0 %3215  ;;  %v1705_v57 = vsel %vm283_vm0, %v3484_v29, %v2942_v47 }
 0x11d   : > { %v3218_v53 = vunpack.i.h.bf16 %v3216_v18  ;;  %v3217_v9 = vunpack.i.l.bf16 %v3216_v18 }
 0x11e   : > { %v1901_v35 = vsel %vm1896_vm7, %v1868_v62, %v3212_v12  ;;  %v1917_v22 = vsel %vm1896_vm7, %v1884_v36, %v3213_v31  ;;  %v1721_v62 = vsel %vm283_vm0, %v4236_v15, %v2982_v4  ;;  %v1738_v36 = vsel %vm1731_vm2, %v1705_v57, %v3022_v16 }
 0x11f   : > { %v3221_v43 = vpop.permute.xlu1 %3220  ;;  %2128 = vmatmul.mubr.f32.gmra.mxu0 %v1901_v35  ;;  %2208 = vmatmul.mubr.f32.gmra.mxu1 %v1917_v22  ;;  %v1803_v10 = vsel %vm1797_vm4, %v1770_v39, %v3217_v9  ;;  %v1819_v6 = vsel %vm1797_vm4, %v1786_v52, %v3218_v53  ;;  %v2943_v15 = vunpack.i.h.bf16 %v4294_v14 }
 0x120   : > { %v3223_v40 = vunpack.i.h.bf16 %v3221_v43  ;;  %v3222_v54 = vunpack.i.l.bf16 %v3221_v43  ;;  %v3226_v27 = vpop.permute.xlu0 %3225  ;;  %2806 = vmatprep.mubr.msk.f32.mxu0 %vm283_vm0, %v776_v19  ;;  %2822 = vmatprep.mubr.msk.f32.mxu1 %vm283_vm0, %v792_v26  ;;  %v1754_v19 = vsel %vm1731_vm2, %v1721_v62, %v3062_v38  ;;  %v2947_v62 = vunpack.i.l.bf16 %v4296_v11 }
 0x121   : > { %v3228_v50 = vunpack.i.h.bf16 %v3226_v27  ;;  %v3227_v55 = vunpack.i.l.bf16 %v3226_v27  ;;  %v3063_v27 = vunpack.i.h.bf16 %v4392_v23  ;;  %v1706_v47 = vsel %vm283_vm0, %v4254_v13, %v2943_v15 }
 0x122   : > { %v1836_v42 = vsel %vm1830_vm5, %v1803_v10, %v3222_v54  ;;  %v1852_v41 = vsel %vm1830_vm5, %v1819_v6, %v3223_v40  ;;  %v2983_v40 = vunpack.i.h.bf16 %v4325_v59  ;;  %v3023_v54 = vunpack.i.h.bf16 %v4361_v2  ;;  %v794_v59 = vld [vmem:[#allocation2 + $0x142] sm:$0xff] }
 0x123   : > { %v3231_v48 = vpop.permute.xlu1 %3230  ;;  %v1869_v44 = vsel %vm1863_vm6, %v1836_v42, %v3227_v55  ;;  %v1885_v51 = vsel %vm1863_vm6, %v1852_v41, %v3228_v50 }
 0x124   : > { %v3236_v1 = vpop.permute.xlu0 %3235  ;;  %v3233_v31 = vunpack.i.h.bf16 %v3231_v48  ;;  %v3232_v12 = vunpack.i.l.bf16 %v3231_v48  ;;  %v1722_v4 = vsel %vm283_vm0, %v4256_v33, %v2983_v40 }
 0x125   : > { %v3238_v58 = vunpack.i.h.bf16 %v3236_v1  ;;  %v3237_v63 = vunpack.i.l.bf16 %v3236_v1  ;;  %v778_v1 = vld [vmem:[#allocation2 + $0x82] sm:$0xff] }
 0x126   : > { %v1771_v53 = vsel %vm1764_vm3, %v1738_v36, %v3232_v12  ;;  %v1787_v9 = vsel %vm1764_vm3, %v1754_v19, %v3233_v31  ;;  %v2987_v36 = vunpack.i.l.bf16 %v4327_v28 }
 0x127   : > { %v3241_v3 = vpop.permute.xlu1 %3240  ;;  %v1902_v61 = vsel %vm1896_vm7, %v1869_v44, %v3237_v63  ;;  %v1918_v20 = vsel %vm1896_vm7, %v1885_v51, %v3238_v58  ;;  %v1739_v51 = vsel %vm1731_vm2, %v1706_v47, %v3023_v54 }
 0x128   : > { %v3246_v18 = vpop.permute.xlu0 %3245  ;;  %2133 = vmatmul.mubr.f32.gmra.mxu0 %v1902_v61  ;;  %2213 = vmatmul.mubr.f32.gmra.mxu1 %v1918_v20  ;;  %v3243_v46 = vunpack.i.h.bf16 %v3241_v3  ;;  %v3242_v0 = vunpack.i.l.bf16 %v3241_v3 }
 0x129   : > { %2807 = vmatprep.mubr.msk.f32.mxu0 %vm283_vm0, %v777_v56  ;;  %2823 = vmatprep.mubr.msk.f32.mxu1 %vm283_vm0, %v793_v45  ;;  %v3248_v35 = vunpack.i.h.bf16 %v3246_v18  ;;  %v3247_v22 = vunpack.i.l.bf16 %v3246_v18  ;;  %v1755_v56 = vsel %vm1731_vm2, %v1722_v4, %v3063_v27  ;;  %v1707_v27 = vsel %vm283_vm0, %v4268_v24, %v2947_v62 }
 0x12a   : > { %v1804_v5 = vsel %vm1797_vm4, %v1771_v53, %v3242_v0  ;;  %v1820_v43 = vsel %vm1797_vm4, %v1787_v9, %v3243_v46  ;;  %v779_v53 = vld [vmem:[#allocation2 + $0x92] sm:$0xff] }
 0x12b   : > { %v3251_v26 = vpop.permute.xlu1 %3250  ;;  %v1837_v50 = vsel %vm1830_vm5, %v1804_v5, %v3247_v22  ;;  %v1853_v55 = vsel %vm1830_vm5, %v1820_v43, %v3248_v35  ;;  %v795_v9 = vld [vmem:[#allocation2 + $0x152] sm:$0xff]  ;;  %v3027_v35 = vunpack.i.l.bf16 %v4363_v17  ;;  %v3067_v22 = vunpack.i.l.bf16 %v4394_v49 }
 0x12c   : > { %v3256_v30 = vpop.permute.xlu0 %3255  ;;  %v3253_v37 = vunpack.i.h.bf16 %v3251_v26  ;;  %v3252_v7 = vunpack.i.l.bf16 %v3251_v26 }
 0x12d   : > { %v3258_v48 = vunpack.i.h.bf16 %v3256_v30  ;;  %v3257_v42 = vunpack.i.l.bf16 %v3256_v30 }
 0x12e   : > { %v1870_v41 = vsel %vm1863_vm6, %v1837_v50, %v3252_v7  ;;  %v1886_v14 = vsel %vm1863_vm6, %v1853_v55, %v3253_v37 }
 0x12f   : > { %v3261_v39 = vpop.permute.xlu1 %3260  ;;  %v1788_v3 = vsel %vm1764_vm3, %v1755_v56, %v3258_v48  ;;  %v1772_v13 = vsel %vm1764_vm3, %v1739_v51, %v3257_v42 }
 0x130   : > { %v3263_v52 = vunpack.i.h.bf16 %v3261_v39  ;;  %v3262_v10 = vunpack.i.l.bf16 %v3261_v39  ;;  %v3266_v6 = vpop.permute.xlu0 %3265  ;;  %v1723_v39 = vsel %vm283_vm0, %v4270_v34, %v2987_v36  ;;  %v2948_v34 = vunpack.i.h.bf16 %v4296_v11 }
 0x131   : > { %v3268_v58 = vunpack.i.h.bf16 %v3266_v6  ;;  %v3267_v2 = vunpack.i.l.bf16 %v3266_v6 }
 0x132   : > { %v1903_v23 = vsel %vm1896_vm7, %v1870_v41, %v3262_v10  ;;  %v1919_v63 = vsel %vm1896_vm7, %v1886_v14, %v3263_v52  ;;  %v1740_v52 = vsel %vm1731_vm2, %v1707_v27, %v3027_v35  ;;  %v1756_v10 = vsel %vm1731_vm2, %v1723_v39, %v3067_v22  ;;  %v5269_v39 = vld [vmem:[#allocation12_spill] sm:$0xff] }
 0x133   : > { %v3271_v44 = vpop.permute.xlu1 %3270  ;;  %2138 = vmatmul.mubr.f32.gmra.mxu0 %v1903_v23  ;;  %2218 = vmatmul.mubr.f32.gmra.mxu1 %v1919_v63  ;;  %v1805_v33 = vsel %vm1797_vm4, %v1772_v13, %v3267_v2  ;;  %v1821_v61 = vsel %vm1797_vm4, %v1788_v3, %v3268_v58  ;;  %v2988_v58 = vunpack.i.h.bf16 %v4327_v28  ;;  %v3028_v2 = vunpack.i.h.bf16 %v4363_v17  ;;  %v796_v3 = vld [vmem:[#allocation2 + $0x15a] sm:$0xff] }
 0x134   : > { %v3273_v45 = vunpack.i.h.bf16 %v3271_v44  ;;  %v3272_v16 = vunpack.i.l.bf16 %v3271_v44  ;;  %v3276_v38 = vpop.permute.xlu0 %3275  ;;  %2808 = vmatprep.mubr.msk.f32.mxu0 %vm283_vm0, %v778_v1  ;;  %2824 = vmatprep.mubr.msk.f32.mxu1 %vm283_vm0, %v794_v59  ;;  %v3068_v23 = vunpack.i.h.bf16 %v4394_v49 }
 0x135   : > { %v3278_v20 = vunpack.i.h.bf16 %v3276_v38  ;;  %v3277_v31 = vunpack.i.l.bf16 %v3276_v38 }
 0x136   : > { %v1838_v18 = vsel %vm1830_vm5, %v1805_v33, %v3272_v16  ;;  %v1854_v46 = vsel %vm1830_vm5, %v1821_v61, %v3273_v45  ;;  %v3485_v33 = vld [vmem:[#allocation2 + $0x68] sm:$0xff] }
 0x137   : > { %v3281_v12 = vpop.permute.xlu1 %3280  ;;  %v1871_v19 = vsel %vm1863_vm6, %v1838_v18, %v3277_v31  ;;  %v1887_v26 = vsel %vm1863_vm6, %v1854_v46, %v3278_v20  ;;  %v1708_v61 = vsel %vm283_vm0, %v3485_v33, %v2948_v34  ;;  %v3486_v20 = vld [vmem:[#allocation2 + $0x128] sm:$0xff]  ;;  %v3033_v33 = vunpack.i.h.bf16 %v5269_v39 }
 0x138   : > { %v3286_v0 = vpop.permute.xlu0 %3285  ;;  %v3283_v37 = vunpack.i.h.bf16 %v3281_v12  ;;  %v3282_v7 = vunpack.i.l.bf16 %v3281_v12  ;;  %v1724_v31 = vsel %vm283_vm0, %v3486_v20, %v2988_v58  ;;  %v1741_v18 = vsel %vm1731_vm2, %v1708_v61, %v3028_v2  ;;  %v5272_v34 = vld [vmem:[#allocation19_spill] sm:$0xff]  ;;  %v3487_v58 = vld [vmem:[#allocation2 + $0x78] sm:$0xff] }
 0x139   : > { %v3288_v29 = vunpack.i.h.bf16 %v3286_v0  ;;  %v3287_v57 = vunpack.i.l.bf16 %v3286_v0  ;;  %v1757_v46 = vsel %vm1731_vm2, %v1724_v31, %v3068_v23  ;;  %v3488_v23 = vld [vmem:[#allocation2 + $0x138] sm:$0xff] }
 0x13a   : > { %v1773_v50 = vsel %vm1764_vm3, %v1740_v52, %v3282_v7  ;;  %v1789_v55 = vsel %vm1764_vm3, %v1756_v10, %v3283_v37  ;;  %v5267_v37 = vld [vmem:[#allocation6_spill] sm:$0xff]  ;;  %v3032_v52 = vunpack.i.l.bf16 %v5269_v39  ;;  %v5270_v10 = vld [vmem:[#allocation15_spill] sm:$0xff] }
 0x13b   : > { %v3291_v30 = vpop.permute.xlu1 %3290  ;;  %v1904_v5 = vsel %vm1896_vm7, %v1871_v19, %v3287_v57  ;;  %v1920_v43 = vsel %vm1896_vm7, %v1887_v26, %v3288_v29  ;;  %v2952_v7 = vunpack.i.l.bf16 %v5267_v37  ;;  %v3073_v61 = vunpack.i.h.bf16 %v5270_v10 }
 0x13c   : > { %v3296_v15 = vpop.permute.xlu0 %3295  ;;  %2143 = vmatmul.mubr.f32.gmra.mxu0 %v1904_v5  ;;  %2223 = vmatmul.mubr.f32.gmra.mxu1 %v1920_v43  ;;  %v3293_v40 = vunpack.i.h.bf16 %v3291_v30  ;;  %v3292_v54 = vunpack.i.l.bf16 %v3291_v30 }
 0x13d   : > { %2809 = vmatprep.mubr.msk.f32.mxu0 %vm283_vm0, %v779_v53  ;;  %2825 = vmatprep.mubr.msk.f32.mxu1 %vm283_vm0, %v795_v9  ;;  %v3298_v48 = vunpack.i.h.bf16 %v3296_v15  ;;  %v3297_v42 = vunpack.i.l.bf16 %v3296_v15  ;;  %v5268_v15 = vld [vmem:[#allocation9_spill] sm:$0xff]  ;;  %v1709_v2 = vsel %vm283_vm0, %v3487_v58, %v2952_v7  ;;  %v5276_v58 = vld [vmem:[#allocation10_spill] sm:$0xff] }
 0x13e   : > { %v1806_v14 = vsel %vm1797_vm4, %v1773_v50, %v3292_v54  ;;  %v1822_v1 = vsel %vm1797_vm4, %v1789_v55, %v3293_v40  ;;  %v2992_v40 = vunpack.i.l.bf16 %v5268_v15 }
 0x13f   : > { %v3301_v6 = vpop.permute.xlu1 %3300  ;;  %v1839_v51 = vsel %vm1830_vm5, %v1806_v14, %v3297_v42  ;;  %v1855_v56 = vsel %vm1830_vm5, %v1822_v1, %v3298_v48 }
 0x140   : > { %v3306_v41 = vpop.permute.xlu0 %3305  ;;  %v3303_v24 = vunpack.i.h.bf16 %v3301_v6  ;;  %v3302_v59 = vunpack.i.l.bf16 %v3301_v6  ;;  %v3072_v6 = vunpack.i.l.bf16 %v5270_v10 }
 0x141   : > { %v3308_v45 = vunpack.i.h.bf16 %v3306_v41  ;;  %v3307_v16 = vunpack.i.l.bf16 %v3306_v41 }
 0x142   : > { %v1872_v38 = vsel %vm1863_vm6, %v1839_v51, %v3302_v59  ;;  %v1888_v11 = vsel %vm1863_vm6, %v1855_v56, %v3303_v24  ;;  %v5271_v59 = vld [vmem:[#allocation18_spill] sm:$0xff] }
 0x143   : > { %v3311_v63 = vpop.permute.xlu1 %3310  ;;  %v1774_v62 = vsel %vm1764_vm3, %v1741_v18, %v3307_v16  ;;  %v1790_v36 = vsel %vm1764_vm3, %v1757_v46, %v3308_v45 }
 0x144   : > { %v3313_v47 = vunpack.i.h.bf16 %v3311_v63  ;;  %v3312_v4 = vunpack.i.l.bf16 %v3311_v63  ;;  %v3316_v44 = vpop.permute.xlu0 %3315  ;;  %v1725_v63 = vsel %vm283_vm0, %v3488_v23, %v2992_v40 }
 0x145   : > { %v3318_v28 = vunpack.i.h.bf16 %v3316_v44  ;;  %v3317_v13 = vunpack.i.l.bf16 %v3316_v44 }
 0x146   : > { %v1905_v17 = vsel %vm1896_vm7, %v1872_v38, %v3312_v4  ;;  %v1921_v49 = vsel %vm1896_vm7, %v1888_v11, %v3313_v47  ;;  %v1742_v47 = vsel %vm1731_vm2, %v1709_v2, %v3032_v52  ;;  %v1758_v4 = vsel %vm1731_vm2, %v1725_v63, %v3072_v6 }
 0x147   : > { %v3321_v12 = vpop.permute.xlu1 %3320  ;;  %2148 = vmatmul.mubr.f32.gmra.mxu0 %v1905_v17  ;;  %2228 = vmatmul.mubr.f32.gmra.mxu1 %v1921_v49  ;;  %v1807_v19 = vsel %vm1797_vm4, %v1774_v62, %v3317_v13  ;;  %v1823_v26 = vsel %vm1797_vm4, %v1790_v36, %v3318_v28  ;;  %v2953_v17 = vunpack.i.h.bf16 %v5267_v37  ;;  %v2993_v49 = vunpack.i.h.bf16 %v5268_v15 }
 0x148   : > { %v3323_v0 = vunpack.i.h.bf16 %v3321_v12  ;;  %v3322_v29 = vunpack.i.l.bf16 %v3321_v12  ;;  %v3326_v57 = vpop.permute.xlu0 %3325  ;;  %2810 = vmatprep.mubr.msk.f32.mxu0 %vm283_vm0, %v4398_v60  ;;  %2826 = vmatprep.mubr.msk.f32.mxu1 %vm283_vm0, %v796_v3  ;;  %v2997_v2 = vunpack.i.l.bf16 %v5276_v58 }
 0x149   : > { %v3328_v53 = vunpack.i.h.bf16 %v3326_v57  ;;  %v3327_v9 = vunpack.i.l.bf16 %v3326_v57 }
 0x14a   : > { %v1840_v22 = vsel %vm1830_vm5, %v1807_v19, %v3322_v29  ;;  %v1856_v30 = vsel %vm1830_vm5, %v1823_v26, %v3323_v0 }
 0x14b   : > { %v3331_v35 = vpop.permute.xlu1 %3330  ;;  %v1873_v54 = vsel %vm1863_vm6, %v1840_v22, %v3327_v9  ;;  %v1889_v27 = vsel %vm1863_vm6, %v1856_v30, %v3328_v53  ;;  %v3490_v30 = vld [vmem:[#allocation2 + $0x140] sm:$0xff] }
 0x14c   : > { %v3336_v5 = vpop.permute.xlu0 %3335  ;;  %v3333_v42 = vunpack.i.h.bf16 %v3331_v35  ;;  %v3332_v41 = vunpack.i.l.bf16 %v3331_v35  ;;  %v3489_v35 = vld [vmem:[#allocation2 + $0x80] sm:$0xff] }
 0x14d   : > { %v3338_v43 = vunpack.i.h.bf16 %v3336_v5  ;;  %v3337_v60 = vunpack.i.l.bf16 %v3336_v5  ;;  %v1710_v22 = vsel %vm283_vm0, %v3489_v35, %v2953_v17  ;;  %v1726_v5 = vsel %vm283_vm0, %v3490_v30, %v2993_v49  ;;  %v3491_v17 = vld [vmem:[#allocation2 + $0x90] sm:$0xff] }
 0x14e   : > { %v1775_v51 = vsel %vm1764_vm3, %v1742_v47, %v3332_v41  ;;  %v1791_v56 = vsel %vm1764_vm3, %v1758_v4, %v3333_v42  ;;  %v1759_v37 = vsel %vm1731_vm2, %v1726_v5, %v3073_v61  ;;  %v5277_v47 = vld [vmem:[#allocation13_spill] sm:$0xff] }
 0x14f   : > { %v3341_v50 = vpop.permute.xlu1 %3340  ;;  %v1906_v55 = vsel %vm1896_vm7, %v1873_v54, %v3337_v60  ;;  %v1922_v48 = vsel %vm1896_vm7, %v1889_v27, %v3338_v43  ;;  %v1743_v60 = vsel %vm1731_vm2, %v1710_v22, %v3033_v33  ;;  %v5273_v54 = vld [vmem:[#allocation20_spill] sm:$0xff]  ;;  %v5274_v27 = vld [vmem:[#allocation21_spill] sm:$0xff]  ;;  %v3037_v4 = vunpack.i.l.bf16 %v5277_v47 }
 0x150   : > { %v3346_v14 = vpop.permute.xlu0 %3345  ;;  %2153 = vmatmul.mubr.f32.gmra.mxu0 %v1906_v55  ;;  %2233 = vmatmul.mubr.f32.gmra.mxu1 %v1922_v48  ;;  %v3343_v1 = vunpack.i.h.bf16 %v3341_v50  ;;  %v3342_v24 = vunpack.i.l.bf16 %v3341_v50  ;;  %v3492_v33 = vld [vmem:[#allocation2 + $0x150] sm:$0xff] }
 0x151   : > { %2811 = vmatprep.mubr.msk.f32.mxu0 %vm283_vm0, %v5271_v59  ;;  %2827 = vmatprep.mubr.msk.f32.mxu1 %vm283_vm0, %v5272_v34  ;;  %v3348_v45 = vunpack.i.h.bf16 %v3346_v14  ;;  %v3347_v16 = vunpack.i.l.bf16 %v3346_v14  ;;  %v5275_v59 = vld [vmem:[#allocation7_spill] sm:$0xff]  ;;  %v1727_v61 = vsel %vm283_vm0, %v3492_v33, %v2997_v2  ;;  %v785_v33 = vld [vmem:[#allocation2 + $0xda] sm:$0xff] }
 0x152   : > { %v1808_v11 = vsel %vm1797_vm4, %v1775_v51, %v3342_v24  ;;  %v1824_v3 = vsel %vm1797_vm4, %v1791_v56, %v3343_v1  ;;  %v2957_v34 = vunpack.i.l.bf16 %v5275_v59 }
 0x153   : > { %v3351_v44 = vpop.permute.xlu1 %3350  ;;  %v1841_v46 = vsel %vm1830_vm5, %v1808_v11, %v3347_v16  ;;  %v1857_v0 = vsel %vm1830_vm5, %v1824_v3, %v3348_v45 }
 0x154   : > { %v3356_v38 = vpop.permute.xlu0 %3355  ;;  %v3353_v28 = vunpack.i.h.bf16 %v3351_v44  ;;  %v3352_v13 = vunpack.i.l.bf16 %v3351_v44  ;;  %v5278_v44 = vld [vmem:[#allocation16_spill] sm:$0xff]  ;;  %v1711_v49 = vsel %vm283_vm0, %v3491_v17, %v2957_v34 }
 0x155   : > { %v3358_v29 = vunpack.i.h.bf16 %v3356_v38  ;;  %v3357_v57 = vunpack.i.l.bf16 %v3356_v38  ;;  %v3077_v51 = vunpack.i.l.bf16 %v5278_v44 }
 0x156   : > { %v1874_v62 = vsel %vm1863_vm6, %v1841_v46, %v3352_v13  ;;  %v1890_v36 = vsel %vm1863_vm6, %v1857_v0, %v3353_v28 }
 0x157   : > { %v3361_v20 = vpop.permute.xlu1 %3360  ;;  %v1792_v39 = vsel %vm1764_vm3, %v1759_v37, %v3358_v29  ;;  %v1776_v52 = vsel %vm1764_vm3, %v1743_v60, %v3357_v57 }
 0x158   : > { %v3363_v31 = vunpack.i.h.bf16 %v3361_v20  ;;  %v3362_v12 = vunpack.i.l.bf16 %v3361_v20  ;;  %v3366_v18 = vpop.permute.xlu0 %3365  ;;  %v1744_v20 = vsel %vm1731_vm2, %v1711_v49, %v3037_v4 }
 0x159   : > { %v3368_v19 = vunpack.i.h.bf16 %v3366_v18  ;;  %v3367_v26 = vunpack.i.l.bf16 %v3366_v18 }
 0x15a   : > { %v1907_v53 = vsel %vm1896_vm7, %v1874_v62, %v3362_v12  ;;  %v1923_v9 = vsel %vm1896_vm7, %v1890_v36, %v3363_v31  ;;  %v1760_v31 = vsel %vm1731_vm2, %v1727_v61, %v3077_v51  ;;  %v801_v61 = vld [vmem:[#allocation2 + $0x19a] sm:$0xff] }
 0x15b   : > { %v3371_v43 = vpop.permute.xlu1 %3370  ;;  %2158 = vmatmul.mubr.f32.gmra.mxu0 %v1907_v53  ;;  %2238 = vmatmul.mubr.f32.gmra.mxu1 %v1923_v9  ;;  %v1809_v10 = vsel %vm1797_vm4, %v1776_v52, %v3367_v26  ;;  %v1825_v6 = vsel %vm1797_vm4, %v1792_v39, %v3368_v19  ;;  %v2958_v19 = vunpack.i.h.bf16 %v5275_v59  ;;  %v2998_v26 = vunpack.i.h.bf16 %v5276_v58 }
 0x15c   : > { %v3373_v7 = vunpack.i.h.bf16 %v3371_v43  ;;  %v3372_v15 = vunpack.i.l.bf16 %v3371_v43  ;;  %v3376_v40 = vpop.permute.xlu0 %3375  ;;  %2812 = vmatprep.mubr.msk.f32.mxu0 %vm283_vm0, %v5273_v54  ;;  %2828 = vmatprep.mubr.msk.f32.mxu1 %vm283_vm0, %v5274_v27  ;;  %v3038_v53 = vunpack.i.h.bf16 %v5277_v47  ;;  %v3078_v9 = vunpack.i.h.bf16 %v5278_v44 }
 0x15d   : > { %v3378_v50 = vunpack.i.h.bf16 %v3376_v40  ;;  %v3377_v55 = vunpack.i.l.bf16 %v3376_v40 }
 0x15e   : > { %v1842_v42 = vsel %vm1830_vm5, %v1809_v10, %v3372_v15  ;;  %v1858_v41 = vsel %vm1830_vm5, %v1825_v6, %v3373_v7  ;;  %v3493_v10 = vld [vmem:[#allocation2 + $0x98] sm:$0xff] }
 0x15f   : > { %v3381_v48 = vpop.permute.xlu1 %3380  ;;  %v1875_v23 = vsel %vm1863_vm6, %v1842_v42, %v3377_v55  ;;  %v1891_v63 = vsel %vm1863_vm6, %v1858_v41, %v3378_v50  ;;  %v1712_v6 = vsel %vm283_vm0, %v3493_v10, %v2958_v19  ;;  %v3494_v50 = vld [vmem:[#allocation2 + $0x158] sm:$0xff] }
 0x160   : > { %v3386_v14 = vpop.permute.xlu0 %3385  ;;  %v3383_v38 = vunpack.i.h.bf16 %v3381_v48  ;;  %v3382_v11 = vunpack.i.l.bf16 %v3381_v48  ;;  %v1728_v55 = vsel %vm283_vm0, %v3494_v50, %v2998_v26  ;;  %v1745_v42 = vsel %vm1731_vm2, %v1712_v6, %v3038_v53 }
 0x161   : > { %v3388_v1 = vunpack.i.h.bf16 %v3386_v14  ;;  %v3387_v24 = vunpack.i.l.bf16 %v3386_v14  ;;  %v1761_v41 = vsel %vm1731_vm2, %v1728_v55, %v3078_v9 }
 0x162   : > { %v1777_v18 = vsel %vm1764_vm3, %v1744_v20, %v3382_v11  ;;  %v1793_v46 = vsel %vm1764_vm3, %v1760_v31, %v3383_v38  ;;  %v5281_v11 = vld [vmem:[#allocation14_spill] sm:$0xff] }
 0x163   : > { %v3391_v56 = vpop.permute.xlu1 %3390  ;;  %v1908_v45 = vsel %vm1896_vm7, %v1875_v23, %v3387_v24  ;;  %v1924_v16 = vsel %vm1896_vm7, %v1891_v63, %v3388_v1 }
 0x164   : > { %v3396_v3 = vpop.permute.xlu0 %3395  ;;  %2163 = vmatmul.mubr.f32.gmra.mxu0 %v1908_v45  ;;  %2243 = vmatmul.mubr.f32.gmra.mxu1 %v1924_v16  ;;  %v3393_v28 = vunpack.i.h.bf16 %v3391_v56  ;;  %v3392_v13 = vunpack.i.l.bf16 %v3391_v56  ;;  %v5280_v45 = vld [vmem:[#allocation11_spill] sm:$0xff] }
 0x165   : > { %2813 = vmatprep.mubr.msk.f32.mxu0 %vm283_vm0, %v4486_v21  ;;  %2829 = vmatprep.mubr.msk.f32.mxu1 %vm283_vm0, %v4488_v32  ;;  %v3398_v0 = vunpack.i.h.bf16 %v3396_v3  ;;  %v3397_v21 = vunpack.i.l.bf16 %v3396_v3  ;;  %v3042_v3 = vunpack.i.l.bf16 %v5281_v11 }
 0x166   : > { %v1810_v32 = vsel %vm1797_vm4, %v1777_v18, %v3392_v13  ;;  %v1826_v57 = vsel %vm1797_vm4, %v1793_v46, %v3393_v28  ;;  %v5282_v28 = vld [vmem:[#allocation17_spill] sm:$0xff] }
 0x167   : > { %v3401_v12 = vpop.permute.xlu1 %3400  ;;  %v1843_v43 = vsel %vm1830_vm5, %v1810_v32, %v3397_v21  ;;  %v1859_v60 = vsel %vm1830_vm5, %v1826_v57, %v3398_v0  ;;  %v3082_v13 = vunpack.i.l.bf16 %v5282_v28  ;;  %v3495_v32 = vld [vmem:[#allocation2 + $0xa8] sm:$0xff] }
 0x168   : > { %v3406_v29 = vpop.permute.xlu0 %3405  ;;  %v3403_v62 = vunpack.i.h.bf16 %v3401_v12  ;;  %v3402_v36 = vunpack.i.l.bf16 %v3401_v12 }
 0x169   : > { %v3408_v37 = vunpack.i.h.bf16 %v3406_v29  ;;  %v3407_v7 = vunpack.i.l.bf16 %v3406_v29 }
 0x16a   : > { %v1876_v15 = vsel %vm1863_vm6, %v1843_v43, %v3402_v36  ;;  %v1892_v40 = vsel %vm1863_vm6, %v1859_v60, %v3403_v62  ;;  %v3496_v62 = vld [vmem:[#allocation2 + $0x168] sm:$0xff] }
 0x16b   : > { %v3411_v35 = vpop.permute.xlu1 %3410  ;;  %v1778_v59 = vsel %vm1764_vm3, %v1745_v42, %v3407_v7  ;;  %v1794_v34 = vsel %vm1764_vm3, %v1761_v41, %v3408_v37 }
 0x16c   : > { %v3413_v22 = vunpack.i.h.bf16 %v3411_v35  ;;  %v3412_v30 = vunpack.i.l.bf16 %v3411_v35  ;;  %v3416_v5 = vpop.permute.xlu0 %3415 }
 0x16d   : > { %v3418_v54 = vunpack.i.h.bf16 %v3416_v5  ;;  %v3417_v27 = vunpack.i.l.bf16 %v3416_v5 }
 0x16e   : > { %v1909_v39 = vsel %vm1896_vm7, %v1876_v15, %v3412_v30  ;;  %v1925_v52 = vsel %vm1896_vm7, %v1892_v40, %v3413_v22  ;;  %v3003_v40 = vunpack.i.h.bf16 %v5280_v45 }
 0x16f   : > { %v3421_v48 = vpop.permute.xlu1 %3420  ;;  %2168 = vmatmul.mubr.f32.gmra.mxu0 %v1909_v39  ;;  %2248 = vmatmul.mubr.f32.gmra.mxu1 %v1925_v52  ;;  %v1811_v58 = vsel %vm1797_vm4, %v1778_v59, %v3417_v27  ;;  %v1827_v2 = vsel %vm1797_vm4, %v1794_v34, %v3418_v54  ;;  %v3043_v54 = vunpack.i.h.bf16 %v5281_v11  ;;  %v3083_v27 = vunpack.i.h.bf16 %v5282_v28  ;;  %v786_v59 = vld [vmem:[#allocation2 + $0xe2] sm:$0xff] }
 0x170   : > { %v3423_v14 = vunpack.i.h.bf16 %v3421_v48  ;;  %v3422_v1 = vunpack.i.l.bf16 %v3421_v48  ;;  %v3426_v24 = vpop.permute.xlu0 %3425  ;;  %2814 = vmatprep.mubr.msk.f32.mxu0 %vm283_vm0, %v4536_v8  ;;  %2830 = vmatprep.mubr.msk.f32.mxu1 %vm283_vm0, %v4538_v25  ;;  %v5279_v8 = vld [vmem:[#allocation8_spill] sm:$0xff]  ;;  %v3002_v25 = vunpack.i.l.bf16 %v5280_v45  ;;  %v802_v34 = vld [vmem:[#allocation2 + $0x1a2] sm:$0xff] }
 0x171   : > { %v3428_v23 = vunpack.i.h.bf16 %v3426_v24  ;;  %v3427_v63 = vunpack.i.l.bf16 %v3426_v24  ;;  %v2962_v56 = vunpack.i.l.bf16 %v5279_v8  ;;  %v2963_v15 = vunpack.i.h.bf16 %v5279_v8 }
 0x172   : > { %v1844_v4 = vsel %vm1830_vm5, %v1811_v58, %v3422_v1  ;;  %v1860_v44 = vsel %vm1830_vm5, %v1827_v2, %v3423_v14  ;;  %v1729_v36 = vsel %vm283_vm0, %v3496_v62, %v3002_v25  ;;  %v3497_v58 = vld [vmem:[#allocation2 + $0xb0] sm:$0xff] }
 0x173   : > { %v3431_v47 = vpop.permute.xlu1 %3430  ;;  %v1877_v17 = vsel %vm1863_vm6, %v1844_v4, %v3427_v63  ;;  %v1893_v49 = vsel %vm1863_vm6, %v1860_v44, %v3428_v23  ;;  %v1713_v57 = vsel %vm283_vm0, %v3495_v32, %v2962_v56  ;;  %v1762_v26 = vsel %vm1731_vm2, %v1729_v36, %v3082_v13  ;;  %v3498_v23 = vld [vmem:[#allocation2 + $0x170] sm:$0xff] }
 0x174   : > { %v3436_v51 = vpop.permute.xlu0 %3435  ;;  %v3433_v20 = vunpack.i.h.bf16 %v3431_v47  ;;  %v3432_v31 = vunpack.i.l.bf16 %v3431_v47  ;;  %v1746_v19 = vsel %vm1731_vm2, %v1713_v57, %v3042_v3  ;;  %v1714_v2 = vsel %vm283_vm0, %v3497_v58, %v2963_v15 }
 0x175   : > { %v3438_v16 = vunpack.i.h.bf16 %v3436_v51  ;;  %v3437_v38 = vunpack.i.l.bf16 %v3436_v51  ;;  %v1730_v63 = vsel %vm283_vm0, %v3498_v23, %v3003_v40  ;;  %v1747_v44 = vsel %vm1731_vm2, %v1714_v2, %v3043_v54 }
 0x176   : > { %v1779_v53 = vsel %vm1764_vm3, %v1746_v19, %v3432_v31  ;;  %v1795_v9 = vsel %vm1764_vm3, %v1762_v26, %v3433_v20  ;;  %v1763_v51 = vsel %vm1731_vm2, %v1730_v63, %v3083_v27 }
 0x177   : > { %v3441_v12 = vpop.permute.xlu1 %3440  ;;  %v1910_v18 = vsel %vm1896_vm7, %v1877_v17, %v3437_v38  ;;  %v1926_v46 = vsel %vm1896_vm7, %v1893_v49, %v3438_v16 }
 0x178   : > { %v3443_v0 = vunpack.i.h.bf16 %v3441_v12  ;;  %v3442_v21 = vunpack.i.l.bf16 %v3441_v12  ;;  %v3446_v29 = vpop.permute.xlu0 %3445  ;;  %2173 = vmatmul.mubr.f32.gmra.mxu0 %v1910_v18  ;;  %2253 = vmatmul.mubr.f32.gmra.mxu1 %v1926_v46 }
 0x179   : > { %2815 = vmatprep.mubr.msk.f32.mxu0 %vm283_vm0, %v785_v33  ;;  %2831 = vmatprep.mubr.msk.f32.mxu1 %vm283_vm0, %v801_v61  ;;  %v3448_v35 = vunpack.i.h.bf16 %v3446_v29  ;;  %v3447_v22 = vunpack.i.l.bf16 %v3446_v29 }
 0x17a   : > { %v1812_v5 = vsel %vm1797_vm4, %v1779_v53, %v3442_v21  ;;  %v1828_v43 = vsel %vm1797_vm4, %v1795_v9, %v3443_v0 }
 0x17b   : > { %v3451_v30 = vpop.permute.xlu1 %3450  ;;  %v1845_v52 = vsel %vm1830_vm5, %v1812_v5, %v3447_v22  ;;  %v1861_v10 = vsel %vm1830_vm5, %v1828_v43, %v3448_v35 }
 0x17c   : > { %v3456_v60 = vpop.permute.xlu0 %3455  ;;  %v3453_v37 = vunpack.i.h.bf16 %v3451_v30  ;;  %v3452_v7 = vunpack.i.l.bf16 %v3451_v30 }
 0x17d   : > { %v3458_v6 = vunpack.i.h.bf16 %v3456_v60  ;;  %v3457_v50 = vunpack.i.l.bf16 %v3456_v60 }
 0x17e   : > { %v1878_v1 = vsel %vm1863_vm6, %v1845_v52, %v3452_v7  ;;  %v1894_v24 = vsel %vm1863_vm6, %v1861_v10, %v3453_v37 }
 0x17f   : > { %v3461_v39 = vpop.permute.xlu1 %3460  ;;  %v1796_v56 = vsel %vm1764_vm3, %v1763_v51, %v3458_v6  ;;  %v1780_v45 = vsel %vm1764_vm3, %v1747_v44, %v3457_v50 }
 0x180   : > { %v3463_v55 = vunpack.i.h.bf16 %v3461_v39  ;;  %v3462_v48 = vunpack.i.l.bf16 %v3461_v39  ;;  %v3466_v42 = vpop.permute.xlu0 %3465 }
 0x181   : > { %v3468_v41 = vunpack.i.h.bf16 %v3466_v42  ;;  %v3467_v14 = vunpack.i.l.bf16 %v3466_v42 }
 0x182   : > { %v1911_v47 = vsel %vm1896_vm7, %v1878_v1, %v3462_v48  ;;  %v1927_v4 = vsel %vm1896_vm7, %v1894_v24, %v3463_v55 }
 0x183   : > { %v3471_v8 = vpop.permute.xlu1 %3470  ;;  %2178 = vmatmul.mubr.f32.gmra.mxu0 %v1911_v47  ;;  %2258 = vmatmul.mubr.f32.gmra.mxu1 %v1927_v4  ;;  %v1813_v11 = vsel %vm1797_vm4, %v1780_v45, %v3467_v14  ;;  %v1829_v3 = vsel %vm1797_vm4, %v1796_v56, %v3468_v41 }
 0x184   : > { %v3473_v25 = vunpack.i.h.bf16 %v3471_v8  ;;  %v3472_v16 = vunpack.i.l.bf16 %v3471_v8  ;;  %v3476_v38 = vpop.permute.xlu0 %3475  ;;  %2816 = vmatprep.mubr.msk.f32.mxu0 %vm283_vm0, %v786_v59  ;;  %2832 = vmatprep.mubr.msk.f32.mxu1 %vm283_vm0, %v802_v34 }
 0x185   : > { %v3478_v28 = vunpack.i.h.bf16 %v3476_v38  ;;  %v3477_v13 = vunpack.i.l.bf16 %v3476_v38 }
 0x186   : > { %v1846_v17 = vsel %vm1830_vm5, %v1813_v11, %v3472_v16  ;;  %v1862_v49 = vsel %vm1830_vm5, %v1829_v3, %v3473_v25 }
 0x187   : > { %v3481_v33 = vpop.permute.xlu1 %3480  ;;  %v1879_v31 = vsel %vm1863_vm6, %v1846_v17, %v3477_v13  ;;  %v1895_v12 = vsel %vm1863_vm6, %v1862_v49, %v3478_v28 }
 0x188   : > { %v3483_v61 = vunpack.i.h.bf16 %v3481_v33  ;;  %v3482_v20 = vunpack.i.l.bf16 %v3481_v33 }
 0x18a   : > { %v1912_v18 = vsel %vm1896_vm7, %v1879_v31, %v3482_v20  ;;  %v1928_v46 = vsel %vm1896_vm7, %v1895_v12, %v3483_v61 }
 0x18b   : > { %2183 = vmatmul.mubr.f32.gmra.mxu0 %v1912_v18  ;;  %2263 = vmatmul.mubr.f32.gmra.mxu1 %v1928_v46 }
 0x1bb   : > { %v2109_v0 = vpop.f32.mrf.mxu0  ;;  %v4837_v21 = vpop.f32.mrf.mxu1 }
 0x1bc   : > { %2332 = vrot.lane.b32.xlu0 %v2109_v0, %s3569_s18  ;;  %v2564_v57 = vmul.f32 %v2109_v0, %v2109_v0  ;;  %v2495_v19 = vsel %vm2494_vm8, %v2109_v0, 0.0 }
 0x1bd   : > { %v2111_v29 = vpop.f32.mrf.mxu0  ;;  %v2191_v32 = vpop.f32.mrf.mxu1 }
 0x1be   : > { %v2596_v30 = vsel %vm2494_vm8, %v2564_v57, 0.0 }
 0x1c0   : > { %2364 = vrot.lane.b32.xlu0 %v4837_v21, %s3569_s18 }
 0x1c3   : > { %v2114_v62 = vpop.f32.mrf.mxu0  ;;  %v4842_v36 = vpop.f32.mrf.mxu1 }
 0x1c4   : > { %v2496_v26 = vsel %vm2494_vm8, %v2114_v62, 0.0  ;;  %v2565_v53 = vmul.f32 %v2114_v62, %v2114_v62  ;;  %2334 = vrot.lane.b32.xlu1 %v2114_v62, %s3569_s18 }
 0x1c5   : > { %v2497_v9 = vadd.f32 %v2496_v26, %v2495_v19  ;;  %v2116_v35 = vpop.f32.mrf.mxu0  ;;  %v2196_v22 = vpop.f32.mrf.mxu1 }
 0x1c6   : > { %v2597_v5 = vsel %vm2494_vm8, %v2565_v53, 0.0 }
 0x1c7   : > { %v2598_v43 = vadd.f32 %v2597_v5, %v2596_v30 }
 0x1c8   : > { %2366 = vrot.lane.b32.xlu1 %v4842_v36, %s3569_s18 }
 0x1cc   : > { %v2119_v60 = vpop.f32.mrf.mxu0  ;;  %v4851_v37 = vpop.f32.mrf.mxu1 }
 0x1cd   : > { %v2498_v7 = vsel %vm2494_vm8, %v2119_v60, 0.0  ;;  %v2566_v15 = vmul.f32 %v2119_v60, %v2119_v60  ;;  %2336 = vrot.lane.b32.xlu0 %v2119_v60, %s3569_s18 }
 0x1ce   : > { %v2499_v40 = vadd.f32 %v2498_v7, %v2497_v9  ;;  %v2121_v54 = vpop.f32.mrf.mxu0  ;;  %v2201_v27 = vpop.f32.mrf.mxu1 }
 0x1cf   : > { %v2599_v39 = vsel %vm2494_vm8, %v2566_v15, 0.0 }
 0x1d0   : > { %v2600_v52 = vadd.f32 %v2599_v39, %v2598_v43 }
 0x1d1   : > { %2368 = vrot.lane.b32.xlu0 %v4851_v37, %s3569_s18 }
 0x1d4   : > { %v2124_v10 = vpop.f32.mrf.mxu0  ;;  %v4858_v6 = vpop.f32.mrf.mxu1 }
 0x1d5   : > { %v2500_v50 = vsel %vm2494_vm8, %v2124_v10, 0.0  ;;  %v2567_v55 = vmul.f32 %v2124_v10, %v2124_v10  ;;  %2338 = vrot.lane.b32.xlu1 %v2124_v10, %s3569_s18  ;;  %v2268_v10 = vld [vmem:[%s4921_s9] sm:$0xff] }
 0x1d6   : > { %v2501_v48 = vadd.f32 %v2500_v50, %v2499_v40  ;;  %v2126_v42 = vpop.f32.mrf.mxu0  ;;  %v2206_v41 = vpop.f32.mrf.mxu1 }
 0x1d7   : > { %v2601_v14 = vsel %vm2494_vm8, %v2567_v55, 0.0  ;;  %v2284_v41 = vld [vmem:[%s4921_s9 + $0x80] sm:$0xff] }
 0x1d8   : > { %v2602_v1 = vadd.f32 %v2601_v14, %v2600_v52 }
 0x1d9   : > { %2370 = vrot.lane.b32.xlu1 %v4858_v6, %s3569_s18 }
 0x1df   : > { %v2129_v24 = vpop.f32.mrf.mxu0  ;;  %v4865_v59 = vpop.f32.mrf.mxu1 }
 0x1e0   : > { %v2502_v34 = vsel %vm2494_vm8, %v2129_v24, 0.0  ;;  %v2568_v58 = vmul.f32 %v2129_v24, %v2129_v24  ;;  %2340 = vrot.lane.b32.xlu0 %v2129_v24, %s3569_s18 }
 0x1e1   : > { %v2503_v2 = vadd.f32 %v2502_v34, %v2501_v48  ;;  %v2131_v23 = vpop.f32.mrf.mxu0  ;;  %v2211_v63 = vpop.f32.mrf.mxu1 }
 0x1e2   : > { %v2603_v47 = vsel %vm2494_vm8, %v2568_v58, 0.0  ;;  %v2269_v58 = vld [vmem:[%s4921_s9 + $0x8] sm:$0xff] }
 0x1e3   : > { %v2604_v4 = vadd.f32 %v2603_v47, %v2602_v1 }
 0x1e4   : > { %2372 = vrot.lane.b32.xlu0 %v4865_v59, %s3569_s18 }
 0x1e8   : > { %v2134_v44 = vpop.f32.mrf.mxu0  ;;  %v4872_v51 = vpop.f32.mrf.mxu1 }
 0x1e9   : > { %v2504_v8 = vsel %vm2494_vm8, %v2134_v44, 0.0  ;;  %v2569_v56 = vmul.f32 %v2134_v44, %v2134_v44  ;;  %2342 = vrot.lane.b32.xlu1 %v2134_v44, %s3569_s18 }
 0x1ea   : > { %v2505_v45 = vadd.f32 %v2504_v8, %v2503_v2  ;;  %v2136_v25 = vpop.f32.mrf.mxu0  ;;  %v2216_v16 = vpop.f32.mrf.mxu1 }
 0x1eb   : > { %v2605_v38 = vsel %vm2494_vm8, %v2569_v56, 0.0 }
 0x1ec   : > { %v2606_v11 = vadd.f32 %v2605_v38, %v2604_v4  ;;  %v2285_v4 = vld [vmem:[%s4921_s9 + $0x88] sm:$0xff] }
 0x1ed   : > { %2374 = vrot.lane.b32.xlu1 %v4872_v51, %s3569_s18 }
 0x1f3   : > { %v2139_v3 = vpop.f32.mrf.mxu0  ;;  %v4879_v28 = vpop.f32.mrf.mxu1 }
 0x1f4   : > { %v2506_v13 = vsel %vm2494_vm8, %v2139_v3, 0.0  ;;  %v2570_v17 = vmul.f32 %v2139_v3, %v2139_v3  ;;  %2344 = vrot.lane.b32.xlu0 %v2139_v3, %s3569_s18 }
 0x1f5   : > { %v2507_v49 = vadd.f32 %v2506_v13, %v2505_v45  ;;  %v2141_v33 = vpop.f32.mrf.mxu0  ;;  %v2221_v61 = vpop.f32.mrf.mxu1 }
 0x1f6   : > { %v2607_v20 = vsel %vm2494_vm8, %v2570_v17, 0.0 }
 0x1f7   : > { %v2608_v31 = vadd.f32 %v2607_v20, %v2606_v11  ;;  %v2270_v11 = vld [vmem:[%s4921_s9 + $0x10] sm:$0xff] }
 0x1f8   : > { %2376 = vrot.lane.b32.xlu0 %v4879_v28, %s3569_s18 }
 0x1fc   : > { %v2144_v12 = vpop.f32.mrf.mxu0  ;;  %v4886_v18 = vpop.f32.mrf.mxu1 }
 0x1fd   : > { %v2508_v46 = vsel %vm2494_vm8, %v2144_v12, 0.0  ;;  %v2571_v0 = vmul.f32 %v2144_v12, %v2144_v12  ;;  %2346 = vrot.lane.b32.xlu1 %v2144_v12, %s3569_s18 }
 0x1fe   : > { %v4890_v29 = vadd.f32 %v2508_v46, %v2507_v49  ;;  %v2146_v32 = vpop.f32.mrf.mxu0  ;;  %v2226_v57 = vpop.f32.mrf.mxu1  ;;  %v2286_v46 = vld [vmem:[%s4921_s9 + $0x90] sm:$0xff] }
 0x1ff   : > { %v2609_v62 = vsel %vm2494_vm8, %v2571_v0, 0.0 }
 0x200   : > { %v4893_v19 = vadd.f32 %v2609_v62, %v2608_v31 }
 0x201   : > { %2378 = vrot.lane.b32.xlu1 %v4886_v18, %s3569_s18 }
 0x207   : > { %v2149_v26 = vpop.f32.mrf.mxu0  ;;  %v4897_v53 = vpop.f32.mrf.mxu1 }
 0x208   : > { %2348 = vrot.lane.b32.xlu0 %v2149_v26, %s3569_s18  ;;  %v2572_v56 = vmul.f32 %v2149_v26, %v2149_v26  ;;  %v2510_v16 = vsel %vm2494_vm8, %v2149_v26, 0.0 }
 0x209   : > { %v2151_v9 = vpop.f32.mrf.mxu0  ;;  %v2231_v35 = vpop.f32.mrf.mxu1  ;;  %v2511_v33 = vadd.f32 %v2510_v16, %v4890_v29 }
 0x20a   : > { %v2611_v3 = vsel %vm2494_vm8, %v2572_v56, 0.0 }
 0x20b   : > { %v2612_v0 = vadd.f32 %v2611_v3, %v4893_v19 }
 0x20c   : > { %2380 = vrot.lane.b32.xlu0 %v4897_v53, %s3569_s18 }
 0x210   : > { %v2154_v22 = vpop.f32.mrf.mxu0  ;;  %v4902_v30 = vpop.f32.mrf.mxu1 }
 0x211   : > { %2350 = vrot.lane.b32.xlu1 %v2154_v22, %s3569_s18  ;;  %v2573_v38 = vmul.f32 %v2154_v22, %v2154_v22  ;;  %v2512_v13 = vsel %vm2494_vm8, %v2154_v22, 0.0 }
 0x212   : > { %v2156_v5 = vpop.f32.mrf.mxu0  ;;  %v2236_v43 = vpop.f32.mrf.mxu1  ;;  %v2513_v32 = vadd.f32 %v2512_v13, %v2511_v33 }
 0x213   : > { %v2613_v20 = vsel %vm2494_vm8, %v2573_v38, 0.0  ;;  %v2580_v38 = vmul.f32 %v4837_v21, %v4837_v21 }
 0x214   : > { %v2614_v35 = vadd.f32 %v2613_v20, %v2612_v0  ;;  %v2581_v20 = vmul.f32 %v4842_v36, %v4842_v36  ;;  %v2272_v0 = vld [vmem:[%s4921_s9 + $0x20] sm:$0xff] }
 0x215   : > { %2382 = vrot.lane.b32.xlu1 %v4902_v30, %s3569_s18 }
 0x21b   : > { %v2159_v60 = vpop.f32.mrf.mxu0  ;;  %v4907_v7 = vpop.f32.mrf.mxu1 }
 0x21c   : > { %2352 = vrot.lane.b32.xlu0 %v2159_v60, %s3569_s18  ;;  %v2574_v17 = vmul.f32 %v2159_v60, %v2159_v60  ;;  %v2514_v31 = vsel %vm2494_vm8, %v2159_v60, 0.0 }
 0x21d   : > { %v2161_v15 = vpop.f32.mrf.mxu0  ;;  %v2241_v40 = vpop.f32.mrf.mxu1  ;;  %v2515_v22 = vadd.f32 %v2514_v31, %v2513_v32  ;;  %v2627_v32 = vsel %vm2494_vm8, %v2580_v38, 0.0 }
 0x21e   : > { %v2615_v57 = vsel %vm2494_vm8, %v2574_v17, 0.0 }
 0x220   : > { %2384 = vrot.lane.b32.xlu0 %v4907_v7, %s3569_s18 }
 0x224   : > { %v2164_v54 = vpop.f32.mrf.mxu0  ;;  %v4912_v27 = vpop.f32.mrf.mxu1 }
 0x225   : > { %2354 = vrot.lane.b32.xlu1 %v2164_v54, %s3569_s18  ;;  %v2575_v12 = vmul.f32 %v2164_v54, %v2164_v54  ;;  %v2516_v62 = vsel %vm2494_vm8, %v2164_v54, 0.0  ;;  %v2271_v54 = vld [vmem:[%s4921_s9 + $0x18] sm:$0xff] }
 0x226   : > { %v2166_v39 = vpop.f32.mrf.mxu0  ;;  %v2246_v52 = vpop.f32.mrf.mxu1 }
 0x227   : > { %v2617_v60 = vsel %vm2494_vm8, %v2575_v12, 0.0  ;;  %v2616_v39 = vadd.f32 %v2615_v57, %v2614_v35  ;;  %v2517_v52 = vadd.f32 %v2516_v62, %v2515_v22  ;;  %v2528_v57 = vsel %vm2494_vm8, %v4842_v36, 0.0 }
 0x228   : > { %v2582_v62 = vmul.f32 %v4851_v37, %v4851_v37  ;;  %v2530_v35 = vsel %vm2494_vm8, %v4851_v37, 0.0  ;;  %v2583_v22 = vmul.f32 %v4858_v6, %v4858_v6  ;;  %v2584_v37 = vmul.f32 %v4865_v59, %v4865_v59 }
 0x229   : > { %2386 = vrot.lane.b32.xlu1 %v4912_v27, %s3569_s18 }
 0x22e   : > { %v2333_v50 = vpop.permute.xlu0 %2332 }
 0x22f   : > { %v2429_v55 = vsel %vm2428_vm9, %v2268_v10, %v2333_v50  ;;  %v2169_v48 = vpop.f32.mrf.mxu0  ;;  %v4931_v42 = vpop.f32.mrf.mxu1 }
 0x230   : > { %2462 = vst.msk [vmem:[%s4928_s13] sm:$0xff] %vm2461_vm10, %v2429_v55  ;;  %2356 = vrot.lane.b32.xlu0 %v2169_v48, %s3569_s18  ;;  %v2576_v29 = vmul.f32 %v2169_v48, %v2169_v48  ;;  %v2518_v19 = vsel %vm2494_vm8, %v2169_v48, 0.0 }
 0x231   : > { %v2171_v14 = vpop.f32.mrf.mxu0  ;;  %v2251_v1 = vpop.f32.mrf.mxu1 }
 0x232   : > { %v2365_v24 = vpop.permute.xlu0 %2364  ;;  %v2619_v50 = vsel %vm2494_vm8, %v2576_v29, 0.0  ;;  %v2618_v1 = vadd.f32 %v2617_v60, %v2616_v39 }
 0x233   : > { %v2445_v34 = vsel %vm2428_vm9, %v2284_v41, %v2365_v24  ;;  %v2519_v24 = vadd.f32 %v2518_v19, %v2517_v52  ;;  %v2288_v19 = vld [vmem:[%s4921_s9 + $0xa0] sm:$0xff] }
 0x234   : > { %2478 = vst.msk [vmem:[%s4928_s13 + $0x80] sm:$0xff] %vm2461_vm10, %v2445_v34  ;;  %2388 = vrot.lane.b32.xlu0 %v4931_v42, %s3569_s18 }
 0x236   : > { %v2335_v2 = vpop.permute.xlu1 %2334 }
 0x237   : > { %v2430_v23 = vsel %vm2428_vm9, %v2269_v58, %v2335_v2  ;;  %v2287_v2 = vld [vmem:[%s4921_s9 + $0x98] sm:$0xff] }
 0x238   : > { %2463 = vst.msk [vmem:[%s4928_s13 + $0x8] sm:$0xff] %vm2461_vm10, %v2430_v23  ;;  %v2174_v63 = vpop.f32.mrf.mxu0  ;;  %v4946_v47 = vpop.f32.mrf.mxu1  ;;  %v2620_v23 = vadd.f32 %v2619_v50, %v2618_v1  ;;  %v2534_v50 = vsel %vm2494_vm8, %v4865_v59, 0.0  ;;  %v2273_v59 = vld [vmem:[%s4921_s9 + $0x28] sm:$0xff] }
 0x239   : > { %2358 = vrot.lane.b32.xlu1 %v2174_v63, %s3569_s18  ;;  %v2577_v15 = vmul.f32 %v2174_v63, %v2174_v63  ;;  %v2520_v55 = vsel %vm2494_vm8, %v2174_v63, 0.0 }
 0x23a   : > { %v2176_v44 = vpop.f32.mrf.mxu0  ;;  %v2256_v8 = vpop.f32.mrf.mxu1 }
 0x23b   : > { %v2367_v45 = vpop.permute.xlu1 %2366  ;;  %v2621_v34 = vsel %vm2494_vm8, %v2577_v15, 0.0  ;;  %v2631_v15 = vsel %vm2494_vm8, %v2582_v62, 0.0 }
 0x23c   : > { %v2446_v25 = vsel %vm2428_vm9, %v2285_v4, %v2367_v45  ;;  %v2521_v4 = vadd.f32 %v2520_v55, %v2519_v24  ;;  %v2622_v56 = vadd.f32 %v2621_v34, %v2620_v23  ;;  %v2585_v55 = vmul.f32 %v4872_v51, %v4872_v51 }
 0x23d   : > { %2479 = vst.msk [vmem:[%s4928_s13 + $0x88] sm:$0xff] %vm2461_vm10, %v2446_v25  ;;  %2390 = vrot.lane.b32.xlu1 %v4946_v47, %s3569_s18  ;;  %v2536_v24 = vsel %vm2494_vm8, %v4872_v51, 0.0  ;;  %v2538_v23 = vsel %vm2494_vm8, %v4879_v28, 0.0 }
 0x23f   : > { %v2337_v49 = vpop.permute.xlu0 %2336 }
 0x240   : > { %v2431_v61 = vsel %vm2428_vm9, %v2270_v11, %v2337_v49 }
 0x241   : > { %2464 = vst.msk [vmem:[%s4928_s13 + $0x10] sm:$0xff] %vm2461_vm10, %v2431_v61  ;;  %v2526_v61 = vsel %vm2494_vm8, %v4837_v21, 0.0 }
 0x243   : > { %v2369_v26 = vpop.permute.xlu0 %2368  ;;  %v2179_v9 = vpop.f32.mrf.mxu0 }
 0x244   : > { %v2447_v5 = vsel %vm2428_vm9, %v2286_v46, %v2369_v26  ;;  %v4970_v43 = vpop.f32.mrf.mxu1  ;;  %2360 = vrot.lane.b32.xlu0 %v2179_v9, %s3569_s18  ;;  %v2578_v41 = vmul.f32 %v2179_v9, %v2179_v9  ;;  %v2522_v58 = vsel %vm2494_vm8, %v2179_v9, 0.0  ;;  %v2629_v9 = vsel %vm2494_vm8, %v2581_v20, 0.0 }
 0x245   : > { %2480 = vst.msk [vmem:[%s4928_s13 + $0x90] sm:$0xff] %vm2461_vm10, %v2447_v5  ;;  %v2181_v40 = vpop.f32.mrf.mxu0  ;;  %v2523_v45 = vadd.f32 %v2522_v58, %v2521_v4  ;;  %v2587_v4 = vmul.f32 %v4886_v18, %v4886_v18 }
 0x246   : > { %v2261_v10 = vpop.f32.mrf.mxu1  ;;  %v2623_v63 = vsel %vm2494_vm8, %v2578_v41, 0.0  ;;  %v2532_v40 = vsel %vm2494_vm8, %v4858_v6, 0.0  ;;  %v2635_v6 = vsel %vm2494_vm8, %v2584_v37, 0.0 }
 0x247   : > { %v2339_v14 = vpop.permute.xlu1 %2338  ;;  %v2624_v17 = vadd.f32 %v2623_v63, %v2622_v56  ;;  %v2633_v10 = vsel %vm2494_vm8, %v2583_v22, 0.0 }
 0x248   : > { %v2432_v48 = vsel %vm2428_vm9, %v2271_v54, %v2339_v14  ;;  %2392 = vrot.lane.b32.xlu0 %v4970_v43, %s3569_s18 }
 0x249   : > { %2465 = vst.msk [vmem:[%s4928_s13 + $0x18] sm:$0xff] %vm2461_vm10, %v2432_v48  ;;  %v2586_v48 = vmul.f32 %v4879_v28, %v4879_v28  ;;  %v2289_v28 = vld [vmem:[%s4921_s9 + $0xa8] sm:$0xff] }
 0x24b   : > { %v4989_v44 = vpop.f32.mrf.mxu1  ;;  %v2371_v8 = vpop.permute.xlu1 %2370 }
 0x24c   : > { %v2448_v25 = vsel %vm2428_vm9, %v2287_v2, %v2371_v8  ;;  %v2184_v16 = vpop.f32.mrf.mxu0  ;;  %v2637_v2 = vsel %vm2494_vm8, %v2585_v55, 0.0  ;;  %v2554_v55 = vsel %vm2494_vm8, %v4970_v43, 0.0 }
 0x24d   : > { %2481 = vst.msk [vmem:[%s4928_s13 + $0x98] sm:$0xff] %vm2461_vm10, %v2448_v25  ;;  %v2524_v11 = vsel %vm2494_vm8, %v2184_v16, 0.0  ;;  %v2579_v3 = vmul.f32 %v2184_v16, %v2184_v16  ;;  %2362 = vrot.lane.b32.xlu1 %v2184_v16, %s3569_s18  ;;  %v2266_v13 = vpop.f32.mrf.mxu1  ;;  %v2540_v25 = vsel %vm2494_vm8, %v4886_v18, 0.0  ;;  %v2588_v16 = vmul.f32 %v4897_v53, %v4897_v53 }
 0x24e   : > { %v2525_v49 = vadd.f32 %v2524_v11, %v2523_v45  ;;  %v2186_v33 = vpop.f32.mrf.mxu0  ;;  %v2639_v45 = vsel %vm2494_vm8, %v2586_v48, 0.0  ;;  %v2542_v13 = vsel %vm2494_vm8, %v4897_v53, 0.0  ;;  %v2275_v48 = vld [vmem:[%s4921_s9 + $0x38] sm:$0xff] }
 0x24f   : > { %v2625_v31 = vsel %vm2494_vm8, %v2579_v3, 0.0  ;;  %v2641_v3 = vsel %vm2494_vm8, %v2587_v4, 0.0  ;;  %v2643_v20 = vsel %vm2494_vm8, %v2588_v16, 0.0 }
 0x250   : > { %v2527_v12 = vadd.f32 %v2526_v61, %v2525_v49  ;;  %v2626_v46 = vadd.f32 %v2625_v31, %v2624_v17  ;;  %v2589_v17 = vmul.f32 %v4902_v30, %v4902_v30  ;;  %v2544_v31 = vsel %vm2494_vm8, %v4902_v30, 0.0  ;;  %v2274_v30 = vld [vmem:[%s4921_s9 + $0x30] sm:$0xff] }
 0x251   : > { %2394 = vrot.lane.b32.xlu1 %v4989_v44, %s3569_s18  ;;  %s3499_s18 = scalar_lea.vmem %s5125_s17, 128 }
 0x252   : > { %v2529_v21 = vadd.f32 %v2528_v57, %v2527_v12  ;;  %v2628_v29 = vadd.f32 %v2627_v32, %v2626_v46  ;;  %v2341_v26 = vpop.permute.xlu0 %2340  ;;  %v2590_v12 = vmul.f32 %v4907_v7, %v4907_v7  ;;  %v2546_v32 = vsel %vm2494_vm8, %v4907_v7, 0.0  ;;  %p3500_p11 = scmp.ne.s32.totalorder %s5125_s17, %s3499_s18  ;;  %p3507_p1 = scmp.lt.s32.totalorder %s3505_s11, %s3499_s18 }
 0x253   : > { %v2433_v5 = vsel %vm2428_vm9, %v2272_v0, %v2341_v26  ;;  %v2645_v0 = vsel %vm2494_vm8, %v2589_v17, 0.0  ;;  %v2591_v57 = vmul.f32 %v4912_v27, %v4912_v27  ;;  %v2548_v26 = vsel %vm2494_vm8, %v4912_v27, 0.0  ;;  %v2290_v27 = vld [vmem:[%s4921_s9 + $0xb0] sm:$0xff] }
 0x254   : > { %v2531_v36 = vadd.f32 %v2530_v35, %v2529_v21  ;;  %v2630_v60 = vadd.f32 %v2629_v9, %v2628_v29  ;;  %2466 = vst.msk [vmem:[%s4928_s13 + $0x20] sm:$0xff] %vm2461_vm10, %v2433_v5  ;;  %v2647_v29 = vsel %vm2494_vm8, %v2590_v12, 0.0  ;;  %v2592_v9 = vmul.f32 %v4931_v42, %v4931_v42  ;;  %p3501_p12 = pnand %p3500_p11, %p3644_p5  ;;  %p3508_p2 = por %p3507_p1, %p3506_p0 }
 0x255   : > { %v2649_v7 = vsel %vm2494_vm8, %v2591_v57, 0.0 }
 0x256   : > { %v2533_v54 = vadd.f32 %v2532_v40, %v2531_v36  ;;  %v2632_v39 = vadd.f32 %v2631_v15, %v2630_v60  ;;  %v2373_v52 = vpop.permute.xlu0 %2372  ;;  %v2550_v36 = vsel %vm2494_vm8, %v4931_v42, 0.0  ;;  %v2593_v60 = vmul.f32 %v4946_v47, %v4946_v47  ;;  %p3502_p13 = pneg %p3501_p12 }
 0x257   : > { %v2449_v41 = vsel %vm2428_vm9, %v2288_v19, %v2373_v52  ;;  %v2651_v37 = vsel %vm2494_vm8, %v2592_v9, 0.0  ;;  %v2594_v42 = vmul.f32 %v4970_v43, %v4970_v43 }
 0x258   : > { %v2535_v14 = vadd.f32 %v2534_v50, %v2533_v54  ;;  %v2634_v1 = vadd.f32 %v2633_v10, %v2632_v39  ;;  %2482 = vst.msk [vmem:[%s4928_s13 + $0xa0] sm:$0xff] %vm2461_vm10, %v2449_v41  ;;  %v2552_v54 = vsel %vm2494_vm8, %v4946_v47, 0.0  ;;  %v2653_v50 = vsel %vm2494_vm8, %v2593_v60, 0.0  ;;  %p3509_p3 = pnand %p3508_p2, %p3502_p13 }
 0x259   : > { %v2595_v41 = vmul.f32 %v4989_v44, %v4989_v44 }
 0x25a   : > { %v2537_v34 = vadd.f32 %v2536_v24, %v2535_v14  ;;  %v2636_v58 = vadd.f32 %v2635_v6, %v2634_v1  ;;  %v2655_v6 = vsel %vm2494_vm8, %v2594_v42, 0.0  ;;  %v2556_v24 = vsel %vm2494_vm8, %v4989_v44, 0.0 }
 0x25b   : > { %v2343_v63 = vpop.permute.xlu1 %2342 }
 0x25c   : > { %v2539_v8 = vadd.f32 %v2538_v23, %v2537_v34  ;;  %v2638_v56 = vadd.f32 %v2637_v2, %v2636_v58  ;;  %v2434_v51 = vsel %vm2428_vm9, %v2273_v59, %v2343_v63  ;;  %v2657_v34 = vsel %vm2494_vm8, %v2595_v41, 0.0  ;;  %v2291_v63 = vld [vmem:[%s4921_s9 + $0xb8] sm:$0xff] }
 0x25d   : > { %2467 = vst.msk [vmem:[%s4928_s13 + $0x28] sm:$0xff] %vm2461_vm10, %v2434_v51 }
 0x25e   : > { %v2541_v38 = vadd.f32 %v2540_v25, %v2539_v8  ;;  %v2640_v11 = vadd.f32 %v2639_v45, %v2638_v56 }
 0x25f   : > { %v2375_v49 = vpop.permute.xlu1 %2374 }
 0x260   : > { %v2543_v18 = vadd.f32 %v2542_v13, %v2541_v38  ;;  %v2642_v33 = vadd.f32 %v2641_v3, %v2640_v11  ;;  %v2450_v61 = vsel %vm2428_vm9, %v2289_v28, %v2375_v49  ;;  %v2276_v38 = vld [vmem:[%s4921_s9 + $0x40] sm:$0xff] }
 0x261   : > { %2483 = vst.msk [vmem:[%s4928_s13 + $0xa8] sm:$0xff] %vm2461_vm10, %v2450_v61 }
 0x262   : > { %v2545_v53 = vadd.f32 %v2544_v31, %v2543_v18  ;;  %v2644_v46 = vadd.f32 %v2643_v20, %v2642_v33  ;;  %v2292_v18 = vld [vmem:[%s4921_s9 + $0xc0] sm:$0xff] }
 0x264   : > { %v2547_v62 = vadd.f32 %v2546_v32, %v2545_v53  ;;  %v2646_v21 = vadd.f32 %v2645_v0, %v2644_v46  ;;  %v2277_v46 = vld [vmem:[%s4921_s9 + $0x48] sm:$0xff] }
 0x266   : > { %v2345_v35 = vpop.permute.xlu0 %2344  ;;  %v2549_v22 = vadd.f32 %v2548_v26, %v2547_v62  ;;  %v2648_v5 = vadd.f32 %v2647_v29, %v2646_v21 }
 0x267   : > { %v2435_v19 = vsel %vm2428_vm9, %v2274_v30, %v2345_v35 }
 0x268   : > { %2468 = vst.msk [vmem:[%s4928_s13 + $0x30] sm:$0xff] %vm2461_vm10, %v2435_v19  ;;  %v2551_v15 = vadd.f32 %v2550_v36, %v2549_v22  ;;  %v2650_v40 = vadd.f32 %v2649_v7, %v2648_v5 }
 0x26a   : > { %v2377_v39 = vpop.permute.xlu0 %2376  ;;  %v2553_v52 = vadd.f32 %v2552_v54, %v2551_v15  ;;  %v2652_v10 = vadd.f32 %v2651_v37, %v2650_v40 }
 0x26b   : > { %v2451_v14 = vsel %vm2428_vm9, %v2290_v27, %v2377_v39 }
 0x26c   : > { %2484 = vst.msk [vmem:[%s4928_s13 + $0xb0] sm:$0xff] %vm2461_vm10, %v2451_v14  ;;  %v2555_v47 = vadd.f32 %v2554_v55, %v2553_v52  ;;  %v2654_v1 = vadd.f32 %v2653_v50, %v2652_v10 }
 0x26e   : > { %v2557_v59 = vadd.f32 %v2556_v24, %v2555_v47  ;;  %v2656_v43 = vadd.f32 %v2655_v6, %v2654_v1 }
 0x26f   : > { %v2347_v58 = vpop.permute.xlu1 %2346 }
 0x270   : > { %v2436_v2 = vsel %vm2428_vm9, %v2275_v48, %v2347_v58  ;;  %v2558_v23 = vrot.slane %v2557_v59, 4  ;;  %v2658_v4 = vadd.f32 %v2657_v34, %v2656_v43 }
 0x271   : > { %2469 = vst.msk [vmem:[%s4928_s13 + $0x38] sm:$0xff] %vm2461_vm10, %v2436_v2 }
 0x272   : > { %v2559_v8 = vadd.f32 %v2558_v23, %v2557_v59  ;;  %v2659_v56 = vrot.slane %v2658_v4, 4 }
 0x273   : > { %v2379_v51 = vpop.permute.xlu1 %2378 }
 0x274   : > { %v2452_v44 = vsel %vm2428_vm9, %v2291_v63, %v2379_v51  ;;  %v2560_v45 = vrot.slane %v2559_v8, 2  ;;  %v2660_v25 = vadd.f32 %v2659_v56, %v2658_v4 }
 0x275   : > { %2485 = vst.msk [vmem:[%s4928_s13 + $0xb8] sm:$0xff] %vm2461_vm10, %v2452_v44 }
 0x276   : > { %v2561_v16 = vadd.f32 %v2560_v45, %v2559_v8  ;;  %v2661_v28 = vrot.slane %v2660_v25, 2 }
 0x278   : > { %v2562_v11 = vrot.slane %v2561_v16, 1  ;;  %v2662_v3 = vadd.f32 %v2661_v28, %v2660_v25 }
 0x27a   : > { %v2349_v13 = vpop.permute.xlu0 %2348  ;;  %v2663_v17 = vrot.slane %v2662_v3, 1  ;;  %v2563_v33 = vadd.f32 %v2562_v11, %v2561_v16 }
 0x27b   : > { %v2437_v49 = vsel %vm2428_vm9, %v2276_v38, %v2349_v13 }
 0x27c   : > { %2470 = vst.msk [vmem:[%s4928_s13 + $0x40] sm:$0xff] %vm2461_vm10, %v2437_v49  ;;  %v2664_v61 = vadd.f32 %v2663_v17, %v2662_v3 }
 0x27e   : > { %v2381_v20 = vpop.permute.xlu0 %2380  ;;  %v2666_v31 = vsel %vm2665_vm11, %v2563_v33, %v2664_v61 }
 0x27f   : > { %v2453_v12 = vsel %vm2428_vm9, %v2292_v18, %v2381_v20  ;;  %v2668_v53 = vsel %vm2667_vm12, %v2666_v31, 0.0 }
 0x280   : > { %2486 = vst.msk [vmem:[%s4928_s13 + $0xc0] sm:$0xff] %vm2461_vm10, %v2453_v12 }
 0x281   : > { %2669 = vst.msk [vmem:[%s267_s16] sm:$0xff] %vm2494_vm8, %v2668_v53 }
 0x282   : > { %3512 = shalt.err (!%p3509_p3)
}
 0x283   : > { %s3513_s12 = scalar_lea.hbm %s5123_s19, 128  ;;  %s3517_s14 = scalar_lea.hbm %s5232_s6, 256 }
 0x284   : > { %p3514_p4 = scmp.ne.s32.totalorder %s5123_s19, %s3513_s12  ;;  %p3518_p9 = scmp.lt.s32.totalorder %s5123_s19, %s5232_s6 }
 0x285   : > { %p3519_p10 = scmp.lt.s32.totalorder %s3517_s14, %s3513_s12 }
 0x286   : > { %p3515_p7 = pnand %p3514_p4, %p3644_p5 }
 0x287   : > { %p3520_p11 = por %p3519_p10, %p3518_p9 }
 0x288   : > { %p3516_p8 = pneg %p3515_p7 }
 0x28a   : > { %p3521_p12 = pnand %p3520_p11, %p3516_p8 }
 0x28c   : > { %3524 = shalt.err (!%p3521_p12)
}
 0x28d   : > { %2876 = dma.vmem_to_hbm [thread:$0]  (%p3644_p5), %s5125_s17, 128, %s5123_s19, %s2676_s25   ;;  %v2351_v0 = vpop.permute.xlu1 %2350  ;;  %v2293_v57 = vld [vmem:[%s4921_s9 + $0xc8] sm:$0xff]  ;;  %v2278_v30 = vld [vmem:[%s4921_s9 + $0x50] sm:$0xff]  ;;  %v2279_v5 = vld [vmem:[%s4921_s9 + $0x58] sm:$0xff] }
 0x28e   : > { %v2438_v32 = vsel %vm2428_vm9, %v2277_v46, %v2351_v0  ;;  %v2353_v29 = vpop.permute.xlu0 %2352  ;;  %v2294_v9 = vld [vmem:[%s4921_s9 + $0xd0] sm:$0xff]  ;;  %v2295_v60 = vld [vmem:[%s4921_s9 + $0xd8] sm:$0xff]  ;;  %v2280_v15 = vld [vmem:[%s4921_s9 + $0x60] sm:$0xff] }
 0x28f   : > { %2471 = vst.msk [vmem:[%s4928_s13 + $0x48] sm:$0xff] %vm2461_vm10, %v2438_v32  ;;  %v2439_v26 = vsel %vm2428_vm9, %v2278_v30, %v2353_v29  ;;  %v2296_v54 = vld [vmem:[%s4921_s9 + $0xe0] sm:$0xff]  ;;  %v2281_v52 = vld [vmem:[%s4921_s9 + $0x68] sm:$0xff]  ;;  %v2282_v47 = vld [vmem:[%s4921_s9 + $0x70] sm:$0xff] }
 0x290   : > { %2472 = vst.msk [vmem:[%s4928_s13 + $0x50] sm:$0xff] %vm2461_vm10, %v2439_v26  ;;  %v2297_v55 = vld [vmem:[%s4921_s9 + $0xe8] sm:$0xff]  ;;  %v2298_v24 = vld [vmem:[%s4921_s9 + $0xf0] sm:$0xff]  ;;  %v2283_v43 = vld [vmem:[%s4921_s9 + $0x78] sm:$0xff] }
 0x291   : > { %v2383_v62 = vpop.permute.xlu1 %2382  ;;  %v2299_v2 = vld [vmem:[%s4921_s9 + $0xf8] sm:$0xff] }
 0x292   : > { %v2454_v21 = vsel %vm2428_vm9, %v2293_v57, %v2383_v62  ;;  %v2385_v35 = vpop.permute.xlu0 %2384 }
 0x293   : > { %2487 = vst.msk [vmem:[%s4928_s13 + $0xc8] sm:$0xff] %vm2461_vm10, %v2454_v21  ;;  %v2455_v22 = vsel %vm2428_vm9, %v2294_v9, %v2385_v35 }
 0x294   : > { %2488 = vst.msk [vmem:[%s4928_s13 + $0xd0] sm:$0xff] %vm2461_vm10, %v2455_v22 }
 0x297   : > { %v2355_v7 = vpop.permute.xlu1 %2354 }
 0x298   : > { %v2440_v36 = vsel %vm2428_vm9, %v2279_v5, %v2355_v7 }
 0x299   : > { %2473 = vst.msk [vmem:[%s4928_s13 + $0x58] sm:$0xff] %vm2461_vm10, %v2440_v36 }
 0x29b   : > { %v2387_v19 = vpop.permute.xlu1 %2386 }
 0x29c   : > { %v2456_v27 = vsel %vm2428_vm9, %v2295_v60, %v2387_v19 }
 0x29d   : > { %2489 = vst.msk [vmem:[%s4928_s13 + $0xd8] sm:$0xff] %vm2461_vm10, %v2456_v27 }
 0x2a2   : > { %v2357_v40 = vpop.permute.xlu0 %2356 }
 0x2a3   : > { %v2441_v37 = vsel %vm2428_vm9, %v2280_v15, %v2357_v40 }
 0x2a4   : > { %2474 = vst.msk [vmem:[%s4928_s13 + $0x60] sm:$0xff] %vm2461_vm10, %v2441_v37 }
 0x2a6   : > { %v2389_v42 = vpop.permute.xlu0 %2388 }
 0x2a7   : > { %v2457_v39 = vsel %vm2428_vm9, %v2296_v54, %v2389_v42 }
 0x2a8   : > { %2490 = vst.msk [vmem:[%s4928_s13 + $0xe0] sm:$0xff] %vm2461_vm10, %v2457_v39 }
 0x2ab   : > { %v2359_v10 = vpop.permute.xlu1 %2358 }
 0x2ac   : > { %v2442_v50 = vsel %vm2428_vm9, %v2281_v52, %v2359_v10 }
 0x2ad   : > { %2475 = vst.msk [vmem:[%s4928_s13 + $0x68] sm:$0xff] %vm2461_vm10, %v2442_v50 }
 0x2af   : > { %v2391_v41 = vpop.permute.xlu1 %2390 }
 0x2b0   : > { %v2458_v14 = vsel %vm2428_vm9, %v2297_v55, %v2391_v41 }
 0x2b1   : > { %2491 = vst.msk [vmem:[%s4928_s13 + $0xe8] sm:$0xff] %vm2461_vm10, %v2458_v14 }
 0x2b6   : > { %v2361_v1 = vpop.permute.xlu0 %2360 }
 0x2b7   : > { %v2443_v6 = vsel %vm2428_vm9, %v2282_v47, %v2361_v1 }
 0x2b8   : > { %2476 = vst.msk [vmem:[%s4928_s13 + $0x70] sm:$0xff] %vm2461_vm10, %v2443_v6 }
 0x2ba   : > { %v2393_v48 = vpop.permute.xlu0 %2392 }
 0x2bb   : > { %v2459_v59 = vsel %vm2428_vm9, %v2298_v24, %v2393_v48 }
 0x2bc   : > { %2492 = vst.msk [vmem:[%s4928_s13 + $0xf0] sm:$0xff] %vm2461_vm10, %v2459_v59 }
 0x2bf   : > { %v2363_v34 = vpop.permute.xlu1 %2362 }
 0x2c0   : > { %v2444_v58 = vsel %vm2428_vm9, %v2283_v43, %v2363_v34 }
 0x2c1   : > { %2477 = vst.msk [vmem:[%s4928_s13 + $0x78] sm:$0xff] %vm2461_vm10, %v2444_v58 }
 0x2c3   : > { %v2395_v23 = vpop.permute.xlu1 %2394 }
 0x2c4   : > { %v2460_v4 = vsel %vm2428_vm9, %v2299_v2, %v2395_v23 }
 0x2c5   : > { %2493 = vst.msk [vmem:[%s4928_s13 + $0xf8] sm:$0xff] %vm2461_vm10, %v2460_v4 }
 0x2c6 PF: > { %p2882_p5 = scmp.ge.s32.totalorder %s3559_s24, 2  ;;  %s2712_s7 = sand.u32 1, %s3547_s21  }
 0x2c7   : > { %s2713_s17 = scalar_lea.sflag [#allocation4], %s2712_s7 }
 0x2c8   : > { %p2879_p13 = pnand %p2882_p5, %p3648_p6 }
 0x2ca   : > { %p2880_p0 = pneg %p2879_p13 }
 0x2cc   : > { %3542 = dma.done.wait (%p2880_p0), %s2713_s17, 128  }
 0x2cd   : > { %3544 = vsyncadd (%p2880_p0), %s2713_s17, 4294967168  ;;  %p17_p1 = scmp.ge.s32.totalorder %s3631_s27, 4   ;;  %s5283_s21 = smov %s3551_s22 }
 0x2ce   : > { %s5284_s22 = smov %s3555_s23  ;;  %s5285_s23 = smov %s3642_s30 }
 0x2cf   : > { %s5286_s24 = smov %s3631_s27  ;;  %19 = sbr.rel (!%p17_p1) target bundleno = 3 (0x3), region = 92 }
 0x2d4   :  { %2718 = vsyncpa [#allocation4], 1 }
 0x2d5   :  { %2720 = vsyncpa [#allocation4 + $0x1], 1 }

</bundles_post_ra>
